<compile_context>
chip_gen: v5e
topology: v5e:2x2
jax: 0.10.0
libtpu: 0.0.40
codegen_flags: <defaults>
</compile_context>

<pallas_src>
import jax
import jax.numpy as jnp
from jax.experimental import pallas as pl
from jax.experimental.pallas import tpu as pltpu

# --- model hyper-parameters (FiLMNet defaults) ---
COND_DIM = 14
COORD_DIM = 3
OUTPUT_DIM = 3
HIDDEN_DIM = 256          # hidden_dim of the modulated MLP (module default)
FC_HIDDEN = 256           # FiLMModulation's internal fc width (hard-coded 256 in torch)
NUM_LAYERS = 4            # => num_layers - 1 = 3 modulated hidden layers
EXTRA_LAYERS = 2
NUM_MOD_PARAMS = 2 * HIDDEN_DIM * (NUM_LAYERS - 1)   # gamma + beta
CHUNK = HIDDEN_DIM * (NUM_LAYERS - 1)                # split point gamma|beta

IN_PAD = 128              # packed input lanes: [coords(3) | cond(14) | zeros]
OUT_PAD = 128             # lane width of the padded output projection (sliced in-kernel)


def _round_up(x, m):
    return ((x + m - 1) // m) * m


def _tile_for_batch(batch):
    """Adaptive batch tile: >=2 grid steps per v7x core at medium batch, low pad waste."""
    if batch > 2048:
        tb = 512
    elif batch >= 256:
        tb = 256
    else:
        tb = _round_up(max(batch, 16), 16)   # bf16 activations: 16-row sublane packing
    return tb, _round_up(batch, tb)


def _film_kernel(xin_ref,
                 w01_ref, b01_ref,                      # fused [FiLM fc1 | mod layer 0]
                 fw2_ref, fb2_ref, fw3_ref, fb3_ref,    # FiLM fc2, fc3
                 mw1_ref, mb1_ref, mw2_ref, mb2_ref,    # modulated layers 1,2
                 ew0_ref, eb0_ref, ew1_ref, eb1_ref,    # extra layers
                 ow_ref, ob_ref,                        # output projection (lane-padded)
                 out_ref):
    f32 = jnp.float32
    bf16 = jnp.bfloat16

    xin = xin_ref[...]                        # (TB, 128) bf16, packed [coords | cond | 0]

    # ---- fused first layer: one (TB,128)@(128,512) MXU pass, split at lane 256 --------
    h0 = jnp.dot(xin, w01_ref[...], preferred_element_type=f32) + b01_ref[...]
    h0 = jnp.maximum(h0, 0.0)                 # both branches apply ReLU after layer 1
    h_f = h0[:, :FC_HIDDEN]                   # FiLM-MLP branch (post-ReLU)
    x = h0[:, FC_HIDDEN:]                     # modulated layer-0 activation (pre-FiLM)

    # ---- FiLM conditioning MLP -> gamma | beta ----------------------------------------
    h = jnp.dot(h_f.astype(bf16), fw2_ref[...], preferred_element_type=f32) + fb2_ref[...]
    h = jnp.maximum(h, 0.0)
    mod = jnp.dot(h.astype(bf16), fw3_ref[...], preferred_element_type=f32) + fb3_ref[...]
    gamma = mod[:, :CHUNK]
    beta = mod[:, CHUNK:]

    # ---- ModulatedMLP ------------------------------------------------------------------
    # f32 elementwise epilogue kept on all generations (v5e has no bf16 VPU path).
    x = gamma[:, :HIDDEN_DIM] * x + beta[:, :HIDDEN_DIM]        # FiLM for layer 0
    x_in = x.astype(bf16)
    for i, (w_ref, b_ref) in enumerate(((mw1_ref, mb1_ref), (mw2_ref, mb2_ref)), start=1):
        x = jnp.dot(x_in, w_ref[...], preferred_element_type=f32) + b_ref[...]
        x = jnp.maximum(x, 0.0)                                  # ReLU
        g_i = gamma[:, i * HIDDEN_DIM:(i + 1) * HIDDEN_DIM]
        b_i = beta[:, i * HIDDEN_DIM:(i + 1) * HIDDEN_DIM]
        x = g_i * x + b_i                                        # FiLM
        x_in = x.astype(bf16)

    for w_ref, b_ref in ((ew0_ref, eb0_ref), (ew1_ref, eb1_ref)):
        x = jnp.dot(x_in, w_ref[...], preferred_element_type=f32) + b_ref[...]
        x = jnp.maximum(x, 0.0)
        x_in = x.astype(bf16)

    out = jnp.dot(x_in, ow_ref[...], preferred_element_type=f32) + ob_ref[...]
    out_ref[...] = out[:, :OUTPUT_DIM].astype(out_ref.dtype)     # narrow (TB, 3) store


def prepare_params(params):
    """One-time weight prep (hoisted out of the per-forward path): fuse the two
    first-layer weights that share the packed-input operand, zero-pad to the 128-lane
    input layout, pad the output projection, and cast matmul weights to bf16
    (biases stay f32)."""
    (fw1, fb1, fw2, fb2, fw3, fb3,
     mw0, mb0, mw1, mb1, mw2, mb2,
     ew0, eb0, ew1, eb1, ow, ob) = params
    f32, bf16 = jnp.float32, jnp.bfloat16

    # fused first layer: cols [0:256] = FiLM fc1 (reads cond lanes 3:17),
    #                    cols [256:]  = modulated layer 0 (reads coord lanes 0:3)
    w01 = jnp.zeros((IN_PAD, FC_HIDDEN + HIDDEN_DIM), f32)
    w01 = w01.at[COORD_DIM:COORD_DIM + COND_DIM, :FC_HIDDEN].set(fw1)
    w01 = w01.at[:COORD_DIM, FC_HIDDEN:].set(mw0)
    b01 = jnp.concatenate([fb1, mb0], axis=1)

    ow_p = jnp.zeros((HIDDEN_DIM, OUT_PAD), f32).at[:, :OUTPUT_DIM].set(ow)
    ob_p = jnp.zeros((1, OUT_PAD), f32).at[:, :OUTPUT_DIM].set(ob)

    return (w01.astype(bf16), b01,
            fw2.astype(bf16), fb2, fw3.astype(bf16), fb3,
            mw1.astype(bf16), mb1, mw2.astype(bf16), mb2,
            ew0.astype(bf16), eb0, ew1.astype(bf16), eb1,
            ow_p.astype(bf16), ob_p)


@jax.jit
def film_net_forward(coords, cond, prepped):
    """coords: (B, COORD_DIM), cond: (B, COND_DIM), prepped: prepare_params(...)
    -> (B, OUTPUT_DIM) float32."""
    batch = coords.shape[0]
    tb, b_pad = _tile_for_batch(batch)
    grid = (b_pad // tb,)

    # ---- pack coords+cond into one lane-dense bf16 slab (zeros elsewhere) ----
    bf16 = jnp.bfloat16
    xin = jnp.zeros((b_pad, IN_PAD), bf16)
    xin = xin.at[:batch, :COORD_DIM].set(coords.astype(bf16))
    xin = xin.at[:batch, COORD_DIM:COORD_DIM + COND_DIM].set(cond.astype(bf16))

    act_spec = pl.BlockSpec((tb, IN_PAD), lambda i: (i, 0))
    out_spec = pl.BlockSpec((tb, OUTPUT_DIM), lambda i: (i, 0))   # narrow, full-dim last axis
    # Full-array, constant-index blocks: Pallas keeps weights VMEM-resident (single DMA).
    w_specs = [pl.BlockSpec(w.shape, lambda i: (0, 0)) for w in prepped]

    macs_per_row = (IN_PAD * (FC_HIDDEN + HIDDEN_DIM)
                    + FC_HIDDEN * FC_HIDDEN
                    + FC_HIDDEN * NUM_MOD_PARAMS
                    + (NUM_LAYERS - 2 + EXTRA_LAYERS) * HIDDEN_DIM * HIDDEN_DIM
                    + HIDDEN_DIM * OUT_PAD)
    weight_bytes = int(sum(w.size * w.dtype.itemsize for w in prepped))
    cost = pl.CostEstimate(
        flops=2 * b_pad * macs_per_row,
        transcendentals=0,
        bytes_accessed=weight_bytes + b_pad * IN_PAD * 2 + b_pad * OUTPUT_DIM * 4)

    out = pl.pallas_call(
        _film_kernel,
        out_shape=jax.ShapeDtypeStruct((b_pad, OUTPUT_DIM), jnp.float32),
        grid=grid,
        in_specs=[act_spec] + w_specs,
        out_specs=out_spec,
        compiler_params=pltpu.CompilerParams(
            dimension_semantics=("parallel",)),   # v7x: shard batch tiles over both TCs
        cost_estimate=cost,
    )(xin, *prepped)

    return out[:batch]


def init_params(key):
    """Deterministic synthetic parameters. Weights are (in, out); biases (1, out)."""
    shapes = [
        # FiLMModulation.fc: Linear(cond,256) -> ReLU -> Linear(256,256) -> ReLU
        #                    -> Linear(256, num_mod_params)
        (COND_DIM, FC_HIDDEN), (FC_HIDDEN,),
        (FC_HIDDEN, FC_HIDDEN), (FC_HIDDEN,),
        (FC_HIDDEN, NUM_MOD_PARAMS), (NUM_MOD_PARAMS,),
        # ModulatedMLP.layers: Linear(coord,hidden) + (num_layers-2) x Linear(hidden,hidden)
        (COORD_DIM, HIDDEN_DIM), (HIDDEN_DIM,),
        (HIDDEN_DIM, HIDDEN_DIM), (HIDDEN_DIM,),
        (HIDDEN_DIM, HIDDEN_DIM), (HIDDEN_DIM,),
        # ModulatedMLP.extra: extra_layers x Linear(hidden,hidden)
        (HIDDEN_DIM, HIDDEN_DIM), (HIDDEN_DIM,),
        (HIDDEN_DIM, HIDDEN_DIM), (HIDDEN_DIM,),
        # output_layer: Linear(hidden, output)
        (HIDDEN_DIM, OUTPUT_DIM), (OUTPUT_DIM,),
    ]
    keys = jax.random.split(key, len(shapes))
    params = []
    for k, shp in zip(keys, shapes):
        fan_in = shp[0]
        scale = 1.0 / jnp.sqrt(jnp.float32(max(fan_in, 1)))
        p = jax.random.normal(k, shp, dtype=jnp.float32) * scale
        if len(shp) == 1:  # bias -> (1, out) for 2D lane-major broadcast in-kernel
            p = p.reshape(1, -1)
        params.append(p)
    return tuple(params)


def film_net_reference(coords, cond, params):
    """Pure-JAX reference mirroring both the PyTorch forward semantics and the kernel's
    mixed precision (bf16 matmul inputs, f32 accumulation and elementwise math)."""
    (fw1, fb1, fw2, fb2, fw3, fb3,
     mw0, mb0, mw1, mb1, mw2, mb2,
     ew0, eb0, ew1, eb1, ow, ob) = params
    bf16 = jnp.bfloat16

    def mm(a, w):
        return jnp.dot(a.astype(bf16), w.astype(bf16),
                       preferred_element_type=jnp.float32)

    h = jax.nn.relu(mm(cond, fw1) + fb1)
    h = jax.nn.relu(mm(h, fw2) + fb2)
    mod = mm(h, fw3) + fb3
    gamma, beta = mod[:, :CHUNK], mod[:, CHUNK:]
    x = coords
    for i, (w, b) in enumerate(((mw0, mb0), (mw1, mb1), (mw2, mb2))):
        x = jax.nn.relu(mm(x, w) + b)
        g_i = gamma[:, i * HIDDEN_DIM:(i + 1) * HIDDEN_DIM]
        b_i = beta[:, i * HIDDEN_DIM:(i + 1) * HIDDEN_DIM]
        x = g_i * x + b_i
    for w, b in ((ew0, eb0), (ew1, eb1)):
        x = jax.nn.relu(mm(x, w) + b)
    return mm(x, ow) + ob


if __name__ == "__main__":
    key = jax.random.PRNGKey(0)
    k_params, k_coords, k_cond = jax.random.split(key, 3)

    # Small shapes, but batch > tile so the run exercises the multi-step batch grid,
    # the weight-resident BlockSpecs, and the remainder-padding / row-slicing path.
    batch = 300
    coords = jax.random.normal(k_coords, (batch, COORD_DIM), dtype=jnp.float32)
    cond = jax.random.normal(k_cond, (batch, COND_DIM), dtype=jnp.float32)
    params = init_params(k_params)
    prepped = prepare_params(params)   # one-time pad/fuse/bf16-cast, outside the forward

    out = jax.block_until_ready(film_net_forward(coords, cond, prepped))
    ref = film_net_reference(coords, cond, params)

    assert out.shape == (batch, OUTPUT_DIM)
    max_err = float(jnp.max(jnp.abs(out - ref)))
    # Tolerance covers bf16 matmul-input rounding / accumulation-order differences.
    assert jnp.allclose(out, ref, atol=1e-2, rtol=1e-2), (
        "kernel != reference; max |diff| = %e" % max_err)

    print("KERNEL_OK")
</pallas_src>

<mosaic_0001>
module attributes {stable_mosaic.version = 11 : i64} {
  func.func @_film_kernel(%arg0: i32, %arg1: memref<256x128xbf16, #tpu.memory_space<vmem>>, %arg2: memref<128x512xbf16, #tpu.memory_space<vmem>>, %arg3: memref<1x512xf32, #tpu.memory_space<vmem>>, %arg4: memref<256x256xbf16, #tpu.memory_space<vmem>>, %arg5: memref<1x256xf32, #tpu.memory_space<vmem>>, %arg6: memref<256x1536xbf16, #tpu.memory_space<vmem>>, %arg7: memref<1x1536xf32, #tpu.memory_space<vmem>>, %arg8: memref<256x256xbf16, #tpu.memory_space<vmem>>, %arg9: memref<1x256xf32, #tpu.memory_space<vmem>>, %arg10: memref<256x256xbf16, #tpu.memory_space<vmem>>, %arg11: memref<1x256xf32, #tpu.memory_space<vmem>>, %arg12: memref<256x256xbf16, #tpu.memory_space<vmem>>, %arg13: memref<1x256xf32, #tpu.memory_space<vmem>>, %arg14: memref<256x256xbf16, #tpu.memory_space<vmem>>, %arg15: memref<1x256xf32, #tpu.memory_space<vmem>>, %arg16: memref<256x128xbf16, #tpu.memory_space<vmem>>, %arg17: memref<1x128xf32, #tpu.memory_space<vmem>>, %arg18: memref<256x3xf32, #tpu.memory_space<vmem>>) attributes {dimension_semantics = [#tpu.dimension_semantics<parallel>], iteration_bounds = array<i64: 2>, scalar_prefetch = 0 : i64, scratch_operands = 0 : i64, tpu.core_type = #tpu.core_type<tc>, window_params = [{transform_indices = @transform_0, window_bounds = array<i64: 256, 128>}, {pipeline_mode = #tpu.pipeline_mode<synchronous>, transform_indices = @transform_1, window_bounds = array<i64: 128, 512>}, {pipeline_mode = #tpu.pipeline_mode<synchronous>, transform_indices = @transform_2, window_bounds = array<i64: 1, 512>}, {pipeline_mode = #tpu.pipeline_mode<synchronous>, transform_indices = @transform_3, window_bounds = array<i64: 256, 256>}, {pipeline_mode = #tpu.pipeline_mode<synchronous>, transform_indices = @transform_4, window_bounds = array<i64: 1, 256>}, {pipeline_mode = #tpu.pipeline_mode<synchronous>, transform_indices = @transform_5, window_bounds = array<i64: 256, 1536>}, {pipeline_mode = #tpu.pipeline_mode<synchronous>, transform_indices = @transform_6, window_bounds = array<i64: 1, 1536>}, {pipeline_mode = #tpu.pipeline_mode<synchronous>, transform_indices = @transform_7, window_bounds = array<i64: 256, 256>}, {pipeline_mode = #tpu.pipeline_mode<synchronous>, transform_indices = @transform_8, window_bounds = array<i64: 1, 256>}, {pipeline_mode = #tpu.pipeline_mode<synchronous>, transform_indices = @transform_9, window_bounds = array<i64: 256, 256>}, {pipeline_mode = #tpu.pipeline_mode<synchronous>, transform_indices = @transform_10, window_bounds = array<i64: 1, 256>}, {pipeline_mode = #tpu.pipeline_mode<synchronous>, transform_indices = @transform_11, window_bounds = array<i64: 256, 256>}, {pipeline_mode = #tpu.pipeline_mode<synchronous>, transform_indices = @transform_12, window_bounds = array<i64: 1, 256>}, {pipeline_mode = #tpu.pipeline_mode<synchronous>, transform_indices = @transform_13, window_bounds = array<i64: 256, 256>}, {pipeline_mode = #tpu.pipeline_mode<synchronous>, transform_indices = @transform_14, window_bounds = array<i64: 1, 256>}, {pipeline_mode = #tpu.pipeline_mode<synchronous>, transform_indices = @transform_15, window_bounds = array<i64: 256, 128>}, {pipeline_mode = #tpu.pipeline_mode<synchronous>, transform_indices = @transform_16, window_bounds = array<i64: 1, 128>}, {transform_indices = @transform_17, window_bounds = array<i64: 256, 3>}]} {
    %c0 = arith.constant 0 : index
    %c0_0 = arith.constant 0 : index
    %0 = vector.load %arg1[%c0, %c0_0] : memref<256x128xbf16, #tpu.memory_space<vmem>>, vector<256x128xbf16>
    %c0_1 = arith.constant 0 : index
    %c0_2 = arith.constant 0 : index
    %1 = vector.load %arg2[%c0_1, %c0_2] : memref<128x512xbf16, #tpu.memory_space<vmem>>, vector<128x512xbf16>
    %cst = arith.constant dense<0.000000e+00> : vector<256x512xf32>
    %2 = tpu.matmul %0, %1, %cst {dimension_numbers = #tpu.dot_dimension_numbers<[1], [0], [0], [1], [0, 0, 1, 1], [], []>} : vector<256x128xbf16>, vector<128x512xbf16>, vector<256x512xf32> -> vector<256x512xf32>
    %c0_3 = arith.constant 0 : index
    %c0_4 = arith.constant 0 : index
    %3 = vector.load %arg3[%c0_3, %c0_4] : memref<1x512xf32, #tpu.memory_space<vmem>>, vector<1x512xf32>
    %4 = vector.broadcast %3 : vector<1x512xf32> to vector<256x512xf32>
    %5 = arith.addf %2, %4 : vector<256x512xf32>
    %cst_5 = arith.constant 0.000000e+00 : f32
    %6 = vector.broadcast %cst_5 : f32 to vector<256x512xf32>
    %7 = arith.maximumf %5, %6 : vector<256x512xf32>
    %8 = vector.extract_strided_slice %7 {offsets = [0, 0], sizes = [256, 256], strides = [1, 1]} : vector<256x512xf32> to vector<256x256xf32>
    %9 = vector.extract_strided_slice %7 {offsets = [0, 256], sizes = [256, 256], strides = [1, 1]} : vector<256x512xf32> to vector<256x256xf32>
    %10 = arith.truncf %8 : vector<256x256xf32> to vector<256x256xbf16>
    %c0_6 = arith.constant 0 : index
    %c0_7 = arith.constant 0 : index
    %11 = vector.load %arg4[%c0_6, %c0_7] : memref<256x256xbf16, #tpu.memory_space<vmem>>, vector<256x256xbf16>
    %cst_8 = arith.constant dense<0.000000e+00> : vector<256x256xf32>
    %12 = tpu.matmul %10, %11, %cst_8 {dimension_numbers = #tpu.dot_dimension_numbers<[1], [0], [0], [1], [0, 0, 1, 1], [], []>} : vector<256x256xbf16>, vector<256x256xbf16>, vector<256x256xf32> -> vector<256x256xf32>
    %c0_9 = arith.constant 0 : index
    %c0_10 = arith.constant 0 : index
    %13 = vector.load %arg5[%c0_9, %c0_10] : memref<1x256xf32, #tpu.memory_space<vmem>>, vector<1x256xf32>
    %14 = vector.broadcast %13 : vector<1x256xf32> to vector<256x256xf32>
    %15 = arith.addf %12, %14 : vector<256x256xf32>
    %cst_11 = arith.constant 0.000000e+00 : f32
    %16 = vector.broadcast %cst_11 : f32 to vector<256x256xf32>
    %17 = arith.maximumf %15, %16 : vector<256x256xf32>
    %18 = arith.truncf %17 : vector<256x256xf32> to vector<256x256xbf16>
    %c0_12 = arith.constant 0 : index
    %c0_13 = arith.constant 0 : index
    %19 = vector.load %arg6[%c0_12, %c0_13] : memref<256x1536xbf16, #tpu.memory_space<vmem>>, vector<256x1536xbf16>
    %cst_14 = arith.constant dense<0.000000e+00> : vector<256x1536xf32>
    %20 = tpu.matmul %18, %19, %cst_14 {dimension_numbers = #tpu.dot_dimension_numbers<[1], [0], [0], [1], [0, 0, 1, 1], [], []>} : vector<256x256xbf16>, vector<256x1536xbf16>, vector<256x1536xf32> -> vector<256x1536xf32>
    %c0_15 = arith.constant 0 : index
    %c0_16 = arith.constant 0 : index
    %21 = vector.load %arg7[%c0_15, %c0_16] : memref<1x1536xf32, #tpu.memory_space<vmem>>, vector<1x1536xf32>
    %22 = vector.broadcast %21 : vector<1x1536xf32> to vector<256x1536xf32>
    %23 = arith.addf %20, %22 : vector<256x1536xf32>
    %24 = vector.extract_strided_slice %23 {offsets = [0, 0], sizes = [256, 768], strides = [1, 1]} : vector<256x1536xf32> to vector<256x768xf32>
    %25 = vector.extract_strided_slice %23 {offsets = [0, 768], sizes = [256, 768], strides = [1, 1]} : vector<256x1536xf32> to vector<256x768xf32>
    %26 = vector.extract_strided_slice %24 {offsets = [0, 0], sizes = [256, 256], strides = [1, 1]} : vector<256x768xf32> to vector<256x256xf32>
    %27 = arith.mulf %26, %9 : vector<256x256xf32>
    %28 = vector.extract_strided_slice %25 {offsets = [0, 0], sizes = [256, 256], strides = [1, 1]} : vector<256x768xf32> to vector<256x256xf32>
    %29 = arith.addf %27, %28 : vector<256x256xf32>
    %30 = arith.truncf %29 : vector<256x256xf32> to vector<256x256xbf16>
    %c0_17 = arith.constant 0 : index
    %c0_18 = arith.constant 0 : index
    %31 = vector.load %arg8[%c0_17, %c0_18] : memref<256x256xbf16, #tpu.memory_space<vmem>>, vector<256x256xbf16>
    %cst_19 = arith.constant dense<0.000000e+00> : vector<256x256xf32>
    %32 = tpu.matmul %30, %31, %cst_19 {dimension_numbers = #tpu.dot_dimension_numbers<[1], [0], [0], [1], [0, 0, 1, 1], [], []>} : vector<256x256xbf16>, vector<256x256xbf16>, vector<256x256xf32> -> vector<256x256xf32>
    %c0_20 = arith.constant 0 : index
    %c0_21 = arith.constant 0 : index
    %33 = vector.load %arg9[%c0_20, %c0_21] : memref<1x256xf32, #tpu.memory_space<vmem>>, vector<1x256xf32>
    %34 = vector.broadcast %33 : vector<1x256xf32> to vector<256x256xf32>
    %35 = arith.addf %32, %34 : vector<256x256xf32>
    %cst_22 = arith.constant 0.000000e+00 : f32
    %36 = vector.broadcast %cst_22 : f32 to vector<256x256xf32>
    %37 = arith.maximumf %35, %36 : vector<256x256xf32>
    %38 = vector.extract_strided_slice %24 {offsets = [0, 256], sizes = [256, 256], strides = [1, 1]} : vector<256x768xf32> to vector<256x256xf32>
    %39 = vector.extract_strided_slice %25 {offsets = [0, 256], sizes = [256, 256], strides = [1, 1]} : vector<256x768xf32> to vector<256x256xf32>
    %40 = arith.mulf %38, %37 : vector<256x256xf32>
    %41 = arith.addf %40, %39 : vector<256x256xf32>
    %42 = arith.truncf %41 : vector<256x256xf32> to vector<256x256xbf16>
    %c0_23 = arith.constant 0 : index
    %c0_24 = arith.constant 0 : index
    %43 = vector.load %arg10[%c0_23, %c0_24] : memref<256x256xbf16, #tpu.memory_space<vmem>>, vector<256x256xbf16>
    %cst_25 = arith.constant dense<0.000000e+00> : vector<256x256xf32>
    %44 = tpu.matmul %42, %43, %cst_25 {dimension_numbers = #tpu.dot_dimension_numbers<[1], [0], [0], [1], [0, 0, 1, 1], [], []>} : vector<256x256xbf16>, vector<256x256xbf16>, vector<256x256xf32> -> vector<256x256xf32>
    %c0_26 = arith.constant 0 : index
    %c0_27 = arith.constant 0 : index
    %45 = vector.load %arg11[%c0_26, %c0_27] : memref<1x256xf32, #tpu.memory_space<vmem>>, vector<1x256xf32>
    %46 = vector.broadcast %45 : vector<1x256xf32> to vector<256x256xf32>
    %47 = arith.addf %44, %46 : vector<256x256xf32>
    %cst_28 = arith.constant 0.000000e+00 : f32
    %48 = vector.broadcast %cst_28 : f32 to vector<256x256xf32>
    %49 = arith.maximumf %47, %48 : vector<256x256xf32>
    %50 = vector.extract_strided_slice %24 {offsets = [0, 512], sizes = [256, 256], strides = [1, 1]} : vector<256x768xf32> to vector<256x256xf32>
    %51 = vector.extract_strided_slice %25 {offsets = [0, 512], sizes = [256, 256], strides = [1, 1]} : vector<256x768xf32> to vector<256x256xf32>
    %52 = arith.mulf %50, %49 : vector<256x256xf32>
    %53 = arith.addf %52, %51 : vector<256x256xf32>
    %54 = arith.truncf %53 : vector<256x256xf32> to vector<256x256xbf16>
    %c0_29 = arith.constant 0 : index
    %c0_30 = arith.constant 0 : index
    %55 = vector.load %arg12[%c0_29, %c0_30] : memref<256x256xbf16, #tpu.memory_space<vmem>>, vector<256x256xbf16>
    %cst_31 = arith.constant dense<0.000000e+00> : vector<256x256xf32>
    %56 = tpu.matmul %54, %55, %cst_31 {dimension_numbers = #tpu.dot_dimension_numbers<[1], [0], [0], [1], [0, 0, 1, 1], [], []>} : vector<256x256xbf16>, vector<256x256xbf16>, vector<256x256xf32> -> vector<256x256xf32>
    %c0_32 = arith.constant 0 : index
    %c0_33 = arith.constant 0 : index
    %57 = vector.load %arg13[%c0_32, %c0_33] : memref<1x256xf32, #tpu.memory_space<vmem>>, vector<1x256xf32>
    %58 = vector.broadcast %57 : vector<1x256xf32> to vector<256x256xf32>
    %59 = arith.addf %56, %58 : vector<256x256xf32>
    %cst_34 = arith.constant 0.000000e+00 : f32
    %60 = vector.broadcast %cst_34 : f32 to vector<256x256xf32>
    %61 = arith.maximumf %59, %60 : vector<256x256xf32>
    %62 = arith.truncf %61 : vector<256x256xf32> to vector<256x256xbf16>
    %c0_35 = arith.constant 0 : index
    %c0_36 = arith.constant 0 : index
    %63 = vector.load %arg14[%c0_35, %c0_36] : memref<256x256xbf16, #tpu.memory_space<vmem>>, vector<256x256xbf16>
    %cst_37 = arith.constant dense<0.000000e+00> : vector<256x256xf32>
    %64 = tpu.matmul %62, %63, %cst_37 {dimension_numbers = #tpu.dot_dimension_numbers<[1], [0], [0], [1], [0, 0, 1, 1], [], []>} : vector<256x256xbf16>, vector<256x256xbf16>, vector<256x256xf32> -> vector<256x256xf32>
    %c0_38 = arith.constant 0 : index
    %c0_39 = arith.constant 0 : index
    %65 = vector.load %arg15[%c0_38, %c0_39] : memref<1x256xf32, #tpu.memory_space<vmem>>, vector<1x256xf32>
    %66 = vector.broadcast %65 : vector<1x256xf32> to vector<256x256xf32>
    %67 = arith.addf %64, %66 : vector<256x256xf32>
    %cst_40 = arith.constant 0.000000e+00 : f32
    %68 = vector.broadcast %cst_40 : f32 to vector<256x256xf32>
    %69 = arith.maximumf %67, %68 : vector<256x256xf32>
    %70 = arith.truncf %69 : vector<256x256xf32> to vector<256x256xbf16>
    %c0_41 = arith.constant 0 : index
    %c0_42 = arith.constant 0 : index
    %71 = vector.load %arg16[%c0_41, %c0_42] : memref<256x128xbf16, #tpu.memory_space<vmem>>, vector<256x128xbf16>
    %cst_43 = arith.constant dense<0.000000e+00> : vector<256x128xf32>
    %72 = tpu.matmul %70, %71, %cst_43 {dimension_numbers = #tpu.dot_dimension_numbers<[1], [0], [0], [1], [0, 0, 1, 1], [], []>} : vector<256x256xbf16>, vector<256x128xbf16>, vector<256x128xf32> -> vector<256x128xf32>
    %c0_44 = arith.constant 0 : index
    %c0_45 = arith.constant 0 : index
    %73 = vector.load %arg17[%c0_44, %c0_45] : memref<1x128xf32, #tpu.memory_space<vmem>>, vector<1x128xf32>
    %74 = vector.broadcast %73 : vector<1x128xf32> to vector<256x128xf32>
    %75 = arith.addf %72, %74 : vector<256x128xf32>
    %76 = vector.extract_strided_slice %75 {offsets = [0, 0], sizes = [256, 3], strides = [1, 1]} : vector<256x128xf32> to vector<256x3xf32>
    %c0_46 = arith.constant 0 : index
    %c0_47 = arith.constant 0 : index
    %77 = vector.load %arg18[%c0_46, %c0_47] : memref<256x3xf32, #tpu.memory_space<vmem>>, vector<256x3xf32>
    tpu.vector_store %arg18[%c0_46, %c0_47], %76 {strides = array<i32>} : memref<256x3xf32, #tpu.memory_space<vmem>>, vector<256x3xf32>,
    return
  }
  func.func @transform_0(%arg0: i32) -> (i32, i32) {
    %c0_i32 = arith.constant 0 : i32
    %c0_i32_0 = arith.constant 0 : i32
    return %arg0, %c0_i32 : i32, i32
  }
  func.func @transform_1(%arg0: i32) -> (i32, i32) {
    %c0_i32 = arith.constant 0 : i32
    %c0_i32_0 = arith.constant 0 : i32
    %c0_i32_1 = arith.constant 0 : i32
    return %c0_i32, %c0_i32_0 : i32, i32
  }
  func.func @transform_2(%arg0: i32) -> (i32, i32) {
    %c0_i32 = arith.constant 0 : i32
    %c0_i32_0 = arith.constant 0 : i32
    %c0_i32_1 = arith.constant 0 : i32
    return %c0_i32, %c0_i32_0 : i32, i32
  }
  func.func @transform_3(%arg0: i32) -> (i32, i32) {
    %c0_i32 = arith.constant 0 : i32
    %c0_i32_0 = arith.constant 0 : i32
    %c0_i32_1 = arith.constant 0 : i32
    return %c0_i32, %c0_i32_0 : i32, i32
  }
  func.func @transform_4(%arg0: i32) -> (i32, i32) {
    %c0_i32 = arith.constant 0 : i32
    %c0_i32_0 = arith.constant 0 : i32
    %c0_i32_1 = arith.constant 0 : i32
    return %c0_i32, %c0_i32_0 : i32, i32
  }
  func.func @transform_5(%arg0: i32) -> (i32, i32) {
    %c0_i32 = arith.constant 0 : i32
    %c0_i32_0 = arith.constant 0 : i32
    %c0_i32_1 = arith.constant 0 : i32
    return %c0_i32, %c0_i32_0 : i32, i32
  }
  func.func @transform_6(%arg0: i32) -> (i32, i32) {
    %c0_i32 = arith.constant 0 : i32
    %c0_i32_0 = arith.constant 0 : i32
    %c0_i32_1 = arith.constant 0 : i32
    return %c0_i32, %c0_i32_0 : i32, i32
  }
  func.func @transform_7(%arg0: i32) -> (i32, i32) {
    %c0_i32 = arith.constant 0 : i32
    %c0_i32_0 = arith.constant 0 : i32
    %c0_i32_1 = arith.constant 0 : i32
    return %c0_i32, %c0_i32_0 : i32, i32
  }
  func.func @transform_8(%arg0: i32) -> (i32, i32) {
    %c0_i32 = arith.constant 0 : i32
    %c0_i32_0 = arith.constant 0 : i32
    %c0_i32_1 = arith.constant 0 : i32
    return %c0_i32, %c0_i32_0 : i32, i32
  }
  func.func @transform_9(%arg0: i32) -> (i32, i32) {
    %c0_i32 = arith.constant 0 : i32
    %c0_i32_0 = arith.constant 0 : i32
    %c0_i32_1 = arith.constant 0 : i32
    return %c0_i32, %c0_i32_0 : i32, i32
  }
  func.func @transform_10(%arg0: i32) -> (i32, i32) {
    %c0_i32 = arith.constant 0 : i32
    %c0_i32_0 = arith.constant 0 : i32
    %c0_i32_1 = arith.constant 0 : i32
    return %c0_i32, %c0_i32_0 : i32, i32
  }
  func.func @transform_11(%arg0: i32) -> (i32, i32) {
    %c0_i32 = arith.constant 0 : i32
    %c0_i32_0 = arith.constant 0 : i32
    %c0_i32_1 = arith.constant 0 : i32
    return %c0_i32, %c0_i32_0 : i32, i32
  }
  func.func @transform_12(%arg0: i32) -> (i32, i32) {
    %c0_i32 = arith.constant 0 : i32
    %c0_i32_0 = arith.constant 0 : i32
    %c0_i32_1 = arith.constant 0 : i32
    return %c0_i32, %c0_i32_0 : i32, i32
  }
  func.func @transform_13(%arg0: i32) -> (i32, i32) {
    %c0_i32 = arith.constant 0 : i32
    %c0_i32_0 = arith.constant 0 : i32
    %c0_i32_1 = arith.constant 0 : i32
    return %c0_i32, %c0_i32_0 : i32, i32
  }
  func.func @transform_14(%arg0: i32) -> (i32, i32) {
    %c0_i32 = arith.constant 0 : i32
    %c0_i32_0 = arith.constant 0 : i32
    %c0_i32_1 = arith.constant 0 : i32
    return %c0_i32, %c0_i32_0 : i32, i32
  }
  func.func @transform_15(%arg0: i32) -> (i32, i32) {
    %c0_i32 = arith.constant 0 : i32
    %c0_i32_0 = arith.constant 0 : i32
    %c0_i32_1 = arith.constant 0 : i32
    return %c0_i32, %c0_i32_0 : i32, i32
  }
  func.func @transform_16(%arg0: i32) -> (i32, i32) {
    %c0_i32 = arith.constant 0 : i32
    %c0_i32_0 = arith.constant 0 : i32
    %c0_i32_1 = arith.constant 0 : i32
    return %c0_i32, %c0_i32_0 : i32, i32
  }
  func.func @transform_17(%arg0: i32) -> (i32, i32) {
    %c0_i32 = arith.constant 0 : i32
    %c0_i32_0 = arith.constant 0 : i32
    return %arg0, %c0_i32 : i32, i32
  }
}

</mosaic_0001>

<bundles_post_ra>
// kernel: film_net_forward.1
= control target key start
LH: loop header
LB: loop body
LE: loop exit
PB: predicated region body
PF: predicated region fallthrough
CT: control target
= control target key end

     0   :  { %s17324_s0 = inlined_call_operand.vmem [shape: bf16[512,128], index: 0, kind: input, shape index: {}]   ;;  %s17325_s1 = inlined_call_operand.hbm [shape: bf16[128,512], index: 1, kind: input, shape index: {}]   ;;  %s17326_s2 = inlined_call_operand.vmem [shape: f32[1,512], index: 2, kind: input, shape index: {}]   ;;  %s17327_s3 = inlined_call_operand.hbm [shape: bf16[256,256], index: 3, kind: input, shape index: {}]   ;;  %s17328_s4 = inlined_call_operand.vmem [shape: f32[1,256], index: 4, kind: input, shape index: {}]   ;;  %s17329_s5 = inlined_call_operand.vmem [shape: bf16[256,1536], index: 5, kind: input, shape index: {}]   ;;  %s17330_s6 = inlined_call_operand.vmem [shape: f32[1,1536], index: 6, kind: input, shape index: {}]   ;;  %s17331_s7 = inlined_call_operand.hbm [shape: bf16[256,256], index: 7, kind: input, shape index: {}]   ;;  %s17332_s8 = inlined_call_operand.vmem [shape: f32[1,256], index: 8, kind: input, shape index: {}]   ;;  %s17333_s9 = inlined_call_operand.hbm [shape: bf16[256,256], index: 9, kind: input, shape index: {}]   ;;  %s17334_s10 = inlined_call_operand.vmem [shape: f32[1,256], index: 10, kind: input, shape index: {}]   ;;  %s17335_s11 = inlined_call_operand.hbm [shape: bf16[256,256], index: 11, kind: input, shape index: {}]   ;;  %s17336_s12 = inlined_call_operand.vmem [shape: f32[1,256], index: 12, kind: input, shape index: {}]   ;;  %s17337_s13 = inlined_call_operand.hbm [shape: bf16[256,256], index: 13, kind: input, shape index: {}]   ;;  %s17338_s14 = inlined_call_operand.vmem [shape: f32[1,256], index: 14, kind: input, shape index: {}]   ;;  %s17339_s15 = inlined_call_operand.hbm [shape: bf16[256,128], index: 15, kind: input, shape index: {}]   ;;  %s17340_s16 = inlined_call_operand.vmem [shape: f32[1,128], index: 16, kind: input, shape index: {}]   ;;  %s17341_s17 = inlined_call_operand.vmem [shape: f32[512,3], index: 17, kind: output, shape index: {}]  }
   0x1   :  { %17420 = sst [smem:[#allocation262_spill]] %s17324_s0 }
   0x2   :  { %17421 = sst [smem:[#allocation263_spill]] %s17325_s1 }
   0x3   :  { %17422 = sst [smem:[#allocation264_spill]] %s17327_s3 }
   0x4   :  { %17423 = sst [smem:[#allocation265_spill]] %s17333_s9 }
   0x5   :  { %17424 = sst [smem:[#allocation266_spill]] %s17337_s13 }
   0x6   :  { %17425 = sst [smem:[#allocation267_spill]] %s17340_s16 }
   0x7   :  { %17426 = sst [smem:[#allocation268_spill]] %s17341_s17 }
   0x8   :  { %22 = vsyncpa [#allocation3], 0 }
   0x9   :  { %23 = vsyncpa [#allocation5], 0 }
   0xa   :  { %24 = vsyncpa [#allocation8], 0 }
   0xb   :  { %25 = vsyncpa [#allocation11], 0  ;;  %s11512_s24 = smov 0  }
   0xc LB: > { %s17427_s3 = sld [smem:[#allocation264_spill]]  ;;  %s17342_s28 = sadd.s32 4294967295, %s11407_s24   ;;  %s11407_s24 = sphi %s11512_s24, %s31_s24  }
   0xd   : > { %p8966_p0 = scmp.ge.s32.totalorder %s11407_s24, 1  ;;  %p424_p1 = scmp.lt.s32.totalorder %s11407_s24, 3 }
   0xe   : > { %p11525_p2 = scmp.eq.s32.totalorder %s17342_s28, 0  ;;  %s11409_s30 = smov [#allocation4]  }
   0xf   : > { %p11529_p3 = pnand %p8966_p0, %p424_p1  ;;  %s454_s18 = sshll.u32 %s11409_s30, 4  ;;  %s455_s18 = int_to_ptr.vmem [resolvable:$true] %s454_s18 }
  0x10   : > { %s17430_s9 = sld [smem:[#allocation265_spill]]  ;;  %s11410_s22 = smov [#allocation7]  }
  0x11   : > { %p11113_p4 = pneg %p11529_p3  ;;  %s494_s23 = sshll.u32 %s11410_s22, 4  ;;  %s495_s23 = int_to_ptr.vmem [resolvable:$true] %s494_s23 }
  0x12   : > { %s452_s27 = sshll.u32 %s17427_s3, 4  ;;  %s17432_s13 = sld [smem:[#allocation266_spill]]  ;;  %s453_s27 = int_to_ptr.hbm [resolvable:$true] %s452_s27 }
  0x13   : > { %p11540_p5 = pnand %p11525_p2, %p11113_p4  ;;  %s11411_s28 = smov 128  }
  0x14   : > { %s11412_s3 = smov 8   ;;  %s11413_s19 = smov [#allocation10]  }
  0x15   : > { %11119 = dma.hbm_to_vmem [thread:$0]  (!%p11540_p5), %s453_s27, 4096, %s455_s18, [#allocation5], %s11411_s28, %s11411_s28, %s11412_s3  }
  0x16   : > { %s492_s20 = sshll.u32 %s17430_s9, 4  ;;  %s528_s1 = sshll.u32 %s11413_s19, 4  ;;  %s493_s20 = int_to_ptr.hbm [resolvable:$true] %s492_s20  ;;  %s529_s1 = int_to_ptr.vmem [resolvable:$true] %s528_s1 }
  0x17   : > { %11125 = dma.hbm_to_vmem [thread:$0]  (!%p11540_p5), %s493_s20, 4096, %s495_s23, [#allocation8], %s11411_s28, %s11411_s28, %s11412_s3  }
  0x18   : > { %s526_s30 = sshll.u32 %s17432_s13, 4  ;;  %s17433_s26 = sld [smem:[#allocation263_spill]]  ;;  %s527_s30 = int_to_ptr.hbm [resolvable:$true] %s526_s30 }
  0x19   : > { %11131 = dma.hbm_to_vmem [thread:$0]  (!%p11540_p5), %s527_s30, 4096, %s529_s1, [#allocation11], %s11411_s28, %s11411_s28, %s11412_s3  }
  0x1a   : > { %s11414_s27 = smov [#allocation2]   ;;  %s475_s23 = sshll.u32 %s17331_s7, 4  ;;  %s476_s23 = int_to_ptr.hbm [resolvable:$true] %s475_s23 }
  0x1b   : > { %s437_s18 = sshll.u32 %s11414_s27, 4  ;;  %s11415_s19 = smov 256   ;;  %s438_s18 = int_to_ptr.vmem [resolvable:$true] %s437_s18 }
  0x1c   : > { %s11416_s17 = smov 16   ;;  %s11417_s22 = smov [#allocation6]  }
  0x1d   : > { %s477_s25 = sshll.u32 %s11417_s22, 4  ;;  %s509_s30 = sshll.u32 %s17335_s11, 4  ;;  %s478_s25 = int_to_ptr.vmem [resolvable:$true] %s477_s25  ;;  %s510_s30 = int_to_ptr.hbm [resolvable:$true] %s509_s30 }
  0x1e   : > { %s435_s9 = sshll.u32 %s17433_s26, 4  ;;  %s543_s27 = sshll.u32 %s17339_s15, 4  ;;  %s436_s9 = int_to_ptr.hbm [resolvable:$true] %s435_s9  ;;  %s544_s27 = int_to_ptr.hbm [resolvable:$true] %s543_s27 }
  0x1f   : > { %11116 = dma.hbm_to_vmem [thread:$0]  (!%p11540_p5), %s436_s9, 4096, %s438_s18, [#allocation3], %s11415_s19, %s11415_s19, %s11416_s17  }
  0x20   : > { %11122 = dma.hbm_to_vmem [thread:$0]  (!%p11540_p5), %s476_s23, 4096, %s478_s25, [#allocation5], %s11411_s28, %s11411_s28, %s11412_s3  }
  0x21   : > { %s11418_s9 = smov [#allocation9]   ;;  %s11419_s16 = smov [#allocation12]  }
  0x22   : > { %s511_s17 = sshll.u32 %s11418_s9, 4  ;;  %s545_s18 = sshll.u32 %s11419_s16, 4  ;;  %s512_s17 = int_to_ptr.vmem [resolvable:$true] %s511_s17  ;;  %s546_s18 = int_to_ptr.vmem [resolvable:$true] %s545_s18 }
  0x23   : > { %11128 = dma.hbm_to_vmem [thread:$0]  (!%p11540_p5), %s510_s30, 4096, %s512_s17, [#allocation8], %s11411_s28, %s11411_s28, %s11412_s3  }
  0x24   : > { %s11420_s20 = smov 64   ;;  %s11421_s19 = smov 4  }
  0x25   : > { %11134 = dma.hbm_to_vmem [thread:$0]  (!%p11540_p5), %s544_s27, 2048, %s546_s18, [#allocation11], %s11420_s20, %s11420_s20, %s11421_s19  }
  0x26   : > { %573 = sbr.rel (%p11529_p3) target bundleno = 3558 (0xde6), region = 88 }
  0x2b   : > { %11390 = dma.done.wait (%p11525_p2), [#allocation3], 4096  }
  0x2c   : > { %11392 = vsyncadd (%p11525_p2), [#allocation3], 4294963200 }
  0x2d   : > { %11394 = dma.done.wait (%p11525_p2), [#allocation5], 8192  }
  0x2e   : > { %11396 = vsyncadd (%p11525_p2), [#allocation5], 4294959104 }
  0x2f   : > { %11398 = dma.done.wait (%p11525_p2), [#allocation8], 8192  }
  0x30   : > { %11400 = vsyncadd (%p11525_p2), [#allocation8], 4294959104 }
  0x31   : > { %11402 = dma.done.wait (%p11525_p2), [#allocation11], 6144  }
  0x32   : > { %11404 = vsyncadd (%p11525_p2), [#allocation11], 4294961152  ;;  %v9165_v0 = vld [vmem:[#allocation2 + $0xe0] sm:$0xf]  ;;  %v10699_v1 = vld [vmem:[#allocation2 + $0xec] sm:$0xf0] }
  0x33   : > { %v10697_v2 = vld [vmem:[#allocation2 + $0xe4] sm:$0xf]  ;;  %v9166_v3 = vor.u32 %v10699_v1, %v9165_v0  ;;  %v9167_v4 = vld [vmem:[#allocation2 + $0xf0] sm:$0xf0]  ;;  %v9149_v5 = vld [vmem:[#allocation2 + $0xc0] sm:$0xf] }
  0x34   : > { %v10695_v6 = vld [vmem:[#allocation2 + $0xcc] sm:$0xf0]  ;;  %v9170_v7 = vor.u32 %v10697_v2, %v9167_v4  ;;  %v10693_v8 = vld [vmem:[#allocation2 + $0xc4] sm:$0xf]  ;;  %v9151_v9 = vld [vmem:[#allocation2 + $0xd0] sm:$0xf0] }
  0x35   : > { %998 = vmatpush.bf16.msra.mxu0 %v9166_v3  ;;  %11069 = vmatpush.bf16.msra.mxu2 %v9166_v3  ;;  %v9150_v10 = vor.u32 %v10695_v6, %v9149_v5  ;;  %v9154_v11 = vor.u32 %v10693_v8, %v9151_v9  ;;  %v9133_v12 = vld [vmem:[#allocation2 + $0xa0] sm:$0xf]  ;;  %v10691_v13 = vld [vmem:[#allocation2 + $0xac] sm:$0xf0]  ;;  %v10689_v14 = vld [vmem:[#allocation2 + $0xa4] sm:$0xf] }
  0x36   : > { %1087 = vmatpush.bf16.msra.mxu1 %v9170_v7  ;;  %11077 = vmatpush.bf16.msra.mxu3 %v9170_v7  ;;  %v9135_v15 = vld [vmem:[#allocation2 + $0xb0] sm:$0xf0]  ;;  %v9134_v16 = vor.u32 %v10691_v13, %v9133_v12  ;;  %v9117_v18 = vld [vmem:[#allocation2 + $0x80] sm:$0xf]  ;;  %v10687_v19 = vld [vmem:[#allocation2 + $0x8c] sm:$0xf0] }
  0x37   : > { %v9138_v17 = vor.u32 %v10689_v14, %v9135_v15  ;;  %v10685_v20 = vld [vmem:[#allocation2 + $0x84] sm:$0xf]  ;;  %v9119_v21 = vld [vmem:[#allocation2 + $0x90] sm:$0xf0]  ;;  %v9118_v22 = vor.u32 %v10687_v19, %v9117_v18  ;;  %v9101_v24 = vld [vmem:[#allocation2 + $0x60] sm:$0xf] }
  0x38   : > { %v9122_v23 = vor.u32 %v10685_v20, %v9119_v21  ;;  %v10683_v25 = vld [vmem:[#allocation2 + $0x6c] sm:$0xf0]  ;;  %s17434_s3 = sadd.s32 4294967295, %s11407_s24   ;;  %v10681_v26 = vld [vmem:[#allocation2 + $0x64] sm:$0xf]  ;;  %s17435_s23 = sld [smem:[#allocation262_spill]] }
  0x39   : > { %999 = vmatpush.bf16.msra.mxu0 %v9150_v10  ;;  %11070 = vmatpush.bf16.msra.mxu2 %v9150_v10  ;;  %s8983_s28 = sshll.u32 %s17434_s3, 5  ;;  %v9103_v27 = vld [vmem:[#allocation2 + $0x70] sm:$0xf0]  ;;  %v9102_v28 = vor.u32 %v10683_v25, %v9101_v24  ;;  %v9085_v30 = vld [vmem:[#allocation2 + $0x40] sm:$0xf]  ;;  %s18298_s30 = sld [smem:[#allocation267_spill]] }
  0x3a   : > { %1088 = vmatpush.bf16.msra.mxu1 %v9154_v11  ;;  %11078 = vmatpush.bf16.msra.mxu3 %v9154_v11  ;;  %p657_p6 = scmp.lt.s32.totalorder %s8983_s28, 63  ;;  %v9106_v29 = vor.u32 %v10681_v26, %v9103_v27  ;;  %v10679_v31 = vld [vmem:[#allocation2 + $0x4c] sm:$0xf0]  ;;  %v10677_v32 = vld [vmem:[#allocation2 + $0x44] sm:$0xf]  ;;  %s18299_s9 = sld [smem:[#allocation268_spill]] }
  0x3b   : > { %v9087_v33 = vld [vmem:[#allocation2 + $0x50] sm:$0xf0]  ;;  %v9086_v34 = vor.u32 %v10679_v31, %v9085_v30  ;;  %v9069_v36 = vld [vmem:[#allocation2 + $0x20] sm:$0xf]  ;;  %v10675_v37 = vld [vmem:[#allocation2 + $0x2c] sm:$0xf0] }
  0x3c   : > { %s18301_s28 = smov (!%p657_p6, %s8983_s28), 63  ;;  %v9090_v35 = vor.u32 %v10677_v32, %v9087_v33  ;;  %v10673_v38 = vld [vmem:[#allocation2 + $0x24] sm:$0xf]  ;;  %v9071_v39 = vld [vmem:[#allocation2 + $0x30] sm:$0xf0]  ;;  %v9070_v40 = vor.u32 %v10675_v37, %v9069_v36  ;;  %vm8806_vm0 = vcmask 23552  }
  0x3d   : > { %1000 = vmatpush.bf16.msra.mxu0 %v9134_v16  ;;  %11071 = vmatpush.bf16.msra.mxu2 %v9134_v16  ;;  %s8984_s29 = sshll.u32 %s18301_s28, 2  ;;  %v9074_v41 = vor.u32 %v10673_v38, %v9071_v39  ;;  %v9053_v42 = vld [vmem:[#allocation2] sm:$0xf]  ;;  %v10671_v43 = vld [vmem:[#allocation2 + $0xc] sm:$0xf0]  ;;  %s8986_s13 = sshll.u32 %s18301_s28, 3 }
  0x3e   : > { %1089 = vmatpush.bf16.msra.mxu1 %v9138_v17  ;;  %11079 = vmatpush.bf16.msra.mxu3 %v9138_v17  ;;  %v10669_v44 = vld [vmem:[#allocation2 + $0x4] sm:$0xf]  ;;  %v9055_v45 = vld [vmem:[#allocation2 + $0x10] sm:$0xf0]  ;;  %v9173_v46 = vld [vmem:[#allocation2 + $0xe8] sm:$0xf]  ;;  %s11614_s22 = scalar_lea.vmem %s17435_s23, %s8984_s29  ;;  %v9054_v50 = vor.u32 %v10671_v43, %v9053_v42 }
  0x3f   : > { %v10700_v47 = vld [vmem:[#allocation2 + $0xf4] sm:$0xf0]  ;;  %v10698_v48 = vld [vmem:[#allocation2 + $0xec] sm:$0xf]  ;;  %v9175_v49 = vld [vmem:[#allocation2 + $0xf8] sm:$0xf0]  ;;  %v9058_v51 = vor.u32 %v10669_v44, %v9055_v45 }
  0x40   : > { %v11617_v52 = vld [vmem:[%s11614_s22] sm:$0xff]  ;;  %v9174_v54 = vor.u32 %v10700_v47, %v9173_v46  ;;  %v9178_v55 = vor.u32 %v10698_v48, %v9175_v49  ;;  %v9157_v56 = vld [vmem:[#allocation2 + $0xc8] sm:$0xf]  ;;  %v10696_v57 = vld [vmem:[#allocation2 + $0xd4] sm:$0xf0]  ;;  %s17195_s17 = scalar_lea.vmem %s18299_s9, %s8986_s13 }
  0x41   : > { %1001 = vmatpush.bf16.msra.mxu0 %v9118_v22  ;;  %11072 = vmatpush.bf16.msra.mxu2 %v9118_v22  ;;  %v11620_v53 = vld [vmem:[%s11614_s22 + $0x40] sm:$0xff]  ;;  %v10694_v58 = vld [vmem:[#allocation2 + $0xcc] sm:$0xf]  ;;  %v9159_v59 = vld [vmem:[#allocation2 + $0xd8] sm:$0xf0]  ;;  %v9158_v60 = vor.u32 %v10696_v57, %v9157_v56 }
  0x42   : > { %1090 = vmatpush.bf16.msra.mxu1 %v9122_v23  ;;  %11080 = vmatpush.bf16.msra.mxu3 %v9122_v23  ;;  %v9162_v61 = vor.u32 %v10694_v58, %v9159_v59  ;;  %v9141_v62 = vld [vmem:[#allocation2 + $0xa8] sm:$0xf]  ;;  %v10692_v63 = vld [vmem:[#allocation2 + $0xb4] sm:$0xf0]  ;;  %v10690_v0 = vld [vmem:[#allocation2 + $0xac] sm:$0xf] }
  0x43   : > { %v9143_v1 = vld [vmem:[#allocation2 + $0xb8] sm:$0xf0]  ;;  %v9142_v2 = vor.u32 %v10692_v63, %v9141_v62  ;;  %v11627_v4 = vld [vmem:[%s11614_s22 + $0x8] sm:$0xff]  ;;  %v10688_v7 = vld [vmem:[#allocation2 + $0x94] sm:$0xf0] }
  0x44   : > { %v9146_v3 = vor.u32 %v10690_v0, %v9143_v1  ;;  %v11630_v5 = vld [vmem:[%s11614_s22 + $0x48] sm:$0xff]  ;;  %v9127_v10 = vld [vmem:[#allocation2 + $0x98] sm:$0xf0]  ;;  %v11637_v12 = vld [vmem:[%s11614_s22 + $0x10] sm:$0xff] }
  0x45   : > { %1002 = vmatpush.bf16.msra.mxu0 %v9102_v28  ;;  %11073 = vmatpush.bf16.msra.mxu2 %v9102_v28  ;;  %v9125_v6 = vld [vmem:[#allocation2 + $0x88] sm:$0xf]  ;;  %v10686_v8 = vld [vmem:[#allocation2 + $0x8c] sm:$0xf]  ;;  %v11640_v13 = vld [vmem:[%s11614_s22 + $0x50] sm:$0xff] }
  0x46   : > { %1091 = vmatpush.bf16.msra.mxu1 %v9106_v29  ;;  %11081 = vmatpush.bf16.msra.mxu3 %v9106_v29  ;;  %v9126_v9 = vor.u32 %v10688_v7, %v9125_v6  ;;  %v9130_v11 = vor.u32 %v10686_v8, %v9127_v10  ;;  %v9109_v14 = vld [vmem:[#allocation2 + $0x68] sm:$0xf]  ;;  %v10684_v15 = vld [vmem:[#allocation2 + $0x74] sm:$0xf0]  ;;  %v10682_v16 = vld [vmem:[#allocation2 + $0x6c] sm:$0xf] }
  0x47   : > { %v9110_v17 = vor.u32 %v10684_v15, %v9109_v14  ;;  %v9111_v18 = vld [vmem:[#allocation2 + $0x78] sm:$0xf0]  ;;  %v9093_v22 = vld [vmem:[#allocation2 + $0x48] sm:$0xf]  ;;  %v10680_v23 = vld [vmem:[#allocation2 + $0x54] sm:$0xf0] }
  0x48   : > { %v9114_v19 = vor.u32 %v10682_v16, %v9111_v18  ;;  %v11647_v20 = vld [vmem:[%s11614_s22 + $0x18] sm:$0xff]  ;;  %v10678_v24 = vld [vmem:[#allocation2 + $0x4c] sm:$0xf]  ;;  %v9094_v25 = vor.u32 %v10680_v23, %v9093_v22  ;;  %v11657_v28 = vld [vmem:[%s11614_s22 + $0x20] sm:$0xff] }
  0x49   : > { %1003 = vmatpush.bf16.msra.mxu0 %v9086_v34  ;;  %11074 = vmatpush.bf16.msra.mxu2 %v9086_v34  ;;  %v11650_v21 = vld [vmem:[%s11614_s22 + $0x58] sm:$0xff]  ;;  %v11660_v29 = vld [vmem:[%s11614_s22 + $0x60] sm:$0xff]  ;;  %v9077_v30 = vld [vmem:[#allocation2 + $0x28] sm:$0xf] }
  0x4a   : > { %1092 = vmatpush.bf16.msra.mxu1 %v9090_v35  ;;  %11082 = vmatpush.bf16.msra.mxu3 %v9090_v35  ;;  %v9095_v26 = vld [vmem:[#allocation2 + $0x58] sm:$0xf0]  ;;  %v10676_v31 = vld [vmem:[#allocation2 + $0x34] sm:$0xf0]  ;;  %v10674_v32 = vld [vmem:[#allocation2 + $0x2c] sm:$0xf] }
  0x4b   : > { %v9098_v27 = vor.u32 %v10678_v24, %v9095_v26  ;;  %v9078_v33 = vor.u32 %v10676_v31, %v9077_v30  ;;  %v9079_v34 = vld [vmem:[#allocation2 + $0x38] sm:$0xf0]  ;;  %v9237_v35 = vld [vmem:[#allocation4 + $0x70] sm:$0xf]  ;;  %v10716_v36 = vld [vmem:[#allocation4 + $0x74] sm:$0xf0] }
  0x4c   : > { %v9082_v37 = vor.u32 %v10674_v32, %v9079_v34  ;;  %v9238_v38 = vor.u32 %v10716_v36, %v9237_v35  ;;  %v9301_v39 = vld [vmem:[#allocation4 + $0xf0] sm:$0xf]  ;;  %v11667_v42 = vld [vmem:[%s11614_s22 + $0x28] sm:$0xff]  ;;  %v9229_v44 = vld [vmem:[#allocation4 + $0x60] sm:$0xf] }
  0x4d   : > { %1004 = vmatpush.bf16.msra.mxu0 %v9070_v40  ;;  %11075 = vmatpush.bf16.msra.mxu2 %v9070_v40  ;;  %v10732_v40 = vld [vmem:[#allocation4 + $0xf4] sm:$0xf0]  ;;  %v11670_v43 = vld [vmem:[%s11614_s22 + $0x68] sm:$0xff]  ;;  %v9293_v47 = vld [vmem:[#allocation4 + $0xe0] sm:$0xf] }
  0x4e   : > { %1093 = vmatpush.bf16.msra.mxu1 %v9074_v41  ;;  %11083 = vmatpush.bf16.msra.mxu3 %v9074_v41  ;;  %v9302_v41 = vor.u32 %v10732_v40, %v9301_v39  ;;  %v10714_v45 = vld [vmem:[#allocation4 + $0x64] sm:$0xf0]  ;;  %v9063_v56 = vld [vmem:[#allocation2 + $0x18] sm:$0xf0]  ;;  %v9221_v57 = vld [vmem:[#allocation4 + $0x50] sm:$0xf] }
  0x4f   : > { %v9230_v46 = vor.u32 %v10714_v45, %v9229_v44  ;;  %v10730_v48 = vld [vmem:[#allocation4 + $0xe4] sm:$0xf0]  ;;  %v10712_v58 = vld [vmem:[#allocation4 + $0x54] sm:$0xf0]  ;;  %v9213_v63 = vld [vmem:[#allocation4 + $0x40] sm:$0xf] }
  0x50   : > { %v9061_v49 = vld [vmem:[#allocation2 + $0x8] sm:$0xf]  ;;  %v10728_v62 = vld [vmem:[#allocation4 + $0xd4] sm:$0xf0]  ;;  %v9205_v8 = vld [vmem:[#allocation4 + $0x30] sm:$0xf] }
  0x51   : > { %1005 = vmatpush.bf16.msra.mxu0 %v9054_v50  ;;  %11076 = vmatpush.bf16.msra.mxu2 %v9054_v50  ;;  %v10672_v50 = vld [vmem:[#allocation2 + $0x14] sm:$0xf0]  ;;  %v10710_v1 = vld [vmem:[#allocation4 + $0x44] sm:$0xf0]  ;;  %v9269_v10 = vld [vmem:[#allocation4 + $0xb0] sm:$0xf] }
  0x52   : > { %1094 = vmatpush.bf16.msra.mxu1 %v9058_v51  ;;  %11084 = vmatpush.bf16.msra.mxu3 %v9058_v51  ;;  %v9294_v51 = vor.u32 %v10730_v48, %v9293_v47  ;;  %v9214_v6 = vor.u32 %v10710_v1, %v9213_v63  ;;  %v11680_v14 = vld [vmem:[%s11614_s22 + $0x70] sm:$0xff]  ;;  %v10724_v16 = vld [vmem:[#allocation4 + $0xb4] sm:$0xf0]  ;;  %v9197_v18 = vld [vmem:[#allocation4 + $0x20] sm:$0xf] }
  0x53   : > { %v9261_v22 = vld [vmem:[#allocation4 + $0xa0] sm:$0xf]  ;;  %v10722_v24 = vld [vmem:[#allocation4 + $0xa4] sm:$0xf0]  ;;  %v9239_v26 = vld [vmem:[#allocation4 + $0x78] sm:$0xf0] }
  0x54   : > { %1006 = vmatmul.bf16.vlgmr.msra.gmra.mxu0 %v11617_v52  ;;  %1046 = vmatmul.bf16.vlgmr.msra.gmra.mxu2 %v11620_v53  ;;  %v10731_v30 = vld [vmem:[#allocation4 + $0xf4] sm:$0xf]  ;;  %v9303_v32 = vld [vmem:[#allocation4 + $0xf8] sm:$0xf0]  ;;  %v9189_v34 = vld [vmem:[#allocation4 + $0x10] sm:$0xf] }
  0x55   : > { %1176 = vmatpush.bf16.msrb.mxu2 %v9174_v54  ;;  %1095 = vmatmul.bf16.vlgmr.msra.gmra.mxu1 %v11617_v52  ;;  %v10670_v54 = vld [vmem:[#allocation2 + $0xc] sm:$0xf]  ;;  %v10704_v35 = vld [vmem:[#allocation4 + $0x14] sm:$0xf0]  ;;  %v9253_v36 = vld [vmem:[#allocation4 + $0x90] sm:$0xf] }
  0x56   : > { %1265 = vmatpush.bf16.msrb.mxu3 %v9178_v55  ;;  %1712 = vmatpush.bf16.msrb.mxu0 %v9238_v38  ;;  %v9062_v55 = vor.u32 %v10672_v50, %v9061_v49  ;;  %v9066_v59 = vor.u32 %v10670_v54, %v9063_v56  ;;  %v10720_v38 = vld [vmem:[#allocation4 + $0x94] sm:$0xf0]  ;;  %v9181_v40 = vld [vmem:[#allocation4] sm:$0xf] }
  0x57   : > { %1135 = vmatmul.bf16.vlgmr.msra.gmra.mxu3 %v11620_v53  ;;  %1801 = vmatpush.bf16.msrb.mxu1 %v9302_v41  ;;  %v9254_v39 = vor.u32 %v10720_v38, %v9253_v36  ;;  %v10702_v41 = vld [vmem:[#allocation4 + $0x4] sm:$0xf0]  ;;  %v9245_v44 = vld [vmem:[#allocation4 + $0x80] sm:$0xf]  ;;  %v11687_v48 = vld [vmem:[%s11614_s22 + $0x38] sm:$0xff] }
  0x58   : > { %v9182_v45 = vor.u32 %v10702_v41, %v9181_v40  ;;  %v11690_v49 = vld [vmem:[%s11614_s22 + $0x78] sm:$0xff]  ;;  %v732_v50 = vld [vmem:[%s17326_s2] sm:$0xf] }
  0x59   : > { %1177 = vmatpush.bf16.msrb.mxu2 %v9158_v60  ;;  %v9222_v60 = vor.u32 %v10712_v58, %v9221_v57  ;;  %v11701_v56 = vperm.slane %v732_v50, 0  ;;  %v10713_v57 = vld [vmem:[#allocation4 + $0x64] sm:$0xf]  ;;  %v9231_v58 = vld [vmem:[#allocation4 + $0x68] sm:$0xf0] }
  0x5a   : > { %1266 = vmatpush.bf16.msrb.mxu3 %v9162_v61  ;;  %1713 = vmatpush.bf16.msrb.mxu0 %v9230_v46  ;;  %v9285_v61 = vld [vmem:[#allocation4 + $0xd0] sm:$0xf]  ;;  %v10718_v46 = vld [vmem:[#allocation4 + $0x84] sm:$0xf0] }
  0x5b   : > { %1802 = vmatpush.bf16.msrb.mxu1 %v9294_v51  ;;  %v9286_v0 = vor.u32 %v10728_v62, %v9285_v61  ;;  %v9246_v47 = vor.u32 %v10718_v46, %v9245_v44  ;;  %v10729_v61 = vld [vmem:[#allocation4 + $0xe4] sm:$0xf]  ;;  %v9295_v62 = vld [vmem:[#allocation4 + $0xe8] sm:$0xf0] }
  0x5c   : > { %v9298_v1 = vor.u32 %v10729_v61, %v9295_v62 }
  0x5d   : > { %1178 = vmatpush.bf16.msrb.mxu2 %v9142_v2  ;;  %v9277_v2 = vld [vmem:[#allocation4 + $0xc0] sm:$0xf] }
  0x5e   : > { %1267 = vmatpush.bf16.msrb.mxu3 %v9146_v3  ;;  %v10726_v3 = vld [vmem:[#allocation4 + $0xc4] sm:$0xf0]  ;;  %1714 = vmatpush.bf16.msrb.mxu0 %v9222_v60  ;;  %v9234_v60 = vor.u32 %v10713_v57, %v9231_v58 }
  0x5f   : > { %1803 = vmatpush.bf16.msrb.mxu1 %v9286_v0  ;;  %v9278_v7 = vor.u32 %v10726_v3, %v9277_v2 }
  0x61   : > { %1179 = vmatpush.bf16.msrb.mxu2 %v9126_v9  ;;  %v10708_v9 = vld [vmem:[#allocation4 + $0x34] sm:$0xf0] }
  0x62   : > { %1268 = vmatpush.bf16.msrb.mxu3 %v9130_v11  ;;  %1715 = vmatpush.bf16.msrb.mxu0 %v9214_v6  ;;  %v11677_v11 = vld [vmem:[%s11614_s22 + $0x30] sm:$0xff]  ;;  %v9206_v15 = vor.u32 %v10708_v9, %v9205_v8 }
  0x63   : > { %1804 = vmatpush.bf16.msrb.mxu1 %v9278_v7 }
  0x64   : > { %1011 = vmatmul.bf16.gmra.mxu0 %v11627_v4  ;;  %1051 = vmatmul.bf16.gmra.mxu2 %v11630_v5 }
  0x65   : > { %1100 = vmatmul.bf16.gmra.mxu1 %v11627_v4  ;;  %1180 = vmatpush.bf16.msrb.mxu2 %v9110_v17  ;;  %v9270_v17 = vor.u32 %v10724_v16, %v9269_v10 }
  0x66   : > { %1269 = vmatpush.bf16.msrb.mxu3 %v9114_v19  ;;  %1716 = vmatpush.bf16.msrb.mxu0 %v9206_v15  ;;  %v10706_v19 = vld [vmem:[#allocation4 + $0x24] sm:$0xf0] }
  0x67   : > { %1140 = vmatmul.bf16.gmra.mxu3 %v11630_v5  ;;  %1805 = vmatpush.bf16.msrb.mxu1 %v9270_v17  ;;  %v9198_v23 = vor.u32 %v10706_v19, %v9197_v18 }
  0x69   : > { %1181 = vmatpush.bf16.msrb.mxu2 %v9094_v25  ;;  %v10715_v25 = vld [vmem:[#allocation4 + $0x74] sm:$0xf] }
  0x6a   : > { %1270 = vmatpush.bf16.msrb.mxu3 %v9098_v27  ;;  %v9262_v27 = vor.u32 %v10722_v24, %v9261_v22  ;;  %v9242_v31 = vor.u32 %v10715_v25, %v9239_v26  ;;  %1717 = vmatpush.bf16.msrb.mxu0 %v9198_v23 }
  0x6c   : > { %1806 = vmatpush.bf16.msrb.mxu1 %v9262_v27 }
  0x6d   : > { %1182 = vmatpush.bf16.msrb.mxu2 %v9078_v33  ;;  %v9306_v33 = vor.u32 %v10731_v30, %v9303_v32 }
  0x6e   : > { %1271 = vmatpush.bf16.msrb.mxu3 %v9082_v37  ;;  %v9190_v37 = vor.u32 %v10704_v35, %v9189_v34 }
  0x70   : > { %1718 = vmatpush.bf16.msrb.mxu0 %v9190_v37  ;;  %1807 = vmatpush.bf16.msrb.mxu1 %v9254_v39 }
  0x71   : > { %1183 = vmatpush.bf16.msrb.mxu2 %v9062_v55  ;;  %v11699_v55 = vperm.slane %v732_v50, 1 }
  0x72   : > { %1272 = vmatpush.bf16.msrb.mxu3 %v9066_v59 }
  0x74   : > { %1016 = vmatmul.bf16.gmra.mxu0 %v11637_v12  ;;  %1056 = vmatmul.bf16.gmra.mxu2 %v11640_v13 }
  0x75   : > { %1105 = vmatmul.bf16.gmra.mxu1 %v11637_v12  ;;  %1890 = vmatpush.bf16.msra.mxu2 %v9242_v31 }
  0x76   : > { %1979 = vmatpush.bf16.msra.mxu3 %v9306_v33  ;;  %1719 = vmatpush.bf16.msrb.mxu0 %v9182_v45 }
  0x77   : > { %1145 = vmatmul.bf16.gmra.mxu3 %v11640_v13  ;;  %1808 = vmatpush.bf16.msrb.mxu1 %v9246_v47 }
  0x79   : > { %1891 = vmatpush.bf16.msra.mxu2 %v9234_v60 }
  0x7a   : > { %1980 = vmatpush.bf16.msra.mxu3 %v9298_v1 }
  0x84   : > { %1021 = vmatmul.bf16.gmra.mxu0 %v11647_v20  ;;  %1061 = vmatmul.bf16.gmra.mxu2 %v11650_v21 }
  0x85   : > { %1110 = vmatmul.bf16.gmra.mxu1 %v11647_v20 }
  0x87   : > { %1150 = vmatmul.bf16.gmra.mxu3 %v11650_v21 }
  0x94   : > { %1026 = vmatmul.bf16.gmra.mxu0 %v11657_v28  ;;  %1066 = vmatmul.bf16.gmra.mxu2 %v11660_v29 }
  0x95   : > { %1115 = vmatmul.bf16.gmra.mxu1 %v11657_v28 }
  0x97   : > { %1155 = vmatmul.bf16.gmra.mxu3 %v11660_v29 }
  0xa4   : > { %1031 = vmatmul.bf16.gmra.mxu0 %v11667_v42  ;;  %1071 = vmatmul.bf16.gmra.mxu2 %v11670_v43 }
  0xa5   : > { %1120 = vmatmul.bf16.gmra.mxu1 %v11667_v42 }
  0xa7   : > { %1160 = vmatmul.bf16.gmra.mxu3 %v11670_v43 }
  0xb4   : > { %1036 = vmatmul.bf16.gmra.mxu0 %v11677_v11  ;;  %1076 = vmatmul.bf16.gmra.mxu2 %v11680_v14 }
  0xb5   : > { %1125 = vmatmul.bf16.gmra.mxu1 %v11677_v11 }
  0xb7   : > { %1165 = vmatmul.bf16.gmra.mxu3 %v11680_v14 }
  0xc4   : > { %1041 = vmatmul.bf16.gmra.mxu0 %v11687_v48  ;;  %1081 = vmatmul.bf16.gmra.mxu2 %v11690_v49 }
  0xc5   : > { %1130 = vmatmul.bf16.gmra.mxu1 %v11687_v48 }
  0xc7   : > { %1170 = vmatmul.bf16.gmra.mxu3 %v11690_v49 }
  0xd1   : > { %v1007_v51 = vpop.f32.mrf.mxu0 }
  0xd2   : > { %v1096_v54 = vpop.f32.mrf.mxu1  ;;  %v1008_v59 = vadd.f32 %v1007_v51, %v11701_v56 }
  0xd3   : > { %v1097_v63 = vadd.f32 %v1096_v54, %v11699_v55 }
  0xd4   : > { %1184 = vmatmul.bf16.vlgmr.msrb.gmra.mxu2 %v11617_v52  ;;  %v1354_v6 = vmax.f32 %v1008_v59, 0.0 }
  0xd7   : > { %1273 = vmatmul.bf16.vlgmr.msrb.gmra.mxu3 %v11617_v52  ;;  %v1047_v0 = vpop.f32.mrf.mxu2  ;;  %v1355_v52 = vmax.f32 %v1097_v63, 0.0 }
  0xd8   : > { %v1048_v16 = vadd.f32 %v1047_v0, %v11701_v56 }
  0xd9   : > { %v1009_v3 = vpop.f32.mrf.mxu0 }
  0xda   : > { %v1136_v2 = vpop.f32.mrf.mxu3  ;;  %v1010_v7 = vadd.f32 %v1009_v3, %v11701_v56  ;;  %v1098_v8 = vpop.f32.mrf.mxu1  ;;  %v1418_v27 = vmax.f32 %v1048_v16, 0.0  ;;  %v10727_v16 = vld [vmem:[#allocation4 + $0xd4] sm:$0xf] }
  0xdb   : > { %v1099_v9 = vadd.f32 %v1098_v8, %v11699_v55  ;;  %v1137_v18 = vadd.f32 %v1136_v2, %v11699_v55  ;;  %v10711_v8 = vld [vmem:[#allocation4 + $0x54] sm:$0xf] }
  0xdc   : > { %v1358_v10 = vmax.f32 %v1010_v7, 0.0 }
  0xdd   : > { %v1359_v15 = vmax.f32 %v1099_v9, 0.0  ;;  %v1419_v32 = vmax.f32 %v1137_v18, 0.0  ;;  %v9287_v18 = vld [vmem:[#allocation4 + $0xd8] sm:$0xf0] }
  0xde   : > { %v11710_v17 = vpack.c.bf16 %v1358_v10, %v1354_v6 }
  0xdf   : > { %v1049_v19 = vpop.f32.mrf.mxu2  ;;  %v11713_v22 = vpack.c.bf16 %v1359_v15, %v1355_v52  ;;  %v9223_v52 = vld [vmem:[#allocation4 + $0x58] sm:$0xf0] }
  0xe0   : > { %v1050_v23 = vadd.f32 %v1049_v19, %v11701_v56  ;;  %1720 = vmatmul.bf16.vlgmr.msrb.gmra.mxu0 %v11710_v17  ;;  %v9226_v15 = vor.u32 %v10711_v8, %v9223_v52 }
  0xe1   : > { %1809 = vmatmul.bf16.vlgmr.msrb.gmra.mxu1 %v11713_v22  ;;  %v1012_v26 = vpop.f32.mrf.mxu0 }
  0xe2   : > { %v1138_v24 = vpop.f32.mrf.mxu3  ;;  %v1422_v30 = vmax.f32 %v1050_v23, 0.0  ;;  %v1101_v31 = vpop.f32.mrf.mxu1  ;;  %v1013_v36 = vadd.f32 %v1012_v26, %v11701_v56  ;;  %1892 = vmatpush.bf16.msra.mxu2 %v9226_v15 }
  0xe3   : > { %v1139_v25 = vadd.f32 %v1138_v24, %v11699_v55  ;;  %v1102_v37 = vadd.f32 %v1101_v31, %v11699_v55  ;;  %v9290_v24 = vor.u32 %v10727_v16, %v9287_v18 }
  0xe4   : > { %1189 = vmatmul.bf16.gmra.mxu2 %v11627_v4  ;;  %v11720_v34 = vpack.c.bf16 %v1422_v30, %v1418_v27  ;;  %v1362_v41 = vmax.f32 %v1013_v36, 0.0 }
  0xe5   : > { %v1423_v33 = vmax.f32 %v1139_v25, 0.0  ;;  %v1363_v46 = vmax.f32 %v1102_v37, 0.0  ;;  %1981 = vmatpush.bf16.msra.mxu3 %v9290_v24 }
  0xe7   : > { %1278 = vmatmul.bf16.gmra.mxu3 %v11627_v4  ;;  %v11723_v35 = vpack.c.bf16 %v1423_v33, %v1419_v32  ;;  %v1052_v38 = vpop.f32.mrf.mxu2 }
  0xe8   : > { %v1053_v4 = vadd.f32 %v1052_v38, %v11701_v56 }
  0xe9   : > { %v1014_v40 = vpop.f32.mrf.mxu0 }
  0xea   : > { %v1141_v39 = vpop.f32.mrf.mxu3  ;;  %v1015_v44 = vadd.f32 %v1014_v40, %v11701_v56  ;;  %v1103_v45 = vpop.f32.mrf.mxu1  ;;  %v1426_v0 = vmax.f32 %v1053_v4, 0.0 }
  0xeb   : > { %v1104_v47 = vadd.f32 %v1103_v45, %v11699_v55  ;;  %v1142_v57 = vadd.f32 %v1141_v39, %v11699_v55 }
  0xec   : > { %v1366_v50 = vmax.f32 %v1015_v44, 0.0 }
  0xed   : > { %v1367_v51 = vmax.f32 %v1104_v47, 0.0  ;;  %v1427_v3 = vmax.f32 %v1142_v57, 0.0 }
  0xee   : > { %v11730_v54 = vpack.c.bf16 %v1366_v50, %v1362_v41 }
  0xef   : > { %v1054_v58 = vpop.f32.mrf.mxu2  ;;  %v11733_v59 = vpack.c.bf16 %v1367_v51, %v1363_v46 }
  0xf0   : > { %v1055_v60 = vadd.f32 %v1054_v58, %v11701_v56  ;;  %1725 = vmatmul.bf16.gmra.mxu0 %v11730_v54 }
  0xf1   : > { %1814 = vmatmul.bf16.gmra.mxu1 %v11733_v59  ;;  %v1017_v63 = vpop.f32.mrf.mxu0 }
  0xf2   : > { %v1143_v61 = vpop.f32.mrf.mxu3  ;;  %v1430_v1 = vmax.f32 %v1055_v60, 0.0  ;;  %v1106_v2 = vpop.f32.mrf.mxu1  ;;  %v1018_v10 = vadd.f32 %v1017_v63, %v11701_v56 }
  0xf3   : > { %v1144_v62 = vadd.f32 %v1143_v61, %v11699_v55  ;;  %v1107_v19 = vadd.f32 %v1106_v2, %v11699_v55 }
  0xf4   : > { %1194 = vmatmul.bf16.gmra.mxu2 %v11637_v12  ;;  %v11740_v7 = vpack.c.bf16 %v1430_v1, %v1426_v0  ;;  %v1370_v27 = vmax.f32 %v1018_v10, 0.0 }
  0xf5   : > { %v1431_v6 = vmax.f32 %v1144_v62, 0.0  ;;  %v1371_v31 = vmax.f32 %v1107_v19, 0.0 }
  0xf7   : > { %1283 = vmatmul.bf16.gmra.mxu3 %v11637_v12  ;;  %v11743_v9 = vpack.c.bf16 %v1431_v6, %v1427_v3  ;;  %v1057_v23 = vpop.f32.mrf.mxu2 }
  0xf8   : > { %v1058_v37 = vadd.f32 %v1057_v23, %v11701_v56 }
  0xf9   : > { %v1019_v26 = vpop.f32.mrf.mxu0 }
  0xfa   : > { %v1146_v25 = vpop.f32.mrf.mxu3  ;;  %v1020_v12 = vadd.f32 %v1019_v26, %v11701_v56  ;;  %v1108_v30 = vpop.f32.mrf.mxu1  ;;  %v1434_v50 = vmax.f32 %v1058_v37, 0.0 }
  0xfb   : > { %v1109_v32 = vadd.f32 %v1108_v30, %v11699_v55  ;;  %v1147_v39 = vadd.f32 %v1146_v25, %v11699_v55 }
  0xfc   : > { %v1374_v33 = vmax.f32 %v1020_v12, 0.0 }
  0xfd   : > { %v1375_v36 = vmax.f32 %v1109_v32, 0.0  ;;  %v1435_v57 = vmax.f32 %v1147_v39, 0.0  ;;  %v10709_v39 = vld [vmem:[#allocation4 + $0x44] sm:$0xf] }
  0xfe   : > { %v11750_v38 = vpack.c.bf16 %v1374_v33, %v1370_v27 }
  0xff   : > { %v1059_v40 = vpop.f32.mrf.mxu2  ;;  %v11753_v41 = vpack.c.bf16 %v1375_v36, %v1371_v31 }
 0x100   : > { %v1060_v44 = vadd.f32 %v1059_v40, %v11701_v56  ;;  %1730 = vmatmul.bf16.gmra.mxu0 %v11750_v38  ;;  %v9215_v40 = vld [vmem:[#allocation4 + $0x48] sm:$0xf0] }
 0x101   : > { %1819 = vmatmul.bf16.gmra.mxu1 %v11753_v41  ;;  %v1022_v47 = vpop.f32.mrf.mxu0 }
 0x102   : > { %v1148_v45 = vpop.f32.mrf.mxu3  ;;  %v1438_v51 = vmax.f32 %v1060_v44, 0.0  ;;  %v1111_v4 = vpop.f32.mrf.mxu1  ;;  %v1023_v62 = vadd.f32 %v1022_v47, %v11701_v56  ;;  %v10725_v47 = vld [vmem:[#allocation4 + $0xc4] sm:$0xf] }
 0x103   : > { %v1149_v46 = vadd.f32 %v1148_v45, %v11699_v55  ;;  %v1112_v63 = vadd.f32 %v1111_v4, %v11699_v55 }
 0x104   : > { %1199 = vmatmul.bf16.gmra.mxu2 %v11647_v20  ;;  %v11760_v60 = vpack.c.bf16 %v1438_v51, %v1434_v50  ;;  %v1378_v3 = vmax.f32 %v1023_v62, 0.0  ;;  %v9279_v50 = vld [vmem:[#allocation4 + $0xc8] sm:$0xf0] }
 0x105   : > { %v1439_v58 = vmax.f32 %v1149_v46, 0.0  ;;  %v1379_v52 = vmax.f32 %v1112_v63, 0.0  ;;  %v9218_v46 = vor.u32 %v10709_v39, %v9215_v40 }
 0x107   : > { %1288 = vmatmul.bf16.gmra.mxu3 %v11647_v20  ;;  %v11763_v61 = vpack.c.bf16 %v1439_v58, %v1435_v57  ;;  %v1062_v0 = vpop.f32.mrf.mxu2  ;;  %v9282_v57 = vor.u32 %v10725_v47, %v9279_v50  ;;  %1893 = vmatpush.bf16.msra.mxu2 %v9218_v46 }
 0x108   : > { %v1063_v20 = vadd.f32 %v1062_v0, %v11701_v56 }
 0x109   : > { %v1024_v2 = vpop.f32.mrf.mxu0  ;;  %1982 = vmatpush.bf16.msra.mxu3 %v9282_v57 }
 0x10a   : > { %v1151_v1 = vpop.f32.mrf.mxu3  ;;  %v1025_v6 = vadd.f32 %v1024_v2, %v11701_v56  ;;  %v1113_v8 = vpop.f32.mrf.mxu1  ;;  %v1442_v30 = vmax.f32 %v1063_v20, 0.0 }
 0x10b   : > { %v1114_v10 = vadd.f32 %v1113_v8, %v11699_v55  ;;  %v1152_v19 = vadd.f32 %v1151_v1, %v11699_v55 }
 0x10c   : > { %v1382_v15 = vmax.f32 %v1025_v6, 0.0 }
 0x10d   : > { %v1383_v16 = vmax.f32 %v1114_v10, 0.0  ;;  %v1443_v33 = vmax.f32 %v1152_v19, 0.0 }
 0x10e   : > { %v11770_v18 = vpack.c.bf16 %v1382_v15, %v1378_v3 }
 0x10f   : > { %v1064_v23 = vpop.f32.mrf.mxu2  ;;  %v11773_v24 = vpack.c.bf16 %v1383_v16, %v1379_v52 }
 0x110   : > { %v1065_v25 = vadd.f32 %v1064_v23, %v11701_v56  ;;  %1735 = vmatmul.bf16.gmra.mxu0 %v11770_v18 }
 0x111   : > { %1824 = vmatmul.bf16.gmra.mxu1 %v11773_v24  ;;  %v1027_v12 = vpop.f32.mrf.mxu0 }
 0x112   : > { %v1153_v26 = vpop.f32.mrf.mxu3  ;;  %v1446_v31 = vmax.f32 %v1065_v25, 0.0  ;;  %v1116_v32 = vpop.f32.mrf.mxu1  ;;  %v1028_v45 = vadd.f32 %v1027_v12, %v11701_v56 }
 0x113   : > { %v1154_v27 = vadd.f32 %v1153_v26, %v11699_v55  ;;  %v1117_v51 = vadd.f32 %v1116_v32, %v11699_v55 }
 0x114   : > { %1204 = vmatmul.bf16.gmra.mxu2 %v11657_v28  ;;  %v11780_v37 = vpack.c.bf16 %v1446_v31, %v1442_v30  ;;  %v1386_v63 = vmax.f32 %v1028_v45, 0.0 }
 0x115   : > { %v1447_v36 = vmax.f32 %v1154_v27, 0.0  ;;  %v1387_v1 = vmax.f32 %v1117_v51, 0.0 }
 0x117   : > { %1293 = vmatmul.bf16.gmra.mxu3 %v11657_v28  ;;  %v11783_v44 = vpack.c.bf16 %v1447_v36, %v1443_v33  ;;  %v1067_v4 = vpop.f32.mrf.mxu2 }
 0x118   : > { %v1068_v8 = vadd.f32 %v1067_v4, %v11701_v56 }
 0x119   : > { %v1029_v62 = vpop.f32.mrf.mxu0 }
 0x11a   : > { %v1156_v58 = vpop.f32.mrf.mxu3  ;;  %v1030_v28 = vadd.f32 %v1029_v62, %v11701_v56  ;;  %v1118_v0 = vpop.f32.mrf.mxu1  ;;  %v1450_v26 = vmax.f32 %v1068_v8, 0.0 }
 0x11b   : > { %v1119_v2 = vadd.f32 %v1118_v0, %v11699_v55  ;;  %v1157_v10 = vadd.f32 %v1156_v58, %v11699_v55 }
 0x11c   : > { %v1390_v3 = vmax.f32 %v1030_v28, 0.0 }
 0x11d   : > { %v1391_v6 = vmax.f32 %v1119_v2, 0.0  ;;  %v1451_v30 = vmax.f32 %v1157_v10, 0.0 }
 0x11e   : > { %v11790_v52 = vpack.c.bf16 %v1390_v3, %v1386_v63 }
 0x11f   : > { %v1069_v15 = vpop.f32.mrf.mxu2  ;;  %v11793_v16 = vpack.c.bf16 %v1391_v6, %v1387_v1 }
 0x120   : > { %v1070_v20 = vadd.f32 %v1069_v15, %v11701_v56  ;;  %1740 = vmatmul.bf16.gmra.mxu0 %v11790_v52 }
 0x121   : > { %1829 = vmatmul.bf16.gmra.mxu1 %v11793_v16  ;;  %v1032_v25 = vpop.f32.mrf.mxu0 }
 0x122   : > { %v1158_v19 = vpop.f32.mrf.mxu3  ;;  %v1454_v27 = vmax.f32 %v1070_v20, 0.0  ;;  %v1121_v12 = vpop.f32.mrf.mxu1  ;;  %v1033_v36 = vadd.f32 %v1032_v25, %v11701_v56 }
 0x123   : > { %v1159_v23 = vadd.f32 %v1158_v19, %v11699_v55  ;;  %v1122_v39 = vadd.f32 %v1121_v12, %v11699_v55 }
 0x124   : > { %1209 = vmatmul.bf16.gmra.mxu2 %v11667_v42  ;;  %v11800_v32 = vpack.c.bf16 %v1454_v27, %v1450_v26  ;;  %v1394_v47 = vmax.f32 %v1033_v36, 0.0  ;;  %v10707_v26 = vld [vmem:[#allocation4 + $0x34] sm:$0xf]  ;;  %v9207_v27 = vld [vmem:[#allocation4 + $0x38] sm:$0xf0] }
 0x125   : > { %v1455_v31 = vmax.f32 %v1159_v23, 0.0  ;;  %v1395_v4 = vmax.f32 %v1122_v39, 0.0  ;;  %v10723_v36 = vld [vmem:[#allocation4 + $0xb4] sm:$0xf]  ;;  %v9271_v39 = vld [vmem:[#allocation4 + $0xb8] sm:$0xf0] }
 0x127   : > { %1298 = vmatmul.bf16.gmra.mxu3 %v11667_v42  ;;  %v11803_v33 = vpack.c.bf16 %v1455_v31, %v1451_v30  ;;  %v1072_v40 = vpop.f32.mrf.mxu2  ;;  %v9210_v31 = vor.u32 %v10707_v26, %v9207_v27 }
 0x128   : > { %v1073_v42 = vadd.f32 %v1072_v40, %v11701_v56 }
 0x129   : > { %v1034_v46 = vpop.f32.mrf.mxu0  ;;  %1894 = vmatpush.bf16.msra.mxu2 %v9210_v31 }
 0x12a   : > { %v1161_v45 = vpop.f32.mrf.mxu3  ;;  %v1035_v50 = vadd.f32 %v1034_v46, %v11701_v56  ;;  %v1123_v51 = vpop.f32.mrf.mxu1  ;;  %v1458_v10 = vmax.f32 %v1073_v42, 0.0  ;;  %v9274_v46 = vor.u32 %v10723_v36, %v9271_v39 }
 0x12b   : > { %v1124_v57 = vadd.f32 %v1123_v51, %v11699_v55  ;;  %v1162_v28 = vadd.f32 %v1161_v45, %v11699_v55 }
 0x12c   : > { %v1398_v58 = vmax.f32 %v1035_v50, 0.0  ;;  %1983 = vmatpush.bf16.msra.mxu3 %v9274_v46 }
 0x12d   : > { %v1399_v62 = vmax.f32 %v1124_v57, 0.0  ;;  %v1459_v19 = vmax.f32 %v1162_v28, 0.0 }
 0x12e   : > { %v11810_v63 = vpack.c.bf16 %v1398_v58, %v1394_v47 }
 0x12f   : > { %v1074_v0 = vpop.f32.mrf.mxu2  ;;  %v11813_v1 = vpack.c.bf16 %v1399_v62, %v1395_v4 }
 0x130   : > { %v1075_v2 = vadd.f32 %v1074_v0, %v11701_v56  ;;  %1745 = vmatmul.bf16.gmra.mxu0 %v11810_v63 }
 0x131   : > { %1834 = vmatmul.bf16.gmra.mxu1 %v11813_v1  ;;  %v1037_v8 = vpop.f32.mrf.mxu0 }
 0x132   : > { %v1163_v3 = vpop.f32.mrf.mxu3  ;;  %v1462_v15 = vmax.f32 %v1075_v2, 0.0  ;;  %v1126_v20 = vpop.f32.mrf.mxu1  ;;  %v1038_v30 = vadd.f32 %v1037_v8, %v11701_v56 }
 0x133   : > { %v1164_v6 = vadd.f32 %v1163_v3, %v11699_v55  ;;  %v1127_v40 = vadd.f32 %v1126_v20, %v11699_v55 }
 0x134   : > { %1214 = vmatmul.bf16.gmra.mxu2 %v11677_v11  ;;  %v11820_v25 = vpack.c.bf16 %v1462_v15, %v1458_v10  ;;  %v1402_v51 = vmax.f32 %v1038_v30, 0.0 }
 0x135   : > { %v1463_v23 = vmax.f32 %v1164_v6, 0.0  ;;  %v1403_v57 = vmax.f32 %v1127_v40, 0.0 }
 0x137   : > { %1303 = vmatmul.bf16.gmra.mxu3 %v11677_v11  ;;  %v11823_v12 = vpack.c.bf16 %v1463_v23, %v1459_v19  ;;  %v1077_v45 = vpop.f32.mrf.mxu2 }
 0x138   : > { %v1078_v28 = vadd.f32 %v1077_v45, %v11701_v56 }
 0x139   : > { %v1039_v50 = vpop.f32.mrf.mxu0 }
 0x13a   : > { %v1166_v47 = vpop.f32.mrf.mxu3  ;;  %v1040_v11 = vadd.f32 %v1039_v50, %v11701_v56  ;;  %v1128_v4 = vpop.f32.mrf.mxu1  ;;  %v1466_v19 = vmax.f32 %v1078_v28, 0.0 }
 0x13b   : > { %v1129_v58 = vadd.f32 %v1128_v4, %v11699_v55  ;;  %v1167_v2 = vadd.f32 %v1166_v47, %v11699_v55 }
 0x13c   : > { %v1406_v62 = vmax.f32 %v1040_v11, 0.0 }
 0x13d   : > { %v1407_v42 = vmax.f32 %v1129_v58, 0.0  ;;  %v1467_v27 = vmax.f32 %v1167_v2, 0.0  ;;  %v10029_v2 = vld [vmem:[%s17329_s5 + $0x5a0] sm:$0xf] }
 0x13e   : > { %v11830_v0 = vpack.c.bf16 %v1406_v62, %v1402_v51  ;;  %v10823_v62 = vld [vmem:[%s17329_s5 + $0x2cc] sm:$0xf0] }
 0x13f   : > { %v1079_v3 = vpop.f32.mrf.mxu2  ;;  %v11833_v6 = vpack.c.bf16 %v1407_v42, %v1403_v57 }
 0x140   : > { %v1080_v8 = vadd.f32 %v1079_v3, %v11701_v56  ;;  %1750 = vmatmul.bf16.gmra.mxu0 %v11830_v0  ;;  %v10919_v3 = vld [vmem:[%s17329_s5 + $0x5cc] sm:$0xf0] }
 0x141   : > { %1839 = vmatmul.bf16.gmra.mxu1 %v11833_v6  ;;  %v1042_v20 = vpop.f32.mrf.mxu0 }
 0x142   : > { %v1168_v10 = vpop.f32.mrf.mxu3  ;;  %v1470_v23 = vmax.f32 %v1080_v8, 0.0  ;;  %v1131_v26 = vpop.f32.mrf.mxu1  ;;  %v1043_v39 = vadd.f32 %v1042_v20, %v11701_v56 }
 0x143   : > { %v1169_v15 = vadd.f32 %v1168_v10, %v11699_v55  ;;  %v1132_v40 = vadd.f32 %v1131_v26, %v11699_v55 }
 0x144   : > { %1219 = vmatmul.bf16.gmra.mxu2 %v11687_v48  ;;  %v11840_v31 = vpack.c.bf16 %v1470_v23, %v1466_v19  ;;  %v1410_v50 = vmax.f32 %v1043_v39, 0.0 }
 0x145   : > { %v1471_v30 = vmax.f32 %v1169_v15, 0.0  ;;  %v1411_v4 = vmax.f32 %v1132_v40, 0.0  ;;  %v10030_v15 = vor.u32 %v10919_v3, %v10029_v2 }
 0x147   : > { %1308 = vmatmul.bf16.gmra.mxu3 %v11687_v48  ;;  %v11843_v36 = vpack.c.bf16 %v1471_v30, %v1467_v27  ;;  %v1082_v45 = vpop.f32.mrf.mxu2  ;;  %v9645_v48 = vld [vmem:[%s17329_s5 + $0x2a0] sm:$0xf]  ;;  %3433 = vmatpush.bf16.msra.mxu1 %v10030_v15  ;;  %v10811_v15 = vld [vmem:[%s17329_s5 + $0x26c] sm:$0xf0] }
 0x148   : > { %v9646_v28 = vor.u32 %v10823_v62, %v9645_v48  ;;  %v1083_v8 = vadd.f32 %v1082_v45, %v11701_v56 }
 0x149   : > { %17436 = vst [vmem:[#allocation17_spill] sm:$0xff] %v11843_v36  ;;  %v1044_v47 = vpop.f32.mrf.mxu0 }
 0x14a   : > { %v1171_v46 = vpop.f32.mrf.mxu3  ;;  %v1045_v51 = vadd.f32 %v1044_v47, %v11701_v56  ;;  %v1133_v11 = vpop.f32.mrf.mxu1  ;;  %3344 = vmatpush.bf16.msra.mxu0 %v9646_v28  ;;  %v1474_v39 = vmax.f32 %v1083_v8, 0.0  ;;  %v9597_v8 = vld [vmem:[%s17329_s5 + $0x240] sm:$0xf] }
 0x14b   : > { %v1134_v57 = vadd.f32 %v1133_v11, %v11699_v55  ;;  %v1172_v20 = vadd.f32 %v1171_v46, %v11699_v55 }
 0x14c   : > { %v1414_v58 = vmax.f32 %v1045_v51, 0.0 }
 0x14d   : > { %v1415_v42 = vmax.f32 %v1134_v57, 0.0  ;;  %v1475_v45 = vmax.f32 %v1172_v20, 0.0  ;;  %v10721_v57 = vld [vmem:[#allocation4 + $0xa4] sm:$0xf]  ;;  %v9981_v20 = vld [vmem:[%s17329_s5 + $0x540] sm:$0xf] }
 0x14e   : > { %v11862_v10 = vpack.c.bf16 %v1414_v58, %v1410_v50  ;;  %v10705_v50 = vld [vmem:[#allocation4 + $0x24] sm:$0xf]  ;;  %v9263_v58 = vld [vmem:[#allocation4 + $0xa8] sm:$0xf0] }
 0x14f   : > { %v1084_v19 = vpop.f32.mrf.mxu2  ;;  %v11865_v23 = vpack.c.bf16 %v1415_v42, %v1411_v4  ;;  %v9266_v62 = vor.u32 %v10721_v57, %v9263_v58  ;;  %v10719_v57 = vld [vmem:[#allocation4 + $0x94] sm:$0xf]  ;;  %v9255_v58 = vld [vmem:[#allocation4 + $0x98] sm:$0xf0] }
 0x150   : > { %v1085_v26 = vadd.f32 %v1084_v19, %v11701_v56  ;;  %1755 = vmatmul.bf16.gmra.mxu0 %v11862_v10  ;;  %v9199_v56 = vld [vmem:[#allocation4 + $0x28] sm:$0xf0] }
 0x151   : > { %1844 = vmatmul.bf16.gmra.mxu1 %v11865_v23  ;;  %v9202_v11 = vor.u32 %v10705_v50, %v9199_v56  ;;  %1984 = vmatpush.bf16.msra.mxu3 %v9266_v62 }
 0x152   : > { %v1173_v27 = vpop.f32.mrf.mxu3  ;;  %v1478_v40 = vmax.f32 %v1085_v26, 0.0  ;;  %v10907_v26 = vld [vmem:[%s17329_s5 + $0x56c] sm:$0xf0] }
 0x153   : > { %v1174_v30 = vadd.f32 %v1173_v27, %v11699_v55  ;;  %1895 = vmatpush.bf16.msra.mxu2 %v9202_v11  ;;  %v9982_v27 = vor.u32 %v10907_v26, %v9981_v20 }
 0x154   : > { %1224 = vmatmul.bf16.gmra.mxu2 %v11620_v53  ;;  %v11872_v46 = vpack.c.bf16 %v1478_v40, %v1474_v39 }
 0x155   : > { %v1479_v47 = vmax.f32 %v1174_v30, 0.0  ;;  %3434 = vmatpush.bf16.msra.mxu1 %v9982_v27 }
 0x157   : > { %1313 = vmatmul.bf16.gmra.mxu3 %v11620_v53  ;;  %v11875_v51 = vpack.c.bf16 %v1479_v47, %v1475_v45  ;;  %v11877_v4 = vpop.f32.mrf.mxu2  ;;  %v10703_v45 = vld [vmem:[#allocation4 + $0x14] sm:$0xf]  ;;  %v9191_v47 = vld [vmem:[#allocation4 + $0x18] sm:$0xf0] }
 0x158   : > { %17437 = vst [vmem:[#allocation18_spill] sm:$0xff] %v11877_v4  ;;  %v9194_v50 = vor.u32 %v10703_v45, %v9191_v47  ;;  %v9549_v45 = vld [vmem:[%s17329_s5 + $0x1e0] sm:$0xf]  ;;  %v10799_v47 = vld [vmem:[%s17329_s5 + $0x20c] sm:$0xf0] }
 0x15a   : > { %v11879_v55 = vpop.f32.mrf.mxu3  ;;  %1896 = vmatpush.bf16.msra.mxu2 %v9194_v50 }
 0x15b   : > { %17438 = vst [vmem:[#allocation19_spill] sm:$0xff] %v11879_v55 }
 0x15d   : > { %v11881_v48 = vpop.f32.mrf.mxu0 }
 0x15e   : > { %v11941_v27 = vpop.f32.mrf.mxu1 }
 0x15f   : > { %v11883_v42 = vpop.f32.mrf.mxu2 }
 0x160   : > { %17439 = vst [vmem:[#allocation20_spill] sm:$0xff] %v11883_v42  ;;  %1760 = vmatmul.bf16.gmra.mxu0 %v11720_v34 }
 0x161   : > { %1849 = vmatmul.bf16.gmra.mxu1 %v11723_v35 }
 0x162   : > { %v11885_v28 = vpop.f32.mrf.mxu3 }
 0x163   : > { %17440 = vst [vmem:[#allocation21_spill] sm:$0xff] %v11885_v28 }
 0x164   : > { %1229 = vmatmul.bf16.gmra.mxu2 %v11630_v5 }
 0x165   : > { %v11891_v53 = vpop.f32.mrf.mxu0 }
 0x167   : > { %1318 = vmatmul.bf16.gmra.mxu3 %v11630_v5  ;;  %v11893_v2 = vpop.f32.mrf.mxu2  ;;  %v9598_v5 = vor.u32 %v10811_v15, %v9597_v8  ;;  %v9258_v8 = vor.u32 %v10719_v57, %v9255_v58  ;;  %v9550_v57 = vor.u32 %v10799_v47, %v9549_v45  ;;  %v10895_v58 = vld [vmem:[%s17329_s5 + $0x50c] sm:$0xf0]  ;;  %v10701_v47 = vld [vmem:[#allocation4 + $0x4] sm:$0xf] }
 0x168   : > { %17441 = vst [vmem:[#allocation22_spill] sm:$0xff] %v11893_v2 }
 0x169   : > { %3345 = vmatpush.bf16.msra.mxu0 %v9598_v5  ;;  %1985 = vmatpush.bf16.msra.mxu3 %v9258_v8 }
 0x16a   : > { %v11895_v3 = vpop.f32.mrf.mxu3 }
 0x16b   : > { %17442 = vst [vmem:[#allocation23_spill] sm:$0xff] %v11895_v3 }
 0x16d   : > { %v11906_v19 = vpop.f32.mrf.mxu0  ;;  %3346 = vmatpush.bf16.msra.mxu0 %v9550_v57 }
 0x16f   : > { %v11911_v30 = vpop.f32.mrf.mxu2 }
 0x170   : > { %17443 = vst [vmem:[#allocation24_spill] sm:$0xff] %v11911_v30  ;;  %1765 = vmatmul.bf16.gmra.mxu0 %v11740_v7 }
 0x171   : > { %1854 = vmatmul.bf16.gmra.mxu1 %v11743_v9 }
 0x172   : > { %v11913_v39 = vpop.f32.mrf.mxu3 }
 0x173   : > { %17444 = vst [vmem:[#allocation25_spill] sm:$0xff] %v11913_v39 }
 0x174   : > { %1234 = vmatmul.bf16.gmra.mxu2 %v11640_v13 }
 0x175   : > { %v11919_v40 = vpop.f32.mrf.mxu0 }
 0x177   : > { %1323 = vmatmul.bf16.gmra.mxu3 %v11640_v13  ;;  %v11921_v56 = vpop.f32.mrf.mxu2 }
 0x178   : > { %17445 = vst [vmem:[#allocation26_spill] sm:$0xff] %v11921_v56 }
 0x17a   : > { %v11923_v11 = vpop.f32.mrf.mxu3 }
 0x17b   : > { %17446 = vst [vmem:[#allocation27_spill] sm:$0xff] %v11923_v11  ;;  %v11964_v11 = vpop.f32.mrf.mxu1 }
 0x17d   : > { %v11925_v62 = vpop.f32.mrf.mxu0 }
 0x17f   : > { %v11927_v15 = vpop.f32.mrf.mxu2 }
 0x180   : > { %17447 = vst [vmem:[#allocation28_spill] sm:$0xff] %v11927_v15  ;;  %1770 = vmatmul.bf16.gmra.mxu0 %v11760_v60 }
 0x181   : > { %1859 = vmatmul.bf16.gmra.mxu1 %v11763_v61 }
 0x182   : > { %v11929_v20 = vpop.f32.mrf.mxu3 }
 0x183   : > { %17448 = vst [vmem:[#allocation29_spill] sm:$0xff] %v11929_v20  ;;  %v11975_v55 = vpop.f32.mrf.mxu1 }
 0x184   : > { %1239 = vmatmul.bf16.gmra.mxu2 %v11650_v21 }
 0x185   : > { %v11935_v13 = vpop.f32.mrf.mxu0 }
 0x187   : > { %1328 = vmatmul.bf16.gmra.mxu3 %v11650_v21  ;;  %v11937_v5 = vpop.f32.mrf.mxu2  ;;  %v9933_v21 = vld [vmem:[%s17329_s5 + $0x4e0] sm:$0xf] }
 0x188   : > { %17449 = vst [vmem:[#allocation30_spill] sm:$0xff] %v11937_v5  ;;  %v9934_v8 = vor.u32 %v10895_v58, %v9933_v21  ;;  %v9183_v21 = vld [vmem:[#allocation4 + $0x8] sm:$0xf0] }
 0x189   : > { %v9186_v58 = vor.u32 %v10701_v47, %v9183_v21 }
 0x18a   : > { %v11939_v26 = vpop.f32.mrf.mxu3  ;;  %3435 = vmatpush.bf16.msra.mxu1 %v9934_v8  ;;  %v9247_v8 = vld [vmem:[#allocation4 + $0x88] sm:$0xf0] }
 0x18b   : > { %17450 = vst [vmem:[#allocation31_spill] sm:$0xff] %v11939_v26  ;;  %1897 = vmatpush.bf16.msra.mxu2 %v9186_v58  ;;  %v11991_v58 = vpop.f32.mrf.mxu1 }
 0x18d   : > { %v11952_v50 = vpop.f32.mrf.mxu0 }
 0x18f   : > { %v11957_v26 = vpop.f32.mrf.mxu2 }
 0x190   : > { %17451 = vst [vmem:[#allocation32_spill] sm:$0xff] %v11957_v26  ;;  %1775 = vmatmul.bf16.gmra.mxu0 %v11780_v37 }
 0x191   : > { %1864 = vmatmul.bf16.gmra.mxu1 %v11783_v44 }
 0x192   : > { %v11959_v20 = vpop.f32.mrf.mxu3 }
 0x193   : > { %17452 = vst [vmem:[#allocation33_spill] sm:$0xff] %v11959_v20  ;;  %v10717_v20 = vld [vmem:[#allocation4 + $0x84] sm:$0xf] }
 0x194   : > { %1244 = vmatmul.bf16.gmra.mxu2 %v11660_v29  ;;  %v9250_v28 = vor.u32 %v10717_v20, %v9247_v8  ;;  %v10787_v8 = vld [vmem:[%s17329_s5 + $0x1ac] sm:$0xf0] }
 0x195   : > { %v11967_v45 = vpop.f32.mrf.mxu0 }
 0x196   : > { %1986 = vmatpush.bf16.msra.mxu3 %v9250_v28  ;;  %v9501_v28 = vld [vmem:[%s17329_s5 + $0x180] sm:$0xf] }
 0x197   : > { %1333 = vmatmul.bf16.gmra.mxu3 %v11660_v29  ;;  %v11969_v39 = vpop.f32.mrf.mxu2 }
 0x198   : > { %17453 = vst [vmem:[#allocation34_spill] sm:$0xff] %v11969_v39  ;;  %v9453_v39 = vld [vmem:[%s17329_s5 + $0x120] sm:$0xf] }
 0x19a   : > { %v11971_v57 = vpop.f32.mrf.mxu3 }
 0x19b   : > { %17454 = vst [vmem:[#allocation35_spill] sm:$0xff] %v11971_v57  ;;  %v10883_v57 = vld [vmem:[%s17329_s5 + $0x4ac] sm:$0xf0] }
 0x19d   : > { %v11973_v3 = vpop.f32.mrf.mxu0 }
 0x19f   : > { %v11977_v26 = vpop.f32.mrf.mxu2 }
 0x1a0   : > { %17455 = vst [vmem:[#allocation36_spill] sm:$0xff] %v11977_v26  ;;  %1780 = vmatmul.bf16.gmra.mxu0 %v11800_v32 }
 0x1a1   : > { %1869 = vmatmul.bf16.gmra.mxu1 %v11803_v33 }
 0x1a2   : > { %v11979_v29 = vpop.f32.mrf.mxu3 }
 0x1a3   : > { %17456 = vst [vmem:[#allocation37_spill] sm:$0xff] %v11979_v29  ;;  %v9502_v29 = vor.u32 %v10787_v8, %v9501_v28  ;;  %v10775_v28 = vld [vmem:[%s17329_s5 + $0x14c] sm:$0xf0] }
 0x1a4   : > { %1249 = vmatmul.bf16.gmra.mxu2 %v11670_v43  ;;  %v9454_v5 = vor.u32 %v10775_v28, %v9453_v39  ;;  %v10817_v39 = vld [vmem:[%s17329_s5 + $0x2a4] sm:$0xf] }
 0x1a5   : > { %v11985_v47 = vpop.f32.mrf.mxu0  ;;  %3347 = vmatpush.bf16.msra.mxu0 %v9502_v29  ;;  %v9405_v29 = vld [vmem:[%s17329_s5 + $0xc0] sm:$0xf] }
 0x1a7   : > { %1338 = vmatmul.bf16.gmra.mxu3 %v11670_v43  ;;  %v11987_v21 = vpop.f32.mrf.mxu2  ;;  %v9885_v43 = vld [vmem:[%s17329_s5 + $0x480] sm:$0xf] }
 0x1a8   : > { %17457 = vst [vmem:[#allocation38_spill] sm:$0xff] %v11987_v21  ;;  %v9886_v21 = vor.u32 %v10883_v57, %v9885_v43  ;;  %v12019_v57 = vpop.f32.mrf.mxu1 }
 0x1a9   : > { %3348 = vmatpush.bf16.msra.mxu0 %v9454_v5  ;;  %v9647_v5 = vld [vmem:[%s17329_s5 + $0x2d0] sm:$0xf0] }
 0x1aa   : > { %v11989_v20 = vpop.f32.mrf.mxu3  ;;  %3436 = vmatpush.bf16.msra.mxu1 %v9886_v21  ;;  %v10763_v21 = vld [vmem:[%s17329_s5 + $0xec] sm:$0xf0]  ;;  %v9650_v28 = vor.u32 %v10817_v39, %v9647_v5  ;;  %v9309_v39 = vld [vmem:[%s17329_s5] sm:$0xf]  ;;  %v10913_v5 = vld [vmem:[%s17329_s5 + $0x5a4] sm:$0xf] }
 0x1ab   : > { %17458 = vst [vmem:[#allocation39_spill] sm:$0xff] %v11989_v20  ;;  %v9406_v43 = vor.u32 %v10763_v21, %v9405_v29  ;;  %v9357_v29 = vld [vmem:[%s17329_s5 + $0x60] sm:$0xf] }
 0x1ac   : > { %3522 = vmatpush.bf16.msrb.mxu2 %v9650_v28 }
 0x1ad   : > { %v12005_v20 = vpop.f32.mrf.mxu0  ;;  %3349 = vmatpush.bf16.msra.mxu0 %v9406_v43  ;;  %v10739_v43 = vld [vmem:[%s17329_s5 + $0x2c] sm:$0xf0] }
 0x1af   : > { %v12007_v26 = vpop.f32.mrf.mxu2 }
 0x1b0   : > { %17459 = vst [vmem:[#allocation40_spill] sm:$0xff] %v12007_v26  ;;  %1785 = vmatmul.bf16.gmra.mxu0 %v11820_v25  ;;  %v12059_v28 = vpop.f32.mrf.mxu1 }
 0x1b1   : > { %1874 = vmatmul.bf16.gmra.mxu1 %v11823_v12 }
 0x1b2   : > { %v12015_v8 = vpop.f32.mrf.mxu3 }
 0x1b3   : > { %17460 = vst [vmem:[#allocation41_spill] sm:$0xff] %v12015_v8 }
 0x1b4   : > { %1254 = vmatmul.bf16.gmra.mxu2 %v11680_v14 }
 0x1b5   : > { %v12029_v8 = vpop.f32.mrf.mxu0 }
 0x1b7   : > { %1343 = vmatmul.bf16.gmra.mxu3 %v11680_v14  ;;  %v12037_v26 = vpop.f32.mrf.mxu2  ;;  %v10751_v14 = vld [vmem:[%s17329_s5 + $0x8c] sm:$0xf0] }
 0x1b8   : > { %17461 = vst [vmem:[#allocation42_spill] sm:$0xff] %v12037_v26  ;;  %v9358_v15 = vor.u32 %v10751_v14, %v9357_v29  ;;  %v10031_v26 = vld [vmem:[%s17329_s5 + $0x5d0] sm:$0xf0] }
 0x1b9   : > { %v10034_v29 = vor.u32 %v10913_v5, %v10031_v26 }
 0x1ba   : > { %v12045_v21 = vpop.f32.mrf.mxu3  ;;  %3350 = vmatpush.bf16.msra.mxu0 %v9358_v15 }
 0x1bb   : > { %17462 = vst [vmem:[#allocation43_spill] sm:$0xff] %v12045_v21  ;;  %v9310_v21 = vor.u32 %v10739_v43, %v9309_v39  ;;  %3611 = vmatpush.bf16.msrb.mxu3 %v10034_v29  ;;  %v12073_v43 = vpop.f32.mrf.mxu1  ;;  %v10871_v29 = vld [vmem:[%s17329_s5 + $0x44c] sm:$0xf0] }
 0x1bd   : > { %v12061_v15 = vpop.f32.mrf.mxu0 }
 0x1be   : > { %3351 = vmatpush.bf16.msra.mxu0 %v9310_v21  ;;  %v12082_v21 = vld [vmem:[%s17328_s4] sm:$0x3] }
 0x1bf   : > { %v12063_v14 = vpop.f32.mrf.mxu2  ;;  %v12085_v5 = vperm.slane %v12082_v21, 0 }
 0x1c0   : > { %17463 = vst [vmem:[#allocation44_spill] sm:$0xff] %v12063_v14  ;;  %1790 = vmatmul.bf16.gmra.mxu0 %v11840_v31 }
 0x1c1   : > { %1879 = vmatmul.bf16.gmra.mxu1 %v11843_v36  ;;  %v1722_v14 = vadd.f32 %v11881_v48, %v12085_v5  ;;  %v1724_v2 = vadd.f32 %v11891_v53, %v12085_v5  ;;  %v10805_v53 = vld [vmem:[%s17329_s5 + $0x244] sm:$0xf] }
 0x1c2   : > { %v12065_v56 = vpop.f32.mrf.mxu3 }
 0x1c3   : > { %17464 = vst [vmem:[#allocation45_spill] sm:$0xff] %v12065_v56  ;;  %v12104_v4 = vpop.f32.mrf.mxu1  ;;  %v1811_v36 = vadd.f32 %v11941_v27, %v1722_v14 }
 0x1c4   : > { %1259 = vmatmul.bf16.gmra.mxu2 %v11690_v49 }
 0x1c5   : > { %v12071_v39 = vpop.f32.mrf.mxu0  ;;  %v2068_v27 = vmax.f32 %v1811_v36, 0.0 }
 0x1c7   : > { %1348 = vmatmul.bf16.gmra.mxu3 %v11690_v49  ;;  %v12075_v30 = vpop.f32.mrf.mxu2  ;;  %v9837_v49 = vld [vmem:[%s17329_s5 + $0x420] sm:$0xf] }
 0x1c8   : > { %17465 = vst [vmem:[#allocation46_spill] sm:$0xff] %v12075_v30  ;;  %v9838_v30 = vor.u32 %v10871_v29, %v9837_v49  ;;  %v1813_v49 = vadd.f32 %v11964_v11, %v1724_v2  ;;  %v9983_v11 = vld [vmem:[%s17329_s5 + $0x570] sm:$0xf0] }
 0x1ca   : > { %v12077_v26 = vpop.f32.mrf.mxu3  ;;  %3437 = vmatpush.bf16.msra.mxu1 %v9838_v30  ;;  %v9599_v30 = vld [vmem:[%s17329_s5 + $0x270] sm:$0xf0]  ;;  %v2070_v14 = vmax.f32 %v1813_v49, 0.0  ;;  %v1727_v49 = vadd.f32 %v11906_v19, %v12085_v5 }
 0x1cb   : > { %17466 = vst [vmem:[#allocation47_spill] sm:$0xff] %v12077_v26  ;;  %v9602_v29 = vor.u32 %v10805_v53, %v9599_v30  ;;  %v12133_v30 = vpop.f32.mrf.mxu1 }
 0x1cd   : > { %v12093_v56 = vpop.f32.mrf.mxu0  ;;  %3523 = vmatpush.bf16.msrb.mxu2 %v9602_v29  ;;  %v1729_v29 = vadd.f32 %v11919_v40, %v12085_v5 }
 0x1cf   : > { %v12095_v26 = vpop.f32.mrf.mxu2 }
 0x1d0   : > { %17467 = vst [vmem:[#allocation48_spill] sm:$0xff] %v12095_v26  ;;  %1795 = vmatmul.bf16.gmra.mxu0 %v11872_v46 }
 0x1d1   : > { %1884 = vmatmul.bf16.gmra.mxu1 %v11875_v51 }
 0x1d2   : > { %v12101_v42 = vpop.f32.mrf.mxu3 }
 0x1d3   : > { %17468 = vst [vmem:[#allocation49_spill] sm:$0xff] %v12101_v42  ;;  %v1832_v40 = vpop.f32.mrf.mxu1 }
 0x1d4   : > { %1898 = vmatmul.bf16.vlgmr.msra.gmra.mxu2 %v11710_v17  ;;  %v12123_v17 = vpack.c.bf16 %v2070_v14, %v2068_v27  ;;  %v1816_v14 = vadd.f32 %v11975_v55, %v1727_v49  ;;  %v9789_v55 = vld [vmem:[%s17329_s5 + $0x3c0] sm:$0xf] }
 0x1d5   : > { %v12111_v48 = vpop.f32.mrf.mxu0 }
 0x1d6   : > { %17470 = vst [vmem:[#allocation51_spill] sm:$0xff] %v12123_v17  ;;  %v2072_v19 = vmax.f32 %v1816_v14, 0.0 }
 0x1d7   : > { %1987 = vmatmul.bf16.vlgmr.msra.gmra.mxu3 %v11713_v22  ;;  %v12119_v42 = vpop.f32.mrf.mxu2  ;;  %v10901_v22 = vld [vmem:[%s17329_s5 + $0x544] sm:$0xf] }
 0x1d8   : > { %v9986_v53 = vor.u32 %v10901_v22, %v9983_v11 }
 0x1da   : > { %v12121_v2 = vpop.f32.mrf.mxu3  ;;  %3612 = vmatpush.bf16.msrb.mxu3 %v9986_v53 }
 0x1db   : > { %17469 = vst [vmem:[#allocation50_spill] sm:$0xff] %v12121_v2  ;;  %v1818_v2 = vadd.f32 %v11991_v58, %v1729_v29  ;;  %v1734_v29 = vadd.f32 %v11935_v13, %v12085_v5  ;;  %v9551_v13 = vld [vmem:[%s17329_s5 + $0x210] sm:$0xf0] }
 0x1dd   : > { %v12131_v26 = vpop.f32.mrf.mxu0  ;;  %v2074_v53 = vmax.f32 %v1818_v2, 0.0  ;;  %v1732_v2 = vadd.f32 %v11925_v62, %v12085_v5  ;;  %v10793_v62 = vld [vmem:[%s17329_s5 + $0x1e4] sm:$0xf] }
 0x1df   : > { %v12135_v36 = vpop.f32.mrf.mxu2 }
 0x1e0   : > { %17471 = vst [vmem:[#allocation52_spill] sm:$0xff] %v12135_v36  ;;  %3352 = vmatmul.bf16.vlgmr.msra.gmra.mxu0 %v12123_v17 }
 0x1e2   : > { %v12141_v27 = vpop.f32.mrf.mxu3 }
 0x1e3   : > { %17472 = vst [vmem:[#allocation53_spill] sm:$0xff] %v12141_v27  ;;  %v12154_v27 = vpack.c.bf16 %v2074_v53, %v2072_v19  ;;  %v12173_v19 = vpop.f32.mrf.mxu1  ;;  %v1821_v53 = vadd.f32 %v12019_v57, %v1732_v2 }
 0x1e4   : > { %1903 = vmatmul.bf16.gmra.mxu2 %v11730_v54  ;;  %v10859_v54 = vld [vmem:[%s17329_s5 + $0x3ec] sm:$0xf0] }
 0x1e5   : > { %v12148_v22 = vpop.f32.mrf.mxu0  ;;  %17474 = vst [vmem:[#allocation55_spill] sm:$0xff] %v12154_v27  ;;  %v9790_v58 = vor.u32 %v10859_v54, %v9789_v55  ;;  %v9554_v54 = vor.u32 %v10793_v62, %v9551_v13  ;;  %v2076_v57 = vmax.f32 %v1821_v53, 0.0  ;;  %v1739_v53 = vadd.f32 %v11967_v45, %v12085_v5 }
 0x1e7   : > { %1992 = vmatmul.bf16.gmra.mxu3 %v11733_v59  ;;  %v12150_v11 = vpop.f32.mrf.mxu2  ;;  %3438 = vmatpush.bf16.msra.mxu1 %v9790_v58 }
 0x1e8   : > { %3524 = vmatpush.bf16.msrb.mxu2 %v9554_v54 }
 0x1ea   : > { %v12152_v36 = vpop.f32.mrf.mxu3 }
 0x1eb   : > { %17473 = vst [vmem:[#allocation54_spill] sm:$0xff] %v12152_v36  ;;  %v1823_v36 = vadd.f32 %v12059_v28, %v1734_v29  ;;  %v9935_v29 = vld [vmem:[%s17329_s5 + $0x510] sm:$0xf0] }
 0x1ed   : > { %v12162_v59 = vpop.f32.mrf.mxu0  ;;  %v2078_v2 = vmax.f32 %v1823_v36, 0.0  ;;  %v1737_v36 = vadd.f32 %v11952_v50, %v12085_v5 }
 0x1ef   : > { %v12164_v49 = vpop.f32.mrf.mxu2 }
 0x1f0   : > { %17475 = vst [vmem:[#allocation56_spill] sm:$0xff] %v12164_v49  ;;  %3357 = vmatmul.bf16.gmra.mxu0 %v12154_v27 }
 0x1f2   : > { %v12170_v14 = vpop.f32.mrf.mxu3 }
 0x1f3   : > { %17476 = vst [vmem:[#allocation57_spill] sm:$0xff] %v12170_v14  ;;  %v1837_v14 = vpop.f32.mrf.mxu1 }
 0x1f4   : > { %1908 = vmatmul.bf16.gmra.mxu2 %v11750_v38  ;;  %v12191_v38 = vpack.c.bf16 %v2078_v2, %v2076_v57  ;;  %v1826_v57 = vadd.f32 %v12073_v43, %v1737_v36  ;;  %v1828_v2 = vadd.f32 %v12104_v4, %v1739_v53  ;;  %v9741_v4 = vld [vmem:[%s17329_s5 + $0x360] sm:$0xf]  ;;  %v1742_v53 = vadd.f32 %v11973_v3, %v12085_v5  ;;  %v10781_v3 = vld [vmem:[%s17329_s5 + $0x184] sm:$0xf] }
 0x1f5   : > { %v12179_v55 = vpop.f32.mrf.mxu0 }
 0x1f6   : > { %17478 = vst [vmem:[#allocation59_spill] sm:$0xff] %v12191_v38  ;;  %v2082_v45 = vmax.f32 %v1828_v2, 0.0 }
 0x1f7   : > { %1997 = vmatmul.bf16.gmra.mxu3 %v11753_v41  ;;  %v12187_v58 = vpop.f32.mrf.mxu2  ;;  %v10889_v41 = vld [vmem:[%s17329_s5 + $0x4e4] sm:$0xf] }
 0x1f8   : > { %v9938_v62 = vor.u32 %v10889_v41, %v9935_v29 }
 0x1fa   : > { %v12189_v28 = vpop.f32.mrf.mxu3  ;;  %3613 = vmatpush.bf16.msrb.mxu3 %v9938_v62  ;;  %v2080_v62 = vmax.f32 %v1826_v57, 0.0  ;;  %v1744_v57 = vadd.f32 %v11985_v47, %v12085_v5  ;;  %v9503_v47 = vld [vmem:[%s17329_s5 + $0x1b0] sm:$0xf0] }
 0x1fb   : > { %17477 = vst [vmem:[#allocation58_spill] sm:$0xff] %v12189_v28  ;;  %v12216_v29 = vpop.f32.mrf.mxu1 }
 0x1fd   : > { %v12199_v49 = vpop.f32.mrf.mxu0 }
 0x1ff   : > { %v12201_v13 = vpop.f32.mrf.mxu2 }
 0x200   : > { %17479 = vst [vmem:[#allocation60_spill] sm:$0xff] %v12201_v13  ;;  %3362 = vmatmul.bf16.gmra.mxu0 %v12191_v38 }
 0x202   : > { %v12207_v54 = vpop.f32.mrf.mxu3 }
 0x203   : > { %17480 = vst [vmem:[#allocation61_spill] sm:$0xff] %v12207_v54  ;;  %v12222_v54 = vpack.c.bf16 %v2082_v45, %v2080_v62  ;;  %v1842_v62 = vpop.f32.mrf.mxu1  ;;  %v1831_v45 = vadd.f32 %v12133_v30, %v1742_v53  ;;  %v10877_v53 = vld [vmem:[%s17329_s5 + $0x484] sm:$0xf] }
 0x204   : > { %1913 = vmatmul.bf16.gmra.mxu2 %v11770_v18  ;;  %v10847_v18 = vld [vmem:[%s17329_s5 + $0x38c] sm:$0xf0] }
 0x205   : > { %v12214_v41 = vpop.f32.mrf.mxu0  ;;  %17483 = vst [vmem:[#allocation64_spill] sm:$0xff] %v12222_v54  ;;  %v9742_v43 = vor.u32 %v10847_v18, %v9741_v4  ;;  %v9506_v18 = vor.u32 %v10781_v3, %v9503_v47 }
 0x207   : > { %2002 = vmatmul.bf16.gmra.mxu3 %v11773_v24  ;;  %v12218_v50 = vpop.f32.mrf.mxu2  ;;  %3439 = vmatpush.bf16.msra.mxu1 %v9742_v43 }
 0x208   : > { %17481 = vst [vmem:[#allocation62_spill] sm:$0xff] %v12218_v50  ;;  %3525 = vmatpush.bf16.msrb.mxu2 %v9506_v18 }
 0x20a   : > { %v12220_v28 = vpop.f32.mrf.mxu3 }
 0x20b   : > { %17482 = vst [vmem:[#allocation63_spill] sm:$0xff] %v12220_v28  ;;  %v1833_v28 = vadd.f32 %v1832_v40, %v1744_v57  ;;  %v9887_v57 = vld [vmem:[%s17329_s5 + $0x4b0] sm:$0xf0] }
 0x20c   : > { %v9890_v3 = vor.u32 %v10877_v53, %v9887_v57 }
 0x20d   : > { %v12230_v24 = vpop.f32.mrf.mxu0  ;;  %v2086_v30 = vmax.f32 %v1833_v28, 0.0  ;;  %v1747_v28 = vadd.f32 %v12005_v20, %v12085_v5 }
 0x20e   : > { %3614 = vmatpush.bf16.msrb.mxu3 %v9890_v3 }
 0x20f   : > { %v12232_v36 = vpop.f32.mrf.mxu2  ;;  %v1836_v18 = vadd.f32 %v12173_v19, %v1747_v28  ;;  %v9693_v19 = vld [vmem:[%s17329_s5 + $0x300] sm:$0xf] }
 0x210   : > { %17484 = vst [vmem:[#allocation65_spill] sm:$0xff] %v12232_v36  ;;  %3367 = vmatmul.bf16.gmra.mxu0 %v12222_v54 }
 0x211   : > { %v2088_v20 = vmax.f32 %v1836_v18, 0.0  ;;  %v1752_v18 = vadd.f32 %v12061_v15, %v12085_v5  ;;  %v10769_v15 = vld [vmem:[%s17329_s5 + $0x124] sm:$0xf] }
 0x212   : > { %v12238_v2 = vpop.f32.mrf.mxu3 }
 0x213   : > { %17485 = vst [vmem:[#allocation66_spill] sm:$0xff] %v12238_v2  ;;  %v2084_v2 = vmax.f32 %v1831_v45, 0.0 }
 0x214   : > { %1918 = vmatmul.bf16.gmra.mxu2 %v11790_v52  ;;  %v1845_v52 = vpop.f32.mrf.mxu1 }
 0x215   : > { %v12244_v4 = vpop.f32.mrf.mxu0 }
 0x217   : > { %2007 = vmatmul.bf16.gmra.mxu3 %v11793_v16  ;;  %v12252_v43 = vpop.f32.mrf.mxu2  ;;  %v12256_v16 = vpack.c.bf16 %v2086_v30, %v2084_v2  ;;  %v1749_v2 = vadd.f32 %v12029_v8, %v12085_v5 }
 0x218   : > { %17486 = vst [vmem:[#allocation67_spill] sm:$0xff] %v12252_v43 }
 0x219   : > { %17488 = vst [vmem:[#allocation69_spill] sm:$0xff] %v12256_v16  ;;  %v1838_v30 = vadd.f32 %v1837_v14, %v1749_v2 }
 0x21a   : > { %v12254_v40 = vpop.f32.mrf.mxu3 }
 0x21b   : > { %17487 = vst [vmem:[#allocation68_spill] sm:$0xff] %v12254_v40  ;;  %v2090_v3 = vmax.f32 %v1838_v30, 0.0  ;;  %v1754_v30 = vadd.f32 %v12071_v39, %v12085_v5  ;;  %v9455_v39 = vld [vmem:[%s17329_s5 + $0x150] sm:$0xf0] }
 0x21c   : > { %v1847_v40 = vpop.f32.mrf.mxu1 }
 0x21d   : > { %v12264_v36 = vpop.f32.mrf.mxu0  ;;  %v12284_v8 = vpack.c.bf16 %v2090_v3, %v2088_v20  ;;  %v1841_v3 = vadd.f32 %v12216_v29, %v1752_v18  ;;  %v10865_v18 = vld [vmem:[%s17329_s5 + $0x424] sm:$0xf] }
 0x21f   : > { %v12266_v47 = vpop.f32.mrf.mxu2  ;;  %17493 = vst [vmem:[#allocation74_spill] sm:$0xff] %v12284_v8 }
 0x220   : > { %17489 = vst [vmem:[#allocation70_spill] sm:$0xff] %v12266_v47  ;;  %3372 = vmatmul.bf16.gmra.mxu0 %v12256_v16 }
 0x222   : > { %v12272_v45 = vpop.f32.mrf.mxu3 }
 0x223   : > { %17490 = vst [vmem:[#allocation71_spill] sm:$0xff] %v12272_v45 }
 0x224   : > { %1923 = vmatmul.bf16.gmra.mxu2 %v11810_v63  ;;  %v10835_v63 = vld [vmem:[%s17329_s5 + $0x32c] sm:$0xf0]  ;;  %v12294_v28 = vpop.f32.mrf.mxu1 }
 0x225   : > { %v12278_v53 = vpop.f32.mrf.mxu0 }
 0x227   : > { %2012 = vmatmul.bf16.gmra.mxu3 %v11813_v1  ;;  %v12280_v57 = vpop.f32.mrf.mxu2  ;;  %v9694_v1 = vor.u32 %v10835_v63, %v9693_v19  ;;  %v9458_v63 = vor.u32 %v10769_v15, %v9455_v39 }
 0x228   : > { %17491 = vst [vmem:[#allocation72_spill] sm:$0xff] %v12280_v57 }
 0x229   : > { %3440 = vmatpush.bf16.msra.mxu1 %v9694_v1  ;;  %3526 = vmatpush.bf16.msrb.mxu2 %v9458_v63 }
 0x22a   : > { %v12282_v47 = vpop.f32.mrf.mxu3 }
 0x22b   : > { %17492 = vst [vmem:[#allocation73_spill] sm:$0xff] %v12282_v47  ;;  %v1843_v47 = vadd.f32 %v1842_v62, %v1754_v30  ;;  %v9839_v30 = vld [vmem:[%s17329_s5 + $0x450] sm:$0xf0] }
 0x22c   : > { %v9842_v15 = vor.u32 %v10865_v18, %v9839_v30 }
 0x22d   : > { %v12292_v14 = vpop.f32.mrf.mxu0  ;;  %v2094_v29 = vmax.f32 %v1843_v47, 0.0  ;;  %v1757_v47 = vadd.f32 %v12093_v56, %v12085_v5 }
 0x22e   : > { %3615 = vmatpush.bf16.msrb.mxu3 %v9842_v15 }
 0x22f   : > { %v12296_v2 = vpop.f32.mrf.mxu2 }
 0x230   : > { %17494 = vst [vmem:[#allocation75_spill] sm:$0xff] %v12296_v2  ;;  %3377 = vmatmul.bf16.gmra.mxu0 %v12284_v8 }
 0x232   : > { %v12302_v20 = vpop.f32.mrf.mxu3 }
 0x233   : > { %17495 = vst [vmem:[#allocation76_spill] sm:$0xff] %v12302_v20  ;;  %v2092_v20 = vmax.f32 %v1841_v3, 0.0 }
 0x234   : > { %1928 = vmatmul.bf16.gmra.mxu2 %v11830_v0  ;;  %v1852_v0 = vpop.f32.mrf.mxu1 }
 0x235   : > { %v12308_v19 = vpop.f32.mrf.mxu0 }
 0x237   : > { %2017 = vmatmul.bf16.gmra.mxu3 %v11833_v6  ;;  %v12316_v1 = vpop.f32.mrf.mxu2  ;;  %v12320_v6 = vpack.c.bf16 %v2094_v29, %v2092_v20  ;;  %v1759_v20 = vadd.f32 %v12111_v48, %v12085_v5  ;;  %v1846_v29 = vadd.f32 %v1845_v52, %v1757_v47  ;;  %v10920_v47 = vld [vmem:[%s17329_s5 + $0x5d4] sm:$0xf0] }
 0x238   : > { %17496 = vst [vmem:[#allocation77_spill] sm:$0xff] %v12316_v1 }
 0x239   : > { %17498 = vst [vmem:[#allocation79_spill] sm:$0xff] %v12320_v6  ;;  %v2096_v56 = vmax.f32 %v1846_v29, 0.0 }
 0x23a   : > { %v12318_v62 = vpop.f32.mrf.mxu3 }
 0x23b   : > { %17497 = vst [vmem:[#allocation78_spill] sm:$0xff] %v12318_v62  ;;  %v1848_v62 = vadd.f32 %v1847_v40, %v1759_v20 }
 0x23c   : > { %v12339_v63 = vpop.f32.mrf.mxu1 }
 0x23d   : > { %v12328_v45 = vpop.f32.mrf.mxu0  ;;  %v2098_v15 = vmax.f32 %v1848_v62, 0.0 }
 0x23f   : > { %v12330_v39 = vpop.f32.mrf.mxu2  ;;  %v12349_v48 = vpack.c.bf16 %v2098_v15, %v2096_v56  ;;  %v1764_v15 = vadd.f32 %v12148_v22, %v12085_v5  ;;  %v10853_v22 = vld [vmem:[%s17329_s5 + $0x3c4] sm:$0xf] }
 0x240   : > { %17499 = vst [vmem:[#allocation80_spill] sm:$0xff] %v12330_v39  ;;  %3382 = vmatmul.bf16.gmra.mxu0 %v12320_v6 }
 0x241   : > { %17503 = vst [vmem:[#allocation84_spill] sm:$0xff] %v12349_v48 }
 0x242   : > { %v12336_v3 = vpop.f32.mrf.mxu3 }
 0x243   : > { %17500 = vst [vmem:[#allocation81_spill] sm:$0xff] %v12336_v3  ;;  %v9653_v3 = vld [vmem:[%s17329_s5 + $0x2a8] sm:$0xf] }
 0x244   : > { %1933 = vmatmul.bf16.gmra.mxu2 %v11862_v10  ;;  %v10824_v10 = vld [vmem:[%s17329_s5 + $0x2d4] sm:$0xf0]  ;;  %v1857_v40 = vpop.f32.mrf.mxu1 }
 0x245   : > { %v12343_v18 = vpop.f32.mrf.mxu0  ;;  %v9654_v62 = vor.u32 %v10824_v10, %v9653_v3  ;;  %v1853_v10 = vadd.f32 %v1852_v0, %v1764_v15 }
 0x247   : > { %2022 = vmatmul.bf16.gmra.mxu3 %v11865_v23  ;;  %v12345_v30 = vpop.f32.mrf.mxu2  ;;  %v10037_v23 = vld [vmem:[%s17329_s5 + $0x5a8] sm:$0xf]  ;;  %3700 = vmatpush.bf16.msrb.mxu0 %v9654_v62  ;;  %v9407_v62 = vld [vmem:[%s17329_s5 + $0xf0] sm:$0xf0] }
 0x248   : > { %17501 = vst [vmem:[#allocation82_spill] sm:$0xff] %v12345_v30  ;;  %v10038_v20 = vor.u32 %v10920_v47, %v10037_v23  ;;  %v10757_v23 = vld [vmem:[%s17329_s5 + $0xc4] sm:$0xf] }
 0x249   : > { %v9410_v47 = vor.u32 %v10757_v23, %v9407_v62 }
 0x24a   : > { %v12347_v39 = vpop.f32.mrf.mxu3  ;;  %3789 = vmatpush.bf16.msrb.mxu1 %v10038_v20  ;;  %v12394_v20 = vperm.slane %v12082_v21, 1 }
 0x24b   : > { %17502 = vst [vmem:[#allocation83_spill] sm:$0xff] %v12347_v39  ;;  %v1762_v39 = vadd.f32 %v12131_v26, %v12085_v5  ;;  %3527 = vmatpush.bf16.msrb.mxu2 %v9410_v47 }
 0x24c   : > { %v12387_v26 = vpop.f32.mrf.mxu1 }
 0x24d   : > { %v12360_v52 = vpop.f32.mrf.mxu0  ;;  %v1851_v0 = vadd.f32 %v12294_v28, %v1762_v39  ;;  %v1769_v39 = vadd.f32 %v12179_v55, %v12085_v5 }
 0x24f   : > { %v12365_v29 = vpop.f32.mrf.mxu2  ;;  %v2100_v30 = vmax.f32 %v1851_v0, 0.0 }
 0x250   : > { %17504 = vst [vmem:[#allocation85_spill] sm:$0xff] %v12365_v29  ;;  %3387 = vmatmul.bf16.gmra.mxu0 %v12349_v48  ;;  %v2102_v29 = vmax.f32 %v1853_v10, 0.0 }
 0x252   : > { %v12367_v56 = vpop.f32.mrf.mxu3  ;;  %v12399_v23 = vpack.c.bf16 %v2102_v29, %v2100_v30  ;;  %v1858_v30 = vadd.f32 %v1857_v40, %v1769_v39 }
 0x253   : > { %17505 = vst [vmem:[#allocation86_spill] sm:$0xff] %v12367_v56 }
 0x254   : > { %1938 = vmatmul.bf16.gmra.mxu2 %v11720_v34  ;;  %17506 = vst [vmem:[#allocation87_spill] sm:$0xff] %v12399_v23  ;;  %v1862_v21 = vpop.f32.mrf.mxu1  ;;  %v2106_v55 = vmax.f32 %v1858_v30, 0.0  ;;  %v1774_v30 = vadd.f32 %v12214_v41, %v12085_v5  ;;  %v10745_v41 = vld [vmem:[%s17329_s5 + $0x64] sm:$0xf] }
 0x255   : > { %v12376_v3 = vpop.f32.mrf.mxu0 }
 0x257   : > { %2027 = vmatmul.bf16.gmra.mxu3 %v11723_v35  ;;  %v1899_v34 = vpop.f32.mrf.mxu2  ;;  %v9791_v35 = vld [vmem:[%s17329_s5 + $0x3f0] sm:$0xf0] }
 0x258   : > { %v9794_v56 = vor.u32 %v10853_v22, %v9791_v35  ;;  %v1900_v1 = vadd.f32 %v1899_v34, %v12394_v20 }
 0x25a   : > { %v1988_v15 = vpop.f32.mrf.mxu3  ;;  %3616 = vmatpush.bf16.msrb.mxu3 %v9794_v56  ;;  %v1767_v56 = vadd.f32 %v12162_v59, %v12085_v5 }
 0x25b   : > { %v1989_v57 = vadd.f32 %v1988_v15, %v1900_v1  ;;  %v9989_v15 = vld [vmem:[%s17329_s5 + $0x548] sm:$0xf] }
 0x25c   : > { %v1856_v35 = vadd.f32 %v12339_v63, %v1767_v56 }
 0x25d   : > { %v12397_v2 = vpop.f32.mrf.mxu0  ;;  %v2069_v22 = vmax.f32 %v1989_v57, 0.0 }
 0x25e   : > { %v2104_v59 = vmax.f32 %v1856_v35, 0.0  ;;  %v1772_v35 = vadd.f32 %v12199_v49, %v12085_v5  ;;  %v9359_v49 = vld [vmem:[%s17329_s5 + $0x90] sm:$0xf0] }
 0x25f   : > { %v1901_v62 = vpop.f32.mrf.mxu2 }
 0x260   : > { %v1902_v43 = vadd.f32 %v1901_v62, %v12394_v20  ;;  %3392 = vmatmul.bf16.gmra.mxu0 %v12399_v23  ;;  %v10908_v62 = vld [vmem:[%s17329_s5 + $0x574] sm:$0xf0] }
 0x261   : > { %v9990_v39 = vor.u32 %v10908_v62, %v9989_v15  ;;  %v9362_v15 = vor.u32 %v10745_v41, %v9359_v49  ;;  %v1777_v49 = vadd.f32 %v12230_v24, %v12085_v5 }
 0x262   : > { %v1990_v28 = vpop.f32.mrf.mxu3 }
 0x263   : > { %v1991_v10 = vadd.f32 %v1990_v28, %v1902_v43  ;;  %v12415_v43 = vpop.f32.mrf.mxu1  ;;  %v12432_v28 = vpack.c.bf16 %v2106_v55, %v2104_v59  ;;  %3790 = vmatpush.bf16.msrb.mxu1 %v9990_v39  ;;  %3528 = vmatpush.bf16.msrb.mxu2 %v9362_v15 }
 0x264   : > { %1943 = vmatmul.bf16.gmra.mxu2 %v11740_v7  ;;  %v9605_v7 = vld [vmem:[%s17329_s5 + $0x248] sm:$0xf] }
 0x265   : > { %v2071_v34 = vmax.f32 %v1991_v10, 0.0  ;;  %v12409_v1 = vpop.f32.mrf.mxu0 }
 0x267   : > { %2032 = vmatmul.bf16.gmra.mxu3 %v11743_v9  ;;  %v12411_v29 = vpack.c.bf16 %v2071_v34, %v2069_v22  ;;  %v1904_v47 = vpop.f32.mrf.mxu2  ;;  %v10812_v9 = vld [vmem:[%s17329_s5 + $0x274] sm:$0xf0] }
 0x268   : > { %v1905_v57 = vadd.f32 %v1904_v47, %v12394_v20  ;;  %v9606_v63 = vor.u32 %v10812_v9, %v9605_v7 }
 0x269   : > { %3441 = vmatmul.bf16.vlgmr.msra.gmra.mxu1 %v12411_v29 }
 0x26a   : > { %v1993_v0 = vpop.f32.mrf.mxu3  ;;  %3701 = vmatpush.bf16.msrb.mxu0 %v9606_v63 }
 0x26b   : > { %v1994_v56 = vadd.f32 %v1993_v0, %v1905_v57  ;;  %v1867_v59 = vpop.f32.mrf.mxu1  ;;  %v1863_v57 = vadd.f32 %v1862_v21, %v1774_v30  ;;  %v1861_v21 = vadd.f32 %v12387_v26, %v1772_v35  ;;  %v1779_v35 = vadd.f32 %v12244_v4, %v12085_v5 }
 0x26d   : > { %v12424_v40 = vpop.f32.mrf.mxu0  ;;  %v2073_v7 = vmax.f32 %v1994_v56, 0.0  ;;  %v2108_v56 = vmax.f32 %v1861_v21, 0.0 }
 0x26f   : > { %v1906_v10 = vpop.f32.mrf.mxu2 }
 0x270   : > { %v1907_v22 = vadd.f32 %v1906_v10, %v12394_v20  ;;  %3397 = vmatmul.bf16.gmra.mxu0 %v12432_v28  ;;  %v2110_v10 = vmax.f32 %v1863_v57, 0.0 }
 0x272   : > { %v1995_v34 = vpop.f32.mrf.mxu3  ;;  %v12463_v30 = vpack.c.bf16 %v2110_v10, %v2108_v56 }
 0x273   : > { %v1996_v47 = vadd.f32 %v1995_v34, %v1907_v22 }
 0x274   : > { %1948 = vmatmul.bf16.gmra.mxu2 %v11760_v60  ;;  %v10841_v60 = vld [vmem:[%s17329_s5 + $0x364] sm:$0xf] }
 0x275   : > { %v2075_v55 = vmax.f32 %v1996_v47, 0.0  ;;  %v12442_v0 = vpop.f32.mrf.mxu0  ;;  %v1870_v47 = vpop.f32.mrf.mxu1 }
 0x277   : > { %2037 = vmatmul.bf16.gmra.mxu3 %v11763_v61  ;;  %v12444_v9 = vpack.c.bf16 %v2075_v55, %v2073_v7  ;;  %v1909_v63 = vpop.f32.mrf.mxu2  ;;  %v9743_v61 = vld [vmem:[%s17329_s5 + $0x390] sm:$0xf0] }
 0x278   : > { %v9746_v39 = vor.u32 %v10841_v60, %v9743_v61  ;;  %v1910_v22 = vadd.f32 %v1909_v63, %v12394_v20  ;;  %v1868_v61 = vadd.f32 %v1867_v59, %v1779_v35 }
 0x279   : > { %3446 = vmatmul.bf16.gmra.mxu1 %v12444_v9 }
 0x27a   : > { %v1998_v62 = vpop.f32.mrf.mxu3  ;;  %3617 = vmatpush.bf16.msrb.mxu3 %v9746_v39  ;;  %v1866_v39 = vadd.f32 %v12415_v43, %v1777_v49  ;;  %v2114_v56 = vmax.f32 %v1868_v61, 0.0  ;;  %v9941_v43 = vld [vmem:[%s17329_s5 + $0x4e8] sm:$0xf] }
 0x27b   : > { %v1999_v55 = vadd.f32 %v1998_v62, %v1910_v22 }
 0x27c   : > { %v2112_v24 = vmax.f32 %v1866_v39, 0.0  ;;  %v1782_v39 = vadd.f32 %v12264_v36, %v12085_v5  ;;  %v10829_v36 = vld [vmem:[%s17329_s5 + $0x304] sm:$0xf] }
 0x27d   : > { %v12461_v34 = vpop.f32.mrf.mxu0  ;;  %v2077_v60 = vmax.f32 %v1999_v55, 0.0  ;;  %v1872_v4 = vpop.f32.mrf.mxu1  ;;  %v10896_v55 = vld [vmem:[%s17329_s5 + $0x514] sm:$0xf0] }
 0x27f   : > { %v1911_v7 = vpop.f32.mrf.mxu2 }
 0x280   : > { %v1912_v41 = vadd.f32 %v1911_v7, %v12394_v20  ;;  %3402 = vmatmul.bf16.gmra.mxu0 %v12463_v30 }
 0x282   : > { %v2000_v26 = vpop.f32.mrf.mxu3 }
 0x283   : > { %v2001_v57 = vadd.f32 %v2000_v26, %v1912_v41  ;;  %v12494_v41 = vpack.c.bf16 %v2114_v56, %v2112_v24  ;;  %v9942_v26 = vor.u32 %v10896_v55, %v9941_v43 }
 0x284   : > { %1953 = vmatmul.bf16.gmra.mxu2 %v11780_v37  ;;  %v9557_v37 = vld [vmem:[%s17329_s5 + $0x1e8] sm:$0xf] }
 0x285   : > { %v2079_v63 = vmax.f32 %v2001_v57, 0.0  ;;  %v12473_v15 = vpop.f32.mrf.mxu0  ;;  %17507 = vst [vmem:[#allocation88_spill] sm:$0xff] %v12494_v41  ;;  %3791 = vmatpush.bf16.msrb.mxu1 %v9942_v26 }
 0x287   : > { %2042 = vmatmul.bf16.gmra.mxu3 %v11783_v44  ;;  %v12475_v21 = vpack.c.bf16 %v2079_v63, %v2077_v60  ;;  %v1914_v62 = vpop.f32.mrf.mxu2  ;;  %v10800_v44 = vld [vmem:[%s17329_s5 + $0x214] sm:$0xf0]  ;;  %v1784_v63 = vadd.f32 %v12278_v53, %v12085_v5  ;;  %v10733_v53 = vld [vmem:[%s17329_s5 + $0x4] sm:$0xf] }
 0x288   : > { %v1915_v22 = vadd.f32 %v1914_v62, %v12394_v20  ;;  %v9558_v7 = vor.u32 %v10800_v44, %v9557_v37  ;;  %v1875_v62 = vpop.f32.mrf.mxu1  ;;  %v9311_v44 = vld [vmem:[%s17329_s5 + $0x30] sm:$0xf0] }
 0x289   : > { %3451 = vmatmul.bf16.gmra.mxu1 %v12475_v21 }
 0x28a   : > { %v2003_v10 = vpop.f32.mrf.mxu3  ;;  %3702 = vmatpush.bf16.msrb.mxu0 %v9558_v7  ;;  %v9314_v7 = vor.u32 %v10733_v53, %v9311_v44  ;;  %v1787_v53 = vadd.f32 %v12292_v14, %v12085_v5  ;;  %v9509_v14 = vld [vmem:[%s17329_s5 + $0x188] sm:$0xf] }
 0x28b   : > { %v2004_v57 = vadd.f32 %v2003_v10, %v1915_v22  ;;  %v1873_v22 = vadd.f32 %v1872_v4, %v1784_v63  ;;  %v1871_v4 = vadd.f32 %v1870_v47, %v1782_v39  ;;  %v1789_v39 = vadd.f32 %v12308_v19, %v12085_v5 }
 0x28c   : > { %3529 = vmatpush.bf16.msrb.mxu2 %v9314_v7 }
 0x28d   : > { %v12486_v59 = vpop.f32.mrf.mxu0  ;;  %v2081_v56 = vmax.f32 %v2004_v57, 0.0  ;;  %v2118_v26 = vmax.f32 %v1873_v22, 0.0 }
 0x28f   : > { %v1916_v35 = vpop.f32.mrf.mxu2 }
 0x290   : > { %v1917_v49 = vadd.f32 %v1916_v35, %v12394_v20  ;;  %3407 = vmatmul.bf16.gmra.mxu0 %v12494_v41  ;;  %v2116_v35 = vmax.f32 %v1871_v4, 0.0 }
 0x292   : > { %v2005_v60 = vpop.f32.mrf.mxu3  ;;  %v12524_v63 = vpack.c.bf16 %v2118_v26, %v2116_v35 }
 0x293   : > { %v2006_v61 = vadd.f32 %v2005_v60, %v1917_v49  ;;  %v1877_v49 = vpop.f32.mrf.mxu1 }
 0x294   : > { %1958 = vmatmul.bf16.gmra.mxu2 %v11800_v32  ;;  %17508 = vst [vmem:[#allocation89_spill] sm:$0xff] %v12524_v63  ;;  %v1878_v7 = vadd.f32 %v1877_v49, %v1789_v39  ;;  %v10884_v49 = vld [vmem:[%s17329_s5 + $0x4b4] sm:$0xf0]  ;;  %v9461_v39 = vld [vmem:[%s17329_s5 + $0x128] sm:$0xf] }
 0x295   : > { %v2083_v24 = vmax.f32 %v2006_v61, 0.0  ;;  %v12504_v10 = vpop.f32.mrf.mxu0 }
 0x296   : > { %v2122_v19 = vmax.f32 %v1878_v7, 0.0 }
 0x297   : > { %2047 = vmatmul.bf16.gmra.mxu3 %v11803_v33  ;;  %v12506_v37 = vpack.c.bf16 %v2083_v24, %v2081_v56  ;;  %v1919_v32 = vpop.f32.mrf.mxu2  ;;  %v9695_v33 = vld [vmem:[%s17329_s5 + $0x330] sm:$0xf0] }
 0x298   : > { %v9698_v55 = vor.u32 %v10829_v36, %v9695_v33  ;;  %v1920_v57 = vadd.f32 %v1919_v32, %v12394_v20 }
 0x299   : > { %3456 = vmatmul.bf16.gmra.mxu1 %v12506_v37 }
 0x29a   : > { %v2008_v43 = vpop.f32.mrf.mxu3  ;;  %3618 = vmatpush.bf16.msrb.mxu3 %v9698_v55  ;;  %v1876_v55 = vadd.f32 %v1875_v62, %v1787_v53  ;;  %v9893_v62 = vld [vmem:[%s17329_s5 + $0x488] sm:$0xf] }
 0x29b   : > { %v2009_v56 = vadd.f32 %v2008_v43, %v1920_v57  ;;  %v1880_v4 = vpop.f32.mrf.mxu1 }
 0x29d   : > { %v12522_v60 = vpop.f32.mrf.mxu0  ;;  %v2085_v44 = vmax.f32 %v2009_v56, 0.0  ;;  %v9894_v56 = vor.u32 %v10884_v49, %v9893_v62  ;;  %v17510_v62 = vld [vmem:[#allocation17_spill] sm:$0xff] }
 0x29f   : > { %v1921_v61 = vpop.f32.mrf.mxu2  ;;  %3792 = vmatpush.bf16.msrb.mxu1 %v9894_v56 }
 0x2a0   : > { %v1922_v24 = vadd.f32 %v1921_v61, %v12394_v20  ;;  %3412 = vmatmul.bf16.gmra.mxu0 %v12524_v63 }
 0x2a2   : > { %v2010_v47 = vpop.f32.mrf.mxu3 }
 0x2a3   : > { %v2011_v22 = vadd.f32 %v2010_v47, %v1922_v24 }
 0x2a4   : > { %1963 = vmatmul.bf16.gmra.mxu2 %v11820_v25  ;;  %v10788_v25 = vld [vmem:[%s17329_s5 + $0x1b4] sm:$0xf0] }
 0x2a5   : > { %v2087_v36 = vmax.f32 %v2011_v22, 0.0  ;;  %v12534_v32 = vpop.f32.mrf.mxu0  ;;  %v9510_v57 = vor.u32 %v10788_v25, %v9509_v14  ;;  %v10776_v22 = vld [vmem:[%s17329_s5 + $0x154] sm:$0xf0]  ;;  %v9413_v14 = vld [vmem:[%s17329_s5 + $0xc8] sm:$0xf]  ;;  %v1792_v25 = vadd.f32 %v12328_v45, %v12085_v5 }
 0x2a6   : > { %v9462_v7 = vor.u32 %v10776_v22, %v9461_v39  ;;  %v9655_v45 = vld [vmem:[%s17329_s5 + $0x2d8] sm:$0xf0] }
 0x2a7   : > { %2052 = vmatmul.bf16.gmra.mxu3 %v11823_v12  ;;  %v12536_v33 = vpack.c.bf16 %v2087_v36, %v2085_v44  ;;  %v1924_v43 = vpop.f32.mrf.mxu2  ;;  %v2120_v12 = vmax.f32 %v1876_v55, 0.0  ;;  %3703 = vmatpush.bf16.msrb.mxu0 %v9510_v57  ;;  %v1794_v55 = vadd.f32 %v12343_v18, %v12085_v5 }
 0x2a8   : > { %v1925_v35 = vadd.f32 %v1924_v43, %v12394_v20  ;;  %v1882_v43 = vpop.f32.mrf.mxu1 }
 0x2a9   : > { %3461 = vmatmul.bf16.gmra.mxu1 %v12536_v33  ;;  %v12554_v24 = vpack.c.bf16 %v2122_v19, %v2120_v12  ;;  %v1883_v49 = vadd.f32 %v1882_v43, %v1794_v55 }
 0x2aa   : > { %v2013_v26 = vpop.f32.mrf.mxu3 }
 0x2ab   : > { %17509 = vst [vmem:[#allocation90_spill] sm:$0xff] %v12554_v24  ;;  %v2014_v53 = vadd.f32 %v2013_v26, %v1925_v35  ;;  %3704 = vmatpush.bf16.msrb.mxu0 %v9462_v7  ;;  %v10764_v26 = vld [vmem:[%s17329_s5 + $0xf4] sm:$0xf0]  ;;  %v1881_v7 = vadd.f32 %v1880_v4, %v1792_v25 }
 0x2ac   : > { %v9414_v57 = vor.u32 %v10764_v26, %v9413_v14  ;;  %v2126_v14 = vmax.f32 %v1883_v49, 0.0 }
 0x2ad   : > { %v12552_v61 = vpop.f32.mrf.mxu0  ;;  %v2089_v12 = vmax.f32 %v2014_v53, 0.0  ;;  %v10039_v53 = vld [vmem:[%s17329_s5 + $0x5d8] sm:$0xf0] }
 0x2af   : > { %v1926_v47 = vpop.f32.mrf.mxu2  ;;  %3705 = vmatpush.bf16.msrb.mxu0 %v9414_v57  ;;  %v2124_v57 = vmax.f32 %v1881_v7, 0.0 }
 0x2b0   : > { %v1927_v44 = vadd.f32 %v1926_v47, %v12394_v20  ;;  %3417 = vmatmul.bf16.gmra.mxu0 %v12554_v24  ;;  %v10818_v47 = vld [vmem:[%s17329_s5 + $0x2ac] sm:$0xf]  ;;  %v1885_v26 = vpop.f32.mrf.mxu1 }
 0x2b1   : > { %v9658_v22 = vor.u32 %v10818_v47, %v9655_v45  ;;  %v12608_v47 = vpack.c.bf16 %v2126_v14, %v2124_v57  ;;  %v17517_v24 = vld [vmem:[#allocation22_spill] sm:$0xff] }
 0x2b2   : > { %v2015_v36 = vpop.f32.mrf.mxu3 }
 0x2b3   : > { %v2016_v19 = vadd.f32 %v2015_v36, %v1927_v44  ;;  %v9365_v44 = vld [vmem:[%s17329_s5 + $0x68] sm:$0xf]  ;;  %v10752_v36 = vld [vmem:[%s17329_s5 + $0x94] sm:$0xf0]  ;;  %3878 = vmatpush.bf16.msra.mxu2 %v9658_v22  ;;  %17511 = vst [vmem:[#allocation17_spill] sm:$0xff] %v12608_v47 }
 0x2b4   : > { %1968 = vmatmul.bf16.gmra.mxu2 %v11840_v31  ;;  %v10914_v31 = vld [vmem:[%s17329_s5 + $0x5ac] sm:$0xf] }
 0x2b5   : > { %v2091_v35 = vmax.f32 %v2016_v19, 0.0  ;;  %v12576_v18 = vpop.f32.mrf.mxu0  ;;  %v10042_v55 = vor.u32 %v10914_v31, %v10039_v53  ;;  %v9366_v19 = vor.u32 %v10752_v36, %v9365_v44  ;;  %v1799_v53 = vadd.f32 %v12376_v3, %v12085_v5 }
 0x2b7   : > { %2057 = vmatmul.bf16.gmra.mxu3 %v17510_v62  ;;  %v12578_v56 = vpack.c.bf16 %v2091_v35, %v2089_v12  ;;  %v1929_v39 = vpop.f32.mrf.mxu2  ;;  %3706 = vmatpush.bf16.msrb.mxu0 %v9366_v19  ;;  %v9317_v12 = vld [vmem:[%s17329_s5 + $0x8] sm:$0xf]  ;;  %v10740_v35 = vld [vmem:[%s17329_s5 + $0x34] sm:$0xf0] }
 0x2b8   : > { %3967 = vmatpush.bf16.msra.mxu3 %v10042_v55  ;;  %v1930_v4 = vadd.f32 %v1929_v39, %v12394_v20  ;;  %v9318_v25 = vor.u32 %v10740_v35, %v9317_v12  ;;  %v1797_v39 = vadd.f32 %v12360_v52, %v12085_v5  ;;  %v1887_v55 = vpop.f32.mrf.mxu1 }
 0x2b9   : > { %3466 = vmatmul.bf16.gmra.mxu1 %v12578_v56  ;;  %v1888_v19 = vadd.f32 %v1887_v55, %v1799_v53  ;;  %v10806_v55 = vld [vmem:[%s17329_s5 + $0x24c] sm:$0xf] }
 0x2ba   : > { %v2018_v43 = vpop.f32.mrf.mxu3  ;;  %v1886_v35 = vadd.f32 %v1885_v26, %v1797_v39 }
 0x2bb   : > { %3707 = vmatpush.bf16.msrb.mxu0 %v9318_v25  ;;  %v2019_v45 = vadd.f32 %v2018_v43, %v1930_v4  ;;  %v2130_v3 = vmax.f32 %v1888_v19, 0.0  ;;  %v9607_v19 = vld [vmem:[%s17329_s5 + $0x278] sm:$0xf0] }
 0x2bc   : > { %v2128_v4 = vmax.f32 %v1886_v35, 0.0  ;;  %v9610_v35 = vor.u32 %v10806_v55, %v9607_v19  ;;  %v17513_v55 = vld [vmem:[#allocation18_spill] sm:$0xff] }
 0x2bd   : > { %v12606_v62 = vpop.f32.mrf.mxu0  ;;  %v2093_v36 = vmax.f32 %v2019_v45, 0.0 }
 0x2be   : > { %3879 = vmatpush.bf16.msra.mxu2 %v9610_v35 }
 0x2bf   : > { %v1931_v49 = vpop.f32.mrf.mxu2 }
 0x2c0   : > { %v1932_v31 = vadd.f32 %v1931_v49, %v12394_v20  ;;  %3422 = vmatmul.bf16.gmra.mxu0 %v12608_v47  ;;  %v12632_v49 = vpack.c.bf16 %v2130_v3, %v2128_v4  ;;  %v10902_v3 = vld [vmem:[%s17329_s5 + $0x54c] sm:$0xf]  ;;  %v9991_v4 = vld [vmem:[%s17329_s5 + $0x578] sm:$0xf0] }
 0x2c2   : > { %v2020_v22 = vpop.f32.mrf.mxu3  ;;  %17512 = vst [vmem:[#allocation91_spill] sm:$0xff] %v12632_v49 }
 0x2c3   : > { %v2021_v44 = vadd.f32 %v2020_v22, %v1932_v31 }
 0x2c4   : > { %1973 = vmatmul.bf16.gmra.mxu2 %v11872_v46  ;;  %v9845_v46 = vld [vmem:[%s17329_s5 + $0x428] sm:$0xf] }
 0x2c5   : > { %v2095_v7 = vmax.f32 %v2021_v44, 0.0  ;;  %v12618_v43 = vpop.f32.mrf.mxu0 }
 0x2c7   : > { %2062 = vmatmul.bf16.gmra.mxu3 %v11875_v51  ;;  %v12620_v14 = vpack.c.bf16 %v2095_v7, %v2093_v36  ;;  %v1934_v12 = vpop.f32.mrf.mxu2  ;;  %v10872_v51 = vld [vmem:[%s17329_s5 + $0x454] sm:$0xf0] }
 0x2c8   : > { %v1935_v5 = vadd.f32 %v1934_v12, %v12394_v20  ;;  %v9846_v25 = vor.u32 %v10872_v51, %v9845_v46  ;;  %v12659_v51 = vld [vmem:[%s17330_s6] sm:$0xff] }
 0x2c9   : > { %3471 = vmatmul.bf16.gmra.mxu1 %v12620_v14 }
 0x2ca   : > { %v2023_v57 = vpop.f32.mrf.mxu3  ;;  %3793 = vmatpush.bf16.msrb.mxu1 %v9846_v25 }
 0x2cb   : > { %v2024_v45 = vadd.f32 %v2023_v57, %v1935_v5  ;;  %v9994_v5 = vor.u32 %v10902_v3, %v9991_v4 }
 0x2cd   : > { %v12630_v52 = vpop.f32.mrf.mxu0  ;;  %v2097_v44 = vmax.f32 %v2024_v45, 0.0  ;;  %3968 = vmatpush.bf16.msra.mxu3 %v9994_v5 }
 0x2cf   : > { %v1936_v26 = vpop.f32.mrf.mxu2 }
 0x2d0   : > { %v1937_v31 = vadd.f32 %v1936_v26, %v12394_v20  ;;  %3427 = vmatmul.bf16.gmra.mxu0 %v12632_v49  ;;  %v12666_v26 = vld [vmem:[%s17326_s2] sm:$0xf] }
 0x2d1   : > { %v12669_v45 = vperm.slane %v12666_v26, 2 }
 0x2d2   : > { %v2025_v22 = vpop.f32.mrf.mxu3 }
 0x2d3   : > { %v2026_v53 = vadd.f32 %v2025_v22, %v1937_v31  ;;  %v12672_v22 = vperm.slane %v12659_v51, 0  ;;  %v1186_v19 = vadd.f32 %v17513_v55, %v12669_v45  ;;  %v1191_v63 = vadd.f32 %v17517_v24, %v12669_v45  ;;  %v10794_v24 = vld [vmem:[%s17329_s5 + $0x1ec] sm:$0xf] }
 0x2d4   : > { %3530 = vmatmul.bf16.vlgmr.msrb.gmra.mxu2 %v12123_v17 }
 0x2d5   : > { %v2099_v39 = vmax.f32 %v2026_v53, 0.0  ;;  %v12638_v36 = vpop.f32.mrf.mxu0  ;;  %v3354_v35 = vadd.f32 %v12397_v2, %v12672_v22  ;;  %v17515_v2 = vld [vmem:[#allocation20_spill] sm:$0xff]  ;;  %v3359_v13 = vadd.f32 %v12424_v40, %v12672_v22 }
 0x2d6   : > { %v9559_v40 = vld [vmem:[%s17329_s5 + $0x218] sm:$0xf0] }
 0x2d7   : > { %3619 = vmatmul.bf16.vlgmr.msrb.gmra.mxu3 %v12411_v29  ;;  %v12640_v7 = vpack.c.bf16 %v2099_v39, %v2097_v44  ;;  %v1939_v12 = vpop.f32.mrf.mxu2 }
 0x2d8   : > { %v1940_v46 = vadd.f32 %v1939_v12, %v12394_v20 }
 0x2d9   : > { %3476 = vmatmul.bf16.gmra.mxu1 %v12640_v7 }
 0x2da   : > { %v2028_v57 = vpop.f32.mrf.mxu3 }
 0x2db   : > { %v2029_v53 = vadd.f32 %v2028_v57, %v1940_v46  ;;  %v1356_v46 = vmax.f32 %v1186_v19, 0.0  ;;  %v9797_v19 = vld [vmem:[%s17329_s5 + $0x3c8] sm:$0xf] }
 0x2dd   : > { %v12661_v25 = vpop.f32.mrf.mxu0  ;;  %v2101_v3 = vmax.f32 %v2029_v53, 0.0  ;;  %v1188_v53 = vadd.f32 %v17515_v2, %v12669_v45 }
 0x2df   : > { %v1941_v31 = vpop.f32.mrf.mxu2 }
 0x2e0   : > { %v1942_v44 = vadd.f32 %v1941_v31, %v12394_v20  ;;  %3708 = vmatmul.bf16.vlgmr.msrb.gmra.mxu0 %v12123_v17 }
 0x2e2   : > { %v2030_v39 = vpop.f32.mrf.mxu3 }
 0x2e3   : > { %v2031_v12 = vadd.f32 %v2030_v39, %v1942_v44  ;;  %v3356_v39 = vadd.f32 %v12409_v1, %v12672_v22 }
 0x2e4   : > { %3535 = vmatmul.bf16.gmra.mxu2 %v12154_v27 }
 0x2e5   : > { %v2103_v4 = vmax.f32 %v2031_v12, 0.0  ;;  %v12682_v5 = vpop.f32.mrf.mxu0 }
 0x2e6   : > { %v3442_v57 = vpop.f32.mrf.mxu1 }
 0x2e7   : > { %3624 = vmatmul.bf16.gmra.mxu3 %v12444_v9  ;;  %v12684_v31 = vpack.c.bf16 %v2103_v4, %v2101_v3  ;;  %v3443_v17 = vadd.f32 %v3442_v57, %v3354_v35  ;;  %v1944_v49 = vpop.f32.mrf.mxu2  ;;  %v1360_v4 = vmax.f32 %v1188_v53, 0.0 }
 0x2e8   : > { %v1945_v55 = vadd.f32 %v1944_v49, %v12394_v20 }
 0x2e9   : > { %v12686_v47 = vmul.f32 %v3443_v17, %v1356_v46  ;;  %3481 = vmatmul.bf16.gmra.mxu1 %v12684_v31  ;;  %v10860_v17 = vld [vmem:[%s17329_s5 + $0x3f4] sm:$0xf0] }
 0x2ea   : > { %v2033_v44 = vpop.f32.mrf.mxu3  ;;  %v9798_v3 = vor.u32 %v10860_v17, %v9797_v19 }
 0x2eb   : > { %17514 = vst [vmem:[#allocation18_spill] sm:$0xff] %v12686_v47  ;;  %v2034_v2 = vadd.f32 %v2033_v44, %v1945_v55  ;;  %v1364_v55 = vmax.f32 %v1191_v63, 0.0  ;;  %v10890_v63 = vld [vmem:[%s17329_s5 + $0x4ec] sm:$0xf] }
 0x2ec   : > { %3794 = vmatpush.bf16.msrb.mxu1 %v9798_v3 }
 0x2ed   : > { %v12700_v12 = vpop.f32.mrf.mxu0  ;;  %v2105_v19 = vmax.f32 %v2034_v2, 0.0 }
 0x2ee   : > { %v3444_v35 = vpop.f32.mrf.mxu1 }
 0x2ef   : > { %v3445_v57 = vadd.f32 %v3444_v35, %v3356_v39  ;;  %v1946_v46 = vpop.f32.mrf.mxu2 }
 0x2f0   : > { %v1947_v49 = vadd.f32 %v1946_v46, %v12394_v20  ;;  %3713 = vmatmul.bf16.gmra.mxu0 %v12154_v27  ;;  %v17519_v46 = vld [vmem:[#allocation24_spill] sm:$0xff]  ;;  %v3369_v27 = vadd.f32 %v12486_v59, %v12672_v22 }
 0x2f1   : > { %v12702_v1 = vmul.f32 %v3445_v57, %v1360_v4  ;;  %v1193_v2 = vadd.f32 %v17519_v46, %v12669_v45  ;;  %v9511_v59 = vld [vmem:[%s17329_s5 + $0x1b8] sm:$0xf0] }
 0x2f2   : > { %v2035_v47 = vpop.f32.mrf.mxu3 }
 0x2f3   : > { %17516 = vst [vmem:[#allocation20_spill] sm:$0xff] %v12702_v1  ;;  %v2036_v50 = vadd.f32 %v2035_v47, %v1947_v49  ;;  %v9562_v47 = vor.u32 %v10794_v24, %v9559_v40  ;;  %v3361_v49 = vadd.f32 %v12442_v0, %v12672_v22 }
 0x2f4   : > { %3540 = vmatmul.bf16.gmra.mxu2 %v12191_v38 }
 0x2f5   : > { %v2107_v53 = vmax.f32 %v2036_v50, 0.0  ;;  %v12712_v44 = vpop.f32.mrf.mxu0  ;;  %3880 = vmatpush.bf16.msra.mxu2 %v9562_v47 }
 0x2f6   : > { %v3447_v39 = vpop.f32.mrf.mxu1 }
 0x2f7   : > { %3629 = vmatmul.bf16.gmra.mxu3 %v12475_v21  ;;  %v12714_v17 = vpack.c.bf16 %v2107_v53, %v2105_v19  ;;  %v3448_v35 = vadd.f32 %v3447_v39, %v3359_v13  ;;  %v1949_v50 = vpop.f32.mrf.mxu2  ;;  %v9943_v13 = vld [vmem:[%s17329_s5 + $0x518] sm:$0xf0] }
 0x2f8   : > { %v9946_v57 = vor.u32 %v10890_v63, %v9943_v13  ;;  %v1950_v19 = vadd.f32 %v1949_v50, %v12394_v20  ;;  %v17521_v13 = vld [vmem:[#allocation26_spill] sm:$0xff]  ;;  %v3364_v50 = vadd.f32 %v12461_v34, %v12672_v22  ;;  %v17523_v34 = vld [vmem:[#allocation28_spill] sm:$0xff] }
 0x2f9   : > { %v12722_v3 = vmul.f32 %v3448_v35, %v1364_v55  ;;  %3486 = vmatmul.bf16.gmra.mxu1 %v12714_v17  ;;  %v1368_v55 = vmax.f32 %v1193_v2, 0.0 }
 0x2fa   : > { %v2038_v4 = vpop.f32.mrf.mxu3  ;;  %3969 = vmatpush.bf16.msra.mxu3 %v9946_v57  ;;  %v1196_v57 = vadd.f32 %v17521_v13, %v12669_v45  ;;  %v10848_v13 = vld [vmem:[%s17329_s5 + $0x394] sm:$0xf0] }
 0x2fb   : > { %17518 = vst [vmem:[#allocation22_spill] sm:$0xff] %v12722_v3  ;;  %v2039_v40 = vadd.f32 %v2038_v4, %v1950_v19 }
 0x2fd   : > { %v12736_v53 = vpop.f32.mrf.mxu0  ;;  %v2109_v46 = vmax.f32 %v2039_v40, 0.0  ;;  %v1198_v40 = vadd.f32 %v17523_v34, %v12669_v45 }
 0x2fe   : > { %v3449_v39 = vpop.f32.mrf.mxu1 }
 0x2ff   : > { %v3450_v35 = vadd.f32 %v3449_v39, %v3361_v49  ;;  %v1951_v24 = vpop.f32.mrf.mxu2  ;;  %v1372_v49 = vmax.f32 %v1196_v57, 0.0 }
 0x300   : > { %v1952_v47 = vadd.f32 %v1951_v24, %v12394_v20  ;;  %3718 = vmatmul.bf16.gmra.mxu0 %v12191_v38 }
 0x301   : > { %v12738_v3 = vmul.f32 %v3450_v35, %v1368_v55 }
 0x302   : > { %v2040_v63 = vpop.f32.mrf.mxu3 }
 0x303   : > { %17520 = vst [vmem:[#allocation24_spill] sm:$0xff] %v12738_v3  ;;  %v2041_v0 = vadd.f32 %v2040_v63, %v1952_v47  ;;  %v3366_v47 = vadd.f32 %v12473_v15, %v12672_v22 }
 0x304   : > { %3545 = vmatmul.bf16.gmra.mxu2 %v12222_v54 }
 0x305   : > { %v2111_v1 = vmax.f32 %v2041_v0, 0.0  ;;  %v12748_v4 = vpop.f32.mrf.mxu0 }
 0x306   : > { %v3452_v2 = vpop.f32.mrf.mxu1 }
 0x307   : > { %3634 = vmatmul.bf16.gmra.mxu3 %v12506_v37  ;;  %v12750_v19 = vpack.c.bf16 %v2111_v1, %v2109_v46  ;;  %v3453_v39 = vadd.f32 %v3452_v2, %v3364_v50  ;;  %v1954_v55 = vpop.f32.mrf.mxu2  ;;  %v9749_v1 = vld [vmem:[%s17329_s5 + $0x368] sm:$0xf]  ;;  %v1376_v46 = vmax.f32 %v1198_v40, 0.0 }
 0x308   : > { %v1955_v63 = vadd.f32 %v1954_v55, %v12394_v20  ;;  %v9750_v50 = vor.u32 %v10848_v13, %v9749_v1 }
 0x309   : > { %v12752_v35 = vmul.f32 %v3453_v39, %v1372_v49  ;;  %3491 = vmatmul.bf16.gmra.mxu1 %v12750_v19 }
 0x30a   : > { %v2043_v24 = vpop.f32.mrf.mxu3  ;;  %3795 = vmatpush.bf16.msrb.mxu1 %v9750_v50 }
 0x30b   : > { %17522 = vst [vmem:[#allocation26_spill] sm:$0xff] %v12752_v35  ;;  %v2044_v39 = vadd.f32 %v2043_v24, %v1955_v63  ;;  %v17525_v35 = vld [vmem:[#allocation30_spill] sm:$0xff] }
 0x30c   : > { %v1201_v3 = vadd.f32 %v17525_v35, %v12669_v45  ;;  %v10782_v35 = vld [vmem:[%s17329_s5 + $0x18c] sm:$0xf] }
 0x30d   : > { %v12766_v57 = vpop.f32.mrf.mxu0  ;;  %v2113_v1 = vmax.f32 %v2044_v39, 0.0  ;;  %v9514_v50 = vor.u32 %v10782_v35, %v9511_v59  ;;  %v17527_v39 = vld [vmem:[#allocation32_spill] sm:$0xff] }
 0x30e   : > { %v3454_v0 = vpop.f32.mrf.mxu1  ;;  %v1380_v63 = vmax.f32 %v1201_v3, 0.0  ;;  %v10878_v3 = vld [vmem:[%s17329_s5 + $0x48c] sm:$0xf] }
 0x30f   : > { %v3455_v2 = vadd.f32 %v3454_v0, %v3366_v47  ;;  %v1956_v49 = vpop.f32.mrf.mxu2  ;;  %3881 = vmatpush.bf16.msra.mxu2 %v9514_v50 }
 0x310   : > { %v1957_v55 = vadd.f32 %v1956_v49, %v12394_v20  ;;  %3723 = vmatmul.bf16.gmra.mxu0 %v12222_v54  ;;  %v3379_v54 = vadd.f32 %v12552_v61, %v12672_v22  ;;  %v9463_v61 = vld [vmem:[%s17329_s5 + $0x158] sm:$0xf0] }
 0x311   : > { %v12768_v15 = vmul.f32 %v3455_v2, %v1376_v46 }
 0x312   : > { %v2045_v34 = vpop.f32.mrf.mxu3 }
 0x313   : > { %17524 = vst [vmem:[#allocation28_spill] sm:$0xff] %v12768_v15  ;;  %v2046_v38 = vadd.f32 %v2045_v34, %v1957_v55  ;;  %v1203_v55 = vadd.f32 %v17527_v39, %v12669_v45  ;;  %v3371_v34 = vadd.f32 %v12504_v10, %v12672_v22 }
 0x314   : > { %3550 = vmatmul.bf16.gmra.mxu2 %v12256_v16 }
 0x315   : > { %v2115_v40 = vmax.f32 %v2046_v38, 0.0  ;;  %v12778_v24 = vpop.f32.mrf.mxu0 }
 0x316   : > { %v3457_v47 = vpop.f32.mrf.mxu1 }
 0x317   : > { %3639 = vmatmul.bf16.gmra.mxu3 %v12536_v33  ;;  %v12780_v13 = vpack.c.bf16 %v2115_v40, %v2113_v1  ;;  %v3458_v0 = vadd.f32 %v3457_v47, %v3369_v27  ;;  %v1959_v38 = vpop.f32.mrf.mxu2  ;;  %v9895_v27 = vld [vmem:[%s17329_s5 + $0x4b8] sm:$0xf0] }
 0x318   : > { %v9898_v49 = vor.u32 %v10878_v3, %v9895_v27  ;;  %v1960_v1 = vadd.f32 %v1959_v38, %v12394_v20  ;;  %v17529_v27 = vld [vmem:[#allocation34_spill] sm:$0xff]  ;;  %v3374_v38 = vadd.f32 %v12522_v60, %v12672_v22  ;;  %v17531_v60 = vld [vmem:[#allocation36_spill] sm:$0xff] }
 0x319   : > { %v12788_v46 = vmul.f32 %v3458_v0, %v1380_v63  ;;  %3496 = vmatmul.bf16.gmra.mxu1 %v12780_v13  ;;  %v1384_v63 = vmax.f32 %v1203_v55, 0.0 }
 0x31a   : > { %v2048_v2 = vpop.f32.mrf.mxu3  ;;  %3970 = vmatpush.bf16.msra.mxu3 %v9898_v49  ;;  %v1206_v49 = vadd.f32 %v17529_v27, %v12669_v45  ;;  %v10836_v27 = vld [vmem:[%s17329_s5 + $0x334] sm:$0xf0] }
 0x31b   : > { %17526 = vst [vmem:[#allocation30_spill] sm:$0xff] %v12788_v46  ;;  %v2049_v59 = vadd.f32 %v2048_v2, %v1960_v1 }
 0x31d   : > { %v12802_v40 = vpop.f32.mrf.mxu0  ;;  %v2117_v39 = vmax.f32 %v2049_v59, 0.0  ;;  %v1208_v59 = vadd.f32 %v17531_v60, %v12669_v45 }
 0x31e   : > { %v3459_v47 = vpop.f32.mrf.mxu1 }
 0x31f   : > { %v3460_v0 = vadd.f32 %v3459_v47, %v3371_v34  ;;  %v1961_v35 = vpop.f32.mrf.mxu2  ;;  %v1388_v34 = vmax.f32 %v1206_v49, 0.0 }
 0x320   : > { %v1962_v50 = vadd.f32 %v1961_v35, %v12394_v20  ;;  %3728 = vmatmul.bf16.gmra.mxu0 %v12256_v16 }
 0x321   : > { %v12804_v46 = vmul.f32 %v3460_v0, %v1384_v63 }
 0x322   : > { %v2050_v3 = vpop.f32.mrf.mxu3 }
 0x323   : > { %17528 = vst [vmem:[#allocation32_spill] sm:$0xff] %v12804_v46  ;;  %v2051_v10 = vadd.f32 %v2050_v3, %v1962_v50  ;;  %v3376_v50 = vadd.f32 %v12534_v32, %v12672_v22 }
 0x324   : > { %3555 = vmatmul.bf16.gmra.mxu2 %v12284_v8 }
 0x325   : > { %v2119_v15 = vmax.f32 %v2051_v10, 0.0  ;;  %v12814_v2 = vpop.f32.mrf.mxu0 }
 0x326   : > { %v3462_v55 = vpop.f32.mrf.mxu1 }
 0x327   : > { %3644 = vmatmul.bf16.gmra.mxu3 %v12578_v56  ;;  %v12816_v1 = vpack.c.bf16 %v2119_v15, %v2117_v39  ;;  %v3463_v47 = vadd.f32 %v3462_v55, %v3374_v38  ;;  %v1964_v63 = vpop.f32.mrf.mxu2  ;;  %v9701_v15 = vld [vmem:[%s17329_s5 + $0x308] sm:$0xf]  ;;  %v1392_v39 = vmax.f32 %v1208_v59, 0.0 }
 0x328   : > { %v1965_v3 = vadd.f32 %v1964_v63, %v12394_v20  ;;  %v9702_v38 = vor.u32 %v10836_v27, %v9701_v15 }
 0x329   : > { %v12818_v0 = vmul.f32 %v3463_v47, %v1388_v34  ;;  %3501 = vmatmul.bf16.gmra.mxu1 %v12816_v1 }
 0x32a   : > { %v2053_v35 = vpop.f32.mrf.mxu3  ;;  %3796 = vmatpush.bf16.msrb.mxu1 %v9702_v38 }
 0x32b   : > { %17530 = vst [vmem:[#allocation34_spill] sm:$0xff] %v12818_v0  ;;  %v2054_v47 = vadd.f32 %v2053_v35, %v1965_v3  ;;  %v17533_v0 = vld [vmem:[#allocation38_spill] sm:$0xff] }
 0x32c   : > { %v1211_v46 = vadd.f32 %v17533_v0, %v12669_v45  ;;  %v10770_v0 = vld [vmem:[%s17329_s5 + $0x12c] sm:$0xf] }
 0x32d   : > { %v12832_v49 = vpop.f32.mrf.mxu0  ;;  %v2121_v15 = vmax.f32 %v2054_v47, 0.0  ;;  %v9466_v38 = vor.u32 %v10770_v0, %v9463_v61  ;;  %v17535_v47 = vld [vmem:[#allocation40_spill] sm:$0xff] }
 0x32e   : > { %v3464_v10 = vpop.f32.mrf.mxu1  ;;  %v1396_v3 = vmax.f32 %v1211_v46, 0.0  ;;  %v10866_v46 = vld [vmem:[%s17329_s5 + $0x42c] sm:$0xf] }
 0x32f   : > { %v3465_v55 = vadd.f32 %v3464_v10, %v3376_v50  ;;  %v1966_v34 = vpop.f32.mrf.mxu2  ;;  %3882 = vmatpush.bf16.msra.mxu2 %v9466_v38 }
 0x330   : > { %v1967_v63 = vadd.f32 %v1966_v34, %v12394_v20  ;;  %3733 = vmatmul.bf16.gmra.mxu0 %v12284_v8 }
 0x331   : > { %v12834_v32 = vmul.f32 %v3465_v55, %v1392_v39 }
 0x332   : > { %v2055_v60 = vpop.f32.mrf.mxu3 }
 0x333   : > { %17532 = vst [vmem:[#allocation36_spill] sm:$0xff] %v12834_v32  ;;  %v2056_v16 = vadd.f32 %v2055_v60, %v1967_v63  ;;  %v1213_v63 = vadd.f32 %v17535_v47, %v12669_v45  ;;  %v3381_v60 = vadd.f32 %v12576_v18, %v12672_v22 }
 0x334   : > { %3560 = vmatmul.bf16.gmra.mxu2 %v12320_v6 }
 0x335   : > { %v2123_v59 = vmax.f32 %v2056_v16, 0.0  ;;  %v12844_v35 = vpop.f32.mrf.mxu0 }
 0x336   : > { %v3467_v50 = vpop.f32.mrf.mxu1 }
 0x337   : > { %3649 = vmatmul.bf16.gmra.mxu3 %v12620_v14  ;;  %v12846_v27 = vpack.c.bf16 %v2123_v59, %v2121_v15  ;;  %v3468_v10 = vadd.f32 %v3467_v50, %v3379_v54  ;;  %v1969_v16 = vpop.f32.mrf.mxu2  ;;  %v9847_v54 = vld [vmem:[%s17329_s5 + $0x458] sm:$0xf0] }
 0x338   : > { %v9850_v34 = vor.u32 %v10866_v46, %v9847_v54  ;;  %v1970_v15 = vadd.f32 %v1969_v16, %v12394_v20  ;;  %v17537_v54 = vld [vmem:[#allocation42_spill] sm:$0xff]  ;;  %v3384_v16 = vadd.f32 %v12606_v62, %v12672_v22  ;;  %v17539_v62 = vld [vmem:[#allocation44_spill] sm:$0xff] }
 0x339   : > { %v12854_v39 = vmul.f32 %v3468_v10, %v1396_v3  ;;  %3506 = vmatmul.bf16.gmra.mxu1 %v12846_v27  ;;  %v1400_v3 = vmax.f32 %v1213_v63, 0.0 }
 0x33a   : > { %v2058_v55 = vpop.f32.mrf.mxu3  ;;  %3971 = vmatpush.bf16.msra.mxu3 %v9850_v34  ;;  %v1216_v34 = vadd.f32 %v17537_v54, %v12669_v45  ;;  %v10825_v54 = vld [vmem:[%s17329_s5 + $0x2dc] sm:$0xf0] }
 0x33b   : > { %17534 = vst [vmem:[#allocation38_spill] sm:$0xff] %v12854_v39  ;;  %v2059_v61 = vadd.f32 %v2058_v55, %v1970_v15 }
 0x33d   : > { %v12868_v59 = vpop.f32.mrf.mxu0  ;;  %v2125_v47 = vmax.f32 %v2059_v61, 0.0  ;;  %v1218_v61 = vadd.f32 %v17539_v62, %v12669_v45 }
 0x33e   : > { %v3469_v50 = vpop.f32.mrf.mxu1 }
 0x33f   : > { %v3470_v10 = vadd.f32 %v3469_v50, %v3381_v60  ;;  %v1971_v0 = vpop.f32.mrf.mxu2  ;;  %v1404_v60 = vmax.f32 %v1216_v34, 0.0 }
 0x340   : > { %v1972_v38 = vadd.f32 %v1971_v0, %v12394_v20  ;;  %3738 = vmatmul.bf16.gmra.mxu0 %v12320_v6 }
 0x341   : > { %v12870_v39 = vmul.f32 %v3470_v10, %v1400_v3 }
 0x342   : > { %v2060_v46 = vpop.f32.mrf.mxu3 }
 0x343   : > { %17536 = vst [vmem:[#allocation40_spill] sm:$0xff] %v12870_v39  ;;  %v2061_v18 = vadd.f32 %v2060_v46, %v1972_v38  ;;  %v3386_v38 = vadd.f32 %v12618_v43, %v12672_v22  ;;  %v10921_v43 = vld [vmem:[%s17329_s5 + $0x5dc] sm:$0xf0] }
 0x344   : > { %3565 = vmatmul.bf16.gmra.mxu2 %v12349_v48 }
 0x345   : > { %v2127_v32 = vmax.f32 %v2061_v18, 0.0  ;;  %v12880_v55 = vpop.f32.mrf.mxu0 }
 0x346   : > { %v3472_v63 = vpop.f32.mrf.mxu1 }
 0x347   : > { %3654 = vmatmul.bf16.gmra.mxu3 %v12640_v7  ;;  %v12882_v15 = vpack.c.bf16 %v2127_v32, %v2125_v47  ;;  %v3473_v50 = vadd.f32 %v3472_v63, %v3384_v16  ;;  %v1974_v3 = vpop.f32.mrf.mxu2  ;;  %v9661_v32 = vld [vmem:[%s17329_s5 + $0x2b0] sm:$0xf]  ;;  %v1408_v63 = vmax.f32 %v1218_v61, 0.0 }
 0x348   : > { %v1975_v46 = vadd.f32 %v1974_v3, %v12394_v20  ;;  %v9662_v16 = vor.u32 %v10825_v54, %v9661_v32  ;;  %v10045_v47 = vld [vmem:[%s17329_s5 + $0x5b0] sm:$0xf]  ;;  %v12911_v32 = vperm.slane %v12666_v26, 3  ;;  %v17541_v54 = vld [vmem:[#allocation46_spill] sm:$0xff] }
 0x349   : > { %v12884_v10 = vmul.f32 %v3473_v50, %v1404_v60  ;;  %3511 = vmatmul.bf16.gmra.mxu1 %v12882_v15  ;;  %v10046_v50 = vor.u32 %v10921_v43, %v10045_v47  ;;  %v1221_v8 = vadd.f32 %v17541_v54, %v12669_v45  ;;  %v10854_v54 = vld [vmem:[%s17329_s5 + $0x3cc] sm:$0xf] }
 0x34a   : > { %v2063_v0 = vpop.f32.mrf.mxu3  ;;  %4056 = vmatpush.bf16.msra.mxu0 %v9662_v16 }
 0x34b   : > { %17538 = vst [vmem:[#allocation42_spill] sm:$0xff] %v12884_v10  ;;  %v2064_v62 = vadd.f32 %v2063_v0, %v1975_v46  ;;  %4145 = vmatpush.bf16.msra.mxu1 %v10046_v50  ;;  %v17542_v46 = vld [vmem:[#allocation19_spill] sm:$0xff] }
 0x34c   : > { %v1275_v16 = vadd.f32 %v17542_v46, %v12911_v32 }
 0x34d   : > { %v12898_v34 = vpop.f32.mrf.mxu0 }
 0x34e   : > { %v3474_v18 = vpop.f32.mrf.mxu1 }
 0x34f   : > { %v3475_v60 = vadd.f32 %v3474_v18, %v3386_v38  ;;  %v1976_v3 = vpop.f32.mrf.mxu2  ;;  %v3389_v38 = vadd.f32 %v12630_v52, %v12672_v22  ;;  %v2129_v18 = vmax.f32 %v2064_v62, 0.0  ;;  %v9415_v52 = vld [vmem:[%s17329_s5 + $0xf8] sm:$0xf0] }
 0x350   : > { %v1977_v39 = vadd.f32 %v1976_v3, %v12394_v20  ;;  %3743 = vmatmul.bf16.gmra.mxu0 %v12349_v48  ;;  %v12919_v20 = vperm.slane %v12659_v51, 1 }
 0x351   : > { %v12906_v10 = vmul.f32 %v3475_v60, %v1408_v63 }
 0x352   : > { %v2065_v6 = vpop.f32.mrf.mxu3 }
 0x353   : > { %17540 = vst [vmem:[#allocation44_spill] sm:$0xff] %v12906_v10  ;;  %v2066_v61 = vadd.f32 %v2065_v6, %v1977_v39  ;;  %v10758_v6 = vld [vmem:[%s17329_s5 + $0xcc] sm:$0xf]  ;;  %v1412_v39 = vmax.f32 %v1221_v8, 0.0  ;;  %v9799_v8 = vld [vmem:[%s17329_s5 + $0x3f8] sm:$0xf0] }
 0x354   : > { %3570 = vmatmul.bf16.gmra.mxu2 %v12399_v23  ;;  %v9418_v63 = vor.u32 %v10758_v6, %v9415_v52 }
 0x355   : > { %v2131_v0 = vmax.f32 %v2066_v61, 0.0  ;;  %v12924_v26 = vpop.f32.mrf.mxu0  ;;  %v9802_v61 = vor.u32 %v10854_v54, %v9799_v8 }
 0x356   : > { %v3477_v47 = vpop.f32.mrf.mxu1  ;;  %3883 = vmatpush.bf16.msra.mxu2 %v9418_v63 }
 0x357   : > { %3659 = vmatmul.bf16.gmra.mxu3 %v12684_v31  ;;  %v12932_v43 = vpack.c.bf16 %v2131_v0, %v2129_v18  ;;  %v3478_v51 = vadd.f32 %v3477_v47, %v3389_v38  ;;  %v3531_v60 = vpop.f32.mrf.mxu2  ;;  %v1357_v38 = vmax.f32 %v1275_v16, 0.0  ;;  %v17544_v18 = vld [vmem:[#allocation48_spill] sm:$0xff]  ;;  %v3391_v47 = vadd.f32 %v12638_v36, %v12672_v22 }
 0x358   : > { %v3532_v3 = vadd.f32 %v3531_v60, %v12919_v20  ;;  %v1223_v0 = vadd.f32 %v17544_v18, %v12669_v45  ;;  %3972 = vmatpush.bf16.msra.mxu3 %v9802_v61  ;;  %v1226_v36 = vadd.f32 %v12119_v42, %v12669_v45 }
 0x359   : > { %v12934_v50 = vmul.f32 %v3478_v51, %v1412_v39  ;;  %3516 = vmatmul.bf16.gmra.mxu1 %v12932_v43  ;;  %v17546_v51 = vld [vmem:[#allocation21_spill] sm:$0xff] }
 0x35a   : > { %v3620_v62 = vpop.f32.mrf.mxu3  ;;  %v1277_v63 = vadd.f32 %v17546_v51, %v12911_v32  ;;  %v1416_v60 = vmax.f32 %v1223_v0, 0.0 }
 0x35b   : > { %17543 = vst [vmem:[#allocation46_spill] sm:$0xff] %v12934_v50  ;;  %v3621_v46 = vadd.f32 %v3620_v62, %v3532_v3 }
 0x35c   : > { %v1361_v62 = vmax.f32 %v1277_v63, 0.0 }
 0x35d   : > { %v12948_v6 = vmul.f32 %v3621_v46, %v1357_v38  ;;  %v12950_v39 = vpop.f32.mrf.mxu0  ;;  %v3394_v38 = vadd.f32 %v12661_v25, %v12672_v22  ;;  %v17549_v46 = vld [vmem:[#allocation23_spill] sm:$0xff] }
 0x35e   : > { %v3479_v52 = vpop.f32.mrf.mxu1 }
 0x35f   : > { %17545 = vst [vmem:[#allocation19_spill] sm:$0xff] %v12948_v6  ;;  %v3480_v50 = vadd.f32 %v3479_v52, %v3391_v47  ;;  %v3533_v54 = vpop.f32.mrf.mxu2  ;;  %v1280_v47 = vadd.f32 %v17549_v46, %v12911_v32  ;;  %v1420_v52 = vmax.f32 %v1226_v36, 0.0  ;;  %v9613_v36 = vld [vmem:[%s17329_s5 + $0x250] sm:$0xf] }
 0x360   : > { %v3534_v8 = vadd.f32 %v3533_v54, %v12919_v20  ;;  %3748 = vmatmul.bf16.gmra.mxu0 %v12399_v23 }
 0x361   : > { %v12954_v16 = vmul.f32 %v3480_v50, %v1416_v60  ;;  %v1365_v54 = vmax.f32 %v1280_v47, 0.0 }
 0x362   : > { %v3622_v3 = vpop.f32.mrf.mxu3 }
 0x363   : > { %17547 = vst [vmem:[#allocation48_spill] sm:$0xff] %v12954_v16  ;;  %v3623_v61 = vadd.f32 %v3622_v3, %v3534_v8  ;;  %v17551_v8 = vld [vmem:[#allocation52_spill] sm:$0xff] }
 0x364   : > { %3575 = vmatmul.bf16.gmra.mxu2 %v12432_v28  ;;  %v1228_v3 = vadd.f32 %v17551_v8, %v12669_v45 }
 0x365   : > { %v12962_v18 = vmul.f32 %v3623_v61, %v1361_v62  ;;  %v12966_v0 = vpop.f32.mrf.mxu0  ;;  %v3396_v61 = vadd.f32 %v12682_v5, %v12672_v22  ;;  %v10909_v5 = vld [vmem:[%s17329_s5 + $0x57c] sm:$0xf0] }
 0x366   : > { %v3482_v50 = vpop.f32.mrf.mxu1 }
 0x367   : > { %17548 = vst [vmem:[#allocation21_spill] sm:$0xff] %v12962_v18  ;;  %3664 = vmatmul.bf16.gmra.mxu3 %v12714_v17  ;;  %v3483_v51 = vadd.f32 %v3482_v50, %v3394_v38  ;;  %v3536_v63 = vpop.f32.mrf.mxu2  ;;  %v10813_v38 = vld [vmem:[%s17329_s5 + $0x27c] sm:$0xf0]  ;;  %v9997_v50 = vld [vmem:[%s17329_s5 + $0x550] sm:$0xf] }
 0x368   : > { %v3537_v60 = vadd.f32 %v3536_v63, %v12919_v20 }
 0x369   : > { %v12970_v42 = vmul.f32 %v3483_v51, %v1420_v52  ;;  %3797 = vmatmul.bf16.vlgmr.msrb.gmra.mxu1 %v12411_v29  ;;  %v9614_v52 = vor.u32 %v10813_v38, %v9613_v36  ;;  %v17553_v51 = vld [vmem:[#allocation25_spill] sm:$0xff]  ;;  %v1231_v38 = vadd.f32 %v12150_v11, %v12669_v45  ;;  %v9367_v11 = vld [vmem:[%s17329_s5 + $0x98] sm:$0xf0] }
 0x36a   : > { %v3625_v25 = vpop.f32.mrf.mxu3  ;;  %v1282_v63 = vadd.f32 %v17553_v51, %v12911_v32 }
 0x36b   : > { %17550 = vst [vmem:[#allocation23_spill] sm:$0xff] %v12970_v42  ;;  %v3626_v62 = vadd.f32 %v3625_v25, %v3537_v60  ;;  %v1424_v60 = vmax.f32 %v1228_v3, 0.0  ;;  %4057 = vmatpush.bf16.msra.mxu0 %v9614_v52  ;;  %v3399_v3 = vadd.f32 %v12700_v12, %v12672_v22  ;;  %v10746_v52 = vld [vmem:[%s17329_s5 + $0x6c] sm:$0xf] }
 0x36c   : > { %v1369_v36 = vmax.f32 %v1282_v63, 0.0 }
 0x36d   : > { %v12978_v18 = vmul.f32 %v3626_v62, %v1365_v54  ;;  %v12989_v47 = vpop.f32.mrf.mxu0  ;;  %v9998_v54 = vor.u32 %v10909_v5, %v9997_v50  ;;  %v9370_v5 = vor.u32 %v10746_v52, %v9367_v11  ;;  %v3401_v11 = vadd.f32 %v12712_v44, %v12672_v22 }
 0x36e   : > { %v3484_v46 = vpop.f32.mrf.mxu1  ;;  %v1236_v44 = vadd.f32 %v12187_v58, %v12669_v45 }
 0x36f   : > { %17552 = vst [vmem:[#allocation52_spill] sm:$0xff] %v12978_v18  ;;  %v3485_v25 = vadd.f32 %v3484_v46, %v3396_v61  ;;  %v3538_v8 = vpop.f32.mrf.mxu2  ;;  %4146 = vmatpush.bf16.msra.mxu1 %v9998_v54  ;;  %3884 = vmatpush.bf16.msra.mxu2 %v9370_v5  ;;  %v10842_v54 = vld [vmem:[%s17329_s5 + $0x36c] sm:$0xf]  ;;  %v17560_v5 = vld [vmem:[#allocation29_spill] sm:$0xff] }
 0x370   : > { %v3539_v18 = vadd.f32 %v3538_v8, %v12919_v20  ;;  %3753 = vmatmul.bf16.gmra.mxu0 %v12432_v28  ;;  %v9751_v8 = vld [vmem:[%s17329_s5 + $0x398] sm:$0xf0] }
 0x371   : > { %v12996_v62 = vmul.f32 %v3485_v25, %v1424_v60 }
 0x372   : > { %v3627_v42 = vpop.f32.mrf.mxu3 }
 0x373   : > { %17554 = vst [vmem:[#allocation25_spill] sm:$0xff] %v12996_v62  ;;  %v3628_v16 = vadd.f32 %v3627_v42, %v3539_v18  ;;  %v17556_v18 = vld [vmem:[#allocation27_spill] sm:$0xff] }
 0x374   : > { %3580 = vmatmul.bf16.gmra.mxu2 %v12463_v30  ;;  %v1285_v12 = vadd.f32 %v17556_v18, %v12911_v32 }
 0x375   : > { %v13004_v61 = vmul.f32 %v3628_v16, %v1369_v36  ;;  %v13008_v46 = vpop.f32.mrf.mxu0  ;;  %v1428_v16 = vmax.f32 %v1231_v38, 0.0  ;;  %v9754_v36 = vor.u32 %v10842_v54, %v9751_v8 }
 0x376   : > { %v3487_v50 = vpop.f32.mrf.mxu1  ;;  %v1373_v38 = vmax.f32 %v1285_v12, 0.0 }
 0x377   : > { %17555 = vst [vmem:[#allocation92_spill] sm:$0xff] %v13004_v61  ;;  %3669 = vmatmul.bf16.gmra.mxu3 %v12750_v19  ;;  %v3488_v42 = vadd.f32 %v3487_v50, %v3399_v3  ;;  %v3541_v51 = vpop.f32.mrf.mxu2  ;;  %v17558_v3 = vld [vmem:[#allocation56_spill] sm:$0xff] }
 0x378   : > { %v3542_v60 = vadd.f32 %v3541_v51, %v12919_v20  ;;  %v1233_v50 = vadd.f32 %v17558_v3, %v12669_v45  ;;  %3973 = vmatpush.bf16.msra.mxu3 %v9754_v36  ;;  %v1287_v51 = vadd.f32 %v17560_v5, %v12911_v32 }
 0x379   : > { %v13018_v63 = vmul.f32 %v3488_v42, %v1428_v16  ;;  %3802 = vmatmul.bf16.gmra.mxu1 %v12444_v9 }
 0x37a   : > { %v3630_v25 = vpop.f32.mrf.mxu3 }
 0x37b   : > { %17557 = vst [vmem:[#allocation27_spill] sm:$0xff] %v13018_v63  ;;  %v3631_v52 = vadd.f32 %v3630_v25, %v3542_v60  ;;  %v1432_v63 = vmax.f32 %v1233_v50, 0.0  ;;  %v1377_v25 = vmax.f32 %v1287_v51, 0.0  ;;  %v17563_v50 = vld [vmem:[#allocation31_spill] sm:$0xff] }
 0x37d   : > { %v13032_v18 = vmul.f32 %v3631_v52, %v1373_v38  ;;  %v13034_v42 = vpop.f32.mrf.mxu0  ;;  %v3404_v38 = vadd.f32 %v12736_v53, %v12672_v22  ;;  %v1290_v52 = vadd.f32 %v17563_v50, %v12911_v32 }
 0x37e   : > { %v3489_v16 = vpop.f32.mrf.mxu1 }
 0x37f   : > { %17559 = vst [vmem:[#allocation56_spill] sm:$0xff] %v13032_v18  ;;  %v3490_v61 = vadd.f32 %v3489_v16, %v3401_v11  ;;  %v3543_v54 = vpop.f32.mrf.mxu2  ;;  %v1436_v11 = vmax.f32 %v1236_v44, 0.0  ;;  %v9565_v44 = vld [vmem:[%s17329_s5 + $0x1f0] sm:$0xf] }
 0x380   : > { %v3544_v8 = vadd.f32 %v3543_v54, %v12919_v20  ;;  %3758 = vmatmul.bf16.gmra.mxu0 %v12463_v30  ;;  %v1381_v54 = vmax.f32 %v1290_v52, 0.0 }
 0x381   : > { %v13038_v12 = vmul.f32 %v3490_v61, %v1432_v63 }
 0x382   : > { %v3632_v60 = vpop.f32.mrf.mxu3 }
 0x383   : > { %17561 = vst [vmem:[#allocation29_spill] sm:$0xff] %v13038_v12  ;;  %v3633_v36 = vadd.f32 %v3632_v60, %v3544_v8  ;;  %v17565_v8 = vld [vmem:[#allocation60_spill] sm:$0xff] }
 0x384   : > { %3585 = vmatmul.bf16.gmra.mxu2 %v12494_v41  ;;  %v1238_v60 = vadd.f32 %v17565_v8, %v12669_v45 }
 0x385   : > { %v13046_v3 = vmul.f32 %v3633_v36, %v1377_v25  ;;  %v13050_v63 = vpop.f32.mrf.mxu0  ;;  %v3406_v36 = vadd.f32 %v12748_v4, %v12672_v22  ;;  %v10897_v4 = vld [vmem:[%s17329_s5 + $0x51c] sm:$0xf0] }
 0x386   : > { %v3492_v61 = vpop.f32.mrf.mxu1 }
 0x387   : > { %17562 = vst [vmem:[#allocation93_spill] sm:$0xff] %v13046_v3  ;;  %3674 = vmatmul.bf16.gmra.mxu3 %v12780_v13  ;;  %v3493_v16 = vadd.f32 %v3492_v61, %v3404_v38  ;;  %v3546_v5 = vpop.f32.mrf.mxu2  ;;  %v10801_v38 = vld [vmem:[%s17329_s5 + $0x21c] sm:$0xf0]  ;;  %v9949_v61 = vld [vmem:[%s17329_s5 + $0x4f0] sm:$0xf] }
 0x388   : > { %v3547_v51 = vadd.f32 %v3546_v5, %v12919_v20 }
 0x389   : > { %v13054_v58 = vmul.f32 %v3493_v16, %v1436_v11  ;;  %3807 = vmatmul.bf16.gmra.mxu1 %v12475_v21  ;;  %v9566_v11 = vor.u32 %v10801_v38, %v9565_v44  ;;  %v17567_v16 = vld [vmem:[#allocation33_spill] sm:$0xff]  ;;  %v17569_v38 = vld [vmem:[#allocation62_spill] sm:$0xff] }
 0x38a   : > { %v3635_v53 = vpop.f32.mrf.mxu3  ;;  %v1292_v5 = vadd.f32 %v17567_v16, %v12911_v32  ;;  %v1241_v12 = vadd.f32 %v17569_v38, %v12669_v45  ;;  %v9703_v38 = vld [vmem:[%s17329_s5 + $0x338] sm:$0xf0] }
 0x38b   : > { %17564 = vst [vmem:[#allocation31_spill] sm:$0xff] %v13054_v58  ;;  %v3636_v25 = vadd.f32 %v3635_v53, %v3547_v51  ;;  %v1440_v51 = vmax.f32 %v1238_v60, 0.0  ;;  %4058 = vmatpush.bf16.msra.mxu0 %v9566_v11  ;;  %v3409_v60 = vadd.f32 %v12766_v57, %v12672_v22 }
 0x38c   : > { %v1385_v44 = vmax.f32 %v1292_v5, 0.0 }
 0x38d   : > { %v13062_v3 = vmul.f32 %v3636_v25, %v1381_v54  ;;  %v13073_v52 = vpop.f32.mrf.mxu0  ;;  %v9950_v54 = vor.u32 %v10897_v4, %v9949_v61  ;;  %v17571_v61 = vld [vmem:[#allocation89_spill] sm:$0xff]  ;;  %v10734_v4 = vld [vmem:[%s17329_s5 + $0xc] sm:$0xf] }
 0x38e   : > { %v3494_v50 = vpop.f32.mrf.mxu1 }
 0x38f   : > { %17566 = vst [vmem:[#allocation60_spill] sm:$0xff] %v13062_v3  ;;  %v3495_v53 = vadd.f32 %v3494_v50, %v3406_v36  ;;  %v3548_v8 = vpop.f32.mrf.mxu2  ;;  %4147 = vmatpush.bf16.msra.mxu1 %v9950_v54 }
 0x390   : > { %v3549_v3 = vadd.f32 %v3548_v8, %v12919_v20  ;;  %3763 = vmatmul.bf16.gmra.mxu0 %v12494_v41 }
 0x391   : > { %v13080_v25 = vmul.f32 %v3495_v53, %v1440_v51 }
 0x392   : > { %v3637_v58 = vpop.f32.mrf.mxu3 }
 0x393   : > { %17568 = vst [vmem:[#allocation33_spill] sm:$0xff] %v13080_v25  ;;  %v3638_v18 = vadd.f32 %v3637_v58, %v3549_v3  ;;  %v9319_v3 = vld [vmem:[%s17329_s5 + $0x38] sm:$0xf0]  ;;  %v17572_v58 = vld [vmem:[#allocation35_spill] sm:$0xff] }
 0x394   : > { %3590 = vmatmul.bf16.gmra.mxu2 %v17571_v61  ;;  %v1295_v57 = vadd.f32 %v17572_v58, %v12911_v32  ;;  %v9322_v5 = vor.u32 %v10734_v4, %v9319_v3  ;;  %v3411_v58 = vadd.f32 %v12778_v24, %v12672_v22  ;;  %v17578_v24 = vld [vmem:[#allocation67_spill] sm:$0xff] }
 0x395   : > { %v13088_v36 = vmul.f32 %v3638_v18, %v1385_v44  ;;  %v13092_v11 = vpop.f32.mrf.mxu0  ;;  %v1444_v18 = vmax.f32 %v1241_v12, 0.0  ;;  %v10830_v44 = vld [vmem:[%s17329_s5 + $0x30c] sm:$0xf] }
 0x396   : > { %v3497_v50 = vpop.f32.mrf.mxu1  ;;  %3885 = vmatpush.bf16.msra.mxu2 %v9322_v5  ;;  %v9706_v12 = vor.u32 %v10830_v44, %v9703_v38 }
 0x397   : > { %17570 = vst [vmem:[#allocation62_spill] sm:$0xff] %v13088_v36  ;;  %3679 = vmatmul.bf16.gmra.mxu3 %v12816_v1  ;;  %v3498_v16 = vadd.f32 %v3497_v50, %v3409_v60  ;;  %v3551_v51 = vpop.f32.mrf.mxu2  ;;  %v1389_v60 = vmax.f32 %v1295_v57, 0.0  ;;  %v17574_v50 = vld [vmem:[#allocation65_spill] sm:$0xff] }
 0x398   : > { %v3552_v54 = vadd.f32 %v3551_v51, %v12919_v20  ;;  %v1243_v4 = vadd.f32 %v17574_v50, %v12669_v45  ;;  %3974 = vmatpush.bf16.msra.mxu3 %v9706_v12  ;;  %v17576_v51 = vld [vmem:[#allocation37_spill] sm:$0xff]  ;;  %v1246_v12 = vadd.f32 %v17578_v24, %v12669_v45  ;;  %v3414_v50 = vadd.f32 %v12802_v40, %v12672_v22 }
 0x399   : > { %v13102_v53 = vmul.f32 %v3498_v16, %v1444_v18  ;;  %3812 = vmatmul.bf16.gmra.mxu1 %v12506_v37 }
 0x39a   : > { %v3640_v8 = vpop.f32.mrf.mxu3  ;;  %v1448_v36 = vmax.f32 %v1243_v4, 0.0  ;;  %v17580_v4 = vld [vmem:[#allocation90_spill] sm:$0xff] }
 0x39b   : > { %17573 = vst [vmem:[#allocation35_spill] sm:$0xff] %v13102_v53  ;;  %v3641_v3 = vadd.f32 %v3640_v8, %v3552_v54  ;;  %v1297_v53 = vadd.f32 %v17576_v51, %v12911_v32 }
 0x39d   : > { %v13116_v18 = vmul.f32 %v3641_v3, %v1389_v60  ;;  %v13118_v5 = vpop.f32.mrf.mxu0  ;;  %v1393_v8 = vmax.f32 %v1297_v53, 0.0  ;;  %v1452_v53 = vmax.f32 %v1246_v12, 0.0  ;;  %v10789_v12 = vld [vmem:[%s17329_s5 + $0x1bc] sm:$0xf0] }
 0x39e   : > { %v3499_v16 = vpop.f32.mrf.mxu1 }
 0x39f   : > { %17575 = vst [vmem:[#allocation65_spill] sm:$0xff] %v13116_v18  ;;  %v3500_v25 = vadd.f32 %v3499_v16, %v3411_v58  ;;  %v3553_v44 = vpop.f32.mrf.mxu2  ;;  %v17581_v58 = vld [vmem:[#allocation39_spill] sm:$0xff] }
 0x3a0   : > { %v3554_v38 = vadd.f32 %v3553_v44, %v12919_v20  ;;  %3768 = vmatmul.bf16.gmra.mxu0 %v17571_v61  ;;  %v1300_v16 = vadd.f32 %v17581_v58, %v12911_v32 }
 0x3a1   : > { %v13122_v57 = vmul.f32 %v3500_v25, %v1448_v36 }
 0x3a2   : > { %v3642_v54 = vpop.f32.mrf.mxu3 }
 0x3a3   : > { %17577 = vst [vmem:[#allocation37_spill] sm:$0xff] %v13122_v57  ;;  %v3643_v60 = vadd.f32 %v3642_v54, %v3554_v38  ;;  %v1397_v54 = vmax.f32 %v1300_v16, 0.0  ;;  %v9517_v57 = vld [vmem:[%s17329_s5 + $0x190] sm:$0xf] }
 0x3a4   : > { %3595 = vmatmul.bf16.gmra.mxu2 %v17580_v4  ;;  %v9518_v58 = vor.u32 %v10789_v12, %v9517_v57  ;;  %v9901_v16 = vld [vmem:[%s17329_s5 + $0x490] sm:$0xf] }
 0x3a5   : > { %v13130_v3 = vmul.f32 %v3643_v60, %v1393_v8  ;;  %v13134_v36 = vpop.f32.mrf.mxu0  ;;  %v17583_v8 = vld [vmem:[#allocation70_spill] sm:$0xff]  ;;  %v9469_v57 = vld [vmem:[%s17329_s5 + $0x130] sm:$0xf] }
 0x3a6   : > { %v3502_v25 = vpop.f32.mrf.mxu1  ;;  %v1248_v60 = vadd.f32 %v17583_v8, %v12669_v45  ;;  %4059 = vmatpush.bf16.msra.mxu0 %v9518_v58  ;;  %v17587_v58 = vld [vmem:[#allocation72_spill] sm:$0xff] }
 0x3a7   : > { %17579 = vst [vmem:[#allocation67_spill] sm:$0xff] %v13130_v3  ;;  %3684 = vmatmul.bf16.gmra.mxu3 %v12846_v27  ;;  %v3503_v51 = vadd.f32 %v3502_v25, %v3414_v50  ;;  %v3556_v44 = vpop.f32.mrf.mxu2  ;;  %v3416_v50 = vadd.f32 %v12814_v2, %v12672_v22 }
 0x3a8   : > { %v3557_v38 = vadd.f32 %v3556_v44, %v12919_v20 }
 0x3a9   : > { %v13138_v24 = vmul.f32 %v3503_v51, %v1452_v53  ;;  %3817 = vmatmul.bf16.gmra.mxu1 %v12536_v33  ;;  %v10885_v53 = vld [vmem:[%s17329_s5 + $0x4bc] sm:$0xf0] }
 0x3aa   : > { %v3645_v40 = vpop.f32.mrf.mxu3 }
 0x3ab   : > { %17582 = vst [vmem:[#allocation39_spill] sm:$0xff] %v13138_v24  ;;  %v3646_v3 = vadd.f32 %v3645_v40, %v3557_v38  ;;  %v9902_v38 = vor.u32 %v10885_v53, %v9901_v16  ;;  %v17585_v40 = vld [vmem:[#allocation41_spill] sm:$0xff]  ;;  %v1456_v24 = vmax.f32 %v1248_v60, 0.0 }
 0x3ac   : > { %v1302_v8 = vadd.f32 %v17585_v40, %v12911_v32  ;;  %v9421_v40 = vld [vmem:[%s17329_s5 + $0xd0] sm:$0xf] }
 0x3ad   : > { %v13152_v25 = vmul.f32 %v3646_v3, %v1397_v54  ;;  %v13160_v44 = vpop.f32.mrf.mxu0  ;;  %4148 = vmatpush.bf16.msra.mxu1 %v9902_v38  ;;  %v10777_v54 = vld [vmem:[%s17329_s5 + $0x15c] sm:$0xf0] }
 0x3ae   : > { %v3504_v51 = vpop.f32.mrf.mxu1  ;;  %v9470_v60 = vor.u32 %v10777_v54, %v9469_v57  ;;  %v17589_v57 = vld [vmem:[#allocation17_spill] sm:$0xff] }
 0x3af   : > { %17584 = vst [vmem:[#allocation70_spill] sm:$0xff] %v13152_v25  ;;  %v3505_v2 = vadd.f32 %v3504_v51, %v3416_v50  ;;  %v3558_v3 = vpop.f32.mrf.mxu2  ;;  %v1401_v50 = vmax.f32 %v1302_v8, 0.0  ;;  %v1251_v51 = vadd.f32 %v17587_v58, %v12669_v45 }
 0x3b0   : > { %v3559_v16 = vadd.f32 %v3558_v3, %v12919_v20  ;;  %3773 = vmatmul.bf16.gmra.mxu0 %v17580_v4 }
 0x3b1   : > { %v13170_v12 = vmul.f32 %v3505_v2, %v1456_v24  ;;  %4060 = vmatpush.bf16.msra.mxu0 %v9470_v60  ;;  %v10765_v24 = vld [vmem:[%s17329_s5 + $0xfc] sm:$0xf0]  ;;  %v3419_v2 = vadd.f32 %v12832_v49, %v12672_v22  ;;  %v9663_v60 = vld [vmem:[%s17329_s5 + $0x2e0] sm:$0xf0]  ;;  %v17590_v49 = vld [vmem:[#allocation43_spill] sm:$0xff]  ;;  %v1460_v58 = vmax.f32 %v1251_v51, 0.0 }
 0x3b2   : > { %v3647_v53 = vpop.f32.mrf.mxu3  ;;  %v9422_v8 = vor.u32 %v10765_v24, %v9421_v40  ;;  %v9373_v24 = vld [vmem:[%s17329_s5 + $0x70] sm:$0xf]  ;;  %v10915_v51 = vld [vmem:[%s17329_s5 + $0x5b4] sm:$0xf] }
 0x3b3   : > { %17586 = vst [vmem:[#allocation41_spill] sm:$0xff] %v13170_v12  ;;  %v3648_v38 = vadd.f32 %v3647_v53, %v3559_v16  ;;  %v10819_v53 = vld [vmem:[%s17329_s5 + $0x2b4] sm:$0xf]  ;;  %v10753_v12 = vld [vmem:[%s17329_s5 + $0x9c] sm:$0xf0] }
 0x3b4   : > { %3600 = vmatmul.bf16.gmra.mxu2 %v17589_v57 }
 0x3b5   : > { %v13184_v3 = vmul.f32 %v3648_v38, %v1401_v50  ;;  %v13188_v16 = vpop.f32.mrf.mxu0  ;;  %v1305_v50 = vadd.f32 %v17590_v49, %v12911_v32  ;;  %4061 = vmatpush.bf16.msra.mxu0 %v9422_v8  ;;  %v9374_v8 = vor.u32 %v10753_v12, %v9373_v24 }
 0x3b6   : > { %v3507_v54 = vpop.f32.mrf.mxu1 }
 0x3b7   : > { %17588 = vst [vmem:[#allocation72_spill] sm:$0xff] %v13184_v3  ;;  %3689 = vmatmul.bf16.gmra.mxu3 %v12882_v15  ;;  %v3508_v38 = vadd.f32 %v3507_v54, %v3419_v2  ;;  %v9666_v3 = vor.u32 %v10819_v53, %v9663_v60  ;;  %v3561_v40 = vpop.f32.mrf.mxu2  ;;  %v10047_v2 = vld [vmem:[%s17329_s5 + $0x5e0] sm:$0xf0]  ;;  %v1405_v53 = vmax.f32 %v1305_v50, 0.0  ;;  %v17592_v60 = vld [vmem:[#allocation75_spill] sm:$0xff] }
 0x3b8   : > { %v3562_v18 = vadd.f32 %v3561_v40, %v12919_v20  ;;  %v10050_v54 = vor.u32 %v10915_v51, %v10047_v2  ;;  %v1253_v49 = vadd.f32 %v17592_v60, %v12669_v45  ;;  %v3421_v40 = vadd.f32 %v12844_v35, %v12672_v22 }
 0x3b9   : > { %v13204_v25 = vmul.f32 %v3508_v38, %v1460_v58  ;;  %3822 = vmatmul.bf16.gmra.mxu1 %v12578_v56  ;;  %4234 = vmatpush.bf16.msrb.mxu2 %v9666_v3  ;;  %v9325_v3 = vld [vmem:[%s17329_s5 + $0x10] sm:$0xf]  ;;  %v10741_v38 = vld [vmem:[%s17329_s5 + $0x3c] sm:$0xf0] }
 0x3ba   : > { %v3650_v62 = vpop.f32.mrf.mxu3  ;;  %4062 = vmatpush.bf16.msra.mxu0 %v9374_v8  ;;  %4323 = vmatpush.bf16.msrb.mxu3 %v10050_v54  ;;  %v9326_v50 = vor.u32 %v10741_v38, %v9325_v3  ;;  %v1464_v2 = vmax.f32 %v1253_v49, 0.0  ;;  %v3424_v38 = vadd.f32 %v12868_v59, %v12672_v22  ;;  %v17598_v49 = vld [vmem:[#allocation91_spill] sm:$0xff] }
 0x3bb   : > { %17591 = vst [vmem:[#allocation43_spill] sm:$0xff] %v13204_v25  ;;  %v3651_v58 = vadd.f32 %v3650_v62, %v3562_v18  ;;  %v17594_v62 = vld [vmem:[#allocation45_spill] sm:$0xff] }
 0x3bc   : > { %v1307_v18 = vadd.f32 %v17594_v62, %v12911_v32 }
 0x3bd   : > { %v13224_v12 = vmul.f32 %v3651_v58, %v1405_v53  ;;  %v13226_v51 = vpop.f32.mrf.mxu0  ;;  %v17596_v53 = vld [vmem:[#allocation77_spill] sm:$0xff] }
 0x3be   : > { %v3509_v24 = vpop.f32.mrf.mxu1  ;;  %4063 = vmatpush.bf16.msra.mxu0 %v9326_v50  ;;  %v1409_v35 = vmax.f32 %v1307_v18, 0.0  ;;  %v1256_v58 = vadd.f32 %v17596_v53, %v12669_v45 }
 0x3bf   : > { %17593 = vst [vmem:[#allocation75_spill] sm:$0xff] %v13224_v12  ;;  %v3510_v8 = vadd.f32 %v3509_v24, %v3421_v40  ;;  %v3563_v54 = vpop.f32.mrf.mxu2  ;;  %v17599_v24 = vld [vmem:[#allocation47_spill] sm:$0xff] }
 0x3c0   : > { %v3564_v25 = vadd.f32 %v3563_v54, %v12919_v20  ;;  %3778 = vmatmul.bf16.gmra.mxu0 %v17589_v57  ;;  %v1468_v18 = vmax.f32 %v1256_v58, 0.0  ;;  %v9853_v58 = vld [vmem:[%s17329_s5 + $0x430] sm:$0xf] }
 0x3c1   : > { %v13230_v60 = vmul.f32 %v3510_v8, %v1464_v2  ;;  %v1310_v2 = vadd.f32 %v17599_v24, %v12911_v32 }
 0x3c2   : > { %v3652_v6 = vpop.f32.mrf.mxu3 }
 0x3c3   : > { %17595 = vst [vmem:[#allocation45_spill] sm:$0xff] %v13230_v60  ;;  %v3653_v3 = vadd.f32 %v3652_v6, %v3564_v25  ;;  %v1413_v25 = vmax.f32 %v1310_v2, 0.0  ;;  %v3426_v60 = vadd.f32 %v12880_v55, %v12672_v22 }
 0x3c4   : > { %3605 = vmatmul.bf16.gmra.mxu2 %v17598_v49 }
 0x3c5   : > { %v13238_v62 = vmul.f32 %v3653_v3, %v1409_v35  ;;  %v13242_v50 = vpop.f32.mrf.mxu0  ;;  %v17601_v35 = vld [vmem:[#allocation80_spill] sm:$0xff] }
 0x3c6   : > { %v3512_v40 = vpop.f32.mrf.mxu1  ;;  %v1258_v3 = vadd.f32 %v17601_v35, %v12669_v45 }
 0x3c7   : > { %17597 = vst [vmem:[#allocation77_spill] sm:$0xff] %v13238_v62  ;;  %3694 = vmatmul.bf16.gmra.mxu3 %v12932_v43  ;;  %v3513_v8 = vadd.f32 %v3512_v40, %v3424_v38  ;;  %v3566_v54 = vpop.f32.mrf.mxu2  ;;  %v10873_v38 = vld [vmem:[%s17329_s5 + $0x45c] sm:$0xf0] }
 0x3c8   : > { %v3567_v6 = vadd.f32 %v3566_v54, %v12919_v20  ;;  %v9854_v2 = vor.u32 %v10873_v38, %v9853_v58  ;;  %v1472_v54 = vmax.f32 %v1258_v3, 0.0  ;;  %v3429_v58 = vadd.f32 %v12898_v34, %v12672_v22 }
 0x3c9   : > { %v13246_v53 = vmul.f32 %v3513_v8, %v1468_v18  ;;  %3827 = vmatmul.bf16.gmra.mxu1 %v12620_v14  ;;  %v17603_v18 = vld [vmem:[#allocation49_spill] sm:$0xff] }
 0x3ca   : > { %v3655_v59 = vpop.f32.mrf.mxu3  ;;  %v1312_v8 = vadd.f32 %v17603_v18, %v12911_v32  ;;  %4149 = vmatpush.bf16.msra.mxu1 %v9854_v2  ;;  %v10807_v2 = vld [vmem:[%s17329_s5 + $0x254] sm:$0xf]  ;;  %v17608_v18 = vld [vmem:[#allocation50_spill] sm:$0xff] }
 0x3cb   : > { %17600 = vst [vmem:[#allocation47_spill] sm:$0xff] %v13246_v53  ;;  %v3656_v62 = vadd.f32 %v3655_v59, %v3567_v6  ;;  %v1315_v34 = vadd.f32 %v17608_v18, %v12911_v32 }
 0x3cc   : > { %v1417_v35 = vmax.f32 %v1312_v8, 0.0 }
 0x3cd   : > { %v13254_v12 = vmul.f32 %v3656_v62, %v1413_v25  ;;  %v13262_v24 = vpop.f32.mrf.mxu0 }
 0x3ce   : > { %v3514_v40 = vpop.f32.mrf.mxu1 }
 0x3cf   : > { %17602 = vst [vmem:[#allocation80_spill] sm:$0xff] %v13254_v12  ;;  %v3515_v6 = vadd.f32 %v3514_v40, %v3426_v60  ;;  %v3568_v55 = vpop.f32.mrf.mxu2  ;;  %v17605_v12 = vld [vmem:[#allocation82_spill] sm:$0xff]  ;;  %v17607_v60 = vld [vmem:[#allocation51_spill] sm:$0xff] }
 0x3d0   : > { %v3569_v59 = vadd.f32 %v3568_v55, %v12919_v20  ;;  %3783 = vmatmul.bf16.gmra.mxu0 %v17598_v49  ;;  %v1261_v53 = vadd.f32 %v17605_v12, %v12669_v45  ;;  %v9615_v12 = vld [vmem:[%s17329_s5 + $0x280] sm:$0xf0] }
 0x3d1   : > { %v13266_v62 = vmul.f32 %v3515_v6, %v1472_v54  ;;  %v9618_v54 = vor.u32 %v10807_v2, %v9615_v12  ;;  %v10903_v6 = vld [vmem:[%s17329_s5 + $0x554] sm:$0xf]  ;;  %v9999_v55 = vld [vmem:[%s17329_s5 + $0x580] sm:$0xf0]  ;;  %v3431_v12 = vadd.f32 %v12924_v26, %v12672_v22 }
 0x3d2   : > { %v3657_v25 = vpop.f32.mrf.mxu3 }
 0x3d3   : > { %17604 = vst [vmem:[#allocation49_spill] sm:$0xff] %v13266_v62  ;;  %v3658_v10 = vadd.f32 %v3657_v25, %v3569_v59  ;;  %v10002_v25 = vor.u32 %v10903_v6, %v9999_v55  ;;  %4235 = vmatpush.bf16.msrb.mxu2 %v9618_v54 }
 0x3d4   : > { %3886 = vmatmul.bf16.vlgmr.msra.gmra.mxu2 %v17607_v60 }
 0x3d5   : > { %v13274_v38 = vmul.f32 %v3658_v10, %v1417_v35  ;;  %v13278_v40 = vpop.f32.mrf.mxu0  ;;  %v1476_v10 = vmax.f32 %v1261_v53, 0.0  ;;  %4324 = vmatpush.bf16.msrb.mxu3 %v10002_v25  ;;  %v1421_v53 = vmax.f32 %v1315_v34, 0.0  ;;  %v13311_v34 = vld [vmem:[%s17330_s6] sm:$0xff] }
 0x3d6   : > { %v3517_v3 = vpop.f32.mrf.mxu1 }
 0x3d7   : > { %17606 = vst [vmem:[#allocation82_spill] sm:$0xff] %v13274_v38  ;;  %3975 = vmatmul.bf16.vlgmr.msra.gmra.mxu3 %v12411_v29  ;;  %v3518_v8 = vadd.f32 %v3517_v3, %v3429_v58  ;;  %v3571_v59 = vpop.f32.mrf.mxu2  ;;  %v17610_v58 = vld [vmem:[#allocation85_spill] sm:$0xff] }
 0x3d8   : > { %v3572_v38 = vadd.f32 %v3571_v59, %v12919_v20  ;;  %v1263_v3 = vadd.f32 %v17610_v58, %v12669_v45  ;;  %v13314_v45 = vperm.slane %v13311_v34, 2 }
 0x3d9   : > { %v13294_v35 = vmul.f32 %v3518_v8, %v1476_v10  ;;  %3832 = vmatmul.bf16.gmra.mxu1 %v12640_v7  ;;  %v17612_v8 = vld [vmem:[#allocation53_spill] sm:$0xff] }
 0x3da   : > { %v3660_v62 = vpop.f32.mrf.mxu3  ;;  %v1317_v55 = vadd.f32 %v17612_v8, %v12911_v32  ;;  %v1480_v59 = vmax.f32 %v1263_v3, 0.0  ;;  %v17615_v3 = vld [vmem:[#allocation55_spill] sm:$0xff] }
 0x3db   : > { %17609 = vst [vmem:[#allocation50_spill] sm:$0xff] %v13294_v35  ;;  %v3661_v2 = vadd.f32 %v3660_v62, %v3572_v38 }
 0x3dc   : > { %v1425_v38 = vmax.f32 %v1317_v55, 0.0 }
 0x3dd   : > { %v13302_v18 = vmul.f32 %v3661_v2, %v1421_v53  ;;  %v13304_v10 = vpop.f32.mrf.mxu0  ;;  %v3710_v53 = vadd.f32 %v12950_v39, %v13314_v45 }
 0x3de   : > { %v3519_v6 = vpop.f32.mrf.mxu1 }
 0x3df   : > { %17611 = vst [vmem:[#allocation85_spill] sm:$0xff] %v13302_v18  ;;  %v3520_v35 = vadd.f32 %v3519_v6, %v3431_v12  ;;  %v3573_v54 = vpop.f32.mrf.mxu2  ;;  %v17616_v12 = vld [vmem:[#allocation54_spill] sm:$0xff]  ;;  %v17626_v18 = vld [vmem:[#allocation61_spill] sm:$0xff] }
 0x3e0   : > { %v3574_v26 = vadd.f32 %v3573_v54, %v12919_v20  ;;  %4064 = vmatmul.bf16.vlgmr.msra.gmra.mxu0 %v17607_v60  ;;  %v1320_v6 = vadd.f32 %v17616_v12, %v12911_v32 }
 0x3e1   : > { %v13316_v22 = vmul.f32 %v3520_v35, %v1480_v59 }
 0x3e2   : > { %v3662_v62 = vpop.f32.mrf.mxu3  ;;  %v1429_v39 = vmax.f32 %v1320_v6, 0.0  ;;  %v17619_v6 = vld [vmem:[#allocation57_spill] sm:$0xff] }
 0x3e3   : > { %17613 = vst [vmem:[#allocation53_spill] sm:$0xff] %v13316_v22  ;;  %v3663_v25 = vadd.f32 %v3662_v62, %v3574_v26  ;;  %v3712_v62 = vadd.f32 %v12966_v0, %v13314_v45 }
 0x3e4   : > { %3891 = vmatmul.bf16.gmra.mxu2 %v17615_v3 }
 0x3e5   : > { %v13322_v58 = vmul.f32 %v3663_v25, %v1425_v38  ;;  %v13326_v2 = vpop.f32.mrf.mxu0  ;;  %v9805_v25 = vld [vmem:[%s17329_s5 + $0x3d0] sm:$0xf] }
 0x3e6   : > { %v3798_v35 = vpop.f32.mrf.mxu1 }
 0x3e7   : > { %17614 = vst [vmem:[#allocation94_spill] sm:$0xff] %v13322_v58  ;;  %3980 = vmatmul.bf16.gmra.mxu3 %v12444_v9  ;;  %v13330_v8 = vadd.f32 %v3798_v35, %v3710_v53  ;;  %v3576_v59 = vpop.f32.mrf.mxu2  ;;  %v10861_v53 = vld [vmem:[%s17329_s5 + $0x3fc] sm:$0xf0]  ;;  %v3715_v58 = vadd.f32 %v12989_v47, %v13314_v45 }
 0x3e8   : > { %v3577_v55 = vadd.f32 %v3576_v59, %v12919_v20  ;;  %v9806_v59 = vor.u32 %v10861_v53, %v9805_v25  ;;  %v17622_v25 = vld [vmem:[#allocation59_spill] sm:$0xff] }
 0x3e9   : > { %17617 = vst [vmem:[#allocation54_spill] sm:$0xff] %v13330_v8  ;;  %3837 = vmatmul.bf16.gmra.mxu1 %v12684_v31 }
 0x3ea   : > { %v3665_v54 = vpop.f32.mrf.mxu3  ;;  %4150 = vmatpush.bf16.msra.mxu1 %v9806_v59  ;;  %v9567_v59 = vld [vmem:[%s17329_s5 + $0x220] sm:$0xf0] }
 0x3eb   : > { %v3666_v26 = vadd.f32 %v3665_v54, %v3577_v55  ;;  %v1322_v55 = vadd.f32 %v17619_v6, %v12911_v32  ;;  %v17623_v6 = vld [vmem:[#allocation58_spill] sm:$0xff] }
 0x3ec   : > { %v1325_v47 = vadd.f32 %v17623_v6, %v12911_v32 }
 0x3ed   : > { %v13336_v38 = vmul.f32 %v3666_v26, %v1429_v39  ;;  %v13344_v35 = vpop.f32.mrf.mxu0  ;;  %v1433_v8 = vmax.f32 %v1322_v55, 0.0  ;;  %v10891_v55 = vld [vmem:[%s17329_s5 + $0x4f4] sm:$0xf] }
 0x3ee   : > { %v3800_v12 = vpop.f32.mrf.mxu1 }
 0x3ef   : > { %17618 = vst [vmem:[#allocation95_spill] sm:$0xff] %v13336_v38  ;;  %v13348_v54 = vadd.f32 %v3800_v12, %v3712_v62  ;;  %v3578_v0 = vpop.f32.mrf.mxu2  ;;  %v10795_v12 = vld [vmem:[%s17329_s5 + $0x1f4] sm:$0xf] }
 0x3f0   : > { %v3579_v39 = vadd.f32 %v3578_v0, %v12919_v20  ;;  %4069 = vmatmul.bf16.gmra.mxu0 %v17615_v3  ;;  %v9951_v0 = vld [vmem:[%s17329_s5 + $0x520] sm:$0xf0] }
 0x3f1   : > { %17620 = vst [vmem:[#allocation57_spill] sm:$0xff] %v13348_v54 }
 0x3f2   : > { %v3667_v26 = vpop.f32.mrf.mxu3 }
 0x3f3   : > { %v3668_v38 = vadd.f32 %v3667_v26, %v3579_v39  ;;  %v9954_v26 = vor.u32 %v10891_v55, %v9951_v0  ;;  %v1327_v55 = vadd.f32 %v17626_v18, %v12911_v32 }
 0x3f4   : > { %3896 = vmatmul.bf16.gmra.mxu2 %v17622_v25 }
 0x3f5   : > { %v13354_v22 = vmul.f32 %v3668_v38, %v1433_v8  ;;  %v13358_v62 = vpop.f32.mrf.mxu0  ;;  %v9570_v38 = vor.u32 %v10795_v12, %v9567_v59  ;;  %4325 = vmatpush.bf16.msrb.mxu3 %v9954_v26  ;;  %v3717_v12 = vadd.f32 %v13008_v46, %v13314_v45  ;;  %v3720_v46 = vadd.f32 %v13034_v42, %v13314_v45  ;;  %v17629_v26 = vld [vmem:[#allocation64_spill] sm:$0xff] }
 0x3f6   : > { %v3803_v53 = vpop.f32.mrf.mxu1 }
 0x3f7   : > { %17621 = vst [vmem:[#allocation96_spill] sm:$0xff] %v13354_v22  ;;  %3985 = vmatmul.bf16.gmra.mxu3 %v12475_v21  ;;  %v13368_v8 = vadd.f32 %v3803_v53, %v3715_v58  ;;  %v3581_v39 = vpop.f32.mrf.mxu2  ;;  %4236 = vmatpush.bf16.msrb.mxu2 %v9570_v38  ;;  %v1437_v58 = vmax.f32 %v1325_v47, 0.0 }
 0x3f8   : > { %v3582_v54 = vadd.f32 %v3581_v39, %v12919_v20 }
 0x3f9   : > { %17624 = vst [vmem:[#allocation58_spill] sm:$0xff] %v13368_v8  ;;  %3842 = vmatmul.bf16.gmra.mxu1 %v12714_v17 }
 0x3fa   : > { %v3670_v22 = vpop.f32.mrf.mxu3 }
 0x3fb   : > { %v3671_v53 = vadd.f32 %v3670_v22, %v3582_v54  ;;  %v1441_v22 = vmax.f32 %v1327_v55, 0.0 }
 0x3fd   : > { %v13380_v59 = vmul.f32 %v3671_v53, %v1437_v58  ;;  %v13382_v6 = vpop.f32.mrf.mxu0  ;;  %v17630_v58 = vld [vmem:[#allocation63_spill] sm:$0xff] }
 0x3fe   : > { %v3805_v8 = vpop.f32.mrf.mxu1  ;;  %v1330_v53 = vadd.f32 %v17630_v58, %v12911_v32 }
 0x3ff   : > { %17625 = vst [vmem:[#allocation97_spill] sm:$0xff] %v13380_v59  ;;  %v13386_v0 = vadd.f32 %v3805_v8, %v3717_v12  ;;  %v3583_v39 = vpop.f32.mrf.mxu2 }
 0x400   : > { %v3584_v3 = vadd.f32 %v3583_v39, %v12919_v20  ;;  %4074 = vmatmul.bf16.gmra.mxu0 %v17622_v25  ;;  %v1445_v42 = vmax.f32 %v1330_v53, 0.0  ;;  %v17633_v53 = vld [vmem:[#allocation66_spill] sm:$0xff] }
 0x401   : > { %17627 = vst [vmem:[#allocation61_spill] sm:$0xff] %v13386_v0  ;;  %v9757_v0 = vld [vmem:[%s17329_s5 + $0x370] sm:$0xf] }
 0x402   : > { %v3672_v38 = vpop.f32.mrf.mxu3 }
 0x403   : > { %v3673_v54 = vadd.f32 %v3672_v38, %v3584_v3 }
 0x404   : > { %3901 = vmatmul.bf16.gmra.mxu2 %v17629_v26 }
 0x405   : > { %v13392_v47 = vmul.f32 %v3673_v54, %v1441_v22  ;;  %v13396_v18 = vpop.f32.mrf.mxu0  ;;  %v3722_v22 = vadd.f32 %v13050_v63, %v13314_v45 }
 0x406   : > { %v3808_v8 = vpop.f32.mrf.mxu1 }
 0x407   : > { %17628 = vst [vmem:[#allocation98_spill] sm:$0xff] %v13392_v47  ;;  %3990 = vmatmul.bf16.gmra.mxu3 %v12506_v37  ;;  %v13400_v12 = vadd.f32 %v3808_v8, %v3720_v46  ;;  %v3586_v39 = vpop.f32.mrf.mxu2  ;;  %v10849_v46 = vld [vmem:[%s17329_s5 + $0x39c] sm:$0xf0]  ;;  %v3725_v47 = vadd.f32 %v13073_v52, %v13314_v45 }
 0x408   : > { %v3587_v3 = vadd.f32 %v3586_v39, %v12919_v20  ;;  %v9758_v39 = vor.u32 %v10849_v46, %v9757_v0  ;;  %v17636_v0 = vld [vmem:[#allocation69_spill] sm:$0xff] }
 0x409   : > { %17631 = vst [vmem:[#allocation63_spill] sm:$0xff] %v13400_v12  ;;  %3847 = vmatmul.bf16.gmra.mxu1 %v12750_v19 }
 0x40a   : > { %v3675_v55 = vpop.f32.mrf.mxu3  ;;  %4151 = vmatpush.bf16.msra.mxu1 %v9758_v39  ;;  %v9519_v39 = vld [vmem:[%s17329_s5 + $0x1c0] sm:$0xf0] }
 0x40b   : > { %v3676_v38 = vadd.f32 %v3675_v55, %v3587_v3  ;;  %v1332_v3 = vadd.f32 %v17633_v53, %v12911_v32  ;;  %v17637_v53 = vld [vmem:[#allocation68_spill] sm:$0xff] }
 0x40c   : > { %v1335_v52 = vadd.f32 %v17637_v53, %v12911_v32 }
 0x40d   : > { %v13406_v54 = vmul.f32 %v3676_v38, %v1445_v42  ;;  %v13414_v8 = vpop.f32.mrf.mxu0  ;;  %v1449_v12 = vmax.f32 %v1332_v3, 0.0  ;;  %v10879_v3 = vld [vmem:[%s17329_s5 + $0x494] sm:$0xf] }
 0x40e   : > { %v3810_v58 = vpop.f32.mrf.mxu1 }
 0x40f   : > { %17632 = vst [vmem:[#allocation99_spill] sm:$0xff] %v13406_v54  ;;  %v13418_v55 = vadd.f32 %v3810_v58, %v3722_v22  ;;  %v3588_v63 = vpop.f32.mrf.mxu2  ;;  %v10783_v58 = vld [vmem:[%s17329_s5 + $0x194] sm:$0xf] }
 0x410   : > { %v3589_v42 = vadd.f32 %v3588_v63, %v12919_v20  ;;  %4079 = vmatmul.bf16.gmra.mxu0 %v17629_v26  ;;  %v9903_v63 = vld [vmem:[%s17329_s5 + $0x4c0] sm:$0xf0]  ;;  %v17640_v26 = vld [vmem:[#allocation71_spill] sm:$0xff] }
 0x411   : > { %17634 = vst [vmem:[#allocation66_spill] sm:$0xff] %v13418_v55 }
 0x412   : > { %v3677_v38 = vpop.f32.mrf.mxu3 }
 0x413   : > { %v3678_v54 = vadd.f32 %v3677_v38, %v3589_v42  ;;  %v9906_v38 = vor.u32 %v10879_v3, %v9903_v63  ;;  %v1337_v3 = vadd.f32 %v17640_v26, %v12911_v32 }
 0x414   : > { %3906 = vmatmul.bf16.gmra.mxu2 %v17636_v0 }
 0x415   : > { %v13424_v59 = vmul.f32 %v3678_v54, %v1449_v12  ;;  %v13428_v22 = vpop.f32.mrf.mxu0  ;;  %v9522_v54 = vor.u32 %v10783_v58, %v9519_v39  ;;  %4326 = vmatpush.bf16.msrb.mxu3 %v9906_v38  ;;  %v3727_v58 = vadd.f32 %v13092_v11, %v13314_v45  ;;  %v3730_v11 = vadd.f32 %v13118_v5, %v13314_v45  ;;  %v17643_v38 = vld [vmem:[#allocation74_spill] sm:$0xff] }
 0x416   : > { %v3813_v46 = vpop.f32.mrf.mxu1 }
 0x417   : > { %17635 = vst [vmem:[#allocation100_spill] sm:$0xff] %v13424_v59  ;;  %3995 = vmatmul.bf16.gmra.mxu3 %v12536_v33  ;;  %v13438_v12 = vadd.f32 %v3813_v46, %v3725_v47  ;;  %v3591_v42 = vpop.f32.mrf.mxu2  ;;  %4237 = vmatpush.bf16.msrb.mxu2 %v9522_v54  ;;  %v1453_v47 = vmax.f32 %v1335_v52, 0.0 }
 0x418   : > { %v3592_v55 = vadd.f32 %v3591_v42, %v12919_v20 }
 0x419   : > { %17638 = vst [vmem:[#allocation68_spill] sm:$0xff] %v13438_v12  ;;  %3852 = vmatmul.bf16.gmra.mxu1 %v12780_v13 }
 0x41a   : > { %v3680_v59 = vpop.f32.mrf.mxu3 }
 0x41b   : > { %v3681_v46 = vadd.f32 %v3680_v59, %v3592_v55  ;;  %v1457_v59 = vmax.f32 %v1337_v3, 0.0 }
 0x41d   : > { %v13450_v39 = vmul.f32 %v3681_v46, %v1453_v47  ;;  %v13452_v53 = vpop.f32.mrf.mxu0  ;;  %v17644_v47 = vld [vmem:[#allocation73_spill] sm:$0xff] }
 0x41e   : > { %v3815_v12 = vpop.f32.mrf.mxu1  ;;  %v1340_v46 = vadd.f32 %v17644_v47, %v12911_v32 }
 0x41f   : > { %17639 = vst [vmem:[#allocation101_spill] sm:$0xff] %v13450_v39  ;;  %v13456_v63 = vadd.f32 %v3815_v12, %v3727_v58  ;;  %v3593_v42 = vpop.f32.mrf.mxu2 }
 0x420   : > { %v3594_v25 = vadd.f32 %v3593_v42, %v12919_v20  ;;  %4084 = vmatmul.bf16.gmra.mxu0 %v17636_v0  ;;  %v1461_v5 = vmax.f32 %v1340_v46, 0.0  ;;  %v17647_v46 = vld [vmem:[#allocation76_spill] sm:$0xff] }
 0x421   : > { %17641 = vst [vmem:[#allocation71_spill] sm:$0xff] %v13456_v63  ;;  %v9709_v63 = vld [vmem:[%s17329_s5 + $0x310] sm:$0xf] }
 0x422   : > { %v3682_v54 = vpop.f32.mrf.mxu3 }
 0x423   : > { %v3683_v55 = vadd.f32 %v3682_v54, %v3594_v25 }
 0x424   : > { %3911 = vmatmul.bf16.gmra.mxu2 %v17643_v38 }
 0x425   : > { %v13462_v52 = vmul.f32 %v3683_v55, %v1457_v59  ;;  %v13466_v26 = vpop.f32.mrf.mxu0  ;;  %v3732_v59 = vadd.f32 %v13134_v36, %v13314_v45 }
 0x426   : > { %v3818_v12 = vpop.f32.mrf.mxu1 }
 0x427   : > { %17642 = vst [vmem:[#allocation102_spill] sm:$0xff] %v13462_v52  ;;  %4000 = vmatmul.bf16.gmra.mxu3 %v12578_v56  ;;  %v13470_v58 = vadd.f32 %v3818_v12, %v3730_v11  ;;  %v3596_v42 = vpop.f32.mrf.mxu2  ;;  %v10837_v11 = vld [vmem:[%s17329_s5 + $0x33c] sm:$0xf0]  ;;  %v3735_v52 = vadd.f32 %v13160_v44, %v13314_v45 }
 0x428   : > { %v3597_v25 = vadd.f32 %v3596_v42, %v12919_v20  ;;  %v9710_v42 = vor.u32 %v10837_v11, %v9709_v63  ;;  %v17650_v63 = vld [vmem:[#allocation79_spill] sm:$0xff] }
 0x429   : > { %17645 = vst [vmem:[#allocation73_spill] sm:$0xff] %v13470_v58  ;;  %3857 = vmatmul.bf16.gmra.mxu1 %v12816_v1 }
 0x42a   : > { %v3685_v3 = vpop.f32.mrf.mxu3  ;;  %4152 = vmatpush.bf16.msra.mxu1 %v9710_v42  ;;  %v9471_v42 = vld [vmem:[%s17329_s5 + $0x160] sm:$0xf0] }
 0x42b   : > { %v3686_v54 = vadd.f32 %v3685_v3, %v3597_v25  ;;  %v1342_v25 = vadd.f32 %v17647_v46, %v12911_v32  ;;  %v17651_v46 = vld [vmem:[#allocation78_spill] sm:$0xff] }
 0x42c   : > { %v1345_v44 = vadd.f32 %v17651_v46, %v12911_v32 }
 0x42d   : > { %v13476_v55 = vmul.f32 %v3686_v54, %v1461_v5  ;;  %v13484_v12 = vpop.f32.mrf.mxu0  ;;  %v1465_v58 = vmax.f32 %v1342_v25, 0.0  ;;  %v10867_v25 = vld [vmem:[%s17329_s5 + $0x434] sm:$0xf] }
 0x42e   : > { %v3820_v47 = vpop.f32.mrf.mxu1 }
 0x42f   : > { %17646 = vst [vmem:[#allocation103_spill] sm:$0xff] %v13476_v55  ;;  %v13488_v3 = vadd.f32 %v3820_v47, %v3732_v59  ;;  %v3598_v36 = vpop.f32.mrf.mxu2  ;;  %v10771_v47 = vld [vmem:[%s17329_s5 + $0x134] sm:$0xf] }
 0x430   : > { %v3599_v5 = vadd.f32 %v3598_v36, %v12919_v20  ;;  %4089 = vmatmul.bf16.gmra.mxu0 %v17643_v38  ;;  %v9855_v36 = vld [vmem:[%s17329_s5 + $0x460] sm:$0xf0] }
 0x431   : > { %17648 = vst [vmem:[#allocation76_spill] sm:$0xff] %v13488_v3  ;;  %v17654_v38 = vld [vmem:[#allocation81_spill] sm:$0xff] }
 0x432   : > { %v3687_v54 = vpop.f32.mrf.mxu3 }
 0x433   : > { %v3688_v55 = vadd.f32 %v3687_v54, %v3599_v5  ;;  %v9858_v54 = vor.u32 %v10867_v25, %v9855_v36  ;;  %v1347_v25 = vadd.f32 %v17654_v38, %v12911_v32 }
 0x434   : > { %3916 = vmatmul.bf16.gmra.mxu2 %v17650_v63 }
 0x435   : > { %v13494_v39 = vmul.f32 %v3688_v55, %v1465_v58  ;;  %v13498_v59 = vpop.f32.mrf.mxu0  ;;  %v9474_v55 = vor.u32 %v10771_v47, %v9471_v42  ;;  %4327 = vmatpush.bf16.msrb.mxu3 %v9858_v54  ;;  %v3737_v47 = vadd.f32 %v13188_v16, %v13314_v45  ;;  %v3740_v16 = vadd.f32 %v13226_v51, %v13314_v45  ;;  %v17657_v54 = vld [vmem:[#allocation83_spill] sm:$0xff] }
 0x436   : > { %v3823_v11 = vpop.f32.mrf.mxu1  ;;  %v1350_v38 = vadd.f32 %v17657_v54, %v12911_v32  ;;  %v10922_v54 = vld [vmem:[%s17329_s5 + $0x5e4] sm:$0xf0] }
 0x437   : > { %17649 = vst [vmem:[#allocation104_spill] sm:$0xff] %v13494_v39  ;;  %4005 = vmatmul.bf16.gmra.mxu3 %v12620_v14  ;;  %v13508_v58 = vadd.f32 %v3823_v11, %v3735_v52  ;;  %v3601_v5 = vpop.f32.mrf.mxu2  ;;  %4238 = vmatpush.bf16.msrb.mxu2 %v9474_v55  ;;  %v1469_v52 = vmax.f32 %v1345_v44, 0.0 }
 0x438   : > { %v3602_v3 = vadd.f32 %v3601_v5, %v12919_v20  ;;  %v1477_v51 = vmax.f32 %v1350_v38, 0.0  ;;  %v3742_v38 = vadd.f32 %v13242_v50, %v13314_v45 }
 0x439   : > { %17652 = vst [vmem:[#allocation78_spill] sm:$0xff] %v13508_v58  ;;  %3862 = vmatmul.bf16.gmra.mxu1 %v12846_v27 }
 0x43a   : > { %v3690_v39 = vpop.f32.mrf.mxu3 }
 0x43b   : > { %v3691_v11 = vadd.f32 %v3690_v39, %v3602_v3  ;;  %v1473_v39 = vmax.f32 %v1347_v25, 0.0 }
 0x43d   : > { %v13520_v42 = vmul.f32 %v3691_v11, %v1469_v52  ;;  %v13522_v46 = vpop.f32.mrf.mxu0 }
 0x43e   : > { %v3825_v58 = vpop.f32.mrf.mxu1 }
 0x43f   : > { %17653 = vst [vmem:[#allocation105_spill] sm:$0xff] %v13520_v42  ;;  %v13526_v36 = vadd.f32 %v3825_v58, %v3737_v47  ;;  %v3603_v5 = vpop.f32.mrf.mxu2 }
 0x440   : > { %v3604_v0 = vadd.f32 %v3603_v5, %v12919_v20  ;;  %4094 = vmatmul.bf16.gmra.mxu0 %v17650_v63 }
 0x441   : > { %17655 = vst [vmem:[#allocation81_spill] sm:$0xff] %v13526_v36 }
 0x442   : > { %v3692_v55 = vpop.f32.mrf.mxu3 }
 0x443   : > { %v3693_v3 = vadd.f32 %v3692_v55, %v3604_v0  ;;  %v9669_v55 = vld [vmem:[%s17329_s5 + $0x2b8] sm:$0xf] }
 0x444   : > { %3921 = vmatmul.bf16.gmra.mxu2 %v12349_v48 }
 0x445   : > { %v13532_v44 = vmul.f32 %v3693_v3, %v1473_v39  ;;  %v13538_v58 = vpop.f32.mrf.mxu0  ;;  %v10826_v39 = vld [vmem:[%s17329_s5 + $0x2e4] sm:$0xf0]  ;;  %v10053_v3 = vld [vmem:[%s17329_s5 + $0x5b8] sm:$0xf] }
 0x446   : > { %v3828_v52 = vpop.f32.mrf.mxu1 }
 0x447   : > { %17656 = vst [vmem:[#allocation106_spill] sm:$0xff] %v13532_v44  ;;  %4010 = vmatmul.bf16.gmra.mxu3 %v12640_v7  ;;  %v13540_v11 = vadd.f32 %v3828_v52, %v3740_v16  ;;  %v3606_v47 = vpop.f32.mrf.mxu2  ;;  %v9670_v16 = vor.u32 %v10826_v39, %v9669_v55 }
 0x448   : > { %v3607_v0 = vadd.f32 %v3606_v47, %v12919_v20  ;;  %v10054_v47 = vor.u32 %v10922_v54, %v10053_v3  ;;  %v10855_v54 = vld [vmem:[%s17329_s5 + $0x3d4] sm:$0xf] }
 0x449   : > { %17658 = vst [vmem:[#allocation83_spill] sm:$0xff] %v13540_v11  ;;  %3867 = vmatmul.bf16.gmra.mxu1 %v12882_v15  ;;  %4412 = vmatpush.bf16.msrb.mxu0 %v9670_v16  ;;  %v17660_v11 = vld [vmem:[#allocation86_spill] sm:$0xff] }
 0x44a   : > { %v3695_v25 = vpop.f32.mrf.mxu3  ;;  %v1352_v36 = vadd.f32 %v17660_v11, %v12911_v32  ;;  %4501 = vmatpush.bf16.msrb.mxu1 %v10054_v47  ;;  %v13574_v32 = vperm.slane %v13311_v34, 3 }
 0x44b   : > { %v3696_v5 = vadd.f32 %v3695_v25, %v3607_v0 }
 0x44c   : > { %v1481_v50 = vmax.f32 %v1352_v36, 0.0  ;;  %v10759_v36 = vld [vmem:[%s17329_s5 + $0xd4] sm:$0xf] }
 0x44d   : > { %v13558_v52 = vmul.f32 %v3696_v5, %v1477_v51  ;;  %v13560_v0 = vpop.f32.mrf.mxu0  ;;  %v3745_v5 = vadd.f32 %v13262_v24, %v13314_v45  ;;  %v9423_v24 = vld [vmem:[%s17329_s5 + $0x100] sm:$0xf0] }
 0x44e   : > { %v3830_v25 = vpop.f32.mrf.mxu1  ;;  %v9426_v16 = vor.u32 %v10759_v36, %v9423_v24 }
 0x44f   : > { %17659 = vst [vmem:[#allocation107_spill] sm:$0xff] %v13558_v52  ;;  %v13564_v44 = vadd.f32 %v3830_v25, %v3742_v38  ;;  %v3608_v55 = vpop.f32.mrf.mxu2  ;;  %v9807_v38 = vld [vmem:[%s17329_s5 + $0x400] sm:$0xf0] }
 0x450   : > { %v3609_v39 = vadd.f32 %v3608_v55, %v12919_v20  ;;  %4099 = vmatmul.bf16.gmra.mxu0 %v12349_v48  ;;  %v9810_v25 = vor.u32 %v10855_v54, %v9807_v38  ;;  %4239 = vmatpush.bf16.msrb.mxu2 %v9426_v16  ;;  %v3750_v16 = vadd.f32 %v13304_v10, %v13314_v45  ;;  %v9621_v10 = vld [vmem:[%s17329_s5 + $0x258] sm:$0xf] }
 0x451   : > { %17661 = vst [vmem:[#allocation86_spill] sm:$0xff] %v13564_v44 }
 0x452   : > { %v3697_v42 = vpop.f32.mrf.mxu3  ;;  %4328 = vmatpush.bf16.msrb.mxu3 %v9810_v25 }
 0x453   : > { %v3698_v51 = vadd.f32 %v3697_v42, %v3609_v39 }
 0x454   : > { %3926 = vmatmul.bf16.gmra.mxu2 %v12399_v23 }
 0x455   : > { %v13570_v3 = vmul.f32 %v3698_v51, %v1481_v50  ;;  %v13577_v11 = vpop.f32.mrf.mxu0  ;;  %v3747_v51 = vadd.f32 %v13278_v40, %v13314_v45 }
 0x456   : > { %v3833_v20 = vpop.f32.mrf.mxu1 }
 0x457   : > { %17662 = vst [vmem:[#allocation108_spill] sm:$0xff] %v13570_v3  ;;  %4015 = vmatmul.bf16.gmra.mxu3 %v12684_v31  ;;  %v13585_v42 = vadd.f32 %v3833_v20, %v3745_v5  ;;  %v3887_v47 = vpop.f32.mrf.mxu2 }
 0x458   : > { %v3888_v55 = vadd.f32 %v3887_v47, %v13574_v32 }
 0x459   : > { %17663 = vst [vmem:[#allocation109_spill] sm:$0xff] %v13585_v42  ;;  %3872 = vmatmul.bf16.gmra.mxu1 %v12932_v43 }
 0x45a   : > { %v3976_v39 = vpop.f32.mrf.mxu3 }
 0x45b   : > { %v13595_v50 = vadd.f32 %v3976_v39, %v3888_v55 }
 0x45d   : > { %17664 = vst [vmem:[#allocation110_spill] sm:$0xff] %v13595_v50  ;;  %v13599_v20 = vpop.f32.mrf.mxu0 }
 0x45e   : > { %v3835_v5 = vpop.f32.mrf.mxu1 }
 0x45f   : > { %v13601_v36 = vadd.f32 %v3835_v5, %v3747_v51  ;;  %v3889_v24 = vpop.f32.mrf.mxu2 }
 0x460   : > { %v3890_v54 = vadd.f32 %v3889_v24, %v13574_v32  ;;  %4104 = vmatmul.bf16.gmra.mxu0 %v12399_v23 }
 0x461   : > { %17665 = vst [vmem:[#allocation111_spill] sm:$0xff] %v13601_v36 }
 0x462   : > { %v3978_v38 = vpop.f32.mrf.mxu3 }
 0x463   : > { %v13605_v47 = vadd.f32 %v3978_v38, %v3890_v54  ;;  %v10814_v54 = vld [vmem:[%s17329_s5 + $0x284] sm:$0xf0]  ;;  %v10005_v38 = vld [vmem:[%s17329_s5 + $0x558] sm:$0xf] }
 0x464   : > { %3931 = vmatmul.bf16.gmra.mxu2 %v12432_v28 }
 0x465   : > { %17666 = vst [vmem:[#allocation112_spill] sm:$0xff] %v13605_v47  ;;  %v13611_v25 = vpop.f32.mrf.mxu0 }
 0x466   : > { %v3838_v40 = vpop.f32.mrf.mxu1 }
 0x467   : > { %4020 = vmatmul.bf16.gmra.mxu3 %v12714_v17  ;;  %v13613_v55 = vadd.f32 %v3838_v40, %v3750_v16  ;;  %v3892_v39 = vpop.f32.mrf.mxu2  ;;  %v9622_v16 = vor.u32 %v10814_v54, %v9621_v10  ;;  %v10910_v40 = vld [vmem:[%s17329_s5 + $0x584] sm:$0xf0]  ;;  %v3755_v54 = vadd.f32 %v13344_v35, %v13314_v45  ;;  %v10843_v35 = vld [vmem:[%s17329_s5 + $0x374] sm:$0xf] }
 0x468   : > { %v3893_v51 = vadd.f32 %v3892_v39, %v13574_v32  ;;  %v3752_v39 = vadd.f32 %v13326_v2, %v13314_v45 }
 0x469   : > { %17667 = vst [vmem:[#allocation113_spill] sm:$0xff] %v13613_v55  ;;  %4153 = vmatmul.bf16.vlgmr.msra.gmra.mxu1 %v12411_v29  ;;  %4413 = vmatpush.bf16.msrb.mxu0 %v9622_v16  ;;  %v10747_v16 = vld [vmem:[%s17329_s5 + $0x74] sm:$0xf] }
 0x46a   : > { %v3981_v5 = vpop.f32.mrf.mxu3 }
 0x46b   : > { %v13617_v24 = vadd.f32 %v3981_v5, %v3893_v51  ;;  %v10006_v51 = vor.u32 %v10910_v40, %v10005_v38  ;;  %v9759_v40 = vld [vmem:[%s17329_s5 + $0x3a0] sm:$0xf0] }
 0x46d   : > { %17668 = vst [vmem:[#allocation114_spill] sm:$0xff] %v13617_v24  ;;  %v13633_v24 = vpop.f32.mrf.mxu0  ;;  %4502 = vmatpush.bf16.msrb.mxu1 %v10006_v51  ;;  %v9762_v51 = vor.u32 %v10843_v35, %v9759_v40 }
 0x46e   : > { %v3840_v5 = vpop.f32.mrf.mxu1 }
 0x46f   : > { %v13635_v55 = vadd.f32 %v3840_v5, %v3752_v39  ;;  %v3894_v47 = vpop.f32.mrf.mxu2  ;;  %4329 = vmatpush.bf16.msrb.mxu3 %v9762_v51 }
 0x470   : > { %v3895_v36 = vadd.f32 %v3894_v47, %v13574_v32  ;;  %4109 = vmatmul.bf16.gmra.mxu0 %v12432_v28  ;;  %v9375_v47 = vld [vmem:[%s17329_s5 + $0xa0] sm:$0xf0] }
 0x471   : > { %17669 = vst [vmem:[#allocation115_spill] sm:$0xff] %v13635_v55 }
 0x472   : > { %v3983_v50 = vpop.f32.mrf.mxu3 }
 0x473   : > { %v13639_v10 = vadd.f32 %v3983_v50, %v3895_v36  ;;  %v9378_v36 = vor.u32 %v10747_v16, %v9375_v47 }
 0x474   : > { %3936 = vmatmul.bf16.gmra.mxu2 %v12463_v30 }
 0x475   : > { %17670 = vst [vmem:[#allocation116_spill] sm:$0xff] %v13639_v10  ;;  %v13645_v38 = vpop.f32.mrf.mxu0  ;;  %4240 = vmatpush.bf16.msrb.mxu2 %v9378_v36 }
 0x476   : > { %v3843_v2 = vpop.f32.mrf.mxu1 }
 0x477   : > { %4025 = vmatmul.bf16.gmra.mxu3 %v12750_v19  ;;  %v13653_v50 = vadd.f32 %v3843_v2, %v3755_v54  ;;  %v3897_v39 = vpop.f32.mrf.mxu2  ;;  %v3757_v2 = vadd.f32 %v13358_v62, %v13314_v45 }
 0x478   : > { %v3898_v5 = vadd.f32 %v3897_v39, %v13574_v32 }
 0x479   : > { %17671 = vst [vmem:[#allocation117_spill] sm:$0xff] %v13653_v50  ;;  %4158 = vmatmul.bf16.gmra.mxu1 %v12444_v9 }
 0x47a   : > { %v3986_v10 = vpop.f32.mrf.mxu3 }
 0x47b   : > { %v13663_v54 = vadd.f32 %v3986_v10, %v3898_v5  ;;  %v3760_v10 = vadd.f32 %v13382_v6, %v13314_v45  ;;  %v9573_v6 = vld [vmem:[%s17329_s5 + $0x1f8] sm:$0xf] }
 0x47d   : > { %17672 = vst [vmem:[#allocation118_spill] sm:$0xff] %v13663_v54  ;;  %v13667_v47 = vpop.f32.mrf.mxu0 }
 0x47e   : > { %v3845_v16 = vpop.f32.mrf.mxu1 }
 0x47f   : > { %v13669_v50 = vadd.f32 %v3845_v16, %v3757_v2  ;;  %v3899_v55 = vpop.f32.mrf.mxu2 }
 0x480   : > { %v3900_v35 = vadd.f32 %v3899_v55, %v13574_v32  ;;  %4114 = vmatmul.bf16.gmra.mxu0 %v12463_v30 }
 0x481   : > { %17673 = vst [vmem:[#allocation119_spill] sm:$0xff] %v13669_v50 }
 0x482   : > { %v3988_v40 = vpop.f32.mrf.mxu3 }
 0x483   : > { %v13673_v39 = vadd.f32 %v3988_v40, %v3900_v35  ;;  %v10802_v35 = vld [vmem:[%s17329_s5 + $0x224] sm:$0xf0]  ;;  %v9957_v40 = vld [vmem:[%s17329_s5 + $0x4f8] sm:$0xf] }
 0x484   : > { %3941 = vmatmul.bf16.gmra.mxu2 %v12494_v41 }
 0x485   : > { %17674 = vst [vmem:[#allocation120_spill] sm:$0xff] %v13673_v39  ;;  %v13679_v36 = vpop.f32.mrf.mxu0 }
 0x486   : > { %v3848_v62 = vpop.f32.mrf.mxu1 }
 0x487   : > { %4030 = vmatmul.bf16.gmra.mxu3 %v12780_v13  ;;  %v13681_v51 = vadd.f32 %v3848_v62, %v3760_v10  ;;  %v3902_v5 = vpop.f32.mrf.mxu2  ;;  %v9574_v10 = vor.u32 %v10802_v35, %v9573_v6  ;;  %v10898_v62 = vld [vmem:[%s17329_s5 + $0x524] sm:$0xf0]  ;;  %v3765_v35 = vadd.f32 %v13414_v8, %v13314_v45  ;;  %v10831_v8 = vld [vmem:[%s17329_s5 + $0x314] sm:$0xf] }
 0x488   : > { %v3903_v55 = vadd.f32 %v3902_v5, %v13574_v32  ;;  %v3762_v5 = vadd.f32 %v13396_v18, %v13314_v45 }
 0x489   : > { %17675 = vst [vmem:[#allocation121_spill] sm:$0xff] %v13681_v51  ;;  %4163 = vmatmul.bf16.gmra.mxu1 %v12475_v21  ;;  %4414 = vmatpush.bf16.msrb.mxu0 %v9574_v10  ;;  %v10735_v10 = vld [vmem:[%s17329_s5 + $0x14] sm:$0xf] }
 0x48a   : > { %v3991_v2 = vpop.f32.mrf.mxu3 }
 0x48b   : > { %v13685_v16 = vadd.f32 %v3991_v2, %v3903_v55  ;;  %v9958_v55 = vor.u32 %v10898_v62, %v9957_v40  ;;  %v9711_v62 = vld [vmem:[%s17329_s5 + $0x340] sm:$0xf0] }
 0x48d   : > { %17676 = vst [vmem:[#allocation122_spill] sm:$0xff] %v13685_v16  ;;  %v13701_v16 = vpop.f32.mrf.mxu0  ;;  %4503 = vmatpush.bf16.msrb.mxu1 %v9958_v55  ;;  %v9714_v55 = vor.u32 %v10831_v8, %v9711_v62 }
 0x48e   : > { %v3850_v2 = vpop.f32.mrf.mxu1 }
 0x48f   : > { %v13703_v51 = vadd.f32 %v3850_v2, %v3762_v5  ;;  %v3904_v39 = vpop.f32.mrf.mxu2  ;;  %4330 = vmatpush.bf16.msrb.mxu3 %v9714_v55 }
 0x490   : > { %v3905_v50 = vadd.f32 %v3904_v39, %v13574_v32  ;;  %4119 = vmatmul.bf16.gmra.mxu0 %v12494_v41  ;;  %v9327_v39 = vld [vmem:[%s17329_s5 + $0x40] sm:$0xf0] }
 0x491   : > { %17677 = vst [vmem:[#allocation123_spill] sm:$0xff] %v13703_v51 }
 0x492   : > { %v3993_v54 = vpop.f32.mrf.mxu3 }
 0x493   : > { %v13707_v6 = vadd.f32 %v3993_v54, %v3905_v50  ;;  %v9330_v54 = vor.u32 %v10735_v10, %v9327_v39 }
 0x494   : > { %3946 = vmatmul.bf16.gmra.mxu2 %v17571_v61 }
 0x495   : > { %17678 = vst [vmem:[#allocation124_spill] sm:$0xff] %v13707_v6  ;;  %v13713_v40 = vpop.f32.mrf.mxu0  ;;  %4241 = vmatpush.bf16.msrb.mxu2 %v9330_v54 }
 0x496   : > { %v3853_v18 = vpop.f32.mrf.mxu1 }
 0x497   : > { %4035 = vmatmul.bf16.gmra.mxu3 %v12816_v1  ;;  %v13721_v50 = vadd.f32 %v3853_v18, %v3765_v35  ;;  %v3907_v5 = vpop.f32.mrf.mxu2  ;;  %v3767_v18 = vadd.f32 %v13428_v22, %v13314_v45 }
 0x498   : > { %v3908_v2 = vadd.f32 %v3907_v5, %v13574_v32 }
 0x499   : > { %17679 = vst [vmem:[#allocation125_spill] sm:$0xff] %v13721_v50  ;;  %4168 = vmatmul.bf16.gmra.mxu1 %v12506_v37 }
 0x49a   : > { %v3996_v6 = vpop.f32.mrf.mxu3 }
 0x49b   : > { %v13731_v35 = vadd.f32 %v3996_v6, %v3908_v2  ;;  %v3770_v6 = vadd.f32 %v13452_v53, %v13314_v45  ;;  %v9525_v53 = vld [vmem:[%s17329_s5 + $0x198] sm:$0xf] }
 0x49d   : > { %17680 = vst [vmem:[#allocation126_spill] sm:$0xff] %v13731_v35  ;;  %v13735_v39 = vpop.f32.mrf.mxu0 }
 0x49e   : > { %v3855_v10 = vpop.f32.mrf.mxu1 }
 0x49f   : > { %v13737_v50 = vadd.f32 %v3855_v10, %v3767_v18  ;;  %v3909_v51 = vpop.f32.mrf.mxu2 }
 0x4a0   : > { %v3910_v8 = vadd.f32 %v3909_v51, %v13574_v32  ;;  %4124 = vmatmul.bf16.gmra.mxu0 %v17571_v61 }
 0x4a1   : > { %17681 = vst [vmem:[#allocation127_spill] sm:$0xff] %v13737_v50 }
 0x4a2   : > { %v3998_v62 = vpop.f32.mrf.mxu3 }
 0x4a3   : > { %v13741_v5 = vadd.f32 %v3998_v62, %v3910_v8  ;;  %v10790_v8 = vld [vmem:[%s17329_s5 + $0x1c4] sm:$0xf0]  ;;  %v9909_v62 = vld [vmem:[%s17329_s5 + $0x498] sm:$0xf] }
 0x4a4   : > { %3951 = vmatmul.bf16.gmra.mxu2 %v17580_v4 }
 0x4a5   : > { %17682 = vst [vmem:[#allocation128_spill] sm:$0xff] %v13741_v5  ;;  %v13747_v54 = vpop.f32.mrf.mxu0 }
 0x4a6   : > { %v3858_v22 = vpop.f32.mrf.mxu1 }
 0x4a7   : > { %4040 = vmatmul.bf16.gmra.mxu3 %v12846_v27  ;;  %v13749_v55 = vadd.f32 %v3858_v22, %v3770_v6  ;;  %v3912_v2 = vpop.f32.mrf.mxu2  ;;  %v9526_v6 = vor.u32 %v10790_v8, %v9525_v53  ;;  %v10886_v22 = vld [vmem:[%s17329_s5 + $0x4c4] sm:$0xf0]  ;;  %v9477_v53 = vld [vmem:[%s17329_s5 + $0x138] sm:$0xf] }
 0x4a8   : > { %v3913_v51 = vadd.f32 %v3912_v2, %v13574_v32  ;;  %v3772_v2 = vadd.f32 %v13466_v26, %v13314_v45  ;;  %v10778_v8 = vld [vmem:[%s17329_s5 + $0x164] sm:$0xf0] }
 0x4a9   : > { %17683 = vst [vmem:[#allocation129_spill] sm:$0xff] %v13749_v55  ;;  %4173 = vmatmul.bf16.gmra.mxu1 %v12536_v33  ;;  %4415 = vmatpush.bf16.msrb.mxu0 %v9526_v6  ;;  %v9429_v6 = vld [vmem:[%s17329_s5 + $0xd8] sm:$0xf] }
 0x4aa   : > { %v4001_v18 = vpop.f32.mrf.mxu3 }
 0x4ab   : > { %v13753_v10 = vadd.f32 %v4001_v18, %v3913_v51  ;;  %v9910_v51 = vor.u32 %v10886_v22, %v9909_v62  ;;  %v9478_v62 = vor.u32 %v10778_v8, %v9477_v53  ;;  %v10820_v53 = vld [vmem:[%s17329_s5 + $0x2bc] sm:$0xf]  ;;  %v9671_v8 = vld [vmem:[%s17329_s5 + $0x2e8] sm:$0xf0] }
 0x4ad   : > { %17684 = vst [vmem:[#allocation130_spill] sm:$0xff] %v13753_v10  ;;  %v13769_v10 = vpop.f32.mrf.mxu0  ;;  %4504 = vmatpush.bf16.msrb.mxu1 %v9910_v51  ;;  %4416 = vmatpush.bf16.msrb.mxu0 %v9478_v62  ;;  %v3775_v51 = vadd.f32 %v13484_v12, %v13314_v45  ;;  %v9674_v62 = vor.u32 %v10820_v53, %v9671_v8  ;;  %v10916_v12 = vld [vmem:[%s17329_s5 + $0x5bc] sm:$0xf] }
 0x4ae   : > { %v3860_v18 = vpop.f32.mrf.mxu1 }
 0x4af   : > { %v13771_v55 = vadd.f32 %v3860_v18, %v3772_v2  ;;  %v3914_v5 = vpop.f32.mrf.mxu2  ;;  %v10766_v2 = vld [vmem:[%s17329_s5 + $0x104] sm:$0xf0]  ;;  %4590 = vmatpush.bf16.msra.mxu2 %v9674_v62 }
 0x4b0   : > { %v3915_v50 = vadd.f32 %v3914_v5, %v13574_v32  ;;  %4129 = vmatmul.bf16.gmra.mxu0 %v17580_v4  ;;  %v9430_v5 = vor.u32 %v10766_v2, %v9429_v6  ;;  %v10055_v6 = vld [vmem:[%s17329_s5 + $0x5e8] sm:$0xf0] }
 0x4b1   : > { %17685 = vst [vmem:[#allocation131_spill] sm:$0xff] %v13771_v55  ;;  %v9381_v55 = vld [vmem:[%s17329_s5 + $0x78] sm:$0xf] }
 0x4b2   : > { %v4003_v26 = vpop.f32.mrf.mxu3  ;;  %4417 = vmatpush.bf16.msrb.mxu0 %v9430_v5 }
 0x4b3   : > { %v13781_v22 = vadd.f32 %v4003_v26, %v3915_v50 }
 0x4b4   : > { %3956 = vmatmul.bf16.gmra.mxu2 %v17589_v57 }
 0x4b5   : > { %17686 = vst [vmem:[#allocation132_spill] sm:$0xff] %v13781_v22  ;;  %v13793_v50 = vpop.f32.mrf.mxu0  ;;  %v10058_v22 = vor.u32 %v10916_v12, %v10055_v6  ;;  %v9333_v12 = vld [vmem:[%s17329_s5 + $0x18] sm:$0xf]  ;;  %v10742_v6 = vld [vmem:[%s17329_s5 + $0x44] sm:$0xf0] }
 0x4b6   : > { %v3863_v18 = vpop.f32.mrf.mxu1 }
 0x4b7   : > { %4045 = vmatmul.bf16.gmra.mxu3 %v12882_v15  ;;  %v13801_v26 = vadd.f32 %v3863_v18, %v3775_v51  ;;  %v3917_v2 = vpop.f32.mrf.mxu2  ;;  %v10754_v51 = vld [vmem:[%s17329_s5 + $0xa4] sm:$0xf0] }
 0x4b8   : > { %v3918_v5 = vadd.f32 %v3917_v2, %v13574_v32  ;;  %v9382_v53 = vor.u32 %v10754_v51, %v9381_v55  ;;  %4679 = vmatpush.bf16.msra.mxu3 %v10058_v22  ;;  %v3777_v2 = vadd.f32 %v13498_v59, %v13314_v45 }
 0x4b9   : > { %17687 = vst [vmem:[#allocation133_spill] sm:$0xff] %v13801_v26  ;;  %4178 = vmatmul.bf16.gmra.mxu1 %v12578_v56  ;;  %v9334_v26 = vor.u32 %v10742_v6, %v9333_v12 }
 0x4ba   : > { %v4006_v18 = vpop.f32.mrf.mxu3  ;;  %4418 = vmatpush.bf16.msrb.mxu0 %v9382_v53 }
 0x4bb   : > { %v13817_v8 = vadd.f32 %v4006_v18, %v3918_v5  ;;  %v3780_v18 = vadd.f32 %v13522_v46, %v13314_v45  ;;  %v9861_v46 = vld [vmem:[%s17329_s5 + $0x438] sm:$0xf] }
 0x4bd   : > { %17688 = vst [vmem:[#allocation134_spill] sm:$0xff] %v13817_v8  ;;  %v13827_v42 = vpop.f32.mrf.mxu0 }
 0x4be   : > { %v3865_v35 = vpop.f32.mrf.mxu1  ;;  %4419 = vmatpush.bf16.msrb.mxu0 %v9334_v26 }
 0x4bf   : > { %v13829_v55 = vadd.f32 %v3865_v35, %v3777_v2  ;;  %v3919_v22 = vpop.f32.mrf.mxu2 }
 0x4c0   : > { %v3920_v62 = vadd.f32 %v3919_v22, %v13574_v32  ;;  %4134 = vmatmul.bf16.gmra.mxu0 %v17589_v57  ;;  %v10874_v22 = vld [vmem:[%s17329_s5 + $0x464] sm:$0xf0] }
 0x4c1   : > { %17689 = vst [vmem:[#allocation135_spill] sm:$0xff] %v13829_v55 }
 0x4c2   : > { %v4008_v51 = vpop.f32.mrf.mxu3 }
 0x4c3   : > { %v13833_v5 = vadd.f32 %v4008_v51, %v3920_v62  ;;  %v9862_v62 = vor.u32 %v10874_v22, %v9861_v46  ;;  %v3782_v51 = vadd.f32 %v13538_v58, %v13314_v45  ;;  %v3785_v46 = vadd.f32 %v13560_v0, %v13314_v45  ;;  %v10904_v0 = vld [vmem:[%s17329_s5 + $0x55c] sm:$0xf] }
 0x4c4   : > { %3961 = vmatmul.bf16.gmra.mxu2 %v17598_v49 }
 0x4c5   : > { %17690 = vst [vmem:[#allocation136_spill] sm:$0xff] %v13833_v5  ;;  %v13839_v53 = vpop.f32.mrf.mxu0  ;;  %4505 = vmatpush.bf16.msrb.mxu1 %v9862_v62  ;;  %v10808_v62 = vld [vmem:[%s17329_s5 + $0x25c] sm:$0xf] }
 0x4c6   : > { %v3868_v59 = vpop.f32.mrf.mxu1 }
 0x4c7   : > { %4050 = vmatmul.bf16.gmra.mxu3 %v12932_v43  ;;  %v13841_v35 = vadd.f32 %v3868_v59, %v3780_v18  ;;  %v3922_v26 = vpop.f32.mrf.mxu2 }
 0x4c8   : > { %v3923_v12 = vadd.f32 %v3922_v26, %v13574_v32 }
 0x4c9   : > { %17691 = vst [vmem:[#allocation137_spill] sm:$0xff] %v13841_v35  ;;  %4183 = vmatmul.bf16.gmra.mxu1 %v12620_v14 }
 0x4ca   : > { %v4011_v6 = vpop.f32.mrf.mxu3 }
 0x4cb   : > { %v13845_v2 = vadd.f32 %v4011_v6, %v3923_v12 }
 0x4cd   : > { %17692 = vst [vmem:[#allocation138_spill] sm:$0xff] %v13845_v2  ;;  %v13855_v59 = vpop.f32.mrf.mxu0 }
 0x4ce   : > { %v3870_v18 = vpop.f32.mrf.mxu1 }
 0x4cf   : > { %v13857_v26 = vadd.f32 %v3870_v18, %v3782_v51  ;;  %v3924_v12 = vpop.f32.mrf.mxu2  ;;  %v9623_v51 = vld [vmem:[%s17329_s5 + $0x288] sm:$0xf0] }
 0x4d0   : > { %v3925_v6 = vadd.f32 %v3924_v12, %v13574_v32  ;;  %4139 = vmatmul.bf16.gmra.mxu0 %v17598_v49  ;;  %v9626_v18 = vor.u32 %v10808_v62, %v9623_v51  ;;  %v10007_v12 = vld [vmem:[%s17329_s5 + $0x588] sm:$0xf0] }
 0x4d1   : > { %17693 = vst [vmem:[#allocation139_spill] sm:$0xff] %v13857_v26 }
 0x4d2   : > { %v4013_v2 = vpop.f32.mrf.mxu3  ;;  %4591 = vmatpush.bf16.msra.mxu2 %v9626_v18 }
 0x4d3   : > { %v13861_v35 = vadd.f32 %v4013_v2, %v3925_v6 }
 0x4d4   : > { %4242 = vmatmul.bf16.vlgmr.msrb.gmra.mxu2 %v17607_v60 }
 0x4d5   : > { %17694 = vst [vmem:[#allocation140_spill] sm:$0xff] %v13861_v35  ;;  %v13867_v22 = vpop.f32.mrf.mxu0  ;;  %v10010_v35 = vor.u32 %v10904_v0, %v10007_v12  ;;  %v13894_v0 = vperm.slane %v13311_v34, 4 }
 0x4d6   : > { %v3873_v58 = vpop.f32.mrf.mxu1 }
 0x4d7   : > { %4331 = vmatmul.bf16.vlgmr.msrb.gmra.mxu3 %v12411_v29  ;;  %v13875_v2 = vadd.f32 %v3873_v58, %v3785_v46  ;;  %v3927_v6 = vpop.f32.mrf.mxu2  ;;  %v3787_v58 = vadd.f32 %v13577_v11, %v13314_v45  ;;  %v17699_v45 = vld [vmem:[#allocation55_spill] sm:$0xff] }
 0x4d8   : > { %v3928_v26 = vadd.f32 %v3927_v6, %v13574_v32  ;;  %4680 = vmatpush.bf16.msra.mxu3 %v10010_v35 }
 0x4d9   : > { %17695 = vst [vmem:[#allocation141_spill] sm:$0xff] %v13875_v2  ;;  %4188 = vmatmul.bf16.gmra.mxu1 %v12640_v7 }
 0x4da   : > { %v4016_v5 = vpop.f32.mrf.mxu3 }
 0x4db   : > { %v13885_v46 = vadd.f32 %v4016_v5, %v3928_v26  ;;  %v4066_v5 = vadd.f32 %v13599_v20, %v13894_v0  ;;  %v9813_v20 = vld [vmem:[%s17329_s5 + $0x3d8] sm:$0xf] }
 0x4dd   : > { %17696 = vst [vmem:[#allocation142_spill] sm:$0xff] %v13885_v46  ;;  %v13889_v51 = vpop.f32.mrf.mxu0 }
 0x4de   : > { %v3875_v62 = vpop.f32.mrf.mxu1 }
 0x4df   : > { %v13891_v2 = vadd.f32 %v3875_v62, %v3787_v58  ;;  %v3929_v55 = vpop.f32.mrf.mxu2 }
 0x4e0   : > { %v3930_v12 = vadd.f32 %v3929_v55, %v13574_v32  ;;  %4420 = vmatmul.bf16.vlgmr.msrb.gmra.mxu0 %v17607_v60 }
 0x4e1   : > { %17697 = vst [vmem:[#allocation143_spill] sm:$0xff] %v13891_v2 }
 0x4e2   : > { %v4018_v6 = vpop.f32.mrf.mxu3 }
 0x4e3   : > { %v13898_v35 = vadd.f32 %v4018_v6, %v3930_v12  ;;  %v10862_v12 = vld [vmem:[%s17329_s5 + $0x404] sm:$0xf0] }
 0x4e4   : > { %4247 = vmatmul.bf16.gmra.mxu2 %v17699_v45  ;;  %v9814_v6 = vor.u32 %v10862_v12, %v9813_v20  ;;  %v4071_v20 = vadd.f32 %v13633_v24, %v13894_v0  ;;  %v17704_v12 = vld [vmem:[#allocation59_spill] sm:$0xff]  ;;  %v10892_v24 = vld [vmem:[%s17329_s5 + $0x4fc] sm:$0xf] }
 0x4e5   : > { %17698 = vst [vmem:[#allocation144_spill] sm:$0xff] %v13898_v35  ;;  %v13904_v11 = vpop.f32.mrf.mxu0 }
 0x4e6   : > { %v4154_v26 = vpop.f32.mrf.mxu1  ;;  %4506 = vmatpush.bf16.msrb.mxu1 %v9814_v6 }
 0x4e7   : > { %4336 = vmatmul.bf16.gmra.mxu3 %v12444_v9  ;;  %v13906_v18 = vadd.f32 %v4154_v26, %v4066_v5  ;;  %v3932_v34 = vpop.f32.mrf.mxu2  ;;  %v4068_v5 = vadd.f32 %v13611_v25, %v13894_v0 }
 0x4e8   : > { %v3933_v55 = vadd.f32 %v3932_v34, %v13574_v32 }
 0x4e9   : > { %17700 = vst [vmem:[#allocation145_spill] sm:$0xff] %v13906_v18  ;;  %4193 = vmatmul.bf16.gmra.mxu1 %v12684_v31 }
 0x4ea   : > { %v4021_v58 = vpop.f32.mrf.mxu3 }
 0x4eb   : > { %v13910_v62 = vadd.f32 %v4021_v58, %v3933_v55 }
 0x4ed   : > { %17701 = vst [vmem:[#allocation146_spill] sm:$0xff] %v13910_v62  ;;  %v13920_v26 = vpop.f32.mrf.mxu0 }
 0x4ee   : > { %v4156_v34 = vpop.f32.mrf.mxu1 }
 0x4ef   : > { %v13922_v18 = vadd.f32 %v4156_v34, %v4068_v5  ;;  %v3934_v55 = vpop.f32.mrf.mxu2  ;;  %v10796_v5 = vld [vmem:[%s17329_s5 + $0x1fc] sm:$0xf]  ;;  %v9575_v34 = vld [vmem:[%s17329_s5 + $0x228] sm:$0xf0] }
 0x4f0   : > { %v3935_v58 = vadd.f32 %v3934_v55, %v13574_v32  ;;  %4425 = vmatmul.bf16.gmra.mxu0 %v17699_v45  ;;  %v9578_v55 = vor.u32 %v10796_v5, %v9575_v34 }
 0x4f1   : > { %17702 = vst [vmem:[#allocation147_spill] sm:$0xff] %v13922_v18 }
 0x4f2   : > { %v4023_v62 = vpop.f32.mrf.mxu3  ;;  %4592 = vmatpush.bf16.msra.mxu2 %v9578_v55 }
 0x4f3   : > { %v13926_v35 = vadd.f32 %v4023_v62, %v3935_v58  ;;  %v9959_v58 = vld [vmem:[%s17329_s5 + $0x528] sm:$0xf0] }
 0x4f4   : > { %4252 = vmatmul.bf16.gmra.mxu2 %v17704_v12 }
 0x4f5   : > { %17703 = vst [vmem:[#allocation148_spill] sm:$0xff] %v13926_v35  ;;  %v13932_v25 = vpop.f32.mrf.mxu0  ;;  %v9962_v35 = vor.u32 %v10892_v24, %v9959_v58 }
 0x4f6   : > { %v4159_v6 = vpop.f32.mrf.mxu1 }
 0x4f7   : > { %4341 = vmatmul.bf16.gmra.mxu3 %v12475_v21  ;;  %v13940_v62 = vadd.f32 %v4159_v6, %v4071_v20  ;;  %v3937_v18 = vpop.f32.mrf.mxu2  ;;  %v4073_v6 = vadd.f32 %v13645_v38, %v13894_v0 }
 0x4f8   : > { %v3938_v2 = vadd.f32 %v3937_v18, %v13574_v32  ;;  %4681 = vmatpush.bf16.msra.mxu3 %v9962_v35 }
 0x4f9   : > { %17705 = vst [vmem:[#allocation59_spill] sm:$0xff] %v13940_v62  ;;  %4198 = vmatmul.bf16.gmra.mxu1 %v12714_v17 }
 0x4fa   : > { %v4026_v46 = vpop.f32.mrf.mxu3 }
 0x4fb   : > { %v13950_v20 = vadd.f32 %v4026_v46, %v3938_v2  ;;  %v4076_v2 = vadd.f32 %v13667_v47, %v13894_v0  ;;  %v17709_v46 = vld [vmem:[#allocation64_spill] sm:$0xff] }
 0x4fc   : > { %v9765_v47 = vld [vmem:[%s17329_s5 + $0x378] sm:$0xf] }
 0x4fd   : > { %17706 = vst [vmem:[#allocation149_spill] sm:$0xff] %v13950_v20  ;;  %v13954_v5 = vpop.f32.mrf.mxu0 }
 0x4fe   : > { %v4161_v34 = vpop.f32.mrf.mxu1 }
 0x4ff   : > { %v13956_v62 = vadd.f32 %v4161_v34, %v4073_v6  ;;  %v3939_v8 = vpop.f32.mrf.mxu2 }
 0x500   : > { %v3940_v24 = vadd.f32 %v3939_v8, %v13574_v32  ;;  %4430 = vmatmul.bf16.gmra.mxu0 %v17704_v12 }
 0x501   : > { %17707 = vst [vmem:[#allocation150_spill] sm:$0xff] %v13956_v62 }
 0x502   : > { %v4028_v58 = vpop.f32.mrf.mxu3 }
 0x503   : > { %v13960_v18 = vadd.f32 %v4028_v58, %v3940_v24  ;;  %v10850_v58 = vld [vmem:[%s17329_s5 + $0x3a4] sm:$0xf0] }
 0x504   : > { %4257 = vmatmul.bf16.gmra.mxu2 %v17709_v46  ;;  %v9766_v62 = vor.u32 %v10850_v58, %v9765_v47  ;;  %v4081_v47 = vadd.f32 %v13701_v16, %v13894_v0  ;;  %v17714_v58 = vld [vmem:[#allocation69_spill] sm:$0xff]  ;;  %v10880_v16 = vld [vmem:[%s17329_s5 + $0x49c] sm:$0xf] }
 0x505   : > { %17708 = vst [vmem:[#allocation151_spill] sm:$0xff] %v13960_v18  ;;  %v13966_v38 = vpop.f32.mrf.mxu0 }
 0x506   : > { %v4164_v35 = vpop.f32.mrf.mxu1  ;;  %4507 = vmatpush.bf16.msrb.mxu1 %v9766_v62 }
 0x507   : > { %4346 = vmatmul.bf16.gmra.mxu3 %v12506_v37  ;;  %v13968_v55 = vadd.f32 %v4164_v35, %v4076_v2  ;;  %v3942_v6 = vpop.f32.mrf.mxu2  ;;  %v4078_v2 = vadd.f32 %v13679_v36, %v13894_v0 }
 0x508   : > { %v3943_v8 = vadd.f32 %v3942_v6, %v13574_v32 }
 0x509   : > { %17710 = vst [vmem:[#allocation64_spill] sm:$0xff] %v13968_v55  ;;  %4203 = vmatmul.bf16.gmra.mxu1 %v12750_v19 }
 0x50a   : > { %v4031_v34 = vpop.f32.mrf.mxu3 }
 0x50b   : > { %v13972_v24 = vadd.f32 %v4031_v34, %v3943_v8 }
 0x50d   : > { %17711 = vst [vmem:[#allocation152_spill] sm:$0xff] %v13972_v24  ;;  %v13982_v35 = vpop.f32.mrf.mxu0 }
 0x50e   : > { %v4166_v6 = vpop.f32.mrf.mxu1 }
 0x50f   : > { %v13984_v55 = vadd.f32 %v4166_v6, %v4078_v2  ;;  %v3944_v8 = vpop.f32.mrf.mxu2  ;;  %v10784_v2 = vld [vmem:[%s17329_s5 + $0x19c] sm:$0xf]  ;;  %v9527_v6 = vld [vmem:[%s17329_s5 + $0x1c8] sm:$0xf0] }
 0x510   : > { %v3945_v34 = vadd.f32 %v3944_v8, %v13574_v32  ;;  %4435 = vmatmul.bf16.gmra.mxu0 %v17709_v46  ;;  %v9530_v8 = vor.u32 %v10784_v2, %v9527_v6 }
 0x511   : > { %17712 = vst [vmem:[#allocation153_spill] sm:$0xff] %v13984_v55 }
 0x512   : > { %v4033_v24 = vpop.f32.mrf.mxu3  ;;  %4593 = vmatpush.bf16.msra.mxu2 %v9530_v8 }
 0x513   : > { %v13988_v18 = vadd.f32 %v4033_v24, %v3945_v34  ;;  %v9911_v34 = vld [vmem:[%s17329_s5 + $0x4c8] sm:$0xf0] }
 0x514   : > { %4262 = vmatmul.bf16.gmra.mxu2 %v17714_v58 }
 0x515   : > { %17713 = vst [vmem:[#allocation154_spill] sm:$0xff] %v13988_v18  ;;  %v13994_v36 = vpop.f32.mrf.mxu0  ;;  %v9914_v18 = vor.u32 %v10880_v16, %v9911_v34 }
 0x516   : > { %v4169_v62 = vpop.f32.mrf.mxu1 }
 0x517   : > { %4351 = vmatmul.bf16.gmra.mxu3 %v12536_v33  ;;  %v14002_v24 = vadd.f32 %v4169_v62, %v4081_v47  ;;  %v3947_v55 = vpop.f32.mrf.mxu2  ;;  %v4083_v62 = vadd.f32 %v13713_v40, %v13894_v0 }
 0x518   : > { %v3948_v20 = vadd.f32 %v3947_v55, %v13574_v32  ;;  %4682 = vmatpush.bf16.msra.mxu3 %v9914_v18 }
 0x519   : > { %17715 = vst [vmem:[#allocation155_spill] sm:$0xff] %v14002_v24  ;;  %4208 = vmatmul.bf16.gmra.mxu1 %v12780_v13 }
 0x51a   : > { %v4036_v44 = vpop.f32.mrf.mxu3 }
 0x51b   : > { %v14012_v47 = vadd.f32 %v4036_v44, %v3948_v20  ;;  %v4086_v44 = vadd.f32 %v13735_v39, %v13894_v0  ;;  %v17719_v20 = vld [vmem:[#allocation74_spill] sm:$0xff]  ;;  %v9717_v39 = vld [vmem:[%s17329_s5 + $0x318] sm:$0xf] }
 0x51d   : > { %17716 = vst [vmem:[#allocation156_spill] sm:$0xff] %v14012_v47  ;;  %v14016_v2 = vpop.f32.mrf.mxu0 }
 0x51e   : > { %v4171_v6 = vpop.f32.mrf.mxu1 }
 0x51f   : > { %v14018_v24 = vadd.f32 %v4171_v6, %v4083_v62  ;;  %v3949_v3 = vpop.f32.mrf.mxu2 }
 0x520   : > { %v3950_v16 = vadd.f32 %v3949_v3, %v13574_v32  ;;  %4440 = vmatmul.bf16.gmra.mxu0 %v17714_v58 }
 0x521   : > { %17717 = vst [vmem:[#allocation157_spill] sm:$0xff] %v14018_v24 }
 0x522   : > { %v4038_v34 = vpop.f32.mrf.mxu3 }
 0x523   : > { %v14022_v55 = vadd.f32 %v4038_v34, %v3950_v16  ;;  %v10838_v34 = vld [vmem:[%s17329_s5 + $0x344] sm:$0xf0] }
 0x524   : > { %4267 = vmatmul.bf16.gmra.mxu2 %v17719_v20  ;;  %v9718_v24 = vor.u32 %v10838_v34, %v9717_v39  ;;  %v4091_v39 = vadd.f32 %v13769_v10, %v13894_v0  ;;  %v10772_v34 = vld [vmem:[%s17329_s5 + $0x13c] sm:$0xf] }
 0x525   : > { %17718 = vst [vmem:[#allocation158_spill] sm:$0xff] %v14022_v55  ;;  %v14028_v40 = vpop.f32.mrf.mxu0  ;;  %v10868_v10 = vld [vmem:[%s17329_s5 + $0x43c] sm:$0xf] }
 0x526   : > { %v4174_v18 = vpop.f32.mrf.mxu1  ;;  %4508 = vmatpush.bf16.msrb.mxu1 %v9718_v24 }
 0x527   : > { %4356 = vmatmul.bf16.gmra.mxu3 %v12578_v56  ;;  %v14030_v8 = vadd.f32 %v4174_v18, %v4086_v44  ;;  %v3952_v62 = vpop.f32.mrf.mxu2  ;;  %v4088_v44 = vadd.f32 %v13747_v54, %v13894_v0 }
 0x528   : > { %v3953_v3 = vadd.f32 %v3952_v62, %v13574_v32 }
 0x529   : > { %17720 = vst [vmem:[#allocation159_spill] sm:$0xff] %v14030_v8  ;;  %4213 = vmatmul.bf16.gmra.mxu1 %v12816_v1 }
 0x52a   : > { %v4041_v6 = vpop.f32.mrf.mxu3 }
 0x52b   : > { %v14034_v16 = vadd.f32 %v4041_v6, %v3953_v3 }
 0x52d   : > { %17721 = vst [vmem:[#allocation160_spill] sm:$0xff] %v14034_v16  ;;  %v14044_v18 = vpop.f32.mrf.mxu0 }
 0x52e   : > { %v4176_v62 = vpop.f32.mrf.mxu1 }
 0x52f   : > { %v14046_v8 = vadd.f32 %v4176_v62, %v4088_v44  ;;  %v3954_v3 = vpop.f32.mrf.mxu2  ;;  %v9479_v44 = vld [vmem:[%s17329_s5 + $0x168] sm:$0xf0] }
 0x530   : > { %v3955_v6 = vadd.f32 %v3954_v3, %v13574_v32  ;;  %4445 = vmatmul.bf16.gmra.mxu0 %v17719_v20  ;;  %v9482_v62 = vor.u32 %v10772_v34, %v9479_v44  ;;  %v9863_v3 = vld [vmem:[%s17329_s5 + $0x468] sm:$0xf0] }
 0x531   : > { %17722 = vst [vmem:[#allocation161_spill] sm:$0xff] %v14046_v8  ;;  %v9866_v8 = vor.u32 %v10868_v10, %v9863_v3 }
 0x532   : > { %v4043_v16 = vpop.f32.mrf.mxu3  ;;  %4594 = vmatpush.bf16.msra.mxu2 %v9482_v62 }
 0x533   : > { %v14050_v55 = vadd.f32 %v4043_v16, %v3955_v6  ;;  %4683 = vmatpush.bf16.msra.mxu3 %v9866_v8 }
 0x534   : > { %4272 = vmatmul.bf16.gmra.mxu2 %v17650_v63 }
 0x535   : > { %17723 = vst [vmem:[#allocation162_spill] sm:$0xff] %v14050_v55  ;;  %v14056_v54 = vpop.f32.mrf.mxu0 }
 0x536   : > { %v4179_v24 = vpop.f32.mrf.mxu1 }
 0x537   : > { %4361 = vmatmul.bf16.gmra.mxu3 %v12620_v14  ;;  %v14064_v16 = vadd.f32 %v4179_v24, %v4091_v39  ;;  %v3957_v6 = vpop.f32.mrf.mxu2  ;;  %v4093_v24 = vadd.f32 %v13793_v50, %v13894_v0 }
 0x538   : > { %v3958_v55 = vadd.f32 %v3957_v6, %v13574_v32 }
 0x539   : > { %17724 = vst [vmem:[#allocation163_spill] sm:$0xff] %v14064_v16  ;;  %4218 = vmatmul.bf16.gmra.mxu1 %v12846_v27 }
 0x53a   : > { %v4046_v47 = vpop.f32.mrf.mxu3 }
 0x53b   : > { %v14074_v39 = vadd.f32 %v4046_v47, %v3958_v55  ;;  %v4096_v47 = vadd.f32 %v13827_v42, %v13894_v0  ;;  %v9677_v42 = vld [vmem:[%s17329_s5 + $0x2c0] sm:$0xf] }
 0x53d   : > { %17725 = vst [vmem:[#allocation164_spill] sm:$0xff] %v14074_v39  ;;  %v14078_v34 = vpop.f32.mrf.mxu0 }
 0x53e   : > { %v4181_v44 = vpop.f32.mrf.mxu1 }
 0x53f   : > { %v14080_v16 = vadd.f32 %v4181_v44, %v4093_v24  ;;  %v3959_v52 = vpop.f32.mrf.mxu2 }
 0x540   : > { %v3960_v10 = vadd.f32 %v3959_v52, %v13574_v32  ;;  %4450 = vmatmul.bf16.gmra.mxu0 %v17650_v63 }
 0x541   : > { %17726 = vst [vmem:[#allocation165_spill] sm:$0xff] %v14080_v16 }
 0x542   : > { %v4048_v3 = vpop.f32.mrf.mxu3 }
 0x543   : > { %v14084_v6 = vadd.f32 %v4048_v3, %v3960_v10  ;;  %v10827_v10 = vld [vmem:[%s17329_s5 + $0x2ec] sm:$0xf0]  ;;  %v10061_v3 = vld [vmem:[%s17329_s5 + $0x5c0] sm:$0xf] }
 0x544   : > { %4277 = vmatmul.bf16.gmra.mxu2 %v12349_v48 }
 0x545   : > { %17727 = vst [vmem:[#allocation166_spill] sm:$0xff] %v14084_v6  ;;  %v14090_v50 = vpop.f32.mrf.mxu0 }
 0x546   : > { %v4184_v55 = vpop.f32.mrf.mxu1 }
 0x547   : > { %4366 = vmatmul.bf16.gmra.mxu3 %v12640_v7  ;;  %v14092_v8 = vadd.f32 %v4184_v55, %v4096_v47  ;;  %v3962_v62 = vpop.f32.mrf.mxu2  ;;  %v9678_v47 = vor.u32 %v10827_v10, %v9677_v42  ;;  %v10923_v55 = vld [vmem:[%s17329_s5 + $0x5ec] sm:$0xf0]  ;;  %v4101_v10 = vadd.f32 %v13855_v59, %v13894_v0  ;;  %v9431_v59 = vld [vmem:[%s17329_s5 + $0x108] sm:$0xf0] }
 0x548   : > { %v3963_v52 = vadd.f32 %v3962_v62, %v13574_v32  ;;  %v4098_v62 = vadd.f32 %v13839_v53, %v13894_v0  ;;  %v14126_v53 = vld [vmem:[%s17330_s6] sm:$0xff] }
 0x549   : > { %17728 = vst [vmem:[#allocation167_spill] sm:$0xff] %v14092_v8  ;;  %4223 = vmatmul.bf16.gmra.mxu1 %v12882_v15  ;;  %4768 = vmatpush.bf16.msra.mxu0 %v9678_v47  ;;  %v10856_v47 = vld [vmem:[%s17329_s5 + $0x3dc] sm:$0xf] }
 0x54a   : > { %v4051_v24 = vpop.f32.mrf.mxu3 }
 0x54b   : > { %v14096_v44 = vadd.f32 %v4051_v24, %v3963_v52  ;;  %v10062_v52 = vor.u32 %v10923_v55, %v10061_v3  ;;  %v9815_v55 = vld [vmem:[%s17329_s5 + $0x408] sm:$0xf0] }
 0x54d   : > { %17729 = vst [vmem:[#allocation168_spill] sm:$0xff] %v14096_v44  ;;  %v14112_v24 = vpop.f32.mrf.mxu0  ;;  %4857 = vmatpush.bf16.msra.mxu1 %v10062_v52  ;;  %v9818_v52 = vor.u32 %v10856_v47, %v9815_v55 }
 0x54e   : > { %v4186_v8 = vpop.f32.mrf.mxu1 }
 0x54f   : > { %v14114_v44 = vadd.f32 %v4186_v8, %v4098_v62  ;;  %v3964_v16 = vpop.f32.mrf.mxu2  ;;  %v14129_v8 = vperm.slane %v14126_v53, 5  ;;  %4684 = vmatpush.bf16.msra.mxu3 %v9818_v52 }
 0x550   : > { %v3965_v6 = vadd.f32 %v3964_v16, %v13574_v32  ;;  %4455 = vmatmul.bf16.gmra.mxu0 %v12349_v48 }
 0x551   : > { %17730 = vst [vmem:[#allocation169_spill] sm:$0xff] %v14114_v44 }
 0x552   : > { %v4053_v39 = vpop.f32.mrf.mxu3 }
 0x553   : > { %v14118_v42 = vadd.f32 %v4053_v39, %v3965_v6  ;;  %v10760_v39 = vld [vmem:[%s17329_s5 + $0xdc] sm:$0xf] }
 0x554   : > { %4282 = vmatmul.bf16.gmra.mxu2 %v12399_v23  ;;  %v9434_v3 = vor.u32 %v10760_v39, %v9431_v59 }
 0x555   : > { %17731 = vst [vmem:[#allocation170_spill] sm:$0xff] %v14118_v42  ;;  %v14132_v32 = vpop.f32.mrf.mxu0 }
 0x556   : > { %v4189_v16 = vpop.f32.mrf.mxu1  ;;  %4595 = vmatpush.bf16.msra.mxu2 %v9434_v3 }
 0x557   : > { %4371 = vmatmul.bf16.gmra.mxu3 %v12684_v31  ;;  %v14140_v6 = vadd.f32 %v4189_v16, %v4101_v10  ;;  %v4243_v62 = vpop.f32.mrf.mxu2  ;;  %v4103_v16 = vadd.f32 %v13867_v22, %v13894_v0 }
 0x558   : > { %v4244_v44 = vadd.f32 %v4243_v62, %v14129_v8 }
 0x559   : > { %17732 = vst [vmem:[#allocation171_spill] sm:$0xff] %v14140_v6  ;;  %4228 = vmatmul.bf16.gmra.mxu1 %v12932_v43 }
 0x55a   : > { %v4332_v42 = vpop.f32.mrf.mxu3 }
 0x55b   : > { %v14150_v10 = vadd.f32 %v4332_v42, %v4244_v44  ;;  %v4106_v44 = vadd.f32 %v13889_v51, %v13894_v0  ;;  %v9629_v51 = vld [vmem:[%s17329_s5 + $0x260] sm:$0xf] }
 0x55d   : > { %17733 = vst [vmem:[#allocation172_spill] sm:$0xff] %v14150_v10  ;;  %v14154_v59 = vpop.f32.mrf.mxu0 }
 0x55e   : > { %v4191_v39 = vpop.f32.mrf.mxu1 }
 0x55f   : > { %v14156_v6 = vadd.f32 %v4191_v39, %v4103_v16  ;;  %v4245_v48 = vpop.f32.mrf.mxu2 }
 0x560   : > { %v4246_v47 = vadd.f32 %v4245_v48, %v14129_v8  ;;  %4460 = vmatmul.bf16.gmra.mxu0 %v12399_v23 }
 0x561   : > { %17734 = vst [vmem:[#allocation173_spill] sm:$0xff] %v14156_v6 }
 0x562   : > { %v4334_v55 = vpop.f32.mrf.mxu3 }
 0x563   : > { %v14160_v62 = vadd.f32 %v4334_v55, %v4246_v47  ;;  %v10815_v47 = vld [vmem:[%s17329_s5 + $0x28c] sm:$0xf0]  ;;  %v10013_v55 = vld [vmem:[%s17329_s5 + $0x560] sm:$0xf] }
 0x564   : > { %4287 = vmatmul.bf16.gmra.mxu2 %v12432_v28 }
 0x565   : > { %17735 = vst [vmem:[#allocation174_spill] sm:$0xff] %v14160_v62  ;;  %v14166_v42 = vpop.f32.mrf.mxu0 }
 0x566   : > { %v4194_v22 = vpop.f32.mrf.mxu1 }
 0x567   : > { %4376 = vmatmul.bf16.gmra.mxu3 %v12714_v17  ;;  %v14168_v3 = vadd.f32 %v4194_v22, %v4106_v44  ;;  %v4248_v52 = vpop.f32.mrf.mxu2  ;;  %v9630_v44 = vor.u32 %v10815_v47, %v9629_v51  ;;  %v10911_v22 = vld [vmem:[%s17329_s5 + $0x58c] sm:$0xf0]  ;;  %v4111_v47 = vadd.f32 %v13920_v26, %v13894_v0  ;;  %v10844_v26 = vld [vmem:[%s17329_s5 + $0x37c] sm:$0xf] }
 0x568   : > { %v4249_v48 = vadd.f32 %v4248_v52, %v14129_v8  ;;  %v4108_v52 = vadd.f32 %v13904_v11, %v13894_v0 }
 0x569   : > { %17736 = vst [vmem:[#allocation175_spill] sm:$0xff] %v14168_v3  ;;  %4509 = vmatmul.bf16.vlgmr.msrb.gmra.mxu1 %v12411_v29  ;;  %4769 = vmatpush.bf16.msra.mxu0 %v9630_v44  ;;  %v10748_v44 = vld [vmem:[%s17329_s5 + $0x7c] sm:$0xf] }
 0x56a   : > { %v4337_v16 = vpop.f32.mrf.mxu3 }
 0x56b   : > { %v14172_v39 = vadd.f32 %v4337_v16, %v4249_v48  ;;  %v10014_v48 = vor.u32 %v10911_v22, %v10013_v55  ;;  %v9767_v22 = vld [vmem:[%s17329_s5 + $0x3a8] sm:$0xf0] }
 0x56d   : > { %17737 = vst [vmem:[#allocation176_spill] sm:$0xff] %v14172_v39  ;;  %v14188_v3 = vpop.f32.mrf.mxu0  ;;  %4858 = vmatpush.bf16.msra.mxu1 %v10014_v48  ;;  %v9770_v48 = vor.u32 %v10844_v26, %v9767_v22 }
 0x56e   : > { %v4196_v16 = vpop.f32.mrf.mxu1 }
 0x56f   : > { %v14190_v39 = vadd.f32 %v4196_v16, %v4108_v52  ;;  %v4250_v6 = vpop.f32.mrf.mxu2  ;;  %4685 = vmatpush.bf16.msra.mxu3 %v9770_v48 }
 0x570   : > { %v4251_v62 = vadd.f32 %v4250_v6, %v14129_v8  ;;  %4465 = vmatmul.bf16.gmra.mxu0 %v12432_v28  ;;  %v9383_v6 = vld [vmem:[%s17329_s5 + $0xa8] sm:$0xf0] }
 0x571   : > { %17738 = vst [vmem:[#allocation177_spill] sm:$0xff] %v14190_v39 }
 0x572   : > { %v4339_v10 = vpop.f32.mrf.mxu3 }
 0x573   : > { %v14194_v51 = vadd.f32 %v4339_v10, %v4251_v62  ;;  %v9386_v62 = vor.u32 %v10748_v44, %v9383_v6 }
 0x574   : > { %4292 = vmatmul.bf16.gmra.mxu2 %v12463_v30 }
 0x575   : > { %17739 = vst [vmem:[#allocation178_spill] sm:$0xff] %v14194_v51  ;;  %v14200_v55 = vpop.f32.mrf.mxu0  ;;  %4596 = vmatpush.bf16.msra.mxu2 %v9386_v62 }
 0x576   : > { %v4199_v11 = vpop.f32.mrf.mxu1 }
 0x577   : > { %4381 = vmatmul.bf16.gmra.mxu3 %v12750_v19  ;;  %v14208_v10 = vadd.f32 %v4199_v11, %v4111_v47  ;;  %v4253_v52 = vpop.f32.mrf.mxu2  ;;  %v4113_v11 = vadd.f32 %v13932_v25, %v13894_v0 }
 0x578   : > { %v4254_v16 = vadd.f32 %v4253_v52, %v14129_v8 }
 0x579   : > { %17740 = vst [vmem:[#allocation179_spill] sm:$0xff] %v14208_v10  ;;  %4514 = vmatmul.bf16.gmra.mxu1 %v12444_v9 }
 0x57a   : > { %v4342_v39 = vpop.f32.mrf.mxu3 }
 0x57b   : > { %v14218_v47 = vadd.f32 %v4342_v39, %v4254_v16  ;;  %v4116_v39 = vadd.f32 %v13954_v5, %v13894_v0  ;;  %v9581_v5 = vld [vmem:[%s17329_s5 + $0x200] sm:$0xf] }
 0x57d   : > { %17741 = vst [vmem:[#allocation180_spill] sm:$0xff] %v14218_v47  ;;  %v14222_v6 = vpop.f32.mrf.mxu0 }
 0x57e   : > { %v4201_v44 = vpop.f32.mrf.mxu1 }
 0x57f   : > { %v14224_v10 = vadd.f32 %v4201_v44, %v4113_v11  ;;  %v4255_v51 = vpop.f32.mrf.mxu2 }
 0x580   : > { %v4256_v26 = vadd.f32 %v4255_v51, %v14129_v8  ;;  %4470 = vmatmul.bf16.gmra.mxu0 %v12463_v30 }
 0x581   : > { %17742 = vst [vmem:[#allocation181_spill] sm:$0xff] %v14224_v10 }
 0x582   : > { %v4344_v22 = vpop.f32.mrf.mxu3 }
 0x583   : > { %v14228_v52 = vadd.f32 %v4344_v22, %v4256_v26  ;;  %v10803_v26 = vld [vmem:[%s17329_s5 + $0x22c] sm:$0xf0]  ;;  %v9965_v22 = vld [vmem:[%s17329_s5 + $0x500] sm:$0xf] }
 0x584   : > { %4297 = vmatmul.bf16.gmra.mxu2 %v12494_v41 }
 0x585   : > { %17743 = vst [vmem:[#allocation182_spill] sm:$0xff] %v14228_v52  ;;  %v14234_v62 = vpop.f32.mrf.mxu0 }
 0x586   : > { %v4204_v25 = vpop.f32.mrf.mxu1 }
 0x587   : > { %4386 = vmatmul.bf16.gmra.mxu3 %v12780_v13  ;;  %v14236_v48 = vadd.f32 %v4204_v25, %v4116_v39  ;;  %v4258_v16 = vpop.f32.mrf.mxu2  ;;  %v9582_v39 = vor.u32 %v10803_v26, %v9581_v5  ;;  %v10899_v25 = vld [vmem:[%s17329_s5 + $0x52c] sm:$0xf0]  ;;  %v4121_v26 = vadd.f32 %v13982_v35, %v13894_v0  ;;  %v10832_v35 = vld [vmem:[%s17329_s5 + $0x31c] sm:$0xf] }
 0x588   : > { %v4259_v51 = vadd.f32 %v4258_v16, %v14129_v8  ;;  %v4118_v16 = vadd.f32 %v13966_v38, %v13894_v0 }
 0x589   : > { %17744 = vst [vmem:[#allocation183_spill] sm:$0xff] %v14236_v48  ;;  %4519 = vmatmul.bf16.gmra.mxu1 %v12475_v21  ;;  %4770 = vmatpush.bf16.msra.mxu0 %v9582_v39  ;;  %v10736_v39 = vld [vmem:[%s17329_s5 + $0x1c] sm:$0xf] }
 0x58a   : > { %v4347_v11 = vpop.f32.mrf.mxu3 }
 0x58b   : > { %v14240_v44 = vadd.f32 %v4347_v11, %v4259_v51  ;;  %v9966_v51 = vor.u32 %v10899_v25, %v9965_v22  ;;  %v9719_v25 = vld [vmem:[%s17329_s5 + $0x348] sm:$0xf0] }
 0x58d   : > { %17745 = vst [vmem:[#allocation184_spill] sm:$0xff] %v14240_v44  ;;  %v14256_v48 = vpop.f32.mrf.mxu0  ;;  %4859 = vmatpush.bf16.msra.mxu1 %v9966_v51  ;;  %v9722_v51 = vor.u32 %v10832_v35, %v9719_v25 }
 0x58e   : > { %v4206_v11 = vpop.f32.mrf.mxu1 }
 0x58f   : > { %v14258_v44 = vadd.f32 %v4206_v11, %v4118_v16  ;;  %v4260_v10 = vpop.f32.mrf.mxu2  ;;  %4686 = vmatpush.bf16.msra.mxu3 %v9722_v51 }
 0x590   : > { %v4261_v52 = vadd.f32 %v4260_v10, %v14129_v8  ;;  %4475 = vmatmul.bf16.gmra.mxu0 %v12494_v41  ;;  %v9335_v10 = vld [vmem:[%s17329_s5 + $0x48] sm:$0xf0] }
 0x591   : > { %17746 = vst [vmem:[#allocation185_spill] sm:$0xff] %v14258_v44 }
 0x592   : > { %v4349_v47 = vpop.f32.mrf.mxu3 }
 0x593   : > { %v14262_v5 = vadd.f32 %v4349_v47, %v4261_v52  ;;  %v9338_v52 = vor.u32 %v10736_v39, %v9335_v10 }
 0x594   : > { %4302 = vmatmul.bf16.gmra.mxu2 %v17571_v61 }
 0x595   : > { %17747 = vst [vmem:[#allocation186_spill] sm:$0xff] %v14262_v5  ;;  %v14268_v22 = vpop.f32.mrf.mxu0  ;;  %4597 = vmatpush.bf16.msra.mxu2 %v9338_v52 }
 0x596   : > { %v4209_v38 = vpop.f32.mrf.mxu1 }
 0x597   : > { %4391 = vmatmul.bf16.gmra.mxu3 %v12816_v1  ;;  %v14276_v47 = vadd.f32 %v4209_v38, %v4121_v26  ;;  %v4263_v16 = vpop.f32.mrf.mxu2  ;;  %v4123_v38 = vadd.f32 %v13994_v36, %v13894_v0 }
 0x598   : > { %v4264_v11 = vadd.f32 %v4263_v16, %v14129_v8 }
 0x599   : > { %17748 = vst [vmem:[#allocation187_spill] sm:$0xff] %v14276_v47  ;;  %4524 = vmatmul.bf16.gmra.mxu1 %v12506_v37 }
 0x59a   : > { %v4352_v44 = vpop.f32.mrf.mxu3 }
 0x59b   : > { %v14286_v26 = vadd.f32 %v4352_v44, %v4264_v11  ;;  %v4126_v44 = vadd.f32 %v14016_v2, %v13894_v0  ;;  %v9533_v2 = vld [vmem:[%s17329_s5 + $0x1a0] sm:$0xf] }
 0x59d   : > { %17749 = vst [vmem:[#allocation188_spill] sm:$0xff] %v14286_v26  ;;  %v14290_v10 = vpop.f32.mrf.mxu0 }
 0x59e   : > { %v4211_v39 = vpop.f32.mrf.mxu1 }
 0x59f   : > { %v14292_v47 = vadd.f32 %v4211_v39, %v4123_v38  ;;  %v4265_v5 = vpop.f32.mrf.mxu2 }
 0x5a0   : > { %v4266_v35 = vadd.f32 %v4265_v5, %v14129_v8  ;;  %4480 = vmatmul.bf16.gmra.mxu0 %v17571_v61 }
 0x5a1   : > { %17750 = vst [vmem:[#allocation189_spill] sm:$0xff] %v14292_v47 }
 0x5a2   : > { %v4354_v25 = vpop.f32.mrf.mxu3 }
 0x5a3   : > { %v14296_v16 = vadd.f32 %v4354_v25, %v4266_v35  ;;  %v10791_v35 = vld [vmem:[%s17329_s5 + $0x1cc] sm:$0xf0]  ;;  %v9917_v25 = vld [vmem:[%s17329_s5 + $0x4a0] sm:$0xf] }
 0x5a4   : > { %4307 = vmatmul.bf16.gmra.mxu2 %v17580_v4 }
 0x5a5   : > { %17751 = vst [vmem:[#allocation190_spill] sm:$0xff] %v14296_v16  ;;  %v14302_v52 = vpop.f32.mrf.mxu0 }
 0x5a6   : > { %v4214_v36 = vpop.f32.mrf.mxu1 }
 0x5a7   : > { %4396 = vmatmul.bf16.gmra.mxu3 %v12846_v27  ;;  %v14304_v51 = vadd.f32 %v4214_v36, %v4126_v44  ;;  %v4268_v11 = vpop.f32.mrf.mxu2  ;;  %v9534_v44 = vor.u32 %v10791_v35, %v9533_v2  ;;  %v10887_v36 = vld [vmem:[%s17329_s5 + $0x4cc] sm:$0xf0]  ;;  %v9485_v2 = vld [vmem:[%s17329_s5 + $0x140] sm:$0xf] }
 0x5a8   : > { %v4269_v5 = vadd.f32 %v4268_v11, %v14129_v8  ;;  %v4128_v11 = vadd.f32 %v14028_v40, %v13894_v0  ;;  %v10779_v35 = vld [vmem:[%s17329_s5 + $0x16c] sm:$0xf0] }
 0x5a9   : > { %17752 = vst [vmem:[#allocation191_spill] sm:$0xff] %v14304_v51  ;;  %4529 = vmatmul.bf16.gmra.mxu1 %v12536_v33  ;;  %4771 = vmatpush.bf16.msra.mxu0 %v9534_v44  ;;  %v9437_v44 = vld [vmem:[%s17329_s5 + $0xe0] sm:$0xf] }
 0x5aa   : > { %v4357_v38 = vpop.f32.mrf.mxu3 }
 0x5ab   : > { %v14308_v39 = vadd.f32 %v4357_v38, %v4269_v5  ;;  %v9918_v5 = vor.u32 %v10887_v36, %v9917_v25  ;;  %v9486_v25 = vor.u32 %v10779_v35, %v9485_v2  ;;  %v10821_v2 = vld [vmem:[%s17329_s5 + $0x2c4] sm:$0xf]  ;;  %v9679_v35 = vld [vmem:[%s17329_s5 + $0x2f0] sm:$0xf0] }
 0x5ad   : > { %17753 = vst [vmem:[#allocation192_spill] sm:$0xff] %v14308_v39  ;;  %v14324_v51 = vpop.f32.mrf.mxu0  ;;  %4860 = vmatpush.bf16.msra.mxu1 %v9918_v5  ;;  %4772 = vmatpush.bf16.msra.mxu0 %v9486_v25  ;;  %v4131_v5 = vadd.f32 %v14044_v18, %v13894_v0  ;;  %v9682_v25 = vor.u32 %v10821_v2, %v9679_v35  ;;  %v10917_v18 = vld [vmem:[%s17329_s5 + $0x5c4] sm:$0xf] }
 0x5ae   : > { %v4216_v38 = vpop.f32.mrf.mxu1 }
 0x5af   : > { %v14326_v39 = vadd.f32 %v4216_v38, %v4128_v11  ;;  %v4270_v47 = vpop.f32.mrf.mxu2  ;;  %v10767_v11 = vld [vmem:[%s17329_s5 + $0x10c] sm:$0xf0]  ;;  %4946 = vmatpush.bf16.msrb.mxu2 %v9682_v25 }
 0x5b0   : > { %v4271_v16 = vadd.f32 %v4270_v47, %v14129_v8  ;;  %4485 = vmatmul.bf16.gmra.mxu0 %v17580_v4  ;;  %v9438_v47 = vor.u32 %v10767_v11, %v9437_v44  ;;  %v10063_v44 = vld [vmem:[%s17329_s5 + $0x5f0] sm:$0xf0] }
 0x5b1   : > { %17754 = vst [vmem:[#allocation193_spill] sm:$0xff] %v14326_v39  ;;  %v10066_v39 = vor.u32 %v10917_v18, %v10063_v44  ;;  %v9341_v18 = vld [vmem:[%s17329_s5 + $0x20] sm:$0xf]  ;;  %v10743_v44 = vld [vmem:[%s17329_s5 + $0x4c] sm:$0xf0] }
 0x5b2   : > { %v4359_v40 = vpop.f32.mrf.mxu3  ;;  %4773 = vmatpush.bf16.msra.mxu0 %v9438_v47 }
 0x5b3   : > { %v14336_v36 = vadd.f32 %v4359_v40, %v4271_v16  ;;  %5035 = vmatpush.bf16.msrb.mxu3 %v10066_v39 }
 0x5b4   : > { %4312 = vmatmul.bf16.gmra.mxu2 %v17589_v57 }
 0x5b5   : > { %17755 = vst [vmem:[#allocation194_spill] sm:$0xff] %v14336_v36  ;;  %v14348_v16 = vpop.f32.mrf.mxu0  ;;  %v9389_v36 = vld [vmem:[%s17329_s5 + $0x80] sm:$0xf] }
 0x5b6   : > { %v4219_v38 = vpop.f32.mrf.mxu1 }
 0x5b7   : > { %4401 = vmatmul.bf16.gmra.mxu3 %v12882_v15  ;;  %v14356_v40 = vadd.f32 %v4219_v38, %v4131_v5  ;;  %v4273_v11 = vpop.f32.mrf.mxu2  ;;  %v10755_v5 = vld [vmem:[%s17329_s5 + $0xac] sm:$0xf0] }
 0x5b8   : > { %v4274_v47 = vadd.f32 %v4273_v11, %v14129_v8  ;;  %v9390_v2 = vor.u32 %v10755_v5, %v9389_v36  ;;  %v4133_v11 = vadd.f32 %v14056_v54, %v13894_v0 }
 0x5b9   : > { %17756 = vst [vmem:[#allocation195_spill] sm:$0xff] %v14356_v40  ;;  %4534 = vmatmul.bf16.gmra.mxu1 %v12578_v56  ;;  %v9342_v40 = vor.u32 %v10743_v44, %v9341_v18 }
 0x5ba   : > { %v4362_v38 = vpop.f32.mrf.mxu3  ;;  %4774 = vmatpush.bf16.msra.mxu0 %v9390_v2 }
 0x5bb   : > { %v14372_v35 = vadd.f32 %v4362_v38, %v4274_v47  ;;  %v4136_v38 = vadd.f32 %v14078_v34, %v13894_v0  ;;  %v9869_v34 = vld [vmem:[%s17329_s5 + $0x440] sm:$0xf] }
 0x5bd   : > { %17757 = vst [vmem:[#allocation196_spill] sm:$0xff] %v14372_v35  ;;  %v14382_v4 = vpop.f32.mrf.mxu0 }
 0x5be   : > { %v4221_v26 = vpop.f32.mrf.mxu1  ;;  %4775 = vmatpush.bf16.msra.mxu0 %v9342_v40 }
 0x5bf   : > { %v14384_v36 = vadd.f32 %v4221_v26, %v4133_v11  ;;  %v4275_v39 = vpop.f32.mrf.mxu2 }
 0x5c0   : > { %v4276_v25 = vadd.f32 %v4275_v39, %v14129_v8  ;;  %4490 = vmatmul.bf16.gmra.mxu0 %v17589_v57  ;;  %v10875_v39 = vld [vmem:[%s17329_s5 + $0x46c] sm:$0xf0] }
 0x5c1   : > { %17758 = vst [vmem:[#allocation197_spill] sm:$0xff] %v14384_v36 }
 0x5c2   : > { %v4364_v5 = vpop.f32.mrf.mxu3 }
 0x5c3   : > { %v14388_v47 = vadd.f32 %v4364_v5, %v4276_v25  ;;  %v9870_v25 = vor.u32 %v10875_v39, %v9869_v34  ;;  %v4138_v5 = vadd.f32 %v14090_v50, %v13894_v0  ;;  %v4141_v34 = vadd.f32 %v14112_v24, %v13894_v0 }
 0x5c4   : > { %4317 = vmatmul.bf16.gmra.mxu2 %v17598_v49 }
 0x5c5   : > { %17759 = vst [vmem:[#allocation198_spill] sm:$0xff] %v14388_v47  ;;  %v14394_v2 = vpop.f32.mrf.mxu0  ;;  %4861 = vmatpush.bf16.msra.mxu1 %v9870_v25  ;;  %v10809_v25 = vld [vmem:[%s17329_s5 + $0x264] sm:$0xf] }
 0x5c6   : > { %v4224_v54 = vpop.f32.mrf.mxu1 }
 0x5c7   : > { %4406 = vmatmul.bf16.gmra.mxu3 %v12932_v43  ;;  %v14396_v26 = vadd.f32 %v4224_v54, %v4136_v38  ;;  %v4278_v40 = vpop.f32.mrf.mxu2 }
 0x5c8   : > { %v4279_v18 = vadd.f32 %v4278_v40, %v14129_v8 }
 0x5c9   : > { %17760 = vst [vmem:[#allocation199_spill] sm:$0xff] %v14396_v26  ;;  %4539 = vmatmul.bf16.gmra.mxu1 %v12620_v14 }
 0x5ca   : > { %v4367_v44 = vpop.f32.mrf.mxu3 }
 0x5cb   : > { %v14400_v11 = vadd.f32 %v4367_v44, %v4279_v18 }
 0x5cd   : > { %17761 = vst [vmem:[#allocation200_spill] sm:$0xff] %v14400_v11  ;;  %v14410_v54 = vpop.f32.mrf.mxu0 }
 0x5ce   : > { %v4226_v38 = vpop.f32.mrf.mxu1 }
 0x5cf   : > { %v14412_v40 = vadd.f32 %v4226_v38, %v4138_v5  ;;  %v4280_v18 = vpop.f32.mrf.mxu2  ;;  %v9631_v5 = vld [vmem:[%s17329_s5 + $0x290] sm:$0xf0] }
 0x5d0   : > { %v4281_v44 = vadd.f32 %v4280_v18, %v14129_v8  ;;  %4495 = vmatmul.bf16.gmra.mxu0 %v17598_v49  ;;  %v9634_v38 = vor.u32 %v10809_v25, %v9631_v5 }
 0x5d1   : > { %17762 = vst [vmem:[#allocation201_spill] sm:$0xff] %v14412_v40  ;;  %v10905_v40 = vld [vmem:[%s17329_s5 + $0x564] sm:$0xf] }
 0x5d2   : > { %v4369_v26 = vpop.f32.mrf.mxu3  ;;  %4947 = vmatpush.bf16.msrb.mxu2 %v9634_v38 }
 0x5d3   : > { %v14416_v11 = vadd.f32 %v4369_v26, %v4281_v44 }
 0x5d4   : > { %4598 = vmatmul.bf16.vlgmr.msra.gmra.mxu2 %v17607_v60 }
 0x5d5   : > { %17763 = vst [vmem:[#allocation202_spill] sm:$0xff] %v14416_v11  ;;  %v14422_v39 = vpop.f32.mrf.mxu0  ;;  %v10015_v11 = vld [vmem:[%s17329_s5 + $0x590] sm:$0xf0] }
 0x5d6   : > { %v4229_v50 = vpop.f32.mrf.mxu1  ;;  %v10018_v36 = vor.u32 %v10905_v40, %v10015_v11 }
 0x5d7   : > { %4687 = vmatmul.bf16.vlgmr.msra.gmra.mxu3 %v12411_v29  ;;  %v14430_v26 = vadd.f32 %v4229_v50, %v4141_v34  ;;  %v4283_v18 = vpop.f32.mrf.mxu2  ;;  %v4143_v34 = vadd.f32 %v14132_v32, %v13894_v0 }
 0x5d8   : > { %v4284_v24 = vadd.f32 %v4283_v18, %v14129_v8  ;;  %5036 = vmatpush.bf16.msrb.mxu3 %v10018_v36  ;;  %v14449_v18 = vperm.slane %v14126_v53, 6 }
 0x5d9   : > { %17764 = vst [vmem:[#allocation203_spill] sm:$0xff] %v14430_v26  ;;  %4544 = vmatmul.bf16.gmra.mxu1 %v12640_v7 }
 0x5da   : > { %v4372_v44 = vpop.f32.mrf.mxu3  ;;  %v4422_v36 = vadd.f32 %v14154_v59, %v14449_v18  ;;  %v9821_v59 = vld [vmem:[%s17329_s5 + $0x3e0] sm:$0xf] }
 0x5db   : > { %v14440_v47 = vadd.f32 %v4372_v44, %v4284_v24  ;;  %v17768_v44 = vld [vmem:[#allocation18_spill] sm:$0xff] }
 0x5dd   : > { %17765 = vst [vmem:[#allocation204_spill] sm:$0xff] %v14440_v47  ;;  %v14444_v25 = vpop.f32.mrf.mxu0 }
 0x5de   : > { %v4231_v50 = vpop.f32.mrf.mxu1 }
 0x5df   : > { %v14446_v5 = vadd.f32 %v4231_v50, %v4143_v34  ;;  %v4285_v38 = vpop.f32.mrf.mxu2 }
 0x5e0   : > { %v4286_v26 = vadd.f32 %v4285_v38, %v14129_v8  ;;  %4776 = vmatmul.bf16.vlgmr.msra.gmra.mxu0 %v17607_v60 }
 0x5e1   : > { %17766 = vst [vmem:[#allocation205_spill] sm:$0xff] %v14446_v5 }
 0x5e2   : > { %v4374_v35 = vpop.f32.mrf.mxu3 }
 0x5e3   : > { %v14453_v11 = vadd.f32 %v4374_v35, %v4286_v26  ;;  %v10863_v26 = vld [vmem:[%s17329_s5 + $0x40c] sm:$0xf0] }
 0x5e4   : > { %4603 = vmatmul.bf16.gmra.mxu2 %v17699_v45  ;;  %v9822_v5 = vor.u32 %v10863_v26, %v9821_v59  ;;  %v10797_v26 = vld [vmem:[%s17329_s5 + $0x204] sm:$0xf] }
 0x5e5   : > { %17767 = vst [vmem:[#allocation206_spill] sm:$0xff] %v14453_v11  ;;  %v14459_v0 = vpop.f32.mrf.mxu0 }
 0x5e6   : > { %v4510_v32 = vpop.f32.mrf.mxu1  ;;  %4862 = vmatpush.bf16.msra.mxu1 %v9822_v5 }
 0x5e7   : > { %4692 = vmatmul.bf16.gmra.mxu3 %v12444_v9  ;;  %v4511_v40 = vadd.f32 %v4510_v32, %v4422_v36  ;;  %v4288_v24 = vpop.f32.mrf.mxu2  ;;  %v4424_v36 = vadd.f32 %v14166_v42, %v14449_v18  ;;  %v4427_v42 = vadd.f32 %v14188_v3, %v14449_v18 }
 0x5e8   : > { %v4289_v50 = vadd.f32 %v4288_v24, %v14129_v8 }
 0x5e9   : > { %v5544_v34 = vadd.f32 %v17768_v44, %v4511_v40  ;;  %4549 = vmatmul.bf16.gmra.mxu1 %v12684_v31 }
 0x5ea   : > { %v4377_v38 = vpop.f32.mrf.mxu3 }
 0x5eb   : > { %v14464_v35 = vadd.f32 %v4377_v38, %v4289_v50  ;;  %v17770_v50 = vld [vmem:[#allocation20_spill] sm:$0xff] }
 0x5ed   : > { %17769 = vst [vmem:[#allocation18_spill] sm:$0xff] %v14464_v35  ;;  %v14474_v32 = vpop.f32.mrf.mxu0 }
 0x5ee   : > { %v4512_v40 = vpop.f32.mrf.mxu1 }
 0x5ef   : > { %v4513_v24 = vadd.f32 %v4512_v40, %v4424_v36  ;;  %v4290_v44 = vpop.f32.mrf.mxu2  ;;  %v17773_v40 = vld [vmem:[#allocation22_spill] sm:$0xff] }
 0x5f0   : > { %v4291_v35 = vadd.f32 %v4290_v44, %v14129_v8  ;;  %4781 = vmatmul.bf16.gmra.mxu0 %v17699_v45 }
 0x5f1   : > { %v5546_v38 = vadd.f32 %v17770_v50, %v4513_v24  ;;  %v10893_v50 = vld [vmem:[%s17329_s5 + $0x504] sm:$0xf] }
 0x5f2   : > { %v4379_v11 = vpop.f32.mrf.mxu3 }
 0x5f3   : > { %v14479_v47 = vpack.c.bf16 %v5546_v38, %v5544_v34  ;;  %v14481_v60 = vadd.f32 %v4379_v11, %v4291_v35  ;;  %v9583_v34 = vld [vmem:[%s17329_s5 + $0x230] sm:$0xf0] }
 0x5f4   : > { %4608 = vmatmul.bf16.gmra.mxu2 %v17704_v12  ;;  %v9586_v35 = vor.u32 %v10797_v26, %v9583_v34  ;;  %v9967_v38 = vld [vmem:[%s17329_s5 + $0x530] sm:$0xf0] }
 0x5f5   : > { %17771 = vst [vmem:[#allocation20_spill] sm:$0xff] %v14479_v47  ;;  %v14487_v5 = vpop.f32.mrf.mxu0 }
 0x5f6   : > { %17772 = vst [vmem:[#allocation207_spill] sm:$0xff] %v14481_v60  ;;  %v4515_v59 = vpop.f32.mrf.mxu1  ;;  %4948 = vmatpush.bf16.msrb.mxu2 %v9586_v35  ;;  %v9970_v60 = vor.u32 %v10893_v50, %v9967_v38 }
 0x5f7   : > { %4697 = vmatmul.bf16.gmra.mxu3 %v12475_v21  ;;  %v4516_v11 = vadd.f32 %v4515_v59, %v4427_v42  ;;  %v4293_v36 = vpop.f32.mrf.mxu2  ;;  %v4429_v59 = vadd.f32 %v14200_v55, %v14449_v18 }
 0x5f8   : > { %v4294_v24 = vadd.f32 %v4293_v36, %v14129_v8  ;;  %5037 = vmatpush.bf16.msrb.mxu3 %v9970_v60  ;;  %v17775_v36 = vld [vmem:[#allocation24_spill] sm:$0xff]  ;;  %v4432_v60 = vadd.f32 %v14222_v6, %v14449_v18  ;;  %v9773_v6 = vld [vmem:[%s17329_s5 + $0x380] sm:$0xf] }
 0x5f9   : > { %v5548_v3 = vadd.f32 %v17773_v40, %v4516_v11  ;;  %4554 = vmatmul.bf16.gmra.mxu1 %v12714_v17 }
 0x5fa   : > { %v4382_v44 = vpop.f32.mrf.mxu3 }
 0x5fb   : > { %v14504_v42 = vadd.f32 %v4382_v44, %v4294_v24 }
 0x5fd   : > { %17774 = vst [vmem:[#allocation22_spill] sm:$0xff] %v14504_v42  ;;  %v14508_v26 = vpop.f32.mrf.mxu0 }
 0x5fe   : > { %v4517_v34 = vpop.f32.mrf.mxu1 }
 0x5ff   : > { %v4518_v11 = vadd.f32 %v4517_v34, %v4429_v59  ;;  %v4295_v35 = vpop.f32.mrf.mxu2  ;;  %v17778_v59 = vld [vmem:[#allocation26_spill] sm:$0xff] }
 0x600   : > { %v4296_v47 = vadd.f32 %v4295_v35, %v14129_v8  ;;  %4786 = vmatmul.bf16.gmra.mxu0 %v17704_v12 }
 0x601   : > { %v5550_v40 = vadd.f32 %v17775_v36, %v4518_v11  ;;  %v4434_v36 = vadd.f32 %v14234_v62, %v14449_v18  ;;  %v4437_v62 = vadd.f32 %v14256_v48, %v14449_v18 }
 0x602   : > { %v4384_v45 = vpop.f32.mrf.mxu3 }
 0x603   : > { %v14513_v49 = vadd.f32 %v4384_v45, %v4296_v47  ;;  %v14515_v24 = vpack.c.bf16 %v5550_v40, %v5548_v3  ;;  %v10851_v3 = vld [vmem:[%s17329_s5 + $0x3ac] sm:$0xf0] }
 0x604   : > { %4613 = vmatmul.bf16.gmra.mxu2 %v17709_v46  ;;  %v9774_v35 = vor.u32 %v10851_v3, %v9773_v6 }
 0x605   : > { %17776 = vst [vmem:[#allocation24_spill] sm:$0xff] %v14513_v49  ;;  %v14521_v55 = vpop.f32.mrf.mxu0 }
 0x606   : > { %17777 = vst [vmem:[#allocation208_spill] sm:$0xff] %v14515_v24  ;;  %v4520_v44 = vpop.f32.mrf.mxu1  ;;  %4863 = vmatpush.bf16.msra.mxu1 %v9774_v35  ;;  %v10785_v35 = vld [vmem:[%s17329_s5 + $0x1a4] sm:$0xf] }
 0x607   : > { %4702 = vmatmul.bf16.gmra.mxu3 %v12506_v37  ;;  %v4521_v50 = vadd.f32 %v4520_v44, %v4432_v60  ;;  %v4298_v38 = vpop.f32.mrf.mxu2 }
 0x608   : > { %v4299_v11 = vadd.f32 %v4298_v38, %v14129_v8  ;;  %v17780_v38 = vld [vmem:[#allocation28_spill] sm:$0xff] }
 0x609   : > { %v5552_v34 = vadd.f32 %v17778_v59, %v4521_v50  ;;  %4559 = vmatmul.bf16.gmra.mxu1 %v12750_v19 }
 0x60a   : > { %v4387_v45 = vpop.f32.mrf.mxu3 }
 0x60b   : > { %v14526_v47 = vadd.f32 %v4387_v45, %v4299_v11 }
 0x60d   : > { %17779 = vst [vmem:[#allocation26_spill] sm:$0xff] %v14526_v47  ;;  %v14536_v40 = vpop.f32.mrf.mxu0 }
 0x60e   : > { %v4522_v60 = vpop.f32.mrf.mxu1 }
 0x60f   : > { %v4523_v44 = vadd.f32 %v4522_v60, %v4434_v36  ;;  %v4300_v50 = vpop.f32.mrf.mxu2  ;;  %v9535_v36 = vld [vmem:[%s17329_s5 + $0x1d0] sm:$0xf0] }
 0x610   : > { %v4301_v11 = vadd.f32 %v4300_v50, %v14129_v8  ;;  %4791 = vmatmul.bf16.gmra.mxu0 %v17709_v46  ;;  %v9538_v60 = vor.u32 %v10785_v35, %v9535_v36  ;;  %v17783_v50 = vld [vmem:[#allocation30_spill] sm:$0xff] }
 0x611   : > { %v5554_v59 = vadd.f32 %v17780_v38, %v4523_v44 }
 0x612   : > { %v4389_v45 = vpop.f32.mrf.mxu3  ;;  %4949 = vmatpush.bf16.msrb.mxu2 %v9538_v60 }
 0x613   : > { %v14541_v47 = vadd.f32 %v4389_v45, %v4301_v11  ;;  %v14543_v49 = vpack.c.bf16 %v5554_v59, %v5552_v34  ;;  %v10881_v11 = vld [vmem:[%s17329_s5 + $0x4a4] sm:$0xf]  ;;  %v9919_v45 = vld [vmem:[%s17329_s5 + $0x4d0] sm:$0xf0] }
 0x614   : > { %4618 = vmatmul.bf16.gmra.mxu2 %v17714_v58 }
 0x615   : > { %17781 = vst [vmem:[#allocation28_spill] sm:$0xff] %v14541_v47  ;;  %v14549_v6 = vpop.f32.mrf.mxu0  ;;  %v9922_v47 = vor.u32 %v10881_v11, %v9919_v45 }
 0x616   : > { %17782 = vst [vmem:[#allocation209_spill] sm:$0xff] %v14543_v49  ;;  %v4525_v3 = vpop.f32.mrf.mxu1 }
 0x617   : > { %4707 = vmatmul.bf16.gmra.mxu3 %v12536_v33  ;;  %v4526_v34 = vadd.f32 %v4525_v3, %v4437_v62  ;;  %v4303_v44 = vpop.f32.mrf.mxu2  ;;  %v4439_v3 = vadd.f32 %v14268_v22, %v14449_v18 }
 0x618   : > { %v4304_v38 = vadd.f32 %v4303_v44, %v14129_v8  ;;  %5038 = vmatpush.bf16.msrb.mxu3 %v9922_v47  ;;  %v17785_v44 = vld [vmem:[#allocation32_spill] sm:$0xff]  ;;  %v4442_v47 = vadd.f32 %v14290_v10, %v14449_v18  ;;  %v9725_v10 = vld [vmem:[%s17329_s5 + $0x320] sm:$0xf] }
 0x619   : > { %v5556_v48 = vadd.f32 %v17783_v50, %v4526_v34  ;;  %4564 = vmatmul.bf16.gmra.mxu1 %v12780_v13 }
 0x61a   : > { %v4392_v59 = vpop.f32.mrf.mxu3 }
 0x61b   : > { %v14566_v62 = vadd.f32 %v4392_v59, %v4304_v38 }
 0x61d   : > { %17784 = vst [vmem:[#allocation30_spill] sm:$0xff] %v14566_v62  ;;  %v14570_v35 = vpop.f32.mrf.mxu0 }
 0x61e   : > { %v4527_v36 = vpop.f32.mrf.mxu1 }
 0x61f   : > { %v4528_v34 = vadd.f32 %v4527_v36, %v4439_v3  ;;  %v4305_v60 = vpop.f32.mrf.mxu2  ;;  %v17788_v3 = vld [vmem:[#allocation34_spill] sm:$0xff] }
 0x620   : > { %v4306_v42 = vadd.f32 %v4305_v60, %v14129_v8  ;;  %4796 = vmatmul.bf16.gmra.mxu0 %v17714_v58 }
 0x621   : > { %v5558_v50 = vadd.f32 %v17785_v44, %v4528_v34  ;;  %v4444_v44 = vadd.f32 %v14302_v52, %v14449_v18  ;;  %v4447_v52 = vadd.f32 %v14324_v51, %v14449_v18 }
 0x622   : > { %v4394_v49 = vpop.f32.mrf.mxu3 }
 0x623   : > { %v14575_v24 = vadd.f32 %v4394_v49, %v4306_v42  ;;  %v14577_v38 = vpack.c.bf16 %v5558_v50, %v5556_v48  ;;  %v10839_v48 = vld [vmem:[%s17329_s5 + $0x34c] sm:$0xf0] }
 0x624   : > { %4623 = vmatmul.bf16.gmra.mxu2 %v17719_v20  ;;  %v9726_v60 = vor.u32 %v10839_v48, %v9725_v10 }
 0x625   : > { %17786 = vst [vmem:[#allocation32_spill] sm:$0xff] %v14575_v24  ;;  %v14583_v22 = vpop.f32.mrf.mxu0 }
 0x626   : > { %17787 = vst [vmem:[#allocation210_spill] sm:$0xff] %v14577_v38  ;;  %v4530_v59 = vpop.f32.mrf.mxu1  ;;  %4864 = vmatpush.bf16.msra.mxu1 %v9726_v60  ;;  %v10773_v60 = vld [vmem:[%s17329_s5 + $0x144] sm:$0xf] }
 0x627   : > { %4712 = vmatmul.bf16.gmra.mxu3 %v12578_v56  ;;  %v4531_v11 = vadd.f32 %v4530_v59, %v4442_v47  ;;  %v4308_v45 = vpop.f32.mrf.mxu2 }
 0x628   : > { %v4309_v34 = vadd.f32 %v4308_v45, %v14129_v8  ;;  %v17790_v45 = vld [vmem:[#allocation36_spill] sm:$0xff] }
 0x629   : > { %v5560_v36 = vadd.f32 %v17788_v3, %v4531_v11  ;;  %4569 = vmatmul.bf16.gmra.mxu1 %v12816_v1 }
 0x62a   : > { %v4397_v49 = vpop.f32.mrf.mxu3 }
 0x62b   : > { %v14588_v42 = vadd.f32 %v4397_v49, %v4309_v34 }
 0x62d   : > { %17789 = vst [vmem:[#allocation34_spill] sm:$0xff] %v14588_v42  ;;  %v14598_v50 = vpop.f32.mrf.mxu0 }
 0x62e   : > { %v4532_v47 = vpop.f32.mrf.mxu1 }
 0x62f   : > { %v4533_v59 = vadd.f32 %v4532_v47, %v4444_v44  ;;  %v4310_v11 = vpop.f32.mrf.mxu2  ;;  %v9487_v44 = vld [vmem:[%s17329_s5 + $0x170] sm:$0xf0] }
 0x630   : > { %v4311_v34 = vadd.f32 %v4310_v11, %v14129_v8  ;;  %4801 = vmatmul.bf16.gmra.mxu0 %v17719_v20  ;;  %v9490_v47 = vor.u32 %v10773_v60, %v9487_v44  ;;  %v17793_v11 = vld [vmem:[#allocation38_spill] sm:$0xff] }
 0x631   : > { %v5562_v3 = vadd.f32 %v17790_v45, %v4533_v59 }
 0x632   : > { %v4399_v49 = vpop.f32.mrf.mxu3  ;;  %4950 = vmatpush.bf16.msrb.mxu2 %v9490_v47 }
 0x633   : > { %v14603_v42 = vadd.f32 %v4399_v49, %v4311_v34  ;;  %v14605_v24 = vpack.c.bf16 %v5562_v3, %v5560_v36  ;;  %v10869_v34 = vld [vmem:[%s17329_s5 + $0x444] sm:$0xf]  ;;  %v9871_v49 = vld [vmem:[%s17329_s5 + $0x470] sm:$0xf0] }
 0x634   : > { %4628 = vmatmul.bf16.gmra.mxu2 %v17650_v63 }
 0x635   : > { %17791 = vst [vmem:[#allocation36_spill] sm:$0xff] %v14603_v42  ;;  %v14611_v10 = vpop.f32.mrf.mxu0  ;;  %v9874_v42 = vor.u32 %v10869_v34, %v9871_v49 }
 0x636   : > { %17792 = vst [vmem:[#allocation211_spill] sm:$0xff] %v14605_v24  ;;  %v4535_v48 = vpop.f32.mrf.mxu1 }
 0x637   : > { %4717 = vmatmul.bf16.gmra.mxu3 %v12620_v14  ;;  %v4536_v36 = vadd.f32 %v4535_v48, %v4447_v52  ;;  %v4313_v59 = vpop.f32.mrf.mxu2  ;;  %v4449_v48 = vadd.f32 %v14348_v16, %v14449_v18  ;;  %v17798_v16 = vld [vmem:[#allocation84_spill] sm:$0xff] }
 0x638   : > { %v4314_v45 = vadd.f32 %v4313_v59, %v14129_v8  ;;  %5039 = vmatpush.bf16.msrb.mxu3 %v9874_v42  ;;  %v17795_v59 = vld [vmem:[#allocation40_spill] sm:$0xff]  ;;  %v4452_v42 = vadd.f32 %v14382_v4, %v14449_v18  ;;  %v4454_v4 = vadd.f32 %v14394_v2, %v14449_v18 }
 0x639   : > { %v5564_v51 = vadd.f32 %v17793_v11, %v4536_v36  ;;  %4574 = vmatmul.bf16.gmra.mxu1 %v12846_v27  ;;  %v10924_v2 = vld [vmem:[%s17329_s5 + $0x5f4] sm:$0xf0] }
 0x63a   : > { %v4402_v3 = vpop.f32.mrf.mxu3 }
 0x63b   : > { %v14628_v52 = vadd.f32 %v4402_v3, %v4314_v45 }
 0x63d   : > { %17794 = vst [vmem:[#allocation38_spill] sm:$0xff] %v14628_v52  ;;  %v14632_v60 = vpop.f32.mrf.mxu0 }
 0x63e   : > { %v4537_v44 = vpop.f32.mrf.mxu1 }
 0x63f   : > { %v4538_v36 = vadd.f32 %v4537_v44, %v4449_v48  ;;  %v4315_v47 = vpop.f32.mrf.mxu2  ;;  %v17799_v44 = vld [vmem:[#allocation42_spill] sm:$0xff] }
 0x640   : > { %v4316_v62 = vadd.f32 %v4315_v47, %v14129_v8  ;;  %4806 = vmatmul.bf16.gmra.mxu0 %v17650_v63 }
 0x641   : > { %v5566_v11 = vadd.f32 %v17795_v59, %v4538_v36  ;;  %v10828_v59 = vld [vmem:[%s17329_s5 + $0x2f4] sm:$0xf0] }
 0x642   : > { %v4404_v24 = vpop.f32.mrf.mxu3 }
 0x643   : > { %v14637_v38 = vadd.f32 %v4404_v24, %v4316_v62  ;;  %v14639_v45 = vpack.c.bf16 %v5566_v11, %v5564_v51  ;;  %v9685_v51 = vld [vmem:[%s17329_s5 + $0x2c8] sm:$0xf] }
 0x644   : > { %4633 = vmatmul.bf16.gmra.mxu2 %v17798_v16  ;;  %v10069_v11 = vld [vmem:[%s17329_s5 + $0x5c8] sm:$0xf] }
 0x645   : > { %17796 = vst [vmem:[#allocation40_spill] sm:$0xff] %v14637_v38  ;;  %v14645_v3 = vpop.f32.mrf.mxu0 }
 0x646   : > { %17797 = vst [vmem:[#allocation212_spill] sm:$0xff] %v14639_v45  ;;  %v4540_v34 = vpop.f32.mrf.mxu1 }
 0x647   : > { %4722 = vmatmul.bf16.gmra.mxu3 %v12640_v7  ;;  %v4541_v49 = vadd.f32 %v4540_v34, %v4452_v42  ;;  %v4318_v48 = vpop.f32.mrf.mxu2 }
 0x648   : > { %v4319_v47 = vadd.f32 %v4318_v48, %v14129_v8 }
 0x649   : > { %v5568_v36 = vadd.f32 %v17799_v44, %v4541_v49  ;;  %4579 = vmatmul.bf16.gmra.mxu1 %v12882_v15  ;;  %v9686_v49 = vor.u32 %v10828_v59, %v9685_v51  ;;  %v10070_v44 = vor.u32 %v10924_v2, %v10069_v11  ;;  %v4457_v51 = vadd.f32 %v14410_v54, %v14449_v18  ;;  %v17804_v11 = vld [vmem:[#allocation46_spill] sm:$0xff]  ;;  %v10857_v2 = vld [vmem:[%s17329_s5 + $0x3e4] sm:$0xf] }
 0x64a   : > { %v4407_v24 = vpop.f32.mrf.mxu3 }
 0x64b   : > { %v14650_v62 = vadd.f32 %v4407_v24, %v4319_v47  ;;  %5124 = vmatpush.bf16.msrb.mxu0 %v9686_v49  ;;  %v17801_v24 = vld [vmem:[#allocation44_spill] sm:$0xff]  ;;  %5213 = vmatpush.bf16.msrb.mxu1 %v10070_v44 }
 0x64d   : > { %17800 = vst [vmem:[#allocation84_spill] sm:$0xff] %v14650_v62  ;;  %v14663_v42 = vpop.f32.mrf.mxu0 }
 0x64e   : > { %v4542_v34 = vpop.f32.mrf.mxu1 }
 0x64f   : > { %v4543_v48 = vadd.f32 %v4542_v34, %v4454_v4  ;;  %v4320_v47 = vpop.f32.mrf.mxu2  ;;  %v14679_v4 = vperm.slane %v14126_v53, 7 }
 0x650   : > { %v4321_v38 = vadd.f32 %v4320_v47, %v14129_v8  ;;  %4811 = vmatmul.bf16.gmra.mxu0 %v17798_v16 }
 0x651   : > { %v5570_v62 = vadd.f32 %v17801_v24, %v4543_v48  ;;  %v9823_v48 = vld [vmem:[%s17329_s5 + $0x410] sm:$0xf0]  ;;  %v4459_v24 = vadd.f32 %v14422_v39, %v14449_v18  ;;  %v4462_v39 = vadd.f32 %v14444_v25, %v14449_v18 }
 0x652   : > { %v4409_v52 = vpop.f32.mrf.mxu3  ;;  %v9826_v44 = vor.u32 %v10857_v2, %v9823_v48 }
 0x653   : > { %v14671_v45 = vadd.f32 %v4409_v52, %v4321_v38  ;;  %v14673_v63 = vpack.c.bf16 %v5570_v62, %v5568_v36  ;;  %v10761_v38 = vld [vmem:[%s17329_s5 + $0xe4] sm:$0xf]  ;;  %v9439_v52 = vld [vmem:[%s17329_s5 + $0x110] sm:$0xf0] }
 0x654   : > { %4638 = vmatmul.bf16.gmra.mxu2 %v12399_v23  ;;  %v9442_v54 = vor.u32 %v10761_v38, %v9439_v52  ;;  %5040 = vmatpush.bf16.msrb.mxu3 %v9826_v44 }
 0x655   : > { %17802 = vst [vmem:[#allocation42_spill] sm:$0xff] %v14671_v45  ;;  %v14682_v59 = vpop.f32.mrf.mxu0 }
 0x656   : > { %17803 = vst [vmem:[#allocation44_spill] sm:$0xff] %v14673_v63  ;;  %v4545_v8 = vpop.f32.mrf.mxu1  ;;  %4951 = vmatpush.bf16.msrb.mxu2 %v9442_v54 }
 0x657   : > { %4727 = vmatmul.bf16.gmra.mxu3 %v12684_v31  ;;  %v4546_v36 = vadd.f32 %v4545_v8, %v4457_v51  ;;  %v4599_v62 = vpop.f32.mrf.mxu2  ;;  %v17805_v51 = vld [vmem:[#allocation19_spill] sm:$0xff] }
 0x658   : > { %v4600_v53 = vadd.f32 %v4599_v62, %v14679_v4  ;;  %v17806_v62 = vld [vmem:[#allocation48_spill] sm:$0xff] }
 0x659   : > { %v5572_v34 = vadd.f32 %v17804_v11, %v4546_v36  ;;  %4584 = vmatmul.bf16.gmra.mxu1 %v12932_v43 }
 0x65a   : > { %v4688_v49 = vpop.f32.mrf.mxu3 }
 0x65b   : > { %v4689_v47 = vadd.f32 %v4688_v49, %v4600_v53  ;;  %v17808_v49 = vld [vmem:[#allocation21_spill] sm:$0xff] }
 0x65d   : > { %v5545_v8 = vadd.f32 %v17805_v51, %v4689_v47  ;;  %v14702_v52 = vpop.f32.mrf.mxu0 }
 0x65e   : > { %v4547_v38 = vpop.f32.mrf.mxu1 }
 0x65f   : > { %v4548_v36 = vadd.f32 %v4547_v38, %v4459_v24  ;;  %v4601_v54 = vpop.f32.mrf.mxu2 }
 0x660   : > { %v4602_v45 = vadd.f32 %v4601_v54, %v14679_v4  ;;  %4816 = vmatmul.bf16.gmra.mxu0 %v12399_v23  ;;  %v4464_v54 = vadd.f32 %v14459_v0, %v14449_v18  ;;  %v10912_v0 = vld [vmem:[%s17329_s5 + $0x594] sm:$0xf0] }
 0x661   : > { %v5574_v11 = vadd.f32 %v17806_v62, %v4548_v36  ;;  %v17810_v36 = vld [vmem:[#allocation23_spill] sm:$0xff]  ;;  %v17811_v62 = vld [vmem:[#allocation52_spill] sm:$0xff] }
 0x662   : > { %v4690_v63 = vpop.f32.mrf.mxu3 }
 0x663   : > { %v4691_v2 = vadd.f32 %v4690_v63, %v4602_v45  ;;  %v14707_v53 = vpack.c.bf16 %v5574_v11, %v5572_v34 }
 0x664   : > { %4643 = vmatmul.bf16.gmra.mxu2 %v12432_v28 }
 0x665   : > { %17807 = vst [vmem:[#allocation46_spill] sm:$0xff] %v14707_v53  ;;  %v5547_v48 = vadd.f32 %v17808_v49, %v4691_v2  ;;  %v14714_v47 = vpop.f32.mrf.mxu0  ;;  %v10816_v2 = vld [vmem:[%s17329_s5 + $0x294] sm:$0xf0] }
 0x666   : > { %v4550_v44 = vpop.f32.mrf.mxu1 }
 0x667   : > { %4732 = vmatmul.bf16.gmra.mxu3 %v12714_v17  ;;  %v14716_v24 = vpack.c.bf16 %v5547_v48, %v5545_v8  ;;  %v4551_v51 = vadd.f32 %v4550_v44, %v4462_v39  ;;  %v4604_v38 = vpop.f32.mrf.mxu2  ;;  %v9637_v8 = vld [vmem:[%s17329_s5 + $0x268] sm:$0xf] }
 0x668   : > { %v4605_v45 = vadd.f32 %v4604_v38, %v14679_v4  ;;  %v10021_v39 = vld [vmem:[%s17329_s5 + $0x568] sm:$0xf]  ;;  %v9638_v44 = vor.u32 %v10816_v2, %v9637_v8  ;;  %v4467_v8 = vadd.f32 %v14474_v32, %v14449_v18  ;;  %v17814_v2 = vld [vmem:[#allocation92_spill] sm:$0xff] }
 0x669   : > { %17809 = vst [vmem:[#allocation19_spill] sm:$0xff] %v14716_v24  ;;  %v5576_v63 = vadd.f32 %v17810_v36, %v4551_v51  ;;  %4865 = vmatmul.bf16.vlgmr.msra.gmra.mxu1 %v12411_v29  ;;  %v10022_v38 = vor.u32 %v10912_v0, %v10021_v39 }
 0x66a   : > { %v4693_v34 = vpop.f32.mrf.mxu3  ;;  %5125 = vmatpush.bf16.msrb.mxu0 %v9638_v44 }
 0x66b   : > { %v4694_v25 = vadd.f32 %v4693_v34, %v4605_v45  ;;  %v17812_v45 = vld [vmem:[#allocation25_spill] sm:$0xff]  ;;  %5214 = vmatpush.bf16.msrb.mxu1 %v10022_v38 }
 0x66d   : > { %v5549_v11 = vadd.f32 %v17811_v62, %v4694_v25  ;;  %v14733_v48 = vpop.f32.mrf.mxu0 }
 0x66e   : > { %v4552_v49 = vpop.f32.mrf.mxu1 }
 0x66f   : > { %v4553_v51 = vadd.f32 %v4552_v49, %v4464_v54  ;;  %v4606_v36 = vpop.f32.mrf.mxu2  ;;  %v10749_v49 = vld [vmem:[%s17329_s5 + $0x84] sm:$0xf] }
 0x670   : > { %v4607_v25 = vadd.f32 %v4606_v36, %v14679_v4  ;;  %4821 = vmatmul.bf16.gmra.mxu0 %v12432_v28 }
 0x671   : > { %v5578_v34 = vadd.f32 %v17812_v45, %v4553_v51  ;;  %v17816_v51 = vld [vmem:[#allocation27_spill] sm:$0xff] }
 0x672   : > { %v4695_v62 = vpop.f32.mrf.mxu3 }
 0x673   : > { %v4696_v24 = vadd.f32 %v4695_v62, %v4607_v25  ;;  %v14741_v53 = vpack.c.bf16 %v5578_v34, %v5576_v63  ;;  %v9391_v63 = vld [vmem:[%s17329_s5 + $0xb0] sm:$0xf0]  ;;  %v10845_v34 = vld [vmem:[%s17329_s5 + $0x384] sm:$0xf] }
 0x674   : > { %4648 = vmatmul.bf16.gmra.mxu2 %v12463_v30  ;;  %v9394_v0 = vor.u32 %v10749_v49, %v9391_v63  ;;  %v9775_v25 = vld [vmem:[%s17329_s5 + $0x3b0] sm:$0xf0] }
 0x675   : > { %17813 = vst [vmem:[#allocation48_spill] sm:$0xff] %v14741_v53  ;;  %v5551_v23 = vadd.f32 %v17814_v2, %v4696_v24  ;;  %v14748_v39 = vpop.f32.mrf.mxu0  ;;  %v9778_v62 = vor.u32 %v10845_v34, %v9775_v25 }
 0x676   : > { %v4555_v54 = vpop.f32.mrf.mxu1  ;;  %4952 = vmatpush.bf16.msrb.mxu2 %v9394_v0  ;;  %v17818_v0 = vld [vmem:[#allocation29_spill] sm:$0xff] }
 0x677   : > { %4737 = vmatmul.bf16.gmra.mxu3 %v12750_v19  ;;  %v4556_v44 = vadd.f32 %v4555_v54, %v4467_v8  ;;  %v14756_v32 = vpack.c.bf16 %v5551_v23, %v5549_v11  ;;  %v4609_v24 = vpop.f32.mrf.mxu2  ;;  %v4469_v11 = vadd.f32 %v14487_v5, %v14449_v18  ;;  %v17817_v8 = vld [vmem:[#allocation56_spill] sm:$0xff]  ;;  %v4472_v5 = vadd.f32 %v14508_v26, %v14449_v18 }
 0x678   : > { %v4610_v36 = vadd.f32 %v4609_v24, %v14679_v4  ;;  %5041 = vmatpush.bf16.msrb.mxu3 %v9778_v62 }
 0x679   : > { %17815 = vst [vmem:[#allocation21_spill] sm:$0xff] %v14756_v32  ;;  %v5580_v38 = vadd.f32 %v17816_v51, %v4556_v44  ;;  %4870 = vmatmul.bf16.gmra.mxu1 %v12444_v9 }
 0x67a   : > { %v4698_v45 = vpop.f32.mrf.mxu3 }
 0x67b   : > { %v4699_v23 = vadd.f32 %v4698_v45, %v4610_v36  ;;  %v17820_v45 = vld [vmem:[#allocation93_spill] sm:$0xff] }
 0x67d   : > { %v5553_v2 = vadd.f32 %v17817_v8, %v4699_v23  ;;  %v14770_v49 = vpop.f32.mrf.mxu0 }
 0x67e   : > { %v4557_v54 = vpop.f32.mrf.mxu1 }
 0x67f   : > { %v4558_v63 = vadd.f32 %v4557_v54, %v4469_v11  ;;  %v4611_v44 = vpop.f32.mrf.mxu2 }
 0x680   : > { %v4612_v51 = vadd.f32 %v4611_v44, %v14679_v4  ;;  %4826 = vmatmul.bf16.gmra.mxu0 %v12463_v30 }
 0x681   : > { %v5582_v24 = vadd.f32 %v17818_v0, %v4558_v63  ;;  %v17822_v63 = vld [vmem:[#allocation31_spill] sm:$0xff]  ;;  %v4474_v0 = vadd.f32 %v14521_v55, %v14449_v18  ;;  %v10900_v55 = vld [vmem:[%s17329_s5 + $0x534] sm:$0xf0] }
 0x682   : > { %v4700_v32 = vpop.f32.mrf.mxu3 }
 0x683   : > { %v4701_v34 = vadd.f32 %v4700_v32, %v4612_v51  ;;  %v14775_v36 = vpack.c.bf16 %v5582_v24, %v5580_v38  ;;  %v17823_v24 = vld [vmem:[#allocation60_spill] sm:$0xff] }
 0x684   : > { %4653 = vmatmul.bf16.gmra.mxu2 %v12494_v41 }
 0x685   : > { %17819 = vst [vmem:[#allocation23_spill] sm:$0xff] %v14775_v36  ;;  %v5555_v25 = vadd.f32 %v17820_v45, %v4701_v34  ;;  %v14782_v23 = vpop.f32.mrf.mxu0  ;;  %v9589_v34 = vld [vmem:[%s17329_s5 + $0x208] sm:$0xf] }
 0x686   : > { %v4560_v62 = vpop.f32.mrf.mxu1 }
 0x687   : > { %4742 = vmatmul.bf16.gmra.mxu3 %v12780_v13  ;;  %v4561_v11 = vadd.f32 %v4560_v62, %v4472_v5  ;;  %v14784_v8 = vpack.c.bf16 %v5555_v25, %v5553_v2  ;;  %v4614_v54 = vpop.f32.mrf.mxu2  ;;  %v10804_v2 = vld [vmem:[%s17329_s5 + $0x234] sm:$0xf0]  ;;  %v9973_v5 = vld [vmem:[%s17329_s5 + $0x508] sm:$0xf] }
 0x688   : > { %v4615_v38 = vadd.f32 %v4614_v54, %v14679_v4  ;;  %v9590_v62 = vor.u32 %v10804_v2, %v9589_v34  ;;  %v9974_v54 = vor.u32 %v10900_v55, %v9973_v5  ;;  %v4477_v34 = vadd.f32 %v14536_v40, %v14449_v18  ;;  %v17826_v2 = vld [vmem:[#allocation62_spill] sm:$0xff] }
 0x689   : > { %17821 = vst [vmem:[#allocation52_spill] sm:$0xff] %v14784_v8  ;;  %v5584_v32 = vadd.f32 %v17822_v63, %v4561_v11  ;;  %4875 = vmatmul.bf16.gmra.mxu1 %v12475_v21 }
 0x68a   : > { %v4703_v44 = vpop.f32.mrf.mxu3  ;;  %5126 = vmatpush.bf16.msrb.mxu0 %v9590_v62  ;;  %5215 = vmatpush.bf16.msrb.mxu1 %v9974_v54 }
 0x68b   : > { %v4704_v26 = vadd.f32 %v4703_v44, %v4615_v38  ;;  %v17824_v38 = vld [vmem:[#allocation33_spill] sm:$0xff] }
 0x68d   : > { %v5557_v51 = vadd.f32 %v17823_v24, %v4704_v26  ;;  %v14801_v25 = vpop.f32.mrf.mxu0 }
 0x68e   : > { %v4562_v45 = vpop.f32.mrf.mxu1 }
 0x68f   : > { %v4563_v11 = vadd.f32 %v4562_v45, %v4474_v0  ;;  %v4616_v63 = vpop.f32.mrf.mxu2  ;;  %v10737_v45 = vld [vmem:[%s17329_s5 + $0x24] sm:$0xf] }
 0x690   : > { %v4617_v26 = vadd.f32 %v4616_v63, %v14679_v4  ;;  %4831 = vmatmul.bf16.gmra.mxu0 %v12494_v41 }
 0x691   : > { %v5586_v44 = vadd.f32 %v17824_v38, %v4563_v11  ;;  %v17828_v11 = vld [vmem:[#allocation35_spill] sm:$0xff] }
 0x692   : > { %v4705_v24 = vpop.f32.mrf.mxu3 }
 0x693   : > { %v4706_v8 = vadd.f32 %v4705_v24, %v4617_v26  ;;  %v14809_v36 = vpack.c.bf16 %v5586_v44, %v5584_v32  ;;  %v9343_v32 = vld [vmem:[%s17329_s5 + $0x50] sm:$0xf0]  ;;  %v10833_v44 = vld [vmem:[%s17329_s5 + $0x324] sm:$0xf] }
 0x694   : > { %4658 = vmatmul.bf16.gmra.mxu2 %v17571_v61  ;;  %v9346_v55 = vor.u32 %v10737_v45, %v9343_v32  ;;  %v9727_v26 = vld [vmem:[%s17329_s5 + $0x350] sm:$0xf0] }
 0x695   : > { %17825 = vst [vmem:[#allocation25_spill] sm:$0xff] %v14809_v36  ;;  %v5559_v53 = vadd.f32 %v17826_v2, %v4706_v8  ;;  %v14816_v5 = vpop.f32.mrf.mxu0  ;;  %v9730_v24 = vor.u32 %v10833_v44, %v9727_v26 }
 0x696   : > { %v4565_v0 = vpop.f32.mrf.mxu1  ;;  %4953 = vmatpush.bf16.msrb.mxu2 %v9346_v55  ;;  %v17830_v55 = vld [vmem:[#allocation37_spill] sm:$0xff] }
 0x697   : > { %4747 = vmatmul.bf16.gmra.mxu3 %v12816_v1  ;;  %v4566_v62 = vadd.f32 %v4565_v0, %v4477_v34  ;;  %v14824_v40 = vpack.c.bf16 %v5559_v53, %v5557_v51  ;;  %v4619_v8 = vpop.f32.mrf.mxu2  ;;  %v4479_v51 = vadd.f32 %v14549_v6, %v14449_v18  ;;  %v17829_v34 = vld [vmem:[#allocation65_spill] sm:$0xff]  ;;  %v4482_v6 = vadd.f32 %v14570_v35, %v14449_v18 }
 0x698   : > { %v4620_v63 = vadd.f32 %v4619_v8, %v14679_v4  ;;  %5042 = vmatpush.bf16.msrb.mxu3 %v9730_v24  ;;  %v17833_v24 = vld [vmem:[#allocation90_spill] sm:$0xff] }
 0x699   : > { %17827 = vst [vmem:[#allocation92_spill] sm:$0xff] %v14824_v40  ;;  %v5588_v54 = vadd.f32 %v17828_v11, %v4566_v62  ;;  %4880 = vmatmul.bf16.gmra.mxu1 %v12506_v37 }
 0x69a   : > { %v4708_v38 = vpop.f32.mrf.mxu3 }
 0x69b   : > { %v4709_v53 = vadd.f32 %v4708_v38, %v4620_v63  ;;  %v17832_v38 = vld [vmem:[#allocation67_spill] sm:$0xff] }
 0x69d   : > { %v5561_v2 = vadd.f32 %v17829_v34, %v4709_v53  ;;  %v14838_v45 = vpop.f32.mrf.mxu0 }
 0x69e   : > { %v4567_v0 = vpop.f32.mrf.mxu1 }
 0x69f   : > { %v4568_v32 = vadd.f32 %v4567_v0, %v4479_v51  ;;  %v4621_v62 = vpop.f32.mrf.mxu2 }
 0x6a0   : > { %v4622_v11 = vadd.f32 %v4621_v62, %v14679_v4  ;;  %4836 = vmatmul.bf16.gmra.mxu0 %v17571_v61  ;;  %v17835_v62 = vld [vmem:[#allocation39_spill] sm:$0xff] }
 0x6a1   : > { %v5590_v8 = vadd.f32 %v17830_v55, %v4568_v32 }
 0x6a2   : > { %v4710_v40 = vpop.f32.mrf.mxu3 }
 0x6a3   : > { %v4711_v44 = vadd.f32 %v4710_v40, %v4622_v11  ;;  %v14843_v63 = vpack.c.bf16 %v5590_v8, %v5588_v54  ;;  %v9541_v8 = vld [vmem:[%s17329_s5 + $0x1a8] sm:$0xf]  ;;  %v10792_v11 = vld [vmem:[%s17329_s5 + $0x1d4] sm:$0xf0] }
 0x6a4   : > { %4663 = vmatmul.bf16.gmra.mxu2 %v17833_v24 }
 0x6a5   : > { %17831 = vst [vmem:[#allocation27_spill] sm:$0xff] %v14843_v63  ;;  %v5563_v26 = vadd.f32 %v17832_v38, %v4711_v44  ;;  %v14850_v51 = vpop.f32.mrf.mxu0  ;;  %v17836_v44 = vld [vmem:[#allocation70_spill] sm:$0xff]  ;;  %v9542_v38 = vor.u32 %v10792_v11, %v9541_v8  ;;  %v17837_v8 = vld [vmem:[#allocation41_spill] sm:$0xff] }
 0x6a6   : > { %v4570_v53 = vpop.f32.mrf.mxu1 }
 0x6a7   : > { %4752 = vmatmul.bf16.gmra.mxu3 %v12846_v27  ;;  %v4571_v34 = vadd.f32 %v4570_v53, %v4482_v6  ;;  %v14852_v0 = vpack.c.bf16 %v5563_v26, %v5561_v2  ;;  %v4624_v32 = vpop.f32.mrf.mxu2  ;;  %v4484_v2 = vadd.f32 %v14583_v22, %v14449_v18  ;;  %v9925_v26 = vld [vmem:[%s17329_s5 + $0x4a8] sm:$0xf]  ;;  %v10888_v53 = vld [vmem:[%s17329_s5 + $0x4d4] sm:$0xf0]  ;;  %5127 = vmatpush.bf16.msrb.mxu0 %v9542_v38 }
 0x6a8   : > { %v4625_v54 = vadd.f32 %v4624_v32, %v14679_v4  ;;  %v9493_v22 = vld [vmem:[%s17329_s5 + $0x148] sm:$0xf] }
 0x6a9   : > { %17834 = vst [vmem:[#allocation56_spill] sm:$0xff] %v14852_v0  ;;  %v5592_v40 = vadd.f32 %v17835_v62, %v4571_v34  ;;  %4885 = vmatmul.bf16.gmra.mxu1 %v12536_v33  ;;  %v9926_v62 = vor.u32 %v10888_v53, %v9925_v26  ;;  %v9445_v53 = vld [vmem:[%s17329_s5 + $0xe8] sm:$0xf] }
 0x6aa   : > { %v4713_v55 = vpop.f32.mrf.mxu3 }
 0x6ab   : > { %v4714_v35 = vadd.f32 %v4713_v55, %v4625_v54  ;;  %5216 = vmatpush.bf16.msrb.mxu1 %v9926_v62  ;;  %v4487_v62 = vadd.f32 %v14598_v50, %v14449_v18 }
 0x6ad   : > { %v5565_v6 = vadd.f32 %v17836_v44, %v4714_v35  ;;  %v14872_v32 = vpop.f32.mrf.mxu0  ;;  %v10780_v35 = vld [vmem:[%s17329_s5 + $0x174] sm:$0xf0] }
 0x6ae   : > { %v4572_v34 = vpop.f32.mrf.mxu1  ;;  %v9494_v26 = vor.u32 %v10780_v35, %v9493_v22  ;;  %v10822_v35 = vld [vmem:[%s17329_s5 + $0x2cc] sm:$0xf] }
 0x6af   : > { %v4573_v54 = vadd.f32 %v4572_v34, %v4484_v2  ;;  %v4626_v55 = vpop.f32.mrf.mxu2  ;;  %v10768_v34 = vld [vmem:[%s17329_s5 + $0x114] sm:$0xf0] }
 0x6b0   : > { %v4627_v44 = vadd.f32 %v4626_v55, %v14679_v4  ;;  %4841 = vmatmul.bf16.gmra.mxu0 %v17833_v24  ;;  %v9446_v22 = vor.u32 %v10768_v34, %v9445_v53  ;;  %v10756_v53 = vld [vmem:[%s17329_s5 + $0xb4] sm:$0xf0]  ;;  %v17841_v34 = vld [vmem:[#allocation43_spill] sm:$0xff] }
 0x6b1   : > { %v5594_v11 = vadd.f32 %v17837_v8, %v4573_v54  ;;  %5128 = vmatpush.bf16.msrb.mxu0 %v9494_v26  ;;  %v17839_v54 = vld [vmem:[#allocation72_spill] sm:$0xff]  ;;  %v17853_v24 = vld [vmem:[#allocation51_spill] sm:$0xff] }
 0x6b2   : > { %v4715_v0 = vpop.f32.mrf.mxu3  ;;  %v9687_v8 = vld [vmem:[%s17329_s5 + $0x2f8] sm:$0xf0] }
 0x6b3   : > { %v4716_v2 = vadd.f32 %v4715_v0, %v4627_v44  ;;  %v14883_v38 = vpack.c.bf16 %v5594_v11, %v5592_v40  ;;  %v9690_v50 = vor.u32 %v10822_v35, %v9687_v8  ;;  %v9349_v35 = vld [vmem:[%s17329_s5 + $0x28] sm:$0xf]  ;;  %v10744_v8 = vld [vmem:[%s17329_s5 + $0x54] sm:$0xf0] }
 0x6b4   : > { %4668 = vmatmul.bf16.gmra.mxu2 %v17589_v57 }
 0x6b5   : > { %17838 = vst [vmem:[#allocation29_spill] sm:$0xff] %v14883_v38  ;;  %v5567_v55 = vadd.f32 %v17839_v54, %v4716_v2  ;;  %v14896_v40 = vpop.f32.mrf.mxu0  ;;  %5129 = vmatpush.bf16.msrb.mxu0 %v9446_v22  ;;  %v9397_v2 = vld [vmem:[%s17329_s5 + $0x88] sm:$0xf]  ;;  %5302 = vmatpush.bf16.msra.mxu2 %v9690_v50  ;;  %v17842_v50 = vld [vmem:[#allocation75_spill] sm:$0xff] }
 0x6b6   : > { %v4575_v0 = vpop.f32.mrf.mxu1 }
 0x6b7   : > { %4757 = vmatmul.bf16.gmra.mxu3 %v12882_v15  ;;  %v4576_v11 = vadd.f32 %v4575_v0, %v4487_v62  ;;  %v14904_v44 = vpack.c.bf16 %v5567_v55, %v5565_v6  ;;  %v4629_v26 = vpop.f32.mrf.mxu2  ;;  %v10918_v6 = vld [vmem:[%s17329_s5 + $0x5cc] sm:$0xf]  ;;  %v10071_v62 = vld [vmem:[%s17329_s5 + $0x5f8] sm:$0xf0]  ;;  %v9398_v55 = vor.u32 %v10756_v53, %v9397_v2  ;;  %v17843_v53 = vld [vmem:[#allocation45_spill] sm:$0xff] }
 0x6b8   : > { %v4630_v38 = vadd.f32 %v4629_v26, %v14679_v4  ;;  %v10074_v22 = vor.u32 %v10918_v6, %v10071_v62 }
 0x6b9   : > { %17840 = vst [vmem:[#allocation93_spill] sm:$0xff] %v14904_v44  ;;  %v5596_v54 = vadd.f32 %v17841_v34, %v4576_v11  ;;  %4890 = vmatmul.bf16.gmra.mxu1 %v12578_v56  ;;  %5130 = vmatpush.bf16.msrb.mxu0 %v9398_v55  ;;  %v4489_v11 = vadd.f32 %v14611_v10, %v14449_v18 }
 0x6ba   : > { %v4718_v63 = vpop.f32.mrf.mxu3  ;;  %5391 = vmatpush.bf16.msra.mxu3 %v10074_v22  ;;  %v9350_v34 = vor.u32 %v10744_v8, %v9349_v35  ;;  %v4492_v10 = vadd.f32 %v14632_v60, %v14449_v18  ;;  %v17846_v8 = vld [vmem:[#allocation91_spill] sm:$0xff] }
 0x6bb   : > { %v4719_v0 = vadd.f32 %v4718_v63, %v4630_v38 }
 0x6bd   : > { %v5569_v26 = vadd.f32 %v17842_v50, %v4719_v0  ;;  %v14930_v2 = vpop.f32.mrf.mxu0  ;;  %5131 = vmatpush.bf16.msrb.mxu0 %v9350_v34  ;;  %v17845_v0 = vld [vmem:[#allocation77_spill] sm:$0xff] }
 0x6be   : > { %v4577_v44 = vpop.f32.mrf.mxu1 }
 0x6bf   : > { %v4578_v63 = vadd.f32 %v4577_v44, %v4489_v11  ;;  %v4631_v38 = vpop.f32.mrf.mxu2 }
 0x6c0   : > { %v4632_v62 = vadd.f32 %v4631_v38, %v14679_v4  ;;  %4846 = vmatmul.bf16.gmra.mxu0 %v17589_v57  ;;  %v17848_v38 = vld [vmem:[#allocation47_spill] sm:$0xff] }
 0x6c1   : > { %v5598_v6 = vadd.f32 %v17843_v53, %v4578_v63 }
 0x6c2   : > { %v4720_v55 = vpop.f32.mrf.mxu3 }
 0x6c3   : > { %v4721_v22 = vadd.f32 %v4720_v55, %v4632_v62  ;;  %v14935_v36 = vpack.c.bf16 %v5598_v6, %v5596_v54  ;;  %v4494_v62 = vadd.f32 %v14645_v3, %v14449_v18  ;;  %v17849_v55 = vld [vmem:[#allocation80_spill] sm:$0xff] }
 0x6c4   : > { %4673 = vmatmul.bf16.gmra.mxu2 %v17846_v8 }
 0x6c5   : > { %17844 = vst [vmem:[#allocation31_spill] sm:$0xff] %v14935_v36  ;;  %v5571_v35 = vadd.f32 %v17845_v0, %v4721_v22  ;;  %v14942_v11 = vpop.f32.mrf.mxu0  ;;  %v17852_v36 = vld [vmem:[#allocation82_spill] sm:$0xff] }
 0x6c6   : > { %v4580_v44 = vpop.f32.mrf.mxu1 }
 0x6c7   : > { %4762 = vmatmul.bf16.gmra.mxu3 %v12932_v43  ;;  %v4581_v50 = vadd.f32 %v4580_v44, %v4492_v10  ;;  %v14944_v34 = vpack.c.bf16 %v5571_v35, %v5569_v26  ;;  %v4634_v63 = vpop.f32.mrf.mxu2  ;;  %v9877_v10 = vld [vmem:[%s17329_s5 + $0x448] sm:$0xf]  ;;  %v10876_v26 = vld [vmem:[%s17329_s5 + $0x474] sm:$0xf0] }
 0x6c8   : > { %v4635_v54 = vadd.f32 %v4634_v63, %v14679_v4  ;;  %v9878_v44 = vor.u32 %v10876_v26, %v9877_v10  ;;  %v10810_v26 = vld [vmem:[%s17329_s5 + $0x26c] sm:$0xf] }
 0x6c9   : > { %17847 = vst [vmem:[#allocation60_spill] sm:$0xff] %v14944_v34  ;;  %v5600_v53 = vadd.f32 %v17848_v38, %v4581_v50  ;;  %4895 = vmatmul.bf16.gmra.mxu1 %v12620_v14  ;;  %v17850_v38 = vld [vmem:[#allocation49_spill] sm:$0xff]  ;;  %v4497_v34 = vadd.f32 %v14663_v42, %v14449_v18  ;;  %v10906_v42 = vld [vmem:[%s17329_s5 + $0x56c] sm:$0xf] }
 0x6ca   : > { %v4723_v6 = vpop.f32.mrf.mxu3  ;;  %5217 = vmatpush.bf16.msrb.mxu1 %v9878_v44 }
 0x6cb   : > { %v4724_v60 = vadd.f32 %v4723_v6, %v4635_v54 }
 0x6cd   : > { %v5573_v22 = vadd.f32 %v17849_v55, %v4724_v60  ;;  %v14958_v35 = vpop.f32.mrf.mxu0 }
 0x6ce   : > { %v4582_v0 = vpop.f32.mrf.mxu1 }
 0x6cf   : > { %v4583_v50 = vadd.f32 %v4582_v0, %v4494_v62  ;;  %v4636_v63 = vpop.f32.mrf.mxu2 }
 0x6d0   : > { %v4637_v3 = vadd.f32 %v4636_v63, %v14679_v4  ;;  %4851 = vmatmul.bf16.gmra.mxu0 %v17846_v8 }
 0x6d1   : > { %v5602_v54 = vadd.f32 %v17850_v38, %v4583_v50 }
 0x6d2   : > { %v4725_v6 = vpop.f32.mrf.mxu3 }
 0x6d3   : > { %v4726_v60 = vadd.f32 %v4725_v6, %v4637_v3  ;;  %v14963_v55 = vpack.c.bf16 %v5602_v54, %v5600_v53  ;;  %v9639_v53 = vld [vmem:[%s17329_s5 + $0x298] sm:$0xf0]  ;;  %v17855_v54 = vld [vmem:[#allocation50_spill] sm:$0xff] }
 0x6d4   : > { %4954 = vmatmul.bf16.vlgmr.msrb.gmra.mxu2 %v17853_v24  ;;  %v9642_v44 = vor.u32 %v10810_v26, %v9639_v53  ;;  %v17856_v26 = vld [vmem:[#allocation85_spill] sm:$0xff] }
 0x6d5   : > { %17851 = vst [vmem:[#allocation33_spill] sm:$0xff] %v14963_v55  ;;  %v5575_v57 = vadd.f32 %v17852_v36, %v4726_v60  ;;  %v14970_v10 = vpop.f32.mrf.mxu0  ;;  %v10023_v36 = vld [vmem:[%s17329_s5 + $0x598] sm:$0xf0] }
 0x6d6   : > { %v4585_v62 = vpop.f32.mrf.mxu1  ;;  %v10026_v38 = vor.u32 %v10906_v42, %v10023_v36  ;;  %5303 = vmatpush.bf16.msra.mxu2 %v9642_v44  ;;  %v17857_v44 = vld [vmem:[#allocation53_spill] sm:$0xff] }
 0x6d7   : > { %5043 = vmatmul.bf16.vlgmr.msrb.gmra.mxu3 %v12411_v29  ;;  %v4586_v0 = vadd.f32 %v4585_v62, %v4497_v34  ;;  %v14984_v50 = vpack.c.bf16 %v5575_v57, %v5573_v22  ;;  %v4639_v63 = vpop.f32.mrf.mxu2  ;;  %v4499_v62 = vadd.f32 %v14682_v59, %v14449_v18  ;;  %v14995_v57 = vld [vmem:[%s17330_s6 + $0x8] sm:$0xf] }
 0x6d8   : > { %v4640_v6 = vadd.f32 %v4639_v63, %v14679_v4  ;;  %5392 = vmatpush.bf16.msra.mxu3 %v10026_v38  ;;  %v15000_v63 = vperm.slane %v14995_v57, 0 }
 0x6d9   : > { %17854 = vst [vmem:[#allocation62_spill] sm:$0xff] %v14984_v50  ;;  %v5604_v3 = vadd.f32 %v17855_v54, %v4586_v0  ;;  %4900 = vmatmul.bf16.gmra.mxu1 %v12640_v7 }
 0x6da   : > { %v4728_v60 = vpop.f32.mrf.mxu3 }
 0x6db   : > { %v4729_v34 = vadd.f32 %v4728_v60, %v4640_v6  ;;  %v4778_v60 = vadd.f32 %v14702_v52, %v15000_v63 }
 0x6dd   : > { %v5577_v53 = vadd.f32 %v17856_v26, %v4729_v34  ;;  %v14997_v0 = vpop.f32.mrf.mxu0  ;;  %v17859_v34 = vld [vmem:[#allocation94_spill] sm:$0xff] }
 0x6de   : > { %v4587_v22 = vpop.f32.mrf.mxu1 }
 0x6df   : > { %v4588_v42 = vadd.f32 %v4587_v22, %v4499_v62  ;;  %v4641_v36 = vpop.f32.mrf.mxu2  ;;  %v17860_v62 = vld [vmem:[#allocation55_spill] sm:$0xff] }
 0x6e0   : > { %v4642_v54 = vadd.f32 %v4641_v36, %v14679_v4  ;;  %5132 = vmatmul.bf16.vlgmr.msrb.gmra.mxu0 %v17853_v24 }
 0x6e1   : > { %v5606_v38 = vadd.f32 %v17857_v44, %v4588_v42 }
 0x6e2   : > { %v4730_v18 = vpop.f32.mrf.mxu3 }
 0x6e3   : > { %v4731_v59 = vadd.f32 %v4730_v18, %v4642_v54  ;;  %v15005_v6 = vpack.c.bf16 %v5606_v38, %v5604_v3  ;;  %v4780_v54 = vadd.f32 %v14714_v47, %v15000_v63  ;;  %v17863_v18 = vld [vmem:[#allocation95_spill] sm:$0xff] }
 0x6e4   : > { %4959 = vmatmul.bf16.gmra.mxu2 %v17860_v62 }
 0x6e5   : > { %17858 = vst [vmem:[#allocation35_spill] sm:$0xff] %v15005_v6  ;;  %v5579_v26 = vadd.f32 %v17859_v34, %v4731_v59  ;;  %v15012_v22 = vpop.f32.mrf.mxu0  ;;  %v9829_v34 = vld [vmem:[%s17329_s5 + $0x3e8] sm:$0xf] }
 0x6e6   : > { %v4866_v42 = vpop.f32.mrf.mxu1 }
 0x6e7   : > { %5048 = vmatmul.bf16.gmra.mxu3 %v12444_v9  ;;  %v15014_v44 = vadd.f32 %v4866_v42, %v4778_v60  ;;  %v15016_v36 = vpack.c.bf16 %v5579_v26, %v5577_v53  ;;  %v4644_v50 = vpop.f32.mrf.mxu2  ;;  %v10864_v53 = vld [vmem:[%s17329_s5 + $0x414] sm:$0xf0] }
 0x6e8   : > { %v4645_v3 = vadd.f32 %v4644_v50, %v14679_v4  ;;  %v9830_v26 = vor.u32 %v10864_v53, %v9829_v34  ;;  %v10798_v53 = vld [vmem:[%s17329_s5 + $0x20c] sm:$0xf] }
 0x6e9   : > { %17861 = vst [vmem:[#allocation65_spill] sm:$0xff] %v15014_v44  ;;  %4905 = vmatmul.bf16.gmra.mxu1 %v12684_v31  ;;  %v17865_v44 = vld [vmem:[#allocation96_spill] sm:$0xff] }
 0x6ea   : > { %17862 = vst [vmem:[#allocation37_spill] sm:$0xff] %v15016_v36  ;;  %v4733_v38 = vpop.f32.mrf.mxu3  ;;  %5218 = vmatpush.bf16.msrb.mxu1 %v9830_v26 }
 0x6eb   : > { %v4734_v52 = vadd.f32 %v4733_v38, %v4645_v3 }
 0x6ed   : > { %v5581_v59 = vadd.f32 %v17863_v18, %v4734_v52  ;;  %v15029_v60 = vpop.f32.mrf.mxu0  ;;  %v4783_v18 = vadd.f32 %v14733_v48, %v15000_v63 }
 0x6ee   : > { %v4868_v50 = vpop.f32.mrf.mxu1 }
 0x6ef   : > { %v15031_v42 = vadd.f32 %v4868_v50, %v4780_v54  ;;  %v4646_v3 = vpop.f32.mrf.mxu2  ;;  %v9591_v50 = vld [vmem:[%s17329_s5 + $0x238] sm:$0xf0] }
 0x6f0   : > { %v4647_v47 = vadd.f32 %v4646_v3, %v14679_v4  ;;  %5137 = vmatmul.bf16.gmra.mxu0 %v17860_v62  ;;  %v9594_v48 = vor.u32 %v10798_v53, %v9591_v50  ;;  %v9975_v3 = vld [vmem:[%s17329_s5 + $0x538] sm:$0xf0]  ;;  %v17868_v53 = vld [vmem:[#allocation97_spill] sm:$0xff] }
 0x6f1   : > { %17864 = vst [vmem:[#allocation67_spill] sm:$0xff] %v15031_v42 }
 0x6f2   : > { %v4735_v38 = vpop.f32.mrf.mxu3  ;;  %5304 = vmatpush.bf16.msra.mxu2 %v9594_v48 }
 0x6f3   : > { %v4736_v52 = vadd.f32 %v4735_v38, %v4647_v47 }
 0x6f4   : > { %4964 = vmatmul.bf16.gmra.mxu2 %v17704_v12 }
 0x6f5   : > { %v5583_v36 = vadd.f32 %v17865_v44, %v4736_v52  ;;  %v15040_v34 = vpop.f32.mrf.mxu0  ;;  %v10894_v44 = vld [vmem:[%s17329_s5 + $0x50c] sm:$0xf] }
 0x6f6   : > { %v4871_v54 = vpop.f32.mrf.mxu1  ;;  %v9978_v52 = vor.u32 %v10894_v44, %v9975_v3 }
 0x6f7   : > { %5053 = vmatmul.bf16.gmra.mxu3 %v12475_v21  ;;  %v15048_v26 = vadd.f32 %v4871_v54, %v4783_v18  ;;  %v15056_v47 = vpack.c.bf16 %v5583_v36, %v5581_v59  ;;  %v4649_v38 = vpop.f32.mrf.mxu2  ;;  %v4785_v54 = vadd.f32 %v14748_v39, %v15000_v63 }
 0x6f8   : > { %v4650_v42 = vadd.f32 %v4649_v38, %v14679_v4  ;;  %5393 = vmatpush.bf16.msra.mxu3 %v9978_v52 }
 0x6f9   : > { %17866 = vst [vmem:[#allocation39_spill] sm:$0xff] %v15048_v26  ;;  %4910 = vmatmul.bf16.gmra.mxu1 %v12714_v17 }
 0x6fa   : > { %17867 = vst [vmem:[#allocation70_spill] sm:$0xff] %v15056_v47  ;;  %v4738_v6 = vpop.f32.mrf.mxu3 }
 0x6fb   : > { %v4739_v18 = vadd.f32 %v4738_v6, %v4650_v42  ;;  %v4788_v6 = vadd.f32 %v14770_v49, %v15000_v63  ;;  %v17870_v42 = vld [vmem:[#allocation98_spill] sm:$0xff] }
 0x6fd   : > { %v5585_v50 = vadd.f32 %v17868_v53, %v4739_v18  ;;  %v15063_v26 = vpop.f32.mrf.mxu0 }
 0x6fe   : > { %v4873_v55 = vpop.f32.mrf.mxu1 }
 0x6ff   : > { %v15065_v36 = vadd.f32 %v4873_v55, %v4785_v54  ;;  %v4651_v59 = vpop.f32.mrf.mxu2 }
 0x700   : > { %v4652_v44 = vadd.f32 %v4651_v59, %v14679_v4  ;;  %5142 = vmatmul.bf16.gmra.mxu0 %v17704_v12 }
 0x701   : > { %17869 = vst [vmem:[#allocation41_spill] sm:$0xff] %v15065_v36 }
 0x702   : > { %v4740_v3 = vpop.f32.mrf.mxu3 }
 0x703   : > { %v4741_v38 = vadd.f32 %v4740_v3, %v4652_v44  ;;  %v4790_v44 = vadd.f32 %v14782_v23, %v15000_v63  ;;  %v17873_v3 = vld [vmem:[#allocation99_spill] sm:$0xff] }
 0x704   : > { %4969 = vmatmul.bf16.gmra.mxu2 %v17709_v46 }
 0x705   : > { %v5587_v48 = vadd.f32 %v17870_v42, %v4741_v38  ;;  %v15074_v39 = vpop.f32.mrf.mxu0  ;;  %v9781_v42 = vld [vmem:[%s17329_s5 + $0x388] sm:$0xf] }
 0x706   : > { %v4876_v55 = vpop.f32.mrf.mxu1 }
 0x707   : > { %5058 = vmatmul.bf16.gmra.mxu3 %v12506_v37  ;;  %v15076_v52 = vadd.f32 %v4876_v55, %v4788_v6  ;;  %v15078_v18 = vpack.c.bf16 %v5587_v48, %v5585_v50  ;;  %v4654_v54 = vpop.f32.mrf.mxu2  ;;  %v10852_v50 = vld [vmem:[%s17329_s5 + $0x3b4] sm:$0xf0] }
 0x708   : > { %v4655_v53 = vadd.f32 %v4654_v54, %v14679_v4  ;;  %v9782_v55 = vor.u32 %v10852_v50, %v9781_v42  ;;  %v10786_v50 = vld [vmem:[%s17329_s5 + $0x1ac] sm:$0xf] }
 0x709   : > { %17871 = vst [vmem:[#allocation72_spill] sm:$0xff] %v15076_v52  ;;  %4915 = vmatmul.bf16.gmra.mxu1 %v12750_v19  ;;  %v17875_v52 = vld [vmem:[#allocation100_spill] sm:$0xff] }
 0x70a   : > { %17872 = vst [vmem:[#allocation43_spill] sm:$0xff] %v15078_v18  ;;  %v4743_v59 = vpop.f32.mrf.mxu3  ;;  %5219 = vmatpush.bf16.msrb.mxu1 %v9782_v55 }
 0x70b   : > { %v4744_v49 = vadd.f32 %v4743_v59, %v4655_v53 }
 0x70d   : > { %v5589_v38 = vadd.f32 %v17873_v3, %v4744_v49  ;;  %v15091_v6 = vpop.f32.mrf.mxu0  ;;  %v4793_v3 = vadd.f32 %v14801_v25, %v15000_v63 }
 0x70e   : > { %v4878_v48 = vpop.f32.mrf.mxu1 }
 0x70f   : > { %v15093_v54 = vadd.f32 %v4878_v48, %v4790_v44  ;;  %v4656_v53 = vpop.f32.mrf.mxu2  ;;  %v9543_v48 = vld [vmem:[%s17329_s5 + $0x1d8] sm:$0xf0] }
 0x710   : > { %v4657_v23 = vadd.f32 %v4656_v53, %v14679_v4  ;;  %5147 = vmatmul.bf16.gmra.mxu0 %v17709_v46  ;;  %v9546_v25 = vor.u32 %v10786_v50, %v9543_v48  ;;  %v9927_v53 = vld [vmem:[%s17329_s5 + $0x4d8] sm:$0xf0]  ;;  %v17878_v50 = vld [vmem:[#allocation101_spill] sm:$0xff] }
 0x711   : > { %17874 = vst [vmem:[#allocation75_spill] sm:$0xff] %v15093_v54 }
 0x712   : > { %v4745_v59 = vpop.f32.mrf.mxu3  ;;  %5305 = vmatpush.bf16.msra.mxu2 %v9546_v25 }
 0x713   : > { %v4746_v49 = vadd.f32 %v4745_v59, %v4657_v23 }
 0x714   : > { %4974 = vmatmul.bf16.gmra.mxu2 %v17714_v58 }
 0x715   : > { %v5591_v18 = vadd.f32 %v17875_v52, %v4746_v49  ;;  %v15102_v42 = vpop.f32.mrf.mxu0  ;;  %v10882_v52 = vld [vmem:[%s17329_s5 + $0x4ac] sm:$0xf] }
 0x716   : > { %v4881_v44 = vpop.f32.mrf.mxu1  ;;  %v9930_v49 = vor.u32 %v10882_v52, %v9927_v53 }
 0x717   : > { %5063 = vmatmul.bf16.gmra.mxu3 %v12536_v33  ;;  %v15110_v55 = vadd.f32 %v4881_v44, %v4793_v3  ;;  %v15118_v23 = vpack.c.bf16 %v5591_v18, %v5589_v38  ;;  %v4659_v59 = vpop.f32.mrf.mxu2  ;;  %v4795_v44 = vadd.f32 %v14816_v5, %v15000_v63 }
 0x718   : > { %v4660_v54 = vadd.f32 %v4659_v59, %v14679_v4  ;;  %5394 = vmatpush.bf16.msra.mxu3 %v9930_v49 }
 0x719   : > { %17876 = vst [vmem:[#allocation45_spill] sm:$0xff] %v15110_v55  ;;  %4920 = vmatmul.bf16.gmra.mxu1 %v12780_v13 }
 0x71a   : > { %17877 = vst [vmem:[#allocation77_spill] sm:$0xff] %v15118_v23  ;;  %v4748_v36 = vpop.f32.mrf.mxu3 }
 0x71b   : > { %v4749_v3 = vadd.f32 %v4748_v36, %v4660_v54  ;;  %v4798_v36 = vadd.f32 %v14838_v45, %v15000_v63  ;;  %v17880_v54 = vld [vmem:[#allocation102_spill] sm:$0xff] }
 0x71d   : > { %v5593_v48 = vadd.f32 %v17878_v50, %v4749_v3  ;;  %v15125_v55 = vpop.f32.mrf.mxu0 }
 0x71e   : > { %v4883_v47 = vpop.f32.mrf.mxu1 }
 0x71f   : > { %v15127_v18 = vadd.f32 %v4883_v47, %v4795_v44  ;;  %v4661_v38 = vpop.f32.mrf.mxu2 }
 0x720   : > { %v4662_v52 = vadd.f32 %v4661_v38, %v14679_v4  ;;  %5152 = vmatmul.bf16.gmra.mxu0 %v17714_v58 }
 0x721   : > { %17879 = vst [vmem:[#allocation91_spill] sm:$0xff] %v15127_v18  ;;  %v17886_v18 = vld [vmem:[#allocation79_spill] sm:$0xff] }
 0x722   : > { %v4750_v53 = vpop.f32.mrf.mxu3 }
 0x723   : > { %v4751_v59 = vadd.f32 %v4750_v53, %v4662_v52  ;;  %v4800_v52 = vadd.f32 %v14850_v51, %v15000_v63  ;;  %v17883_v53 = vld [vmem:[#allocation103_spill] sm:$0xff] }
 0x724   : > { %4979 = vmatmul.bf16.gmra.mxu2 %v17719_v20 }
 0x725   : > { %v5595_v25 = vadd.f32 %v17880_v54, %v4751_v59  ;;  %v15136_v5 = vpop.f32.mrf.mxu0  ;;  %v9733_v54 = vld [vmem:[%s17329_s5 + $0x328] sm:$0xf] }
 0x726   : > { %v4886_v47 = vpop.f32.mrf.mxu1 }
 0x727   : > { %5068 = vmatmul.bf16.gmra.mxu3 %v12578_v56  ;;  %v15138_v49 = vadd.f32 %v4886_v47, %v4798_v36  ;;  %v15140_v3 = vpack.c.bf16 %v5595_v25, %v5593_v48  ;;  %v4664_v44 = vpop.f32.mrf.mxu2  ;;  %v10840_v48 = vld [vmem:[%s17329_s5 + $0x354] sm:$0xf0] }
 0x728   : > { %v4665_v50 = vadd.f32 %v4664_v44, %v14679_v4  ;;  %v9734_v47 = vor.u32 %v10840_v48, %v9733_v54  ;;  %v10774_v48 = vld [vmem:[%s17329_s5 + $0x14c] sm:$0xf] }
 0x729   : > { %17881 = vst [vmem:[#allocation47_spill] sm:$0xff] %v15138_v49  ;;  %4925 = vmatmul.bf16.gmra.mxu1 %v12816_v1  ;;  %v17885_v49 = vld [vmem:[#allocation104_spill] sm:$0xff] }
 0x72a   : > { %17882 = vst [vmem:[#allocation80_spill] sm:$0xff] %v15140_v3  ;;  %v4753_v38 = vpop.f32.mrf.mxu3  ;;  %5220 = vmatpush.bf16.msrb.mxu1 %v9734_v47 }
 0x72b   : > { %v4754_v45 = vadd.f32 %v4753_v38, %v4665_v50 }
 0x72d   : > { %v5597_v59 = vadd.f32 %v17883_v53, %v4754_v45  ;;  %v15153_v36 = vpop.f32.mrf.mxu0  ;;  %v4803_v53 = vadd.f32 %v14872_v32, %v15000_v63 }
 0x72e   : > { %v4888_v25 = vpop.f32.mrf.mxu1 }
 0x72f   : > { %v15155_v44 = vadd.f32 %v4888_v25, %v4800_v52  ;;  %v4666_v50 = vpop.f32.mrf.mxu2  ;;  %v9495_v25 = vld [vmem:[%s17329_s5 + $0x178] sm:$0xf0] }
 0x730   : > { %v4667_v51 = vadd.f32 %v4666_v50, %v14679_v4  ;;  %5157 = vmatmul.bf16.gmra.mxu0 %v17719_v20  ;;  %v9498_v32 = vor.u32 %v10774_v48, %v9495_v25  ;;  %v9879_v50 = vld [vmem:[%s17329_s5 + $0x478] sm:$0xf0]  ;;  %v17889_v48 = vld [vmem:[#allocation105_spill] sm:$0xff] }
 0x731   : > { %17884 = vst [vmem:[#allocation49_spill] sm:$0xff] %v15155_v44 }
 0x732   : > { %v4755_v38 = vpop.f32.mrf.mxu3  ;;  %5306 = vmatpush.bf16.msra.mxu2 %v9498_v32 }
 0x733   : > { %v4756_v45 = vadd.f32 %v4755_v38, %v4667_v51 }
 0x734   : > { %4984 = vmatmul.bf16.gmra.mxu2 %v17886_v18 }
 0x735   : > { %v5599_v3 = vadd.f32 %v17885_v49, %v4756_v45  ;;  %v15164_v54 = vpop.f32.mrf.mxu0  ;;  %v10870_v49 = vld [vmem:[%s17329_s5 + $0x44c] sm:$0xf] }
 0x736   : > { %v4891_v52 = vpop.f32.mrf.mxu1  ;;  %v9882_v38 = vor.u32 %v10870_v49, %v9879_v50 }
 0x737   : > { %5073 = vmatmul.bf16.gmra.mxu3 %v12620_v14  ;;  %v15172_v47 = vadd.f32 %v4891_v52, %v4803_v53  ;;  %v4669_v51 = vpop.f32.mrf.mxu2  ;;  %v15180_v45 = vpack.c.bf16 %v5599_v3, %v5597_v59  ;;  %v4805_v52 = vadd.f32 %v14896_v40, %v15000_v63 }
 0x738   : > { %v4670_v44 = vadd.f32 %v4669_v51, %v14679_v4  ;;  %5395 = vmatpush.bf16.msra.mxu3 %v9882_v38 }
 0x739   : > { %17887 = vst [vmem:[#allocation82_spill] sm:$0xff] %v15172_v47  ;;  %4930 = vmatmul.bf16.gmra.mxu1 %v12846_v27 }
 0x73a   : > { %17888 = vst [vmem:[#allocation51_spill] sm:$0xff] %v15180_v45  ;;  %v4758_v23 = vpop.f32.mrf.mxu3  ;;  %v17894_v45 = vld [vmem:[#allocation107_spill] sm:$0xff] }
 0x73b   : > { %v4759_v53 = vadd.f32 %v4758_v23, %v4670_v44  ;;  %v4808_v23 = vadd.f32 %v14930_v2, %v15000_v63  ;;  %v17891_v44 = vld [vmem:[#allocation106_spill] sm:$0xff] }
 0x73d   : > { %v5601_v25 = vadd.f32 %v17889_v48, %v4759_v53  ;;  %v15187_v47 = vpop.f32.mrf.mxu0 }
 0x73e   : > { %v4893_v20 = vpop.f32.mrf.mxu1 }
 0x73f   : > { %v15189_v58 = vadd.f32 %v4893_v20, %v4805_v52  ;;  %v4671_v3 = vpop.f32.mrf.mxu2 }
 0x740   : > { %v4672_v59 = vadd.f32 %v4671_v3, %v14679_v4  ;;  %5162 = vmatmul.bf16.gmra.mxu0 %v17886_v18  ;;  %v10133_v3 = vld [vmem:[#allocation6 + $0x70] sm:$0xf] }
 0x741   : > { %17890 = vst [vmem:[#allocation50_spill] sm:$0xff] %v15189_v58  ;;  %v4810_v58 = vadd.f32 %v14942_v11, %v15000_v63  ;;  %v4813_v11 = vadd.f32 %v14958_v35, %v15000_v63  ;;  %v9447_v35 = vld [vmem:[%s17329_s5 + $0x118] sm:$0xf0] }
 0x742   : > { %v4760_v49 = vpop.f32.mrf.mxu3 }
 0x743   : > { %v4761_v50 = vadd.f32 %v4760_v49, %v4672_v59  ;;  %v10940_v59 = vld [vmem:[#allocation6 + $0x74] sm:$0xf0]  ;;  %v10197_v49 = vld [vmem:[#allocation6 + $0xf0] sm:$0xf] }
 0x744   : > { %4989 = vmatmul.bf16.gmra.mxu2 %v17798_v16 }
 0x745   : > { %v5603_v32 = vadd.f32 %v17891_v44, %v4761_v50  ;;  %v15198_v40 = vpop.f32.mrf.mxu0  ;;  %v10134_v50 = vor.u32 %v10940_v59, %v10133_v3  ;;  %v10956_v44 = vld [vmem:[#allocation6 + $0xf4] sm:$0xf0] }
 0x746   : > { %v4896_v20 = vpop.f32.mrf.mxu1  ;;  %v17896_v59 = vld [vmem:[#allocation108_spill] sm:$0xff] }
 0x747   : > { %5078 = vmatmul.bf16.gmra.mxu3 %v12640_v7  ;;  %v15200_v51 = vadd.f32 %v4896_v20, %v4808_v23  ;;  %v15202_v38 = vpack.c.bf16 %v5603_v32, %v5601_v25  ;;  %v4674_v53 = vpop.f32.mrf.mxu2  ;;  %v10198_v20 = vor.u32 %v10956_v44, %v10197_v49  ;;  %5838 = vmatpush.bf16.msra.mxu0 %v10134_v50  ;;  %v15220_v49 = vperm.slane %v14995_v57, 1 }
 0x748   : > { %v4675_v52 = vadd.f32 %v4674_v53, %v14679_v4 }
 0x749   : > { %17892 = vst [vmem:[#allocation85_spill] sm:$0xff] %v15200_v51  ;;  %4935 = vmatmul.bf16.gmra.mxu1 %v12882_v15 }
 0x74a   : > { %17893 = vst [vmem:[#allocation53_spill] sm:$0xff] %v15202_v38  ;;  %v4763_v48 = vpop.f32.mrf.mxu3  ;;  %5927 = vmatpush.bf16.msra.mxu1 %v10198_v20  ;;  %v10858_v20 = vld [vmem:[%s17329_s5 + $0x3ec] sm:$0xf] }
 0x74b   : > { %v4764_v2 = vadd.f32 %v4763_v48, %v4675_v52 }
 0x74d   : > { %v5605_v23 = vadd.f32 %v17894_v45, %v4764_v2  ;;  %v15209_v25 = vpop.f32.mrf.mxu0  ;;  %v17897_v2 = vld [vmem:[#allocation87_spill] sm:$0xff] }
 0x74e   : > { %v4898_v32 = vpop.f32.mrf.mxu1 }
 0x74f   : > { %v15211_v53 = vadd.f32 %v4898_v32, %v4810_v58  ;;  %v4676_v51 = vpop.f32.mrf.mxu2  ;;  %v9831_v32 = vld [vmem:[%s17329_s5 + $0x418] sm:$0xf0] }
 0x750   : > { %v4677_v52 = vadd.f32 %v4676_v51, %v14679_v4  ;;  %5167 = vmatmul.bf16.gmra.mxu0 %v17798_v16  ;;  %v10762_v4 = vld [vmem:[%s17329_s5 + $0xec] sm:$0xf] }
 0x751   : > { %17895 = vst [vmem:[#allocation94_spill] sm:$0xff] %v15211_v53  ;;  %v9450_v44 = vor.u32 %v10762_v4, %v9447_v35 }
 0x752   : > { %v4765_v48 = vpop.f32.mrf.mxu3 }
 0x753   : > { %v4766_v3 = vadd.f32 %v4765_v48, %v4677_v52  ;;  %5307 = vmatpush.bf16.msra.mxu2 %v9450_v44 }
 0x754   : > { %4994 = vmatmul.bf16.gmra.mxu2 %v17897_v2 }
 0x755   : > { %v5607_v45 = vadd.f32 %v17896_v59, %v4766_v3  ;;  %v15223_v58 = vpop.f32.mrf.mxu0  ;;  %v9834_v3 = vor.u32 %v10858_v20, %v9831_v32 }
 0x756   : > { %v4901_v50 = vpop.f32.mrf.mxu1 }
 0x757   : > { %5083 = vmatmul.bf16.gmra.mxu3 %v12684_v31  ;;  %v15231_v51 = vadd.f32 %v4901_v50, %v4813_v11  ;;  %v15239_v52 = vpack.c.bf16 %v5607_v45, %v5605_v23  ;;  %v4955_v48 = vpop.f32.mrf.mxu2  ;;  %v4815_v50 = vadd.f32 %v14970_v10, %v15000_v63 }
 0x758   : > { %v4956_v59 = vadd.f32 %v4955_v48, %v15220_v49  ;;  %5396 = vmatpush.bf16.msra.mxu3 %v9834_v3 }
 0x759   : > { %17898 = vst [vmem:[#allocation55_spill] sm:$0xff] %v15231_v51  ;;  %4940 = vmatmul.bf16.gmra.mxu1 %v12932_v43 }
 0x75a   : > { %17899 = vst [vmem:[#allocation95_spill] sm:$0xff] %v15239_v52  ;;  %v5044_v53 = vpop.f32.mrf.mxu3 }
 0x75b   : > { %v15243_v11 = vadd.f32 %v5044_v53, %v4956_v59  ;;  %v4818_v53 = vadd.f32 %v14997_v0, %v15000_v63  ;;  %v10189_v0 = vld [vmem:[#allocation6 + $0xe0] sm:$0xf] }
 0x75d   : > { %17900 = vst [vmem:[#allocation96_spill] sm:$0xff] %v15243_v11  ;;  %v15247_v35 = vpop.f32.mrf.mxu0 }
 0x75e   : > { %v4903_v4 = vpop.f32.mrf.mxu1 }
 0x75f   : > { %v15249_v51 = vadd.f32 %v4903_v4, %v4815_v50  ;;  %v4957_v23 = vpop.f32.mrf.mxu2 }
 0x760   : > { %v4958_v45 = vadd.f32 %v4957_v23, %v15220_v49  ;;  %5172 = vmatmul.bf16.gmra.mxu0 %v17897_v2  ;;  %v10125_v23 = vld [vmem:[#allocation6 + $0x60] sm:$0xf] }
 0x761   : > { %17901 = vst [vmem:[#allocation97_spill] sm:$0xff] %v15249_v51  ;;  %v4820_v51 = vadd.f32 %v15012_v22, %v15000_v63 }
 0x762   : > { %v5046_v20 = vpop.f32.mrf.mxu3 }
 0x763   : > { %v15253_v32 = vadd.f32 %v5046_v20, %v4958_v45  ;;  %v10938_v45 = vld [vmem:[#allocation6 + $0x64] sm:$0xf0] }
 0x764   : > { %4999 = vmatmul.bf16.gmra.mxu2 %v12432_v28  ;;  %v10126_v20 = vor.u32 %v10938_v45, %v10125_v23  ;;  %v4823_v23 = vadd.f32 %v15029_v60, %v15000_v63  ;;  %v10846_v60 = vld [vmem:[%s17329_s5 + $0x38c] sm:$0xf] }
 0x765   : > { %17902 = vst [vmem:[#allocation98_spill] sm:$0xff] %v15253_v32  ;;  %v15259_v44 = vpop.f32.mrf.mxu0  ;;  %v10954_v32 = vld [vmem:[#allocation6 + $0xe4] sm:$0xf0] }
 0x766   : > { %v4906_v10 = vpop.f32.mrf.mxu1  ;;  %v10190_v11 = vor.u32 %v10954_v32, %v10189_v0  ;;  %5839 = vmatpush.bf16.msra.mxu0 %v10126_v20  ;;  %v9783_v0 = vld [vmem:[%s17329_s5 + $0x3b8] sm:$0xf0] }
 0x767   : > { %5088 = vmatmul.bf16.gmra.mxu3 %v12714_v17  ;;  %v15261_v48 = vadd.f32 %v4906_v10, %v4818_v53  ;;  %v4960_v3 = vpop.f32.mrf.mxu2 }
 0x768   : > { %v4961_v59 = vadd.f32 %v4960_v3, %v15220_v49  ;;  %5928 = vmatpush.bf16.msra.mxu1 %v10190_v11 }
 0x769   : > { %17903 = vst [vmem:[#allocation99_spill] sm:$0xff] %v15261_v48  ;;  %5221 = vmatmul.bf16.vlgmr.msrb.gmra.mxu1 %v12411_v29 }
 0x76a   : > { %v5049_v50 = vpop.f32.mrf.mxu3 }
 0x76b   : > { %v15265_v4 = vadd.f32 %v5049_v50, %v4961_v59 }
 0x76d   : > { %17904 = vst [vmem:[#allocation100_spill] sm:$0xff] %v15265_v4  ;;  %v15269_v53 = vpop.f32.mrf.mxu0 }
 0x76e   : > { %v4908_v52 = vpop.f32.mrf.mxu1 }
 0x76f   : > { %v15271_v10 = vadd.f32 %v4908_v52, %v4820_v51  ;;  %v4962_v3 = vpop.f32.mrf.mxu2  ;;  %v10750_v51 = vld [vmem:[%s17329_s5 + $0x8c] sm:$0xf]  ;;  %v9399_v52 = vld [vmem:[%s17329_s5 + $0xb8] sm:$0xf0] }
 0x770   : > { %v4963_v59 = vadd.f32 %v4962_v3, %v15220_v49  ;;  %5177 = vmatmul.bf16.gmra.mxu0 %v12432_v28  ;;  %v9402_v45 = vor.u32 %v10750_v51, %v9399_v52  ;;  %v9786_v3 = vor.u32 %v10846_v60, %v9783_v0 }
 0x771   : > { %17905 = vst [vmem:[#allocation101_spill] sm:$0xff] %v15271_v10 }
 0x772   : > { %v5051_v50 = vpop.f32.mrf.mxu3  ;;  %5308 = vmatpush.bf16.msra.mxu2 %v9402_v45  ;;  %5397 = vmatpush.bf16.msra.mxu3 %v9786_v3  ;;  %v4828_v45 = vadd.f32 %v15063_v26, %v15000_v63  ;;  %v10181_v26 = vld [vmem:[#allocation6 + $0xd0] sm:$0xf] }
 0x773   : > { %v15275_v4 = vadd.f32 %v5051_v50, %v4963_v59 }
 0x774   : > { %5004 = vmatmul.bf16.gmra.mxu2 %v12463_v30 }
 0x775   : > { %17906 = vst [vmem:[#allocation102_spill] sm:$0xff] %v15275_v4  ;;  %v15281_v32 = vpop.f32.mrf.mxu0 }
 0x776   : > { %v4911_v22 = vpop.f32.mrf.mxu1 }
 0x777   : > { %5093 = vmatmul.bf16.gmra.mxu3 %v12750_v19  ;;  %v15289_v11 = vadd.f32 %v4911_v22, %v4823_v23  ;;  %v4965_v20 = vpop.f32.mrf.mxu2  ;;  %v4825_v22 = vadd.f32 %v15040_v34, %v15000_v63 }
 0x778   : > { %v4966_v59 = vadd.f32 %v4965_v20, %v15220_v49 }
 0x779   : > { %17907 = vst [vmem:[#allocation103_spill] sm:$0xff] %v15289_v11  ;;  %5226 = vmatmul.bf16.gmra.mxu1 %v12444_v9 }
 0x77a   : > { %v5054_v50 = vpop.f32.mrf.mxu3 }
 0x77b   : > { %v15299_v23 = vadd.f32 %v5054_v50, %v4966_v59 }
 0x77d   : > { %17908 = vst [vmem:[#allocation104_spill] sm:$0xff] %v15299_v23  ;;  %v15303_v52 = vpop.f32.mrf.mxu0  ;;  %v4830_v23 = vadd.f32 %v15074_v39, %v15000_v63 }
 0x77e   : > { %v4913_v51 = vpop.f32.mrf.mxu1 }
 0x77f   : > { %v15305_v11 = vadd.f32 %v4913_v51, %v4825_v22  ;;  %v4967_v4 = vpop.f32.mrf.mxu2 }
 0x780   : > { %v4968_v60 = vadd.f32 %v4967_v4, %v15220_v49  ;;  %5182 = vmatmul.bf16.gmra.mxu0 %v12463_v30 }
 0x781   : > { %17909 = vst [vmem:[#allocation79_spill] sm:$0xff] %v15305_v11  ;;  %v10952_v11 = vld [vmem:[#allocation6 + $0xd4] sm:$0xf0] }
 0x782   : > { %v5056_v0 = vpop.f32.mrf.mxu3  ;;  %v10182_v10 = vor.u32 %v10952_v11, %v10181_v26 }
 0x783   : > { %v15309_v20 = vadd.f32 %v5056_v0, %v4968_v60  ;;  %v10117_v60 = vld [vmem:[#allocation6 + $0x50] sm:$0xf]  ;;  %v10936_v0 = vld [vmem:[#allocation6 + $0x54] sm:$0xf0] }
 0x784   : > { %5009 = vmatmul.bf16.gmra.mxu2 %v12494_v41  ;;  %5929 = vmatpush.bf16.msra.mxu1 %v10182_v10  ;;  %v9351_v10 = vld [vmem:[%s17329_s5 + $0x58] sm:$0xf0] }
 0x785   : > { %17910 = vst [vmem:[#allocation105_spill] sm:$0xff] %v15309_v20  ;;  %v15315_v3 = vpop.f32.mrf.mxu0  ;;  %v10118_v20 = vor.u32 %v10936_v0, %v10117_v60  ;;  %v4833_v60 = vadd.f32 %v15091_v6, %v15000_v63  ;;  %v10834_v6 = vld [vmem:[%s17329_s5 + $0x32c] sm:$0xf]  ;;  %v9735_v0 = vld [vmem:[%s17329_s5 + $0x358] sm:$0xf0] }
 0x786   : > { %v4916_v34 = vpop.f32.mrf.mxu1 }
 0x787   : > { %5098 = vmatmul.bf16.gmra.mxu3 %v12780_v13  ;;  %v15317_v59 = vadd.f32 %v4916_v34, %v4828_v45  ;;  %v4970_v50 = vpop.f32.mrf.mxu2  ;;  %5840 = vmatpush.bf16.msra.mxu0 %v10118_v20 }
 0x788   : > { %v4971_v4 = vadd.f32 %v4970_v50, %v15220_v49 }
 0x789   : > { %17911 = vst [vmem:[#allocation106_spill] sm:$0xff] %v15317_v59  ;;  %5231 = vmatmul.bf16.gmra.mxu1 %v12475_v21 }
 0x78a   : > { %v5059_v22 = vpop.f32.mrf.mxu3 }
 0x78b   : > { %v15321_v51 = vadd.f32 %v5059_v22, %v4971_v4 }
 0x78d   : > { %17912 = vst [vmem:[#allocation107_spill] sm:$0xff] %v15321_v51  ;;  %v15325_v45 = vpop.f32.mrf.mxu0 }
 0x78e   : > { %v4918_v48 = vpop.f32.mrf.mxu1 }
 0x78f   : > { %v15327_v34 = vadd.f32 %v4918_v48, %v4830_v23  ;;  %v4972_v50 = vpop.f32.mrf.mxu2  ;;  %v10738_v48 = vld [vmem:[%s17329_s5 + $0x2c] sm:$0xf] }
 0x790   : > { %v4973_v4 = vadd.f32 %v4972_v50, %v15220_v49  ;;  %5187 = vmatmul.bf16.gmra.mxu0 %v12494_v41  ;;  %v9354_v20 = vor.u32 %v10738_v48, %v9351_v10  ;;  %v9738_v50 = vor.u32 %v10834_v6, %v9735_v0 }
 0x791   : > { %17913 = vst [vmem:[#allocation108_spill] sm:$0xff] %v15327_v34  ;;  %v4840_v34 = vadd.f32 %v15136_v5, %v15000_v63  ;;  %v10093_v5 = vld [vmem:[#allocation6 + $0x20] sm:$0xf] }
 0x792   : > { %v5061_v22 = vpop.f32.mrf.mxu3  ;;  %5309 = vmatpush.bf16.msra.mxu2 %v9354_v20  ;;  %5398 = vmatpush.bf16.msra.mxu3 %v9738_v50  ;;  %v4838_v20 = vadd.f32 %v15125_v55, %v15000_v63  ;;  %v17919_v50 = vld [vmem:[#allocation90_spill] sm:$0xff]  ;;  %v10173_v55 = vld [vmem:[#allocation6 + $0xc0] sm:$0xf] }
 0x793   : > { %v15331_v51 = vadd.f32 %v5061_v22, %v4973_v4 }
 0x794   : > { %5014 = vmatmul.bf16.gmra.mxu2 %v17571_v61 }
 0x795   : > { %17914 = vst [vmem:[#allocation87_spill] sm:$0xff] %v15331_v51  ;;  %v15337_v11 = vpop.f32.mrf.mxu0 }
 0x796   : > { %v4921_v39 = vpop.f32.mrf.mxu1 }
 0x797   : > { %5103 = vmatmul.bf16.gmra.mxu3 %v12816_v1  ;;  %v15345_v23 = vadd.f32 %v4921_v39, %v4833_v60  ;;  %v4975_v26 = vpop.f32.mrf.mxu2  ;;  %v4835_v39 = vadd.f32 %v15102_v42, %v15000_v63 }
 0x798   : > { %v4976_v4 = vadd.f32 %v4975_v26, %v15220_v49 }
 0x799   : > { %17915 = vst [vmem:[#allocation213_spill] sm:$0xff] %v15345_v23  ;;  %5236 = vmatmul.bf16.gmra.mxu1 %v12506_v37 }
 0x79a   : > { %v5064_v22 = vpop.f32.mrf.mxu3 }
 0x79b   : > { %v15355_v60 = vadd.f32 %v5064_v22, %v4976_v4 }
 0x79d   : > { %17916 = vst [vmem:[#allocation214_spill] sm:$0xff] %v15355_v60  ;;  %v15359_v10 = vpop.f32.mrf.mxu0  ;;  %v10950_v60 = vld [vmem:[#allocation6 + $0xc4] sm:$0xf0] }
 0x79e   : > { %v4923_v48 = vpop.f32.mrf.mxu1  ;;  %v10174_v59 = vor.u32 %v10950_v60, %v10173_v55  ;;  %v10930_v60 = vld [vmem:[#allocation6 + $0x24] sm:$0xf0] }
 0x79f   : > { %v15361_v23 = vadd.f32 %v4923_v48, %v4835_v39  ;;  %v4977_v51 = vpop.f32.mrf.mxu2 }
 0x7a0   : > { %v4978_v6 = vadd.f32 %v4977_v51, %v15220_v49  ;;  %5192 = vmatmul.bf16.gmra.mxu0 %v17571_v61  ;;  %5930 = vmatpush.bf16.msra.mxu1 %v10174_v59  ;;  %v10094_v59 = vor.u32 %v10930_v60, %v10093_v5 }
 0x7a1   : > { %17917 = vst [vmem:[#allocation215_spill] sm:$0xff] %v15361_v23 }
 0x7a2   : > { %v5066_v0 = vpop.f32.mrf.mxu3 }
 0x7a3   : > { %v15365_v26 = vadd.f32 %v5066_v0, %v4978_v6  ;;  %v10109_v0 = vld [vmem:[#allocation6 + $0x40] sm:$0xf] }
 0x7a4   : > { %5019 = vmatmul.bf16.gmra.mxu2 %v17919_v50 }
 0x7a5   : > { %17918 = vst [vmem:[#allocation216_spill] sm:$0xff] %v15365_v26  ;;  %v15371_v4 = vpop.f32.mrf.mxu0  ;;  %v10934_v26 = vld [vmem:[#allocation6 + $0x44] sm:$0xf0] }
 0x7a6   : > { %v4926_v42 = vpop.f32.mrf.mxu1  ;;  %v10110_v23 = vor.u32 %v10934_v26, %v10109_v0 }
 0x7a7   : > { %5108 = vmatmul.bf16.gmra.mxu3 %v12846_v27  ;;  %v15373_v22 = vadd.f32 %v4926_v42, %v4838_v20  ;;  %v4980_v39 = vpop.f32.mrf.mxu2 }
 0x7a8   : > { %v4981_v51 = vadd.f32 %v4980_v39, %v15220_v49  ;;  %5841 = vmatpush.bf16.msra.mxu0 %v10110_v23  ;;  %v4843_v23 = vadd.f32 %v15153_v36, %v15000_v63  ;;  %v10928_v36 = vld [vmem:[#allocation6 + $0x14] sm:$0xf0] }
 0x7a9   : > { %17920 = vst [vmem:[#allocation217_spill] sm:$0xff] %v15373_v22  ;;  %5241 = vmatmul.bf16.gmra.mxu1 %v12536_v33  ;;  %v10101_v22 = vld [vmem:[#allocation6 + $0x30] sm:$0xf] }
 0x7aa   : > { %v5069_v48 = vpop.f32.mrf.mxu3 }
 0x7ab   : > { %v15377_v6 = vadd.f32 %v5069_v48, %v4981_v51  ;;  %v10932_v51 = vld [vmem:[#allocation6 + $0x34] sm:$0xf0] }
 0x7ac   : > { %v10102_v26 = vor.u32 %v10932_v51, %v10101_v22  ;;  %v10199_v51 = vld [vmem:[#allocation6 + $0xf8] sm:$0xf0] }
 0x7ad   : > { %17921 = vst [vmem:[#allocation218_spill] sm:$0xff] %v15377_v6  ;;  %v15381_v20 = vpop.f32.mrf.mxu0 }
 0x7ae   : > { %v4928_v38 = vpop.f32.mrf.mxu1  ;;  %5842 = vmatpush.bf16.msra.mxu0 %v10102_v26 }
 0x7af   : > { %v15383_v42 = vadd.f32 %v4928_v38, %v4840_v34  ;;  %v4982_v39 = vpop.f32.mrf.mxu2  ;;  %v17924_v38 = vld [vmem:[#allocation17_spill] sm:$0xff] }
 0x7b0   : > { %v4983_v48 = vadd.f32 %v4982_v39, %v15220_v49  ;;  %5197 = vmatmul.bf16.gmra.mxu0 %v17919_v50  ;;  %v10939_v39 = vld [vmem:[#allocation6 + $0x74] sm:$0xf] }
 0x7b1   : > { %17922 = vst [vmem:[#allocation219_spill] sm:$0xff] %v15383_v42  ;;  %v10135_v42 = vld [vmem:[#allocation6 + $0x78] sm:$0xf0] }
 0x7b2   : > { %v5071_v6 = vpop.f32.mrf.mxu3  ;;  %v10138_v22 = vor.u32 %v10939_v39, %v10135_v42  ;;  %5843 = vmatpush.bf16.msra.mxu0 %v10094_v59  ;;  %v10926_v42 = vld [vmem:[#allocation6 + $0x4] sm:$0xf0]  ;;  %v4845_v59 = vadd.f32 %v15164_v54, %v15000_v63 }
 0x7b3   : > { %v15387_v0 = vadd.f32 %v5071_v6, %v4983_v48  ;;  %v10955_v6 = vld [vmem:[#allocation6 + $0xf4] sm:$0xf] }
 0x7b4   : > { %5024 = vmatmul.bf16.gmra.mxu2 %v17924_v38  ;;  %v10202_v26 = vor.u32 %v10955_v6, %v10199_v51 }
 0x7b5   : > { %17923 = vst [vmem:[#allocation220_spill] sm:$0xff] %v15387_v0  ;;  %v15393_v55 = vpop.f32.mrf.mxu0  ;;  %v10085_v0 = vld [vmem:[#allocation6 + $0x10] sm:$0xf]  ;;  %6016 = vmatpush.bf16.msrb.mxu2 %v10138_v22 }
 0x7b6   : > { %v4931_v34 = vpop.f32.mrf.mxu1  ;;  %v10086_v60 = vor.u32 %v10928_v36, %v10085_v0  ;;  %6105 = vmatpush.bf16.msrb.mxu3 %v10202_v26  ;;  %v4848_v26 = vadd.f32 %v15187_v47, %v15000_v63 }
 0x7b7   : > { %5113 = vmatmul.bf16.gmra.mxu3 %v12882_v15  ;;  %v15395_v50 = vadd.f32 %v4931_v34, %v4843_v23  ;;  %v4985_v48 = vpop.f32.mrf.mxu2  ;;  %v10077_v23 = vld [vmem:[#allocation6] sm:$0xf] }
 0x7b8   : > { %v4986_v61 = vadd.f32 %v4985_v48, %v15220_v49  ;;  %5844 = vmatpush.bf16.msra.mxu0 %v10086_v60  ;;  %v10078_v34 = vor.u32 %v10926_v42, %v10077_v23 }
 0x7b9   : > { %5246 = vmatmul.bf16.gmra.mxu1 %v12578_v56 }
 0x7ba   : > { %v5074_v5 = vpop.f32.mrf.mxu3 }
 0x7bb   : > { %v15399_v41 = vadd.f32 %v5074_v5, %v4986_v61 }
 0x7bc   : > { %5845 = vmatpush.bf16.msra.mxu0 %v10078_v34  ;;  %v10165_v34 = vld [vmem:[#allocation6 + $0xb0] sm:$0xf] }
 0x7bd   : > { %v15403_v6 = vpop.f32.mrf.mxu0 }
 0x7be   : > { %v4933_v39 = vpop.f32.mrf.mxu1 }
 0x7bf   : > { %v15405_v51 = vadd.f32 %v4933_v39, %v4845_v59  ;;  %v4987_v48 = vpop.f32.mrf.mxu2  ;;  %v10948_v39 = vld [vmem:[#allocation6 + $0xb4] sm:$0xf0] }
 0x7c0   : > { %v4988_v22 = vadd.f32 %v4987_v48, %v15220_v49  ;;  %5202 = vmatmul.bf16.gmra.mxu0 %v17924_v38  ;;  %v10166_v47 = vor.u32 %v10948_v39, %v10165_v34  ;;  %v4850_v48 = vadd.f32 %v15198_v40, %v15000_v63  ;;  %v10937_v39 = vld [vmem:[#allocation6 + $0x64] sm:$0xf] }
 0x7c2   : > { %v5076_v0 = vpop.f32.mrf.mxu3  ;;  %5931 = vmatpush.bf16.msra.mxu1 %v10166_v47  ;;  %v10127_v47 = vld [vmem:[#allocation6 + $0x68] sm:$0xf0] }
 0x7c3   : > { %v15409_v61 = vadd.f32 %v5076_v0, %v4988_v22 }
 0x7c4   : > { %5029 = vmatmul.bf16.gmra.mxu2 %v17846_v8 }
 0x7c5   : > { %v15415_v36 = vpop.f32.mrf.mxu0 }
 0x7c6   : > { %v4936_v54 = vpop.f32.mrf.mxu1 }
 0x7c7   : > { %5118 = vmatmul.bf16.gmra.mxu3 %v12932_v43  ;;  %v15417_v5 = vadd.f32 %v4936_v54, %v4848_v26  ;;  %v4990_v60 = vpop.f32.mrf.mxu2 }
 0x7c8   : > { %v4991_v23 = vadd.f32 %v4990_v60, %v15220_v49 }
 0x7c9   : > { %17925 = vst [vmem:[#allocation17_spill] sm:$0xff] %v15417_v5  ;;  %5251 = vmatmul.bf16.gmra.mxu1 %v12620_v14 }
 0x7ca   : > { %v5079_v42 = vpop.f32.mrf.mxu3 }
 0x7cb   : > { %v15421_v59 = vadd.f32 %v5079_v42, %v4991_v23  ;;  %v4853_v42 = vadd.f32 %v15209_v25, %v15000_v63 }
 0x7cd   : > { %17926 = vst [vmem:[#allocation221_spill] sm:$0xff] %v15421_v59  ;;  %v15425_v0 = vpop.f32.mrf.mxu0 }
 0x7ce   : > { %v4938_v22 = vpop.f32.mrf.mxu1 }
 0x7cf   : > { %v15427_v26 = vadd.f32 %v4938_v22, %v4850_v48  ;;  %v4992_v54 = vpop.f32.mrf.mxu2  ;;  %v10130_v22 = vor.u32 %v10937_v39, %v10127_v47 }
 0x7d0   : > { %v4993_v60 = vadd.f32 %v4992_v54, %v15220_v49  ;;  %5207 = vmatmul.bf16.gmra.mxu0 %v17846_v8  ;;  %v10953_v54 = vld [vmem:[#allocation6 + $0xe4] sm:$0xf] }
 0x7d1   : > { %17927 = vst [vmem:[#allocation222_spill] sm:$0xff] %v15427_v26  ;;  %v10191_v26 = vld [vmem:[#allocation6 + $0xe8] sm:$0xf0]  ;;  %6017 = vmatpush.bf16.msrb.mxu2 %v10130_v22 }
 0x7d2   : > { %v5081_v5 = vpop.f32.mrf.mxu3 }
 0x7d3   : > { %v15431_v23 = vadd.f32 %v5081_v5, %v4993_v60  ;;  %v10194_v5 = vor.u32 %v10953_v54, %v10191_v26  ;;  %v15452_v26 = vperm.slane %v14995_v57, 2  ;;  %v17931_v54 = vld [vmem:[#allocation20_spill] sm:$0xff] }
 0x7d4   : > { %5310 = vmatmul.bf16.vlgmr.msra.gmra.mxu2 %v17853_v24  ;;  %v4855_v24 = vadd.f32 %v15223_v58, %v15000_v63 }
 0x7d5   : > { %17928 = vst [vmem:[#allocation223_spill] sm:$0xff] %v15431_v23  ;;  %v15437_v34 = vpop.f32.mrf.mxu0  ;;  %6106 = vmatpush.bf16.msrb.mxu3 %v10194_v5 }
 0x7d6   : > { %v4941_v40 = vpop.f32.mrf.mxu1 }
 0x7d7   : > { %5399 = vmatmul.bf16.vlgmr.msra.gmra.mxu3 %v12411_v29  ;;  %v15439_v48 = vadd.f32 %v4941_v40, %v4853_v42  ;;  %v4995_v59 = vpop.f32.mrf.mxu2 }
 0x7d8   : > { %v4996_v60 = vadd.f32 %v4995_v59, %v15220_v49 }
 0x7d9   : > { %5256 = vmatmul.bf16.gmra.mxu1 %v12640_v7 }
 0x7da   : > { %v5084_v23 = vpop.f32.mrf.mxu3 }
 0x7db   : > { %v15443_v29 = vadd.f32 %v5084_v23, %v4996_v60  ;;  %v5134_v23 = vadd.f32 %v15247_v35, %v15452_v26 }
 0x7dd   : > { %17929 = vst [vmem:[#allocation224_spill] sm:$0xff] %v15443_v29  ;;  %v15447_v42 = vpop.f32.mrf.mxu0 }
 0x7de   : > { %v4943_v25 = vpop.f32.mrf.mxu1 }
 0x7df   : > { %v15449_v40 = vadd.f32 %v4943_v25, %v4855_v24  ;;  %v4997_v39 = vpop.f32.mrf.mxu2 }
 0x7e0   : > { %v4998_v59 = vadd.f32 %v4997_v39, %v15220_v49  ;;  %5846 = vmatmul.bf16.vlgmr.msra.gmra.mxu0 %v17931_v54  ;;  %v10157_v39 = vld [vmem:[#allocation6 + $0xa0] sm:$0xf] }
 0x7e1   : > { %17930 = vst [vmem:[#allocation225_spill] sm:$0xff] %v15449_v40 }
 0x7e2   : > { %v5086_v47 = vpop.f32.mrf.mxu3 }
 0x7e3   : > { %v15456_v22 = vadd.f32 %v5086_v47, %v4998_v59  ;;  %v10946_v59 = vld [vmem:[#allocation6 + $0xa4] sm:$0xf0] }
 0x7e4   : > { %5315 = vmatmul.bf16.gmra.mxu2 %v17860_v62  ;;  %v10158_v35 = vor.u32 %v10946_v59, %v10157_v39  ;;  %v5136_v62 = vadd.f32 %v15259_v44, %v15452_v26  ;;  %v10935_v59 = vld [vmem:[#allocation6 + $0x54] sm:$0xf] }
 0x7e5   : > { %17932 = vst [vmem:[#allocation20_spill] sm:$0xff] %v15456_v22  ;;  %v15462_v63 = vpop.f32.mrf.mxu0  ;;  %v17936_v22 = vld [vmem:[#allocation208_spill] sm:$0xff] }
 0x7e6   : > { %v5222_v58 = vpop.f32.mrf.mxu1  ;;  %5932 = vmatpush.bf16.msra.mxu1 %v10158_v35  ;;  %v10119_v35 = vld [vmem:[#allocation6 + $0x58] sm:$0xf0] }
 0x7e7   : > { %5404 = vmatmul.bf16.gmra.mxu3 %v12444_v9  ;;  %v15464_v5 = vadd.f32 %v5222_v58, %v5134_v23  ;;  %v5000_v57 = vpop.f32.mrf.mxu2 }
 0x7e8   : > { %v5001_v60 = vadd.f32 %v5000_v57, %v15220_v49 }
 0x7e9   : > { %17933 = vst [vmem:[#allocation226_spill] sm:$0xff] %v15464_v5  ;;  %5261 = vmatmul.bf16.gmra.mxu1 %v12684_v31 }
 0x7ea   : > { %v5089_v24 = vpop.f32.mrf.mxu3 }
 0x7eb   : > { %v15468_v25 = vadd.f32 %v5089_v24, %v5001_v60  ;;  %v5139_v24 = vadd.f32 %v15269_v53, %v15452_v26 }
 0x7ed   : > { %17934 = vst [vmem:[#allocation227_spill] sm:$0xff] %v15468_v25  ;;  %v15472_v9 = vpop.f32.mrf.mxu0 }
 0x7ee   : > { %v5224_v47 = vpop.f32.mrf.mxu1 }
 0x7ef   : > { %v15474_v23 = vadd.f32 %v5224_v47, %v5136_v62  ;;  %v5002_v58 = vpop.f32.mrf.mxu2  ;;  %v10122_v47 = vor.u32 %v10935_v59, %v10119_v35 }
 0x7f0   : > { %v5003_v57 = vadd.f32 %v5002_v58, %v15220_v49  ;;  %5851 = vmatmul.bf16.gmra.mxu0 %v17936_v22  ;;  %v10951_v58 = vld [vmem:[#allocation6 + $0xd4] sm:$0xf] }
 0x7f1   : > { %17935 = vst [vmem:[#allocation228_spill] sm:$0xff] %v15474_v23  ;;  %v10183_v23 = vld [vmem:[#allocation6 + $0xd8] sm:$0xf0]  ;;  %6018 = vmatpush.bf16.msrb.mxu2 %v10122_v47 }
 0x7f2   : > { %v5091_v5 = vpop.f32.mrf.mxu3 }
 0x7f3   : > { %v15478_v60 = vadd.f32 %v5091_v5, %v5003_v57  ;;  %v10186_v5 = vor.u32 %v10951_v58, %v10183_v23 }
 0x7f4   : > { %5320 = vmatmul.bf16.gmra.mxu2 %v17704_v12  ;;  %v5141_v12 = vadd.f32 %v15281_v32, %v15452_v26 }
 0x7f5   : > { %17937 = vst [vmem:[#allocation208_spill] sm:$0xff] %v15478_v60  ;;  %v15484_v44 = vpop.f32.mrf.mxu0  ;;  %6107 = vmatpush.bf16.msrb.mxu3 %v10186_v5 }
 0x7f6   : > { %v5227_v39 = vpop.f32.mrf.mxu1 }
 0x7f7   : > { %5409 = vmatmul.bf16.gmra.mxu3 %v12475_v21  ;;  %v15486_v62 = vadd.f32 %v5227_v39, %v5139_v24  ;;  %v5005_v25 = vpop.f32.mrf.mxu2 }
 0x7f8   : > { %v5006_v57 = vadd.f32 %v5005_v25, %v15220_v49  ;;  %v17941_v25 = vld [vmem:[#allocation209_spill] sm:$0xff] }
 0x7f9   : > { %17938 = vst [vmem:[#allocation229_spill] sm:$0xff] %v15486_v62  ;;  %5266 = vmatmul.bf16.gmra.mxu1 %v12714_v17 }
 0x7fa   : > { %v5094_v60 = vpop.f32.mrf.mxu3 }
 0x7fb   : > { %v15490_v21 = vadd.f32 %v5094_v60, %v5006_v57  ;;  %v5144_v60 = vadd.f32 %v15303_v52, %v15452_v26 }
 0x7fd   : > { %17939 = vst [vmem:[#allocation230_spill] sm:$0xff] %v15490_v21  ;;  %v15494_v53 = vpop.f32.mrf.mxu0 }
 0x7fe   : > { %v5229_v24 = vpop.f32.mrf.mxu1 }
 0x7ff   : > { %v15496_v39 = vadd.f32 %v5229_v24, %v5141_v12  ;;  %v5007_v59 = vpop.f32.mrf.mxu2 }
 0x800   : > { %v5008_v23 = vadd.f32 %v5007_v59, %v15220_v49  ;;  %5856 = vmatmul.bf16.gmra.mxu0 %v17941_v25 }
 0x801   : > { %17940 = vst [vmem:[#allocation231_spill] sm:$0xff] %v15496_v39 }
 0x802   : > { %v5096_v35 = vpop.f32.mrf.mxu3 }
 0x803   : > { %v15500_v58 = vadd.f32 %v5096_v35, %v5008_v23  ;;  %v10149_v23 = vld [vmem:[#allocation6 + $0x90] sm:$0xf]  ;;  %v10944_v35 = vld [vmem:[#allocation6 + $0x94] sm:$0xf0] }
 0x804   : > { %5325 = vmatmul.bf16.gmra.mxu2 %v17709_v46  ;;  %v10150_v52 = vor.u32 %v10944_v35, %v10149_v23  ;;  %v5146_v46 = vadd.f32 %v15315_v3, %v15452_v26  ;;  %v17948_v23 = vld [vmem:[#allocation69_spill] sm:$0xff] }
 0x805   : > { %17942 = vst [vmem:[#allocation209_spill] sm:$0xff] %v15500_v58  ;;  %v15506_v32 = vpop.f32.mrf.mxu0  ;;  %v17946_v58 = vld [vmem:[#allocation210_spill] sm:$0xff] }
 0x806   : > { %v5232_v47 = vpop.f32.mrf.mxu1  ;;  %5933 = vmatpush.bf16.msra.mxu1 %v10150_v52  ;;  %v10111_v52 = vld [vmem:[#allocation6 + $0x48] sm:$0xf0] }
 0x807   : > { %5414 = vmatmul.bf16.gmra.mxu3 %v12506_v37  ;;  %v15508_v5 = vadd.f32 %v5232_v47, %v5144_v60  ;;  %v5010_v57 = vpop.f32.mrf.mxu2 }
 0x808   : > { %v5011_v12 = vadd.f32 %v5010_v57, %v15220_v49 }
 0x809   : > { %17943 = vst [vmem:[#allocation232_spill] sm:$0xff] %v15508_v5  ;;  %5271 = vmatmul.bf16.gmra.mxu1 %v12750_v19 }
 0x80a   : > { %v5099_v24 = vpop.f32.mrf.mxu3 }
 0x80b   : > { %v15512_v59 = vadd.f32 %v5099_v24, %v5011_v12  ;;  %v5149_v24 = vadd.f32 %v15325_v45, %v15452_v26  ;;  %v5151_v45 = vadd.f32 %v15337_v11, %v15452_v26 }
 0x80d   : > { %17944 = vst [vmem:[#allocation233_spill] sm:$0xff] %v15512_v59  ;;  %v15516_v37 = vpop.f32.mrf.mxu0  ;;  %v10175_v59 = vld [vmem:[#allocation6 + $0xc8] sm:$0xf0] }
 0x80e   : > { %v5234_v39 = vpop.f32.mrf.mxu1 }
 0x80f   : > { %v15518_v60 = vadd.f32 %v5234_v39, %v5146_v46  ;;  %v5012_v47 = vpop.f32.mrf.mxu2  ;;  %v10933_v39 = vld [vmem:[#allocation6 + $0x44] sm:$0xf] }
 0x810   : > { %v5013_v57 = vadd.f32 %v5012_v47, %v15220_v49  ;;  %5861 = vmatmul.bf16.gmra.mxu0 %v17946_v58  ;;  %v10114_v47 = vor.u32 %v10933_v39, %v10111_v52 }
 0x811   : > { %17945 = vst [vmem:[#allocation234_spill] sm:$0xff] %v15518_v60  ;;  %v10949_v60 = vld [vmem:[#allocation6 + $0xc4] sm:$0xf] }
 0x812   : > { %v5101_v5 = vpop.f32.mrf.mxu3  ;;  %6019 = vmatpush.bf16.msrb.mxu2 %v10114_v47  ;;  %v17954_v47 = vld [vmem:[#allocation74_spill] sm:$0xff] }
 0x813   : > { %v15522_v12 = vadd.f32 %v5101_v5, %v5013_v57  ;;  %v10178_v5 = vor.u32 %v10949_v60, %v10175_v59 }
 0x814   : > { %5330 = vmatmul.bf16.gmra.mxu2 %v17948_v23 }
 0x815   : > { %17947 = vst [vmem:[#allocation210_spill] sm:$0xff] %v15522_v12  ;;  %v15528_v3 = vpop.f32.mrf.mxu0  ;;  %6108 = vmatpush.bf16.msrb.mxu3 %v10178_v5 }
 0x816   : > { %v5237_v35 = vpop.f32.mrf.mxu1 }
 0x817   : > { %5419 = vmatmul.bf16.gmra.mxu3 %v12536_v33  ;;  %v15530_v46 = vadd.f32 %v5237_v35, %v5149_v24  ;;  %v5015_v62 = vpop.f32.mrf.mxu2 }
 0x818   : > { %v5016_v57 = vadd.f32 %v5015_v62, %v15220_v49  ;;  %v17952_v62 = vld [vmem:[#allocation211_spill] sm:$0xff] }
 0x819   : > { %17949 = vst [vmem:[#allocation69_spill] sm:$0xff] %v15530_v46  ;;  %5276 = vmatmul.bf16.gmra.mxu1 %v12780_v13  ;;  %v17958_v46 = vld [vmem:[#allocation212_spill] sm:$0xff] }
 0x81a   : > { %v5104_v12 = vpop.f32.mrf.mxu3 }
 0x81b   : > { %v15534_v33 = vadd.f32 %v5104_v12, %v5016_v57  ;;  %v5154_v12 = vadd.f32 %v15359_v10, %v15452_v26 }
 0x81d   : > { %17950 = vst [vmem:[#allocation235_spill] sm:$0xff] %v15534_v33  ;;  %v15538_v23 = vpop.f32.mrf.mxu0 }
 0x81e   : > { %v5239_v24 = vpop.f32.mrf.mxu1 }
 0x81f   : > { %v15540_v35 = vadd.f32 %v5239_v24, %v5151_v45  ;;  %v5017_v39 = vpop.f32.mrf.mxu2 }
 0x820   : > { %v5018_v59 = vadd.f32 %v5017_v39, %v15220_v49  ;;  %5866 = vmatmul.bf16.gmra.mxu0 %v17952_v62 }
 0x821   : > { %17951 = vst [vmem:[#allocation236_spill] sm:$0xff] %v15540_v35  ;;  %v10942_v35 = vld [vmem:[#allocation6 + $0x84] sm:$0xf0] }
 0x822   : > { %v5106_v60 = vpop.f32.mrf.mxu3 }
 0x823   : > { %v15544_v52 = vadd.f32 %v5106_v60, %v5018_v59  ;;  %v10141_v60 = vld [vmem:[#allocation6 + $0x80] sm:$0xf] }
 0x824   : > { %5335 = vmatmul.bf16.gmra.mxu2 %v17954_v47  ;;  %v10142_v10 = vor.u32 %v10942_v35, %v10141_v60  ;;  %v5156_v47 = vadd.f32 %v15371_v4, %v15452_v26  ;;  %v5159_v35 = vadd.f32 %v15381_v20, %v15452_v26  ;;  %v10103_v60 = vld [vmem:[#allocation6 + $0x38] sm:$0xf0] }
 0x825   : > { %17953 = vst [vmem:[#allocation211_spill] sm:$0xff] %v15544_v52  ;;  %v15550_v11 = vpop.f32.mrf.mxu0 }
 0x826   : > { %v5242_v5 = vpop.f32.mrf.mxu1  ;;  %5934 = vmatpush.bf16.msra.mxu1 %v10142_v10 }
 0x827   : > { %5424 = vmatmul.bf16.gmra.mxu3 %v12578_v56  ;;  %v15552_v57 = vadd.f32 %v5242_v5, %v5154_v12  ;;  %v5020_v45 = vpop.f32.mrf.mxu2 }
 0x828   : > { %v5021_v24 = vadd.f32 %v5020_v45, %v15220_v49 }
 0x829   : > { %17955 = vst [vmem:[#allocation74_spill] sm:$0xff] %v15552_v57  ;;  %5281 = vmatmul.bf16.gmra.mxu1 %v12816_v1 }
 0x82a   : > { %v5109_v39 = vpop.f32.mrf.mxu3 }
 0x82b   : > { %v15556_v59 = vadd.f32 %v5109_v39, %v5021_v24 }
 0x82d   : > { %17956 = vst [vmem:[#allocation237_spill] sm:$0xff] %v15556_v59  ;;  %v15560_v56 = vpop.f32.mrf.mxu0 }
 0x82e   : > { %v5244_v52 = vpop.f32.mrf.mxu1 }
 0x82f   : > { %v15562_v12 = vadd.f32 %v5244_v52, %v5156_v47  ;;  %v5022_v5 = vpop.f32.mrf.mxu2  ;;  %v10931_v52 = vld [vmem:[#allocation6 + $0x34] sm:$0xf] }
 0x830   : > { %v5023_v45 = vadd.f32 %v5022_v5, %v15220_v49  ;;  %5871 = vmatmul.bf16.gmra.mxu0 %v17958_v46  ;;  %v10106_v47 = vor.u32 %v10931_v52, %v10103_v60  ;;  %v10947_v5 = vld [vmem:[#allocation6 + $0xb4] sm:$0xf] }
 0x831   : > { %17957 = vst [vmem:[#allocation238_spill] sm:$0xff] %v15562_v12  ;;  %v10167_v12 = vld [vmem:[#allocation6 + $0xb8] sm:$0xf0] }
 0x832   : > { %v5111_v57 = vpop.f32.mrf.mxu3  ;;  %6020 = vmatpush.bf16.msrb.mxu2 %v10106_v47 }
 0x833   : > { %v15566_v24 = vadd.f32 %v5111_v57, %v5023_v45  ;;  %v10170_v57 = vor.u32 %v10947_v5, %v10167_v12 }
 0x834   : > { %5340 = vmatmul.bf16.gmra.mxu2 %v17886_v18  ;;  %v5161_v18 = vadd.f32 %v15393_v55, %v15452_v26 }
 0x835   : > { %17959 = vst [vmem:[#allocation212_spill] sm:$0xff] %v15566_v24  ;;  %v15572_v4 = vpop.f32.mrf.mxu0  ;;  %6109 = vmatpush.bf16.msrb.mxu3 %v10170_v57 }
 0x836   : > { %v5247_v39 = vpop.f32.mrf.mxu1 }
 0x837   : > { %5429 = vmatmul.bf16.gmra.mxu3 %v12620_v14  ;;  %v15574_v10 = vadd.f32 %v5247_v39, %v5159_v35  ;;  %v5025_v59 = vpop.f32.mrf.mxu2 }
 0x838   : > { %v5026_v45 = vadd.f32 %v5025_v59, %v15220_v49  ;;  %v17963_v59 = vld [vmem:[#allocation44_spill] sm:$0xff] }
 0x839   : > { %17960 = vst [vmem:[#allocation239_spill] sm:$0xff] %v15574_v10  ;;  %5286 = vmatmul.bf16.gmra.mxu1 %v12846_v27 }
 0x83a   : > { %v5114_v24 = vpop.f32.mrf.mxu3 }
 0x83b   : > { %v15578_v14 = vadd.f32 %v5114_v24, %v5026_v45  ;;  %v5164_v24 = vadd.f32 %v15403_v6, %v15452_v26  ;;  %v10325_v6 = vld [vmem:[#allocation7 + $0xf0] sm:$0xf] }
 0x83d   : > { %17961 = vst [vmem:[#allocation240_spill] sm:$0xff] %v15578_v14  ;;  %v15582_v20 = vpop.f32.mrf.mxu0 }
 0x83e   : > { %v5249_v35 = vpop.f32.mrf.mxu1 }
 0x83f   : > { %v15584_v39 = vadd.f32 %v5249_v35, %v5161_v18  ;;  %v5027_v52 = vpop.f32.mrf.mxu2 }
 0x840   : > { %v5028_v12 = vadd.f32 %v5027_v52, %v15220_v49  ;;  %5876 = vmatmul.bf16.gmra.mxu0 %v17963_v59 }
 0x841   : > { %17962 = vst [vmem:[#allocation241_spill] sm:$0xff] %v15584_v39 }
 0x842   : > { %v5116_v60 = vpop.f32.mrf.mxu3 }
 0x843   : > { %v15588_v5 = vadd.f32 %v5116_v60, %v5028_v12  ;;  %v10261_v12 = vld [vmem:[#allocation7 + $0x70] sm:$0xf]  ;;  %v10972_v60 = vld [vmem:[#allocation7 + $0x74] sm:$0xf0] }
 0x844   : > { %5345 = vmatmul.bf16.gmra.mxu2 %v17798_v16  ;;  %v10262_v39 = vor.u32 %v10972_v60, %v10261_v12  ;;  %v10988_v16 = vld [vmem:[#allocation7 + $0xf4] sm:$0xf0]  ;;  %v5169_v12 = vadd.f32 %v15425_v0, %v15452_v26  ;;  %v10929_v60 = vld [vmem:[#allocation6 + $0x24] sm:$0xf]  ;;  %v10159_v0 = vld [vmem:[#allocation6 + $0xa8] sm:$0xf0] }
 0x845   : > { %17964 = vst [vmem:[#allocation44_spill] sm:$0xff] %v15588_v5  ;;  %v15594_v55 = vpop.f32.mrf.mxu0  ;;  %v10326_v5 = vor.u32 %v10988_v16, %v10325_v6  ;;  %v10095_v6 = vld [vmem:[#allocation6 + $0x28] sm:$0xf0] }
 0x846   : > { %v5252_v47 = vpop.f32.mrf.mxu1  ;;  %6616 = vmatpush.bf16.msrb.mxu0 %v10262_v39 }
 0x847   : > { %5434 = vmatmul.bf16.gmra.mxu3 %v12640_v7  ;;  %v15596_v57 = vadd.f32 %v5252_v47, %v5164_v24  ;;  %v5030_v45 = vpop.f32.mrf.mxu2  ;;  %v5166_v7 = vadd.f32 %v15415_v36, %v15452_v26  ;;  %6705 = vmatpush.bf16.msrb.mxu1 %v10326_v5  ;;  %v11174_v36 = vld [vmem:[%s17330_s6 + $0x8] sm:$0xf] }
 0x848   : > { %v5031_v18 = vadd.f32 %v5030_v45, %v15220_v49  ;;  %v15618_v39 = vperm.slane %v11174_v36, 3  ;;  %v5171_v36 = vadd.f32 %v15437_v34, %v15452_v26 }
 0x849   : > { %17965 = vst [vmem:[#allocation242_spill] sm:$0xff] %v15596_v57  ;;  %5291 = vmatmul.bf16.gmra.mxu1 %v12882_v15  ;;  %v17968_v57 = vld [vmem:[#allocation46_spill] sm:$0xff] }
 0x84a   : > { %v5119_v35 = vpop.f32.mrf.mxu3 }
 0x84b   : > { %v15600_v52 = vadd.f32 %v5119_v35, %v5031_v18 }
 0x84d   : > { %17966 = vst [vmem:[#allocation243_spill] sm:$0xff] %v15600_v52  ;;  %v15604_v10 = vpop.f32.mrf.mxu0 }
 0x84e   : > { %v5254_v24 = vpop.f32.mrf.mxu1 }
 0x84f   : > { %v15606_v47 = vadd.f32 %v5254_v24, %v5166_v7  ;;  %v5032_v45 = vpop.f32.mrf.mxu2  ;;  %v10098_v7 = vor.u32 %v10929_v60, %v10095_v6  ;;  %v10945_v24 = vld [vmem:[#allocation6 + $0xa4] sm:$0xf] }
 0x850   : > { %v5033_v18 = vadd.f32 %v5032_v45, %v15220_v49  ;;  %5881 = vmatmul.bf16.gmra.mxu0 %v17968_v57 }
 0x851   : > { %17967 = vst [vmem:[#allocation244_spill] sm:$0xff] %v15606_v47  ;;  %6021 = vmatpush.bf16.msrb.mxu2 %v10098_v7  ;;  %v5174_v7 = vadd.f32 %v15447_v42, %v15452_v26  ;;  %v10317_v42 = vld [vmem:[#allocation7 + $0xe0] sm:$0xf] }
 0x852   : > { %v5121_v35 = vpop.f32.mrf.mxu3 }
 0x853   : > { %v15610_v52 = vadd.f32 %v5121_v35, %v5033_v18 }
 0x854   : > { %5350 = vmatmul.bf16.gmra.mxu2 %v17897_v2  ;;  %v10162_v2 = vor.u32 %v10945_v24, %v10159_v0  ;;  %v17973_v0 = vld [vmem:[#allocation48_spill] sm:$0xff] }
 0x855   : > { %17969 = vst [vmem:[#allocation46_spill] sm:$0xff] %v15610_v52  ;;  %v15621_v5 = vpop.f32.mrf.mxu0 }
 0x856   : > { %v5257_v49 = vpop.f32.mrf.mxu1  ;;  %6110 = vmatpush.bf16.msrb.mxu3 %v10162_v2 }
 0x857   : > { %5439 = vmatmul.bf16.gmra.mxu3 %v12684_v31  ;;  %v15623_v16 = vadd.f32 %v5257_v49, %v5169_v12  ;;  %v5311_v45 = vpop.f32.mrf.mxu2 }
 0x858   : > { %v5312_v18 = vadd.f32 %v5311_v45, %v15618_v39 }
 0x859   : > { %17970 = vst [vmem:[#allocation245_spill] sm:$0xff] %v15623_v16  ;;  %5296 = vmatmul.bf16.gmra.mxu1 %v12932_v43 }
 0x85a   : > { %v5400_v35 = vpop.f32.mrf.mxu3 }
 0x85b   : > { %v15627_v31 = vadd.f32 %v5400_v35, %v5312_v18 }
 0x85d   : > { %17971 = vst [vmem:[#allocation246_spill] sm:$0xff] %v15627_v31  ;;  %v15631_v12 = vpop.f32.mrf.mxu0 }
 0x85e   : > { %v5259_v47 = vpop.f32.mrf.mxu1 }
 0x85f   : > { %v15633_v49 = vadd.f32 %v5259_v47, %v5171_v36  ;;  %v5313_v60 = vpop.f32.mrf.mxu2 }
 0x860   : > { %v5314_v6 = vadd.f32 %v5313_v60, %v15618_v39  ;;  %5886 = vmatmul.bf16.gmra.mxu0 %v17973_v0  ;;  %v17976_v60 = vld [vmem:[#allocation19_spill] sm:$0xff] }
 0x861   : > { %17972 = vst [vmem:[#allocation247_spill] sm:$0xff] %v15633_v49  ;;  %v10970_v49 = vld [vmem:[#allocation7 + $0x64] sm:$0xf0] }
 0x862   : > { %v5402_v24 = vpop.f32.mrf.mxu3 }
 0x863   : > { %v15637_v45 = vadd.f32 %v5402_v24, %v5314_v6  ;;  %v10253_v24 = vld [vmem:[#allocation7 + $0x60] sm:$0xf] }
 0x864   : > { %5355 = vmatmul.bf16.gmra.mxu2 %v12432_v28  ;;  %v10986_v28 = vld [vmem:[#allocation7 + $0xe4] sm:$0xf0] }
 0x865   : > { %17974 = vst [vmem:[#allocation48_spill] sm:$0xff] %v15637_v45  ;;  %v15643_v2 = vpop.f32.mrf.mxu0  ;;  %v10254_v45 = vor.u32 %v10970_v49, %v10253_v24  ;;  %v10318_v16 = vor.u32 %v10986_v28, %v10317_v42  ;;  %v5179_v49 = vadd.f32 %v15472_v9, %v15452_v26  ;;  %v10943_v28 = vld [vmem:[#allocation6 + $0x94] sm:$0xf]  ;;  %v17982_v9 = vld [vmem:[#allocation21_spill] sm:$0xff] }
 0x866   : > { %v5262_v34 = vpop.f32.mrf.mxu1 }
 0x867   : > { %5444 = vmatmul.bf16.gmra.mxu3 %v12714_v17  ;;  %v15645_v47 = vadd.f32 %v5262_v34, %v5174_v7  ;;  %v5316_v18 = vpop.f32.mrf.mxu2  ;;  %v5176_v17 = vadd.f32 %v15462_v63, %v15452_v26  ;;  %6617 = vmatpush.bf16.msrb.mxu0 %v10254_v45 }
 0x868   : > { %v5317_v35 = vadd.f32 %v5316_v18, %v15618_v39  ;;  %6706 = vmatpush.bf16.msrb.mxu1 %v10318_v16  ;;  %v10087_v16 = vld [vmem:[#allocation6 + $0x18] sm:$0xf0] }
 0x869   : > { %17975 = vst [vmem:[#allocation248_spill] sm:$0xff] %v15645_v47  ;;  %5935 = vmatmul.bf16.vlgmr.msra.gmra.mxu1 %v17976_v60  ;;  %v17979_v47 = vld [vmem:[#allocation23_spill] sm:$0xff] }
 0x86a   : > { %v5405_v36 = vpop.f32.mrf.mxu3 }
 0x86b   : > { %v15649_v6 = vadd.f32 %v5405_v36, %v5317_v35 }
 0x86d   : > { %17977 = vst [vmem:[#allocation19_spill] sm:$0xff] %v15649_v6  ;;  %v15653_v7 = vpop.f32.mrf.mxu0 }
 0x86e   : > { %v5264_v31 = vpop.f32.mrf.mxu1 }
 0x86f   : > { %v15655_v34 = vadd.f32 %v5264_v31, %v5176_v17  ;;  %v5318_v18 = vpop.f32.mrf.mxu2  ;;  %v10927_v31 = vld [vmem:[#allocation6 + $0x14] sm:$0xf]  ;;  %v10151_v17 = vld [vmem:[#allocation6 + $0x98] sm:$0xf0] }
 0x870   : > { %v5319_v35 = vadd.f32 %v5318_v18, %v15618_v39  ;;  %5891 = vmatmul.bf16.gmra.mxu0 %v17979_v47  ;;  %v10090_v42 = vor.u32 %v10927_v31, %v10087_v16 }
 0x871   : > { %17978 = vst [vmem:[#allocation249_spill] sm:$0xff] %v15655_v34 }
 0x872   : > { %v5407_v36 = vpop.f32.mrf.mxu3  ;;  %6022 = vmatpush.bf16.msrb.mxu2 %v10090_v42  ;;  %v17987_v42 = vld [vmem:[#allocation88_spill] sm:$0xff] }
 0x873   : > { %v15659_v6 = vadd.f32 %v5407_v36, %v5319_v35  ;;  %v10154_v35 = vor.u32 %v10943_v28, %v10151_v17  ;;  %v17985_v17 = vld [vmem:[#allocation25_spill] sm:$0xff] }
 0x874   : > { %5360 = vmatmul.bf16.gmra.mxu2 %v12463_v30 }
 0x875   : > { %17980 = vst [vmem:[#allocation23_spill] sm:$0xff] %v15659_v6  ;;  %v15665_v45 = vpop.f32.mrf.mxu0  ;;  %6111 = vmatpush.bf16.msrb.mxu3 %v10154_v35 }
 0x876   : > { %v5267_v63 = vpop.f32.mrf.mxu1 }
 0x877   : > { %5449 = vmatmul.bf16.gmra.mxu3 %v12750_v19  ;;  %v15667_v24 = vadd.f32 %v5267_v63, %v5179_v49  ;;  %v5321_v18 = vpop.f32.mrf.mxu2  ;;  %v5181_v19 = vadd.f32 %v15484_v44, %v15452_v26 }
 0x878   : > { %v5322_v36 = vadd.f32 %v5321_v18, %v15618_v39 }
 0x879   : > { %17981 = vst [vmem:[#allocation250_spill] sm:$0xff] %v15667_v24  ;;  %5940 = vmatmul.bf16.gmra.mxu1 %v17982_v9 }
 0x87a   : > { %v5410_v6 = vpop.f32.mrf.mxu3 }
 0x87b   : > { %v15671_v30 = vadd.f32 %v5410_v6, %v5322_v36  ;;  %v5184_v6 = vadd.f32 %v15494_v53, %v15452_v26  ;;  %v10309_v53 = vld [vmem:[#allocation7 + $0xd0] sm:$0xf] }
 0x87d   : > { %17983 = vst [vmem:[#allocation21_spill] sm:$0xff] %v15671_v30  ;;  %v15675_v49 = vpop.f32.mrf.mxu0 }
 0x87e   : > { %v5269_v34 = vpop.f32.mrf.mxu1 }
 0x87f   : > { %v15677_v63 = vadd.f32 %v5269_v34, %v5181_v19  ;;  %v5323_v31 = vpop.f32.mrf.mxu2 }
 0x880   : > { %v5324_v16 = vadd.f32 %v5323_v31, %v15618_v39  ;;  %5896 = vmatmul.bf16.gmra.mxu0 %v17985_v17 }
 0x881   : > { %17984 = vst [vmem:[#allocation251_spill] sm:$0xff] %v15677_v63  ;;  %v17989_v63 = vld [vmem:[#allocation52_spill] sm:$0xff] }
 0x882   : > { %v5412_v28 = vpop.f32.mrf.mxu3 }
 0x883   : > { %v15681_v18 = vadd.f32 %v5412_v28, %v5324_v16  ;;  %v10245_v28 = vld [vmem:[#allocation7 + $0x50] sm:$0xf] }
 0x884   : > { %5365 = vmatmul.bf16.gmra.mxu2 %v17987_v42  ;;  %v10984_v42 = vld [vmem:[#allocation7 + $0xd4] sm:$0xf0] }
 0x885   : > { %17986 = vst [vmem:[#allocation25_spill] sm:$0xff] %v15681_v18  ;;  %v15687_v35 = vpop.f32.mrf.mxu0  ;;  %v10968_v18 = vld [vmem:[#allocation7 + $0x54] sm:$0xf0]  ;;  %v10310_v30 = vor.u32 %v10984_v42, %v10309_v53 }
 0x886   : > { %v5272_v44 = vpop.f32.mrf.mxu1  ;;  %v10246_v24 = vor.u32 %v10968_v18, %v10245_v28  ;;  %v5189_v18 = vadd.f32 %v15516_v37, %v15452_v26  ;;  %v17996_v37 = vld [vmem:[#allocation92_spill] sm:$0xff] }
 0x887   : > { %5454 = vmatmul.bf16.gmra.mxu3 %v12780_v13  ;;  %v15689_v34 = vadd.f32 %v5272_v44, %v5184_v6  ;;  %v5326_v36 = vpop.f32.mrf.mxu2  ;;  %v5186_v13 = vadd.f32 %v15506_v32, %v15452_v26  ;;  %6707 = vmatpush.bf16.msrb.mxu1 %v10310_v30  ;;  %v17994_v32 = vld [vmem:[#allocation89_spill] sm:$0xff]  ;;  %v10079_v30 = vld [vmem:[#allocation6 + $0x8] sm:$0xf0] }
 0x888   : > { %v5327_v19 = vadd.f32 %v5326_v36, %v15618_v39  ;;  %6618 = vmatpush.bf16.msrb.mxu0 %v10246_v24 }
 0x889   : > { %17988 = vst [vmem:[#allocation88_spill] sm:$0xff] %v15689_v34  ;;  %5945 = vmatmul.bf16.gmra.mxu1 %v17989_v63  ;;  %v17992_v34 = vld [vmem:[#allocation27_spill] sm:$0xff] }
 0x88a   : > { %v5415_v31 = vpop.f32.mrf.mxu3 }
 0x88b   : > { %v15693_v16 = vadd.f32 %v5415_v31, %v5327_v19 }
 0x88d   : > { %17990 = vst [vmem:[#allocation52_spill] sm:$0xff] %v15693_v16  ;;  %v15697_v6 = vpop.f32.mrf.mxu0 }
 0x88e   : > { %v5274_v52 = vpop.f32.mrf.mxu1 }
 0x88f   : > { %v15699_v44 = vadd.f32 %v5274_v52, %v5186_v13  ;;  %v5328_v36 = vpop.f32.mrf.mxu2  ;;  %v10925_v52 = vld [vmem:[#allocation6 + $0x4] sm:$0xf] }
 0x890   : > { %v5329_v19 = vadd.f32 %v5328_v36, %v15618_v39  ;;  %5901 = vmatmul.bf16.gmra.mxu0 %v17992_v34  ;;  %v10082_v42 = vor.u32 %v10925_v52, %v10079_v30  ;;  %v10941_v13 = vld [vmem:[#allocation6 + $0x84] sm:$0xf]  ;;  %v10143_v36 = vld [vmem:[#allocation6 + $0x88] sm:$0xf0] }
 0x891   : > { %17991 = vst [vmem:[#allocation252_spill] sm:$0xff] %v15699_v44 }
 0x892   : > { %v5417_v31 = vpop.f32.mrf.mxu3  ;;  %6023 = vmatpush.bf16.msrb.mxu2 %v10082_v42  ;;  %v18001_v42 = vld [vmem:[#allocation90_spill] sm:$0xff] }
 0x893   : > { %v15703_v16 = vadd.f32 %v5417_v31, %v5329_v19  ;;  %v10146_v19 = vor.u32 %v10941_v13, %v10143_v36 }
 0x894   : > { %5370 = vmatmul.bf16.gmra.mxu2 %v17994_v32  ;;  %v5191_v32 = vadd.f32 %v15528_v3, %v15452_v26 }
 0x895   : > { %17993 = vst [vmem:[#allocation27_spill] sm:$0xff] %v15703_v16  ;;  %v15709_v24 = vpop.f32.mrf.mxu0  ;;  %6112 = vmatpush.bf16.msrb.mxu3 %v10146_v19 }
 0x896   : > { %v5277_v28 = vpop.f32.mrf.mxu1 }
 0x897   : > { %5459 = vmatmul.bf16.gmra.mxu3 %v12816_v1  ;;  %v15711_v53 = vadd.f32 %v5277_v28, %v5189_v18  ;;  %v5331_v44 = vpop.f32.mrf.mxu2 }
 0x898   : > { %v5332_v31 = vadd.f32 %v5331_v44, %v15618_v39  ;;  %v17999_v44 = vld [vmem:[#allocation29_spill] sm:$0xff] }
 0x899   : > { %17995 = vst [vmem:[#allocation89_spill] sm:$0xff] %v15711_v53  ;;  %5950 = vmatmul.bf16.gmra.mxu1 %v17996_v37 }
 0x89a   : > { %v5420_v16 = vpop.f32.mrf.mxu3 }
 0x89b   : > { %v15715_v1 = vadd.f32 %v5420_v16, %v5332_v31  ;;  %v5194_v16 = vadd.f32 %v15538_v23, %v15452_v26  ;;  %v10301_v23 = vld [vmem:[#allocation7 + $0xc0] sm:$0xf] }
 0x89d   : > { %17997 = vst [vmem:[#allocation92_spill] sm:$0xff] %v15715_v1  ;;  %v15719_v18 = vpop.f32.mrf.mxu0 }
 0x89e   : > { %v5279_v14 = vpop.f32.mrf.mxu1 }
 0x89f   : > { %v15721_v28 = vadd.f32 %v5279_v14, %v5191_v32  ;;  %v5333_v52 = vpop.f32.mrf.mxu2 }
 0x8a0   : > { %v5334_v30 = vadd.f32 %v5333_v52, %v15618_v39  ;;  %5906 = vmatmul.bf16.gmra.mxu0 %v17999_v44 }
 0x8a1   : > { %17998 = vst [vmem:[#allocation253_spill] sm:$0xff] %v15721_v28  ;;  %v18003_v28 = vld [vmem:[#allocation56_spill] sm:$0xff] }
 0x8a2   : > { %v5422_v13 = vpop.f32.mrf.mxu3 }
 0x8a3   : > { %v15725_v36 = vadd.f32 %v5422_v13, %v5334_v30  ;;  %v10237_v13 = vld [vmem:[#allocation7 + $0x40] sm:$0xf] }
 0x8a4   : > { %5375 = vmatmul.bf16.gmra.mxu2 %v18001_v42  ;;  %v10982_v42 = vld [vmem:[#allocation7 + $0xc4] sm:$0xf0] }
 0x8a5   : > { %18000 = vst [vmem:[#allocation29_spill] sm:$0xff] %v15725_v36  ;;  %v15731_v19 = vpop.f32.mrf.mxu0  ;;  %v10966_v36 = vld [vmem:[#allocation7 + $0x44] sm:$0xf0]  ;;  %v10302_v1 = vor.u32 %v10982_v42, %v10301_v23  ;;  %v10987_v42 = vld [vmem:[#allocation7 + $0xf4] sm:$0xf] }
 0x8a6   : > { %v5282_v3 = vpop.f32.mrf.mxu1  ;;  %v10238_v53 = vor.u32 %v10966_v36, %v10237_v13  ;;  %v5199_v36 = vadd.f32 %v15560_v56, %v15452_v26  ;;  %v18009_v56 = vld [vmem:[#allocation93_spill] sm:$0xff] }
 0x8a7   : > { %5464 = vmatmul.bf16.gmra.mxu3 %v12846_v27  ;;  %v15733_v14 = vadd.f32 %v5282_v3, %v5194_v16  ;;  %v5336_v31 = vpop.f32.mrf.mxu2  ;;  %v5196_v27 = vadd.f32 %v15550_v11, %v15452_v26  ;;  %6708 = vmatpush.bf16.msrb.mxu1 %v10302_v1  ;;  %v10263_v1 = vld [vmem:[#allocation7 + $0x78] sm:$0xf0] }
 0x8a8   : > { %v5337_v32 = vadd.f32 %v5336_v31, %v15618_v39  ;;  %6619 = vmatpush.bf16.msrb.mxu0 %v10238_v53 }
 0x8a9   : > { %18002 = vst [vmem:[#allocation90_spill] sm:$0xff] %v15733_v14  ;;  %5955 = vmatmul.bf16.gmra.mxu1 %v18003_v28  ;;  %v18006_v14 = vld [vmem:[#allocation31_spill] sm:$0xff] }
 0x8aa   : > { %v5425_v52 = vpop.f32.mrf.mxu3 }
 0x8ab   : > { %v15737_v30 = vadd.f32 %v5425_v52, %v5337_v32 }
 0x8ad   : > { %18004 = vst [vmem:[#allocation56_spill] sm:$0xff] %v15737_v30  ;;  %v15741_v16 = vpop.f32.mrf.mxu0 }
 0x8ae   : > { %v5284_v33 = vpop.f32.mrf.mxu1 }
 0x8af   : > { %v15743_v3 = vadd.f32 %v5284_v33, %v5196_v27  ;;  %v5338_v31 = vpop.f32.mrf.mxu2  ;;  %v10971_v33 = vld [vmem:[#allocation7 + $0x74] sm:$0xf]  ;;  %v10327_v27 = vld [vmem:[#allocation7 + $0xf8] sm:$0xf0] }
 0x8b0   : > { %v5339_v32 = vadd.f32 %v5338_v31, %v15618_v39  ;;  %5911 = vmatmul.bf16.gmra.mxu0 %v18006_v14  ;;  %v10266_v23 = vor.u32 %v10971_v33, %v10263_v1 }
 0x8b1   : > { %18005 = vst [vmem:[#allocation254_spill] sm:$0xff] %v15743_v3 }
 0x8b2   : > { %v5427_v52 = vpop.f32.mrf.mxu3  ;;  %6794 = vmatpush.bf16.msra.mxu2 %v10266_v23 }
 0x8b3   : > { %v15747_v30 = vadd.f32 %v5427_v52, %v5339_v32  ;;  %v10330_v32 = vor.u32 %v10987_v42, %v10327_v27  ;;  %v18012_v27 = vld [vmem:[#allocation33_spill] sm:$0xff] }
 0x8b4   : > { %5380 = vmatmul.bf16.gmra.mxu2 %v17924_v38  ;;  %v5201_v38 = vadd.f32 %v15572_v4, %v15452_v26 }
 0x8b5   : > { %18007 = vst [vmem:[#allocation31_spill] sm:$0xff] %v15747_v30  ;;  %v15753_v53 = vpop.f32.mrf.mxu0  ;;  %6883 = vmatpush.bf16.msra.mxu3 %v10330_v32 }
 0x8b6   : > { %v5287_v11 = vpop.f32.mrf.mxu1 }
 0x8b7   : > { %5469 = vmatmul.bf16.gmra.mxu3 %v12882_v15  ;;  %v15755_v13 = vadd.f32 %v5287_v11, %v5199_v36  ;;  %v5341_v31 = vpop.f32.mrf.mxu2 }
 0x8b8   : > { %v5342_v52 = vadd.f32 %v5341_v31, %v15618_v39 }
 0x8b9   : > { %18008 = vst [vmem:[#allocation255_spill] sm:$0xff] %v15755_v13  ;;  %5960 = vmatmul.bf16.gmra.mxu1 %v18009_v56  ;;  %v10293_v13 = vld [vmem:[#allocation7 + $0xb0] sm:$0xf] }
 0x8ba   : > { %v5430_v30 = vpop.f32.mrf.mxu3 }
 0x8bb   : > { %v15759_v15 = vadd.f32 %v5430_v30, %v5342_v52  ;;  %v5204_v30 = vadd.f32 %v15582_v20, %v15452_v26  ;;  %v10229_v52 = vld [vmem:[#allocation7 + $0x30] sm:$0xf]  ;;  %v10962_v20 = vld [vmem:[#allocation7 + $0x24] sm:$0xf0] }
 0x8bd   : > { %18010 = vst [vmem:[#allocation93_spill] sm:$0xff] %v15759_v15  ;;  %v15763_v36 = vpop.f32.mrf.mxu0 }
 0x8be   : > { %v5289_v3 = vpop.f32.mrf.mxu1 }
 0x8bf   : > { %v15765_v11 = vadd.f32 %v5289_v3, %v5201_v38  ;;  %v5343_v33 = vpop.f32.mrf.mxu2  ;;  %v10964_v38 = vld [vmem:[#allocation7 + $0x34] sm:$0xf0] }
 0x8c0   : > { %v5344_v1 = vadd.f32 %v5343_v33, %v15618_v39  ;;  %5916 = vmatmul.bf16.gmra.mxu0 %v18012_v27 }
 0x8c1   : > { %18011 = vst [vmem:[#allocation256_spill] sm:$0xff] %v15765_v11 }
 0x8c2   : > { %v5432_v42 = vpop.f32.mrf.mxu3 }
 0x8c3   : > { %v15769_v31 = vadd.f32 %v5432_v42, %v5344_v1  ;;  %v18015_v1 = vld [vmem:[#allocation60_spill] sm:$0xff]  ;;  %v10230_v42 = vor.u32 %v10964_v38, %v10229_v52 }
 0x8c4   : > { %5385 = vmatmul.bf16.gmra.mxu2 %v17846_v8  ;;  %v10221_v8 = vld [vmem:[#allocation7 + $0x20] sm:$0xf]  ;;  %v10960_v52 = vld [vmem:[#allocation7 + $0x14] sm:$0xf0] }
 0x8c5   : > { %18013 = vst [vmem:[#allocation33_spill] sm:$0xff] %v15769_v31  ;;  %v15775_v23 = vpop.f32.mrf.mxu0  ;;  %6620 = vmatpush.bf16.msrb.mxu0 %v10230_v42  ;;  %v18018_v42 = vld [vmem:[#allocation35_spill] sm:$0xff] }
 0x8c6   : > { %v5292_v4 = vpop.f32.mrf.mxu1 }
 0x8c7   : > { %5474 = vmatmul.bf16.gmra.mxu3 %v12932_v43  ;;  %v15777_v3 = vadd.f32 %v5292_v4, %v5204_v30  ;;  %v5346_v32 = vpop.f32.mrf.mxu2  ;;  %v5206_v43 = vadd.f32 %v15594_v55, %v15452_v26  ;;  %v10980_v30 = vld [vmem:[#allocation7 + $0xb4] sm:$0xf0]  ;;  %v10222_v4 = vor.u32 %v10962_v20, %v10221_v8  ;;  %v10205_v8 = vld [vmem:[#allocation7] sm:$0xf]  ;;  %v10958_v20 = vld [vmem:[#allocation7 + $0x4] sm:$0xf0] }
 0x8c8   : > { %v5347_v33 = vadd.f32 %v5346_v32, %v15618_v39  ;;  %v10294_v21 = vor.u32 %v10980_v30, %v10293_v13  ;;  %v5209_v13 = vadd.f32 %v15604_v10, %v15452_v26  ;;  %v10969_v30 = vld [vmem:[#allocation7 + $0x64] sm:$0xf]  ;;  %v5211_v10 = vadd.f32 %v15621_v5, %v15452_v26 }
 0x8c9   : > { %18014 = vst [vmem:[#allocation257_spill] sm:$0xff] %v15777_v3  ;;  %5965 = vmatmul.bf16.gmra.mxu1 %v18015_v1  ;;  %6621 = vmatpush.bf16.msrb.mxu0 %v10222_v4  ;;  %v10255_v4 = vld [vmem:[#allocation7 + $0x68] sm:$0xf0] }
 0x8ca   : > { %v5435_v11 = vpop.f32.mrf.mxu3  ;;  %6709 = vmatpush.bf16.msrb.mxu1 %v10294_v21 }
 0x8cb   : > { %v15781_v31 = vadd.f32 %v5435_v11, %v5347_v33  ;;  %v10213_v11 = vld [vmem:[#allocation7 + $0x10] sm:$0xf] }
 0x8cc   : > { %v10214_v55 = vor.u32 %v10960_v52, %v10213_v11  ;;  %v10258_v52 = vor.u32 %v10969_v30, %v10255_v4 }
 0x8cd   : > { %18016 = vst [vmem:[#allocation60_spill] sm:$0xff] %v15781_v31  ;;  %v15785_v15 = vpop.f32.mrf.mxu0 }
 0x8ce   : > { %v5294_v3 = vpop.f32.mrf.mxu1  ;;  %6622 = vmatpush.bf16.msrb.mxu0 %v10214_v55  ;;  %v18021_v55 = vld [vmem:[#allocation62_spill] sm:$0xff]  ;;  %6795 = vmatpush.bf16.msra.mxu2 %v10258_v52 }
 0x8cf   : > { %v15787_v32 = vadd.f32 %v5294_v3, %v5206_v43  ;;  %v5348_v40 = vpop.f32.mrf.mxu2  ;;  %v10206_v3 = vor.u32 %v10958_v20, %v10205_v8  ;;  %v10319_v8 = vld [vmem:[#allocation7 + $0xe8] sm:$0xf0]  ;;  %v15810_v20 = vld [vmem:[%s17332_s8] sm:$0x3] }
 0x8d0   : > { %v5349_v38 = vadd.f32 %v5348_v40, %v15618_v39  ;;  %5921 = vmatmul.bf16.gmra.mxu0 %v18018_v42 }
 0x8d1   : > { %18017 = vst [vmem:[#allocation258_spill] sm:$0xff] %v15787_v32 }
 0x8d2   : > { %v5437_v33 = vpop.f32.mrf.mxu3  ;;  %6623 = vmatpush.bf16.msrb.mxu0 %v10206_v3 }
 0x8d3   : > { %v15791_v31 = vadd.f32 %v5437_v33, %v5349_v38 }
 0x8d4   : > { %6024 = vmatmul.bf16.vlgmr.msrb.gmra.mxu2 %v17931_v54 }
 0x8d5   : > { %18019 = vst [vmem:[#allocation35_spill] sm:$0xff] %v15791_v31  ;;  %v15797_v43 = vpop.f32.mrf.mxu0 }
 0x8d6   : > { %v5297_v21 = vpop.f32.mrf.mxu1 }
 0x8d7   : > { %6113 = vmatmul.bf16.vlgmr.msrb.gmra.mxu3 %v17976_v60  ;;  %v15799_v40 = vadd.f32 %v5297_v21, %v5209_v13  ;;  %v5351_v11 = vpop.f32.mrf.mxu2  ;;  %v10985_v60 = vld [vmem:[#allocation7 + $0xe4] sm:$0xf] }
 0x8d8   : > { %v5352_v38 = vadd.f32 %v5351_v11, %v15618_v39  ;;  %v10322_v21 = vor.u32 %v10985_v60, %v10319_v8  ;;  %v15817_v11 = vperm.slane %v15810_v20, 0 }
 0x8d9   : > { %18020 = vst [vmem:[#allocation259_spill] sm:$0xff] %v15799_v40  ;;  %5970 = vmatmul.bf16.gmra.mxu1 %v18021_v55  ;;  %v10285_v40 = vld [vmem:[#allocation7 + $0xa0] sm:$0xf] }
 0x8da   : > { %v5440_v33 = vpop.f32.mrf.mxu3  ;;  %6884 = vmatpush.bf16.msra.mxu3 %v10322_v21 }
 0x8db   : > { %v15803_v54 = vadd.f32 %v5440_v33, %v5352_v38  ;;  %v5848_v38 = vadd.f32 %v15631_v12, %v15817_v11  ;;  %v18028_v12 = vld [vmem:[#allocation65_spill] sm:$0xff] }
 0x8dd   : > { %18022 = vst [vmem:[#allocation62_spill] sm:$0xff] %v15803_v54  ;;  %v15812_v3 = vpop.f32.mrf.mxu0  ;;  %v10978_v54 = vld [vmem:[#allocation7 + $0xa4] sm:$0xf0] }
 0x8de   : > { %v5299_v13 = vpop.f32.mrf.mxu1 }
 0x8df   : > { %v15814_v30 = vadd.f32 %v5299_v13, %v5211_v10  ;;  %v5353_v4 = vpop.f32.mrf.mxu2 }
 0x8e0   : > { %v5354_v26 = vadd.f32 %v5353_v4, %v15618_v39  ;;  %v18025_v4 = vld [vmem:[#allocation37_spill] sm:$0xff] }
 0x8e1   : > { %18023 = vst [vmem:[#allocation260_spill] sm:$0xff] %v15814_v30 }
 0x8e2   : > { %v5442_v5 = vpop.f32.mrf.mxu3 }
 0x8e3   : > { %v15820_v52 = vadd.f32 %v5442_v5, %v5354_v26  ;;  %v18026_v26 = vld [vmem:[#allocation54_spill] sm:$0xff] }
 0x8e4   : > { %6029 = vmatmul.bf16.gmra.mxu2 %v17936_v22  ;;  %v5850_v22 = vadd.f32 %v15643_v2, %v15817_v11  ;;  %v5853_v2 = vadd.f32 %v15653_v7, %v15817_v11 }
 0x8e5   : > { %18024 = vst [vmem:[#allocation261_spill] sm:$0xff] %v15820_v52  ;;  %v15826_v33 = vpop.f32.mrf.mxu0 }
 0x8e6   : > { %v5936_v10 = vpop.f32.mrf.mxu1 }
 0x8e7   : > { %6118 = vmatmul.bf16.gmra.mxu3 %v17982_v9  ;;  %v5937_v60 = vadd.f32 %v5936_v10, %v5848_v38  ;;  %v5356_v8 = vpop.f32.mrf.mxu2  ;;  %v10286_v10 = vor.u32 %v10978_v54, %v10285_v40 }
 0x8e8   : > { %v5357_v21 = vadd.f32 %v5356_v8, %v15618_v39 }
 0x8e9   : > { %v6194_v13 = vmax.f32 %v5937_v60, 0.0  ;;  %5975 = vmatmul.bf16.gmra.mxu1 %v18025_v4 }
 0x8ea   : > { %v5445_v30 = vpop.f32.mrf.mxu3  ;;  %6710 = vmatpush.bf16.msrb.mxu1 %v10286_v10 }
 0x8eb   : > { %v6258_v5 = vmul.f32 %v6194_v13, %v18026_v26  ;;  %v15831_v52 = vadd.f32 %v5445_v30, %v5357_v21  ;;  %v18029_v30 = vld [vmem:[#allocation57_spill] sm:$0xff] }
 0x8ed   : > { %18027 = vst [vmem:[#allocation37_spill] sm:$0xff] %v15831_v52  ;;  %v6322_v9 = vadd.f32 %v6258_v5, %v18028_v12  ;;  %v15836_v31 = vpop.f32.mrf.mxu0  ;;  %v18031_v5 = vld [vmem:[#allocation67_spill] sm:$0xff] }
 0x8ee   : > { %v5938_v38 = vpop.f32.mrf.mxu1 }
 0x8ef   : > { %v5939_v60 = vadd.f32 %v5938_v38, %v5850_v22  ;;  %v5358_v8 = vpop.f32.mrf.mxu2  ;;  %v10967_v22 = vld [vmem:[#allocation7 + $0x54] sm:$0xf]  ;;  %v10247_v38 = vld [vmem:[#allocation7 + $0x58] sm:$0xf0] }
 0x8f0   : > { %v5359_v29 = vadd.f32 %v5358_v8, %v15618_v39 }
 0x8f1   : > { %v6196_v32 = vmax.f32 %v5939_v60, 0.0 }
 0x8f2   : > { %v5447_v13 = vpop.f32.mrf.mxu3 }
 0x8f3   : > { %v6260_v21 = vmul.f32 %v6196_v32, %v18029_v30  ;;  %v15840_v26 = vadd.f32 %v5447_v13, %v5359_v29  ;;  %v10250_v32 = vor.u32 %v10967_v22, %v10247_v38  ;;  %v18032_v30 = vld [vmem:[#allocation70_spill] sm:$0xff] }
 0x8f4   : > { %6034 = vmatmul.bf16.gmra.mxu2 %v17941_v25  ;;  %v18033_v25 = vld [vmem:[#allocation58_spill] sm:$0xff] }
 0x8f5   : > { %18030 = vst [vmem:[#allocation54_spill] sm:$0xff] %v15840_v26  ;;  %v6324_v12 = vadd.f32 %v6260_v21, %v18031_v5  ;;  %v15847_v40 = vpop.f32.mrf.mxu0  ;;  %6796 = vmatpush.bf16.msra.mxu2 %v10250_v32  ;;  %v18035_v5 = vld [vmem:[#allocation39_spill] sm:$0xff] }
 0x8f6   : > { %v5941_v54 = vpop.f32.mrf.mxu1 }
 0x8f7   : > { %6123 = vmatmul.bf16.gmra.mxu3 %v17989_v63  ;;  %v15849_v10 = vpack.c.bf16 %v6324_v12, %v6322_v9  ;;  %v5942_v60 = vadd.f32 %v5941_v54, %v5853_v2  ;;  %v5361_v29 = vpop.f32.mrf.mxu2  ;;  %v5855_v9 = vadd.f32 %v15665_v45, %v15817_v11  ;;  %v10983_v12 = vld [vmem:[#allocation7 + $0xd4] sm:$0xf]  ;;  %v10311_v54 = vld [vmem:[#allocation7 + $0xd8] sm:$0xf0]  ;;  %v5858_v45 = vadd.f32 %v15675_v49, %v15817_v11 }
 0x8f8   : > { %v5362_v13 = vadd.f32 %v5361_v29, %v15618_v39  ;;  %v10314_v38 = vor.u32 %v10983_v12, %v10311_v54 }
 0x8f9   : > { %v6198_v8 = vmax.f32 %v5942_v60, 0.0  ;;  %5980 = vmatmul.bf16.gmra.mxu1 %v18032_v30  ;;  %6624 = vmatmul.bf16.vlgmr.msrb.gmra.mxu0 %v15849_v10 }
 0x8fa   : > { %v5450_v7 = vpop.f32.mrf.mxu3  ;;  %6885 = vmatpush.bf16.msra.mxu3 %v10314_v38 }
 0x8fb   : > { %v6262_v63 = vmul.f32 %v6198_v8, %v18033_v25  ;;  %v15855_v21 = vadd.f32 %v5450_v7, %v5362_v13  ;;  %v18036_v13 = vld [vmem:[#allocation61_spill] sm:$0xff] }
 0x8fd   : > { %18034 = vst [vmem:[#allocation65_spill] sm:$0xff] %v15855_v21  ;;  %v6326_v2 = vadd.f32 %v6262_v63, %v18035_v5  ;;  %v15860_v29 = vpop.f32.mrf.mxu0  ;;  %v18038_v63 = vld [vmem:[#allocation41_spill] sm:$0xff] }
 0x8fe   : > { %v5943_v22 = vpop.f32.mrf.mxu1 }
 0x8ff   : > { %v5944_v60 = vadd.f32 %v5943_v22, %v5855_v9  ;;  %v5363_v26 = vpop.f32.mrf.mxu2 }
 0x900   : > { %v5364_v32 = vadd.f32 %v5363_v26, %v15618_v39 }
 0x901   : > { %v6200_v52 = vmax.f32 %v5944_v60, 0.0  ;;  %v18040_v60 = vld [vmem:[#allocation43_spill] sm:$0xff] }
 0x902   : > { %v5452_v8 = vpop.f32.mrf.mxu3 }
 0x903   : > { %v6264_v7 = vmul.f32 %v6200_v52, %v18036_v13  ;;  %v15864_v25 = vadd.f32 %v5452_v8, %v5364_v32 }
 0x904   : > { %6039 = vmatmul.bf16.gmra.mxu2 %v17946_v58  ;;  %v18041_v58 = vld [vmem:[#allocation63_spill] sm:$0xff] }
 0x905   : > { %18037 = vst [vmem:[#allocation57_spill] sm:$0xff] %v15864_v25  ;;  %v6328_v5 = vadd.f32 %v6264_v7, %v18038_v63  ;;  %v15876_v49 = vpop.f32.mrf.mxu0  ;;  %v10277_v7 = vld [vmem:[#allocation7 + $0x90] sm:$0xf] }
 0x906   : > { %v5946_v9 = vpop.f32.mrf.mxu1 }
 0x907   : > { %6128 = vmatmul.bf16.gmra.mxu3 %v17996_v37  ;;  %v5947_v12 = vadd.f32 %v5946_v9, %v5858_v45  ;;  %v15871_v54 = vpack.c.bf16 %v6328_v5, %v6326_v2  ;;  %v5366_v22 = vpop.f32.mrf.mxu2  ;;  %v5860_v37 = vadd.f32 %v15687_v35, %v15817_v11  ;;  %v18042_v2 = vld [vmem:[#allocation72_spill] sm:$0xff]  ;;  %v5863_v35 = vadd.f32 %v15697_v6, %v15817_v11 }
 0x908   : > { %v5367_v38 = vadd.f32 %v5366_v22, %v15618_v39  ;;  %v10976_v45 = vld [vmem:[#allocation7 + $0x94] sm:$0xf0] }
 0x909   : > { %18039 = vst [vmem:[#allocation67_spill] sm:$0xff] %v15871_v54  ;;  %v6202_v26 = vmax.f32 %v5947_v12, 0.0  ;;  %5985 = vmatmul.bf16.gmra.mxu1 %v18040_v60  ;;  %6629 = vmatmul.bf16.gmra.mxu0 %v15871_v54  ;;  %v10278_v5 = vor.u32 %v10976_v45, %v10277_v7  ;;  %v18043_v54 = vld [vmem:[#allocation66_spill] sm:$0xff] }
 0x90a   : > { %v5455_v52 = vpop.f32.mrf.mxu3  ;;  %v10239_v7 = vld [vmem:[#allocation7 + $0x48] sm:$0xf0] }
 0x90b   : > { %v6266_v32 = vmul.f32 %v6202_v26, %v18041_v58  ;;  %v15879_v8 = vadd.f32 %v5455_v52, %v5367_v38  ;;  %6711 = vmatpush.bf16.msrb.mxu1 %v10278_v5  ;;  %v18045_v58 = vld [vmem:[#allocation75_spill] sm:$0xff] }
 0x90d   : > { %v6330_v13 = vadd.f32 %v6266_v32, %v18042_v2  ;;  %v15888_v52 = vpop.f32.mrf.mxu0  ;;  %v10965_v2 = vld [vmem:[#allocation7 + $0x44] sm:$0xf] }
 0x90e   : > { %v5948_v63 = vpop.f32.mrf.mxu1 }
 0x90f   : > { %v5949_v9 = vadd.f32 %v5948_v63, %v5860_v37  ;;  %v5368_v12 = vpop.f32.mrf.mxu2 }
 0x910   : > { %v5369_v25 = vadd.f32 %v5368_v12, %v15618_v39  ;;  %v18046_v12 = vld [vmem:[#allocation77_spill] sm:$0xff] }
 0x911   : > { %v6204_v22 = vmax.f32 %v5949_v9, 0.0 }
 0x912   : > { %v5457_v21 = vpop.f32.mrf.mxu3 }
 0x913   : > { %v6268_v26 = vmul.f32 %v6204_v22, %v18043_v54  ;;  %v15886_v38 = vadd.f32 %v5457_v21, %v5369_v25  ;;  %v10242_v54 = vor.u32 %v10965_v2, %v10239_v7  ;;  %v5865_v22 = vadd.f32 %v15709_v24, %v15817_v11 }
 0x914   : > { %6044 = vmatmul.bf16.gmra.mxu2 %v17952_v62  ;;  %v18047_v62 = vld [vmem:[#allocation68_spill] sm:$0xff]  ;;  %v5868_v24 = vadd.f32 %v15719_v18, %v15817_v11 }
 0x915   : > { %18044 = vst [vmem:[#allocation70_spill] sm:$0xff] %v15886_v38  ;;  %v6332_v32 = vadd.f32 %v6268_v26, %v18045_v58  ;;  %6797 = vmatpush.bf16.msra.mxu2 %v10242_v54  ;;  %v10303_v58 = vld [vmem:[#allocation7 + $0xc8] sm:$0xf0] }
 0x916   : > { %v5951_v37 = vpop.f32.mrf.mxu1 }
 0x917   : > { %6133 = vmatmul.bf16.gmra.mxu3 %v18003_v28  ;;  %v5952_v45 = vadd.f32 %v5951_v37, %v5863_v35  ;;  %v15895_v63 = vpack.c.bf16 %v6332_v32, %v6330_v13  ;;  %v5371_v21 = vpop.f32.mrf.mxu2  ;;  %v18049_v13 = vld [vmem:[#allocation45_spill] sm:$0xff]  ;;  %v15906_v32 = vpop.f32.mrf.mxu0 }
 0x918   : > { %v5372_v5 = vadd.f32 %v5371_v21, %v15618_v39  ;;  %v10981_v35 = vld [vmem:[#allocation7 + $0xc4] sm:$0xf] }
 0x919   : > { %v6206_v25 = vmax.f32 %v5952_v45, 0.0  ;;  %5990 = vmatmul.bf16.gmra.mxu1 %v18046_v12  ;;  %6634 = vmatmul.bf16.gmra.mxu0 %v15895_v63  ;;  %v10306_v2 = vor.u32 %v10981_v35, %v10303_v58 }
 0x91a   : > { %v5460_v9 = vpop.f32.mrf.mxu3 }
 0x91b   : > { %v6270_v6 = vmul.f32 %v6206_v25, %v18047_v62  ;;  %v15901_v28 = vadd.f32 %v5460_v9, %v5372_v5  ;;  %6886 = vmatpush.bf16.msra.mxu3 %v10306_v2  ;;  %v18050_v5 = vld [vmem:[#allocation71_spill] sm:$0xff] }
 0x91d   : > { %18048 = vst [vmem:[#allocation58_spill] sm:$0xff] %v15901_v28  ;;  %v6334_v26 = vadd.f32 %v6270_v6, %v18049_v13  ;;  %v18052_v6 = vld [vmem:[#allocation91_spill] sm:$0xff] }
 0x91e   : > { %v5953_v37 = vpop.f32.mrf.mxu1 }
 0x91f   : > { %v5954_v7 = vadd.f32 %v5953_v37, %v5865_v22  ;;  %v5373_v45 = vpop.f32.mrf.mxu2  ;;  %v15919_v37 = vpop.f32.mrf.mxu0 }
 0x920   : > { %v5374_v54 = vadd.f32 %v5373_v45, %v15618_v39 }
 0x921   : > { %v6208_v21 = vmax.f32 %v5954_v7, 0.0 }
 0x922   : > { %v5462_v25 = vpop.f32.mrf.mxu3 }
 0x923   : > { %v6272_v9 = vmul.f32 %v6208_v21, %v18050_v5  ;;  %v15910_v62 = vadd.f32 %v5462_v25, %v5374_v54  ;;  %v18053_v54 = vld [vmem:[#allocation80_spill] sm:$0xff] }
 0x924   : > { %6049 = vmatmul.bf16.gmra.mxu2 %v17958_v46  ;;  %v18054_v46 = vld [vmem:[#allocation73_spill] sm:$0xff] }
 0x925   : > { %18051 = vst [vmem:[#allocation39_spill] sm:$0xff] %v15910_v62  ;;  %v6336_v13 = vadd.f32 %v6272_v9, %v18052_v6  ;;  %v10269_v9 = vld [vmem:[#allocation7 + $0x80] sm:$0xf] }
 0x926   : > { %v5956_v22 = vpop.f32.mrf.mxu1 }
 0x927   : > { %6138 = vmatmul.bf16.gmra.mxu3 %v18009_v56  ;;  %v5957_v35 = vadd.f32 %v5956_v22, %v5868_v24  ;;  %v15917_v58 = vpack.c.bf16 %v6336_v13, %v6334_v26  ;;  %v5376_v2 = vpop.f32.mrf.mxu2  ;;  %v5870_v56 = vadd.f32 %v15731_v19, %v15817_v11  ;;  %v18056_v26 = vld [vmem:[#allocation47_spill] sm:$0xff]  ;;  %v10974_v24 = vld [vmem:[#allocation7 + $0x84] sm:$0xf0]  ;;  %v15931_v38 = vpop.f32.mrf.mxu0  ;;  %v5873_v19 = vadd.f32 %v15741_v16, %v15817_v11 }
 0x928   : > { %v5377_v45 = vadd.f32 %v5376_v2, %v15618_v39  ;;  %v10270_v13 = vor.u32 %v10974_v24, %v10269_v9  ;;  %v10231_v9 = vld [vmem:[#allocation7 + $0x38] sm:$0xf0] }
 0x929   : > { %v6210_v7 = vmax.f32 %v5957_v35, 0.0  ;;  %5995 = vmatmul.bf16.gmra.mxu1 %v18053_v54  ;;  %6639 = vmatmul.bf16.gmra.mxu0 %v15917_v58 }
 0x92a   : > { %v5465_v21 = vpop.f32.mrf.mxu3  ;;  %6712 = vmatpush.bf16.msrb.mxu1 %v10270_v13 }
 0x92b   : > { %v6274_v18 = vmul.f32 %v6210_v7, %v18054_v46  ;;  %v15925_v25 = vadd.f32 %v5465_v21, %v5377_v45  ;;  %v18057_v7 = vld [vmem:[#allocation76_spill] sm:$0xff]  ;;  %v18059_v46 = vld [vmem:[#allocation49_spill] sm:$0xff] }
 0x92d   : > { %18055 = vst [vmem:[#allocation61_spill] sm:$0xff] %v15925_v25  ;;  %v6338_v5 = vadd.f32 %v6274_v18, %v18056_v26  ;;  %v10963_v26 = vld [vmem:[#allocation7 + $0x34] sm:$0xf] }
 0x92e   : > { %v5958_v6 = vpop.f32.mrf.mxu1  ;;  %v10234_v13 = vor.u32 %v10963_v26, %v10231_v9 }
 0x92f   : > { %v5959_v22 = vadd.f32 %v5958_v6, %v5870_v56  ;;  %v5378_v35 = vpop.f32.mrf.mxu2 }
 0x930   : > { %v5379_v62 = vadd.f32 %v5378_v35, %v15618_v39  ;;  %6798 = vmatpush.bf16.msra.mxu2 %v10234_v13 }
 0x931   : > { %v6212_v2 = vmax.f32 %v5959_v22, 0.0 }
 0x932   : > { %v5467_v28 = vpop.f32.mrf.mxu3 }
 0x933   : > { %v6276_v45 = vmul.f32 %v6212_v2, %v18057_v7  ;;  %v15934_v21 = vadd.f32 %v5467_v28, %v5379_v62  ;;  %v18060_v2 = vld [vmem:[#allocation51_spill] sm:$0xff]  ;;  %v15949_v7 = vpop.f32.mrf.mxu0 }
 0x934   : > { %6054 = vmatmul.bf16.gmra.mxu2 %v17963_v59  ;;  %v18061_v59 = vld [vmem:[#allocation78_spill] sm:$0xff] }
 0x935   : > { %18058 = vst [vmem:[#allocation41_spill] sm:$0xff] %v15934_v21  ;;  %v6340_v18 = vadd.f32 %v6276_v45, %v18059_v46  ;;  %v18063_v45 = vld [vmem:[#allocation82_spill] sm:$0xff]  ;;  %v10979_v46 = vld [vmem:[#allocation7 + $0xb4] sm:$0xf] }
 0x936   : > { %v5961_v56 = vpop.f32.mrf.mxu1 }
 0x937   : > { %6143 = vmatmul.bf16.gmra.mxu3 %v18015_v1  ;;  %v5962_v24 = vadd.f32 %v5961_v56, %v5873_v19  ;;  %v15941_v6 = vpack.c.bf16 %v6340_v18, %v6338_v5  ;;  %v5381_v22 = vpop.f32.mrf.mxu2  ;;  %v5875_v5 = vadd.f32 %v15753_v53, %v15817_v11  ;;  %v10295_v18 = vld [vmem:[#allocation7 + $0xb8] sm:$0xf0]  ;;  %v5878_v53 = vadd.f32 %v15763_v36, %v15817_v11 }
 0x938   : > { %v5382_v28 = vadd.f32 %v5381_v22, %v15618_v39  ;;  %v10298_v26 = vor.u32 %v10979_v46, %v10295_v18 }
 0x939   : > { %v6214_v35 = vmax.f32 %v5962_v24, 0.0  ;;  %6000 = vmatmul.bf16.gmra.mxu1 %v18060_v2  ;;  %6644 = vmatmul.bf16.gmra.mxu0 %v15941_v6 }
 0x93a   : > { %v5470_v62 = vpop.f32.mrf.mxu3  ;;  %6887 = vmatpush.bf16.msra.mxu3 %v10298_v26 }
 0x93b   : > { %v6278_v16 = vmul.f32 %v6214_v35, %v18061_v59  ;;  %v15947_v1 = vadd.f32 %v5470_v62, %v5382_v28  ;;  %v18064_v28 = vld [vmem:[#allocation81_spill] sm:$0xff] }
 0x93d   : > { %18062 = vst [vmem:[#allocation43_spill] sm:$0xff] %v15947_v1  ;;  %v6342_v19 = vadd.f32 %v6278_v16, %v18063_v45  ;;  %v18066_v16 = vld [vmem:[#allocation50_spill] sm:$0xff]  ;;  %v15962_v1 = vpop.f32.mrf.mxu0 }
 0x93e   : > { %v5963_v56 = vpop.f32.mrf.mxu1 }
 0x93f   : > { %v5964_v9 = vadd.f32 %v5963_v56, %v5875_v5  ;;  %v5383_v24 = vpop.f32.mrf.mxu2 }
 0x940   : > { %v5384_v13 = vadd.f32 %v5383_v24, %v15618_v39 }
 0x941   : > { %v6216_v22 = vmax.f32 %v5964_v9, 0.0 }
 0x942   : > { %v5472_v35 = vpop.f32.mrf.mxu3 }
 0x943   : > { %v6280_v62 = vmul.f32 %v6216_v22, %v18064_v28  ;;  %v15956_v59 = vadd.f32 %v5472_v35, %v5384_v13  ;;  %v18067_v22 = vld [vmem:[#allocation53_spill] sm:$0xff] }
 0x944   : > { %6059 = vmatmul.bf16.gmra.mxu2 %v17968_v57  ;;  %v18068_v57 = vld [vmem:[#allocation83_spill] sm:$0xff]  ;;  %v18070_v35 = vld [vmem:[#allocation85_spill] sm:$0xff] }
 0x945   : > { %18065 = vst [vmem:[#allocation63_spill] sm:$0xff] %v15956_v59  ;;  %v6344_v45 = vadd.f32 %v6280_v62, %v18066_v16  ;;  %v11004_v59 = vld [vmem:[#allocation9 + $0x74] sm:$0xf0] }
 0x946   : > { %v5966_v5 = vpop.f32.mrf.mxu1 }
 0x947   : > { %6148 = vmatmul.bf16.gmra.mxu3 %v18021_v55  ;;  %v5967_v46 = vadd.f32 %v5966_v5, %v5878_v53  ;;  %v15965_v18 = vpack.c.bf16 %v6344_v45, %v6342_v19  ;;  %v5386_v56 = vpop.f32.mrf.mxu2  ;;  %v5880_v55 = vadd.f32 %v15775_v23, %v15817_v11  ;;  %v15976_v53 = vpop.f32.mrf.mxu0 }
 0x948   : > { %v5387_v9 = vadd.f32 %v5386_v56, %v15618_v39  ;;  %v10389_v56 = vld [vmem:[#allocation9 + $0x70] sm:$0xf] }
 0x949   : > { %v6218_v26 = vmax.f32 %v5967_v46, 0.0  ;;  %6005 = vmatmul.bf16.gmra.mxu1 %v18067_v22  ;;  %6649 = vmatmul.bf16.gmra.mxu0 %v15965_v18  ;;  %v10390_v21 = vor.u32 %v11004_v59, %v10389_v56  ;;  %v18074_v56 = vld [vmem:[#allocation95_spill] sm:$0xff] }
 0x94a   : > { %v5475_v24 = vpop.f32.mrf.mxu3 }
 0x94b   : > { %v6282_v36 = vmul.f32 %v6218_v26, %v18068_v57  ;;  %v15971_v13 = vadd.f32 %v5475_v24, %v5387_v9  ;;  %v10453_v26 = vld [vmem:[#allocation9 + $0xf0] sm:$0xf]  ;;  %v11020_v9 = vld [vmem:[#allocation9 + $0xf4] sm:$0xf0]  ;;  %v18071_v24 = vld [vmem:[#allocation86_spill] sm:$0xff]  ;;  %7394 = vmatpush.bf16.msra.mxu0 %v10390_v21 }
 0x94c   : > { %v10454_v23 = vor.u32 %v11020_v9, %v10453_v26 }
 0x94d   : > { %18069 = vst [vmem:[#allocation72_spill] sm:$0xff] %v15971_v13  ;;  %v6346_v28 = vadd.f32 %v6282_v36, %v18070_v35  ;;  %v5883_v36 = vadd.f32 %v15785_v15, %v15817_v11 }
 0x94e   : > { %v5968_v19 = vpop.f32.mrf.mxu1  ;;  %7483 = vmatpush.bf16.msra.mxu1 %v10454_v23 }
 0x94f   : > { %v5969_v62 = vadd.f32 %v5968_v19, %v5880_v55  ;;  %v5388_v16 = vpop.f32.mrf.mxu2  ;;  %v15986_v55 = vperm.slane %v15810_v20, 1  ;;  %v15995_v20 = vpop.f32.mrf.mxu0 }
 0x950   : > { %v5389_v5 = vadd.f32 %v5388_v16, %v15618_v39  ;;  %v18073_v39 = vld [vmem:[#allocation94_spill] sm:$0xff]  ;;  %v10961_v16 = vld [vmem:[#allocation7 + $0x24] sm:$0xf] }
 0x951   : > { %v6220_v45 = vmax.f32 %v5969_v62, 0.0 }
 0x952   : > { %v5477_v46 = vpop.f32.mrf.mxu3 }
 0x953   : > { %v6284_v57 = vmul.f32 %v6220_v45, %v18071_v24  ;;  %v15980_v13 = vadd.f32 %v5477_v46, %v5389_v5  ;;  %v10223_v45 = vld [vmem:[#allocation7 + $0x28] sm:$0xf0]  ;;  %v18076_v24 = vld [vmem:[#allocation55_spill] sm:$0xff] }
 0x954   : > { %6064 = vmatmul.bf16.gmra.mxu2 %v17973_v0  ;;  %v10226_v5 = vor.u32 %v10961_v16, %v10223_v45 }
 0x955   : > { %18072 = vst [vmem:[#allocation66_spill] sm:$0xff] %v15980_v13  ;;  %v6348_v35 = vadd.f32 %v6284_v57, %v18073_v39  ;;  %v10287_v39 = vld [vmem:[#allocation7 + $0xa8] sm:$0xf0]  ;;  %v18078_v13 = vld [vmem:[#allocation96_spill] sm:$0xff] }
 0x956   : > { %v5971_v59 = vpop.f32.mrf.mxu1  ;;  %6799 = vmatpush.bf16.msra.mxu2 %v10226_v5 }
 0x957   : > { %6153 = vmatmul.bf16.gmra.mxu3 %v18025_v4  ;;  %v5972_v19 = vadd.f32 %v5971_v59, %v5883_v36  ;;  %v15990_v62 = vpack.c.bf16 %v6348_v35, %v6346_v28  ;;  %v6025_v21 = vpop.f32.mrf.mxu2  ;;  %v18075_v4 = vld [vmem:[#allocation109_spill] sm:$0xff]  ;;  %v5885_v28 = vadd.f32 %v15797_v43, %v15817_v11 }
 0x958   : > { %v6026_v15 = vadd.f32 %v6025_v21, %v15986_v55  ;;  %v10977_v36 = vld [vmem:[#allocation7 + $0xa4] sm:$0xf] }
 0x959   : > { %v6222_v46 = vmax.f32 %v5972_v19, 0.0  ;;  %6010 = vmatmul.bf16.gmra.mxu1 %v18074_v56  ;;  %6654 = vmatmul.bf16.gmra.mxu0 %v15990_v62  ;;  %v10290_v59 = vor.u32 %v10977_v36, %v10287_v39  ;;  %v18077_v19 = vld [vmem:[#allocation110_spill] sm:$0xff]  ;;  %v18081_v36 = vld [vmem:[#allocation112_spill] sm:$0xff] }
 0x95a   : > { %v6114_v0 = vpop.f32.mrf.mxu3 }
 0x95b   : > { %v6286_v26 = vmul.f32 %v6222_v46, %v18075_v4  ;;  %v6115_v9 = vadd.f32 %v6114_v0, %v6026_v15  ;;  %6888 = vmatpush.bf16.msra.mxu3 %v10290_v59  ;;  %v18079_v0 = vld [vmem:[#allocation111_spill] sm:$0xff] }
 0x95d   : > { %v6350_v57 = vadd.f32 %v6286_v26, %v18076_v24  ;;  %v6195_v23 = vmax.f32 %v6115_v9, 0.0  ;;  %v16005_v26 = vpop.f32.mrf.mxu0  ;;  %v5888_v9 = vadd.f32 %v15812_v3, %v15817_v11 }
 0x95e   : > { %v5973_v35 = vpop.f32.mrf.mxu1 }
 0x95f   : > { %v6259_v16 = vmul.f32 %v6195_v23, %v18077_v19  ;;  %v5974_v45 = vadd.f32 %v5973_v35, %v5885_v28  ;;  %v6027_v21 = vpop.f32.mrf.mxu2  ;;  %v18080_v28 = vld [vmem:[#allocation97_spill] sm:$0xff]  ;;  %v18082_v19 = vld [vmem:[#allocation98_spill] sm:$0xff] }
 0x960   : > { %v6028_v46 = vadd.f32 %v6027_v21, %v15986_v55 }
 0x961   : > { %v6323_v5 = vadd.f32 %v6259_v16, %v18078_v13  ;;  %v6224_v25 = vmax.f32 %v5974_v45, 0.0 }
 0x962   : > { %v6116_v15 = vpop.f32.mrf.mxu3 }
 0x963   : > { %v6288_v43 = vmul.f32 %v6224_v25, %v18079_v0  ;;  %v6117_v4 = vadd.f32 %v6116_v15, %v6028_v46  ;;  %v18083_v46 = vld [vmem:[#allocation113_spill] sm:$0xff]  ;;  %v5890_v0 = vadd.f32 %v15826_v33, %v15817_v11  ;;  %v11002_v33 = vld [vmem:[#allocation9 + $0x64] sm:$0xf0] }
 0x964   : > { %6069 = vmatmul.bf16.gmra.mxu2 %v17979_v47 }
 0x965   : > { %v6197_v24 = vmax.f32 %v6117_v4, 0.0  ;;  %v6352_v23 = vadd.f32 %v6288_v43, %v18080_v28  ;;  %v18084_v43 = vld [vmem:[#allocation99_spill] sm:$0xff]  ;;  %v18085_v28 = vld [vmem:[#allocation114_spill] sm:$0xff] }
 0x966   : > { %v5976_v13 = vpop.f32.mrf.mxu1 }
 0x967   : > { %6158 = vmatmul.bf16.gmra.mxu3 %v18032_v30  ;;  %v6261_v39 = vmul.f32 %v6197_v24, %v18081_v36  ;;  %v5977_v35 = vadd.f32 %v5976_v13, %v5888_v9  ;;  %v16013_v59 = vpack.c.bf16 %v6352_v23, %v6350_v57  ;;  %v6030_v25 = vpop.f32.mrf.mxu2  ;;  %v16025_v9 = vpop.f32.mrf.mxu0 }
 0x968   : > { %v6031_v21 = vadd.f32 %v6030_v25, %v15986_v55 }
 0x969   : > { %v6325_v16 = vadd.f32 %v6261_v39, %v18082_v19  ;;  %v6226_v45 = vmax.f32 %v5977_v35, 0.0  ;;  %6659 = vmatmul.bf16.gmra.mxu0 %v16013_v59 }
 0x96a   : > { %v6119_v3 = vpop.f32.mrf.mxu3 }
 0x96b   : > { %v16018_v47 = vpack.c.bf16 %v6325_v16, %v6323_v5  ;;  %v6290_v15 = vmul.f32 %v6226_v45, %v18083_v46  ;;  %v6120_v30 = vadd.f32 %v6119_v3, %v6031_v21  ;;  %v18086_v5 = vld [vmem:[#allocation100_spill] sm:$0xff]  ;;  %v10381_v16 = vld [vmem:[#allocation9 + $0x60] sm:$0xf]  ;;  %v11018_v3 = vld [vmem:[#allocation9 + $0xe4] sm:$0xf0] }
 0x96c   : > { %v10382_v45 = vor.u32 %v11002_v33, %v10381_v16  ;;  %v10445_v21 = vld [vmem:[#allocation9 + $0xe0] sm:$0xf]  ;;  %v18087_v46 = vld [vmem:[#allocation115_spill] sm:$0xff]  ;;  %v10215_v16 = vld [vmem:[#allocation7 + $0x18] sm:$0xf0] }
 0x96d   : > { %v6354_v57 = vadd.f32 %v6290_v15, %v18084_v43  ;;  %v6199_v4 = vmax.f32 %v6120_v30, 0.0  ;;  %6713 = vmatmul.bf16.vlgmr.msrb.gmra.mxu1 %v16018_v47  ;;  %v10446_v43 = vor.u32 %v11018_v3, %v10445_v21  ;;  %v18090_v3 = vld [vmem:[#allocation102_spill] sm:$0xff] }
 0x96e   : > { %v5978_v24 = vpop.f32.mrf.mxu1  ;;  %7395 = vmatpush.bf16.msra.mxu0 %v10382_v45 }
 0x96f   : > { %v6263_v23 = vmul.f32 %v6199_v4, %v18085_v28  ;;  %v5979_v13 = vadd.f32 %v5978_v24, %v5890_v0  ;;  %v6032_v36 = vpop.f32.mrf.mxu2  ;;  %v5893_v0 = vadd.f32 %v15836_v31, %v15817_v11  ;;  %v18088_v24 = vld [vmem:[#allocation101_spill] sm:$0xff]  ;;  %7484 = vmatpush.bf16.msra.mxu1 %v10446_v43 }
 0x970   : > { %v6033_v25 = vadd.f32 %v6032_v36, %v15986_v55  ;;  %v18089_v36 = vld [vmem:[#allocation116_spill] sm:$0xff] }
 0x971   : > { %v6327_v39 = vadd.f32 %v6263_v23, %v18086_v5  ;;  %v6228_v35 = vmax.f32 %v5979_v13, 0.0 }
 0x972   : > { %v6121_v19 = vpop.f32.mrf.mxu3 }
 0x973   : > { %v6292_v15 = vmul.f32 %v6228_v35, %v18087_v46  ;;  %v6122_v30 = vadd.f32 %v6121_v19, %v6033_v25  ;;  %v10959_v19 = vld [vmem:[#allocation7 + $0x14] sm:$0xf]  ;;  %v18091_v46 = vld [vmem:[#allocation117_spill] sm:$0xff] }
 0x974   : > { %6074 = vmatmul.bf16.gmra.mxu2 %v17985_v17  ;;  %v10218_v31 = vor.u32 %v10959_v19, %v10215_v16  ;;  %v18093_v19 = vld [vmem:[#allocation118_spill] sm:$0xff] }
 0x975   : > { %v6201_v4 = vmax.f32 %v6122_v30, 0.0  ;;  %v6356_v28 = vadd.f32 %v6292_v15, %v18088_v24 }
 0x976   : > { %v5981_v23 = vpop.f32.mrf.mxu1  ;;  %v16036_v13 = vpop.f32.mrf.mxu0  ;;  %6800 = vmatpush.bf16.msra.mxu2 %v10218_v31 }
 0x977   : > { %6163 = vmatmul.bf16.gmra.mxu3 %v18040_v60  ;;  %v6265_v5 = vmul.f32 %v6201_v4, %v18089_v36  ;;  %v5982_v35 = vadd.f32 %v5981_v23, %v5893_v0  ;;  %v16039_v25 = vpack.c.bf16 %v6356_v28, %v6354_v57  ;;  %v6035_v33 = vpop.f32.mrf.mxu2  ;;  %v5895_v57 = vadd.f32 %v15847_v40, %v15817_v11  ;;  %v18092_v0 = vld [vmem:[#allocation103_spill] sm:$0xff]  ;;  %v10279_v23 = vld [vmem:[#allocation7 + $0x98] sm:$0xf0] }
 0x978   : > { %v6036_v17 = vadd.f32 %v6035_v33, %v15986_v55  ;;  %v10975_v28 = vld [vmem:[#allocation7 + $0x94] sm:$0xf] }
 0x979   : > { %v6230_v45 = vmax.f32 %v5982_v35, 0.0  ;;  %6664 = vmatmul.bf16.gmra.mxu0 %v16039_v25  ;;  %v6329_v60 = vadd.f32 %v6265_v5, %v18090_v3  ;;  %v10282_v5 = vor.u32 %v10975_v28, %v10279_v23  ;;  %v18095_v3 = vld [vmem:[#allocation119_spill] sm:$0xff]  ;;  %v18097_v23 = vld [vmem:[#allocation120_spill] sm:$0xff] }
 0x97a   : > { %v6124_v21 = vpop.f32.mrf.mxu3 }
 0x97b   : > { %v6294_v15 = vmul.f32 %v6230_v45, %v18091_v46  ;;  %v6125_v30 = vadd.f32 %v6124_v21, %v6036_v17  ;;  %v16045_v43 = vpack.c.bf16 %v6329_v60, %v6327_v39  ;;  %6889 = vmatpush.bf16.msra.mxu3 %v10282_v5  ;;  %v18094_v39 = vld [vmem:[#allocation104_spill] sm:$0xff] }
 0x97d   : > { %v6358_v4 = vadd.f32 %v6294_v15, %v18092_v0  ;;  %v6203_v24 = vmax.f32 %v6125_v30, 0.0  ;;  %6718 = vmatmul.bf16.gmra.mxu1 %v16045_v43  ;;  %v5898_v15 = vadd.f32 %v15860_v29, %v15817_v11  ;;  %v18096_v0 = vld [vmem:[#allocation79_spill] sm:$0xff] }
 0x97e   : > { %v5983_v36 = vpop.f32.mrf.mxu1  ;;  %v16051_v35 = vpop.f32.mrf.mxu0 }
 0x97f   : > { %v6267_v16 = vmul.f32 %v6203_v24, %v18093_v19  ;;  %v5984_v33 = vadd.f32 %v5983_v36, %v5895_v57  ;;  %v6037_v31 = vpop.f32.mrf.mxu2 }
 0x980   : > { %v6038_v40 = vadd.f32 %v6037_v31, %v15986_v55 }
 0x981   : > { %v6331_v45 = vadd.f32 %v6267_v16, %v18094_v39  ;;  %v6232_v17 = vmax.f32 %v5984_v33, 0.0 }
 0x982   : > { %v6126_v21 = vpop.f32.mrf.mxu3 }
 0x983   : > { %v6296_v60 = vmul.f32 %v6232_v17, %v18095_v3  ;;  %v6127_v46 = vadd.f32 %v6126_v21, %v6038_v40  ;;  %v18099_v17 = vld [vmem:[#allocation121_spill] sm:$0xff]  ;;  %v5900_v3 = vadd.f32 %v15876_v49, %v15817_v11  ;;  %v11000_v49 = vld [vmem:[#allocation9 + $0x54] sm:$0xf0] }
 0x984   : > { %6079 = vmatmul.bf16.gmra.mxu2 %v17992_v34  ;;  %v18098_v34 = vld [vmem:[#allocation105_spill] sm:$0xff] }
 0x985   : > { %v6205_v30 = vmax.f32 %v6127_v46, 0.0  ;;  %v6360_v24 = vadd.f32 %v6296_v60, %v18096_v0  ;;  %v18100_v60 = vld [vmem:[#allocation106_spill] sm:$0xff] }
 0x986   : > { %v5986_v57 = vpop.f32.mrf.mxu1  ;;  %v16062_v28 = vpop.f32.mrf.mxu0  ;;  %v18101_v0 = vld [vmem:[#allocation122_spill] sm:$0xff] }
 0x987   : > { %6168 = vmatmul.bf16.gmra.mxu3 %v18046_v12  ;;  %v6269_v36 = vmul.f32 %v6205_v30, %v18097_v23  ;;  %v5987_v5 = vadd.f32 %v5986_v57, %v5898_v15  ;;  %v16065_v19 = vpack.c.bf16 %v6360_v24, %v6358_v4  ;;  %v6040_v16 = vpop.f32.mrf.mxu2 }
 0x988   : > { %v6041_v31 = vadd.f32 %v6040_v16, %v15986_v55 }
 0x989   : > { %v6234_v33 = vmax.f32 %v5987_v5, 0.0  ;;  %6669 = vmatmul.bf16.gmra.mxu0 %v16065_v19  ;;  %v6333_v39 = vadd.f32 %v6269_v36, %v18098_v34  ;;  %v18102_v36 = vld [vmem:[#allocation107_spill] sm:$0xff] }
 0x98a   : > { %v6129_v29 = vpop.f32.mrf.mxu3  ;;  %v10437_v34 = vld [vmem:[#allocation9 + $0xd0] sm:$0xf] }
 0x98b   : > { %v6298_v40 = vmul.f32 %v6234_v33, %v18099_v17  ;;  %v6130_v12 = vadd.f32 %v6129_v29, %v6041_v31  ;;  %v16071_v21 = vpack.c.bf16 %v6333_v39, %v6331_v45  ;;  %v10373_v31 = vld [vmem:[#allocation9 + $0x50] sm:$0xf]  ;;  %v11016_v39 = vld [vmem:[#allocation9 + $0xd4] sm:$0xf0] }
 0x98c   : > { %v10374_v29 = vor.u32 %v11000_v49, %v10373_v31  ;;  %v18103_v17 = vld [vmem:[#allocation123_spill] sm:$0xff]  ;;  %v10207_v31 = vld [vmem:[#allocation7 + $0x8] sm:$0xf0] }
 0x98d   : > { %v6362_v4 = vadd.f32 %v6298_v40, %v18100_v60  ;;  %v6207_v46 = vmax.f32 %v6130_v12, 0.0  ;;  %6723 = vmatmul.bf16.gmra.mxu1 %v16071_v21  ;;  %v10438_v60 = vor.u32 %v11016_v39, %v10437_v34  ;;  %v18106_v39 = vld [vmem:[#allocation87_spill] sm:$0xff] }
 0x98e   : > { %v5988_v15 = vpop.f32.mrf.mxu1  ;;  %v16077_v30 = vpop.f32.mrf.mxu0  ;;  %7396 = vmatpush.bf16.msra.mxu0 %v10374_v29 }
 0x98f   : > { %v6271_v24 = vmul.f32 %v6207_v46, %v18101_v0  ;;  %v5989_v57 = vadd.f32 %v5988_v15, %v5900_v3  ;;  %v6042_v23 = vpop.f32.mrf.mxu2  ;;  %v5903_v3 = vadd.f32 %v15888_v52, %v15817_v11  ;;  %v18104_v15 = vld [vmem:[#allocation108_spill] sm:$0xff]  ;;  %7485 = vmatpush.bf16.msra.mxu1 %v10438_v60 }
 0x990   : > { %v6043_v45 = vadd.f32 %v6042_v23, %v15986_v55  ;;  %v18105_v23 = vld [vmem:[#allocation124_spill] sm:$0xff] }
 0x991   : > { %v6335_v5 = vadd.f32 %v6271_v24, %v18102_v36  ;;  %v6236_v16 = vmax.f32 %v5989_v57, 0.0 }
 0x992   : > { %v6131_v33 = vpop.f32.mrf.mxu3 }
 0x993   : > { %v6300_v40 = vmul.f32 %v6236_v16, %v18103_v17  ;;  %v6132_v12 = vadd.f32 %v6131_v33, %v6043_v45  ;;  %v10957_v33 = vld [vmem:[#allocation7 + $0x4] sm:$0xf] }
 0x994   : > { %6084 = vmatmul.bf16.gmra.mxu2 %v17999_v44  ;;  %v10210_v52 = vor.u32 %v10957_v33, %v10207_v31  ;;  %v18107_v17 = vld [vmem:[#allocation125_spill] sm:$0xff]  ;;  %v18109_v33 = vld [vmem:[#allocation126_spill] sm:$0xff] }
 0x995   : > { %v6209_v46 = vmax.f32 %v6132_v12, 0.0  ;;  %v6364_v0 = vadd.f32 %v6300_v40, %v18104_v15 }
 0x996   : > { %v5991_v24 = vpop.f32.mrf.mxu1  ;;  %v16088_v57 = vpop.f32.mrf.mxu0  ;;  %6801 = vmatpush.bf16.msra.mxu2 %v10210_v52 }
 0x997   : > { %6173 = vmatmul.bf16.gmra.mxu3 %v18053_v54  ;;  %v6273_v36 = vmul.f32 %v6209_v46, %v18105_v23  ;;  %v5992_v16 = vadd.f32 %v5991_v24, %v5903_v3  ;;  %v16091_v45 = vpack.c.bf16 %v6364_v0, %v6362_v4  ;;  %v6045_v49 = vpop.f32.mrf.mxu2  ;;  %v5905_v4 = vadd.f32 %v15906_v32, %v15817_v11  ;;  %v18108_v3 = vld [vmem:[#allocation213_spill] sm:$0xff]  ;;  %v10271_v24 = vld [vmem:[#allocation7 + $0x88] sm:$0xf0] }
 0x998   : > { %v6046_v44 = vadd.f32 %v6045_v49, %v15986_v55  ;;  %v10973_v0 = vld [vmem:[#allocation7 + $0x84] sm:$0xf] }
 0x999   : > { %v6238_v29 = vmax.f32 %v5992_v16, 0.0  ;;  %6674 = vmatmul.bf16.gmra.mxu0 %v16091_v45  ;;  %v6337_v54 = vadd.f32 %v6273_v36, %v18106_v39  ;;  %v10274_v36 = vor.u32 %v10973_v0, %v10271_v24  ;;  %v18111_v39 = vld [vmem:[#allocation127_spill] sm:$0xff]  ;;  %v18113_v24 = vld [vmem:[#allocation128_spill] sm:$0xff] }
 0x99a   : > { %v6134_v34 = vpop.f32.mrf.mxu3 }
 0x99b   : > { %v6302_v40 = vmul.f32 %v6238_v29, %v18107_v17  ;;  %v6135_v12 = vadd.f32 %v6134_v34, %v6046_v44  ;;  %v16097_v60 = vpack.c.bf16 %v6337_v54, %v6335_v5  ;;  %6890 = vmatpush.bf16.msra.mxu3 %v10274_v36  ;;  %v18110_v5 = vld [vmem:[#allocation214_spill] sm:$0xff] }
 0x99d   : > { %v6366_v46 = vadd.f32 %v6302_v40, %v18108_v3  ;;  %v6211_v15 = vmax.f32 %v6135_v12, 0.0  ;;  %6728 = vmatmul.bf16.gmra.mxu1 %v16097_v60  ;;  %v5908_v40 = vadd.f32 %v15919_v37, %v15817_v11  ;;  %v18112_v3 = vld [vmem:[#allocation215_spill] sm:$0xff] }
 0x99e   : > { %v5993_v23 = vpop.f32.mrf.mxu1  ;;  %v16103_v16 = vpop.f32.mrf.mxu0 }
 0x99f   : > { %v6275_v31 = vmul.f32 %v6211_v15, %v18109_v33  ;;  %v5994_v49 = vadd.f32 %v5993_v23, %v5905_v4  ;;  %v6047_v52 = vpop.f32.mrf.mxu2 }
 0x9a0   : > { %v6048_v32 = vadd.f32 %v6047_v52, %v15986_v55 }
 0x9a1   : > { %v6339_v29 = vadd.f32 %v6275_v31, %v18110_v5  ;;  %v6240_v44 = vmax.f32 %v5994_v49, 0.0 }
 0x9a2   : > { %v6136_v34 = vpop.f32.mrf.mxu3 }
 0x9a3   : > { %v6304_v54 = vmul.f32 %v6240_v44, %v18111_v39  ;;  %v6137_v17 = vadd.f32 %v6136_v34, %v6048_v32  ;;  %v18115_v44 = vld [vmem:[#allocation129_spill] sm:$0xff]  ;;  %v5910_v39 = vadd.f32 %v15931_v38, %v15817_v11  ;;  %v10998_v38 = vld [vmem:[#allocation9 + $0x44] sm:$0xf0] }
 0x9a4   : > { %6089 = vmatmul.bf16.gmra.mxu2 %v18006_v14  ;;  %v18114_v14 = vld [vmem:[#allocation216_spill] sm:$0xff] }
 0x9a5   : > { %v6213_v12 = vmax.f32 %v6137_v17, 0.0  ;;  %v6368_v15 = vadd.f32 %v6304_v54, %v18112_v3  ;;  %v18116_v54 = vld [vmem:[#allocation217_spill] sm:$0xff]  ;;  %v18117_v3 = vld [vmem:[#allocation130_spill] sm:$0xff] }
 0x9a6   : > { %v5996_v4 = vpop.f32.mrf.mxu1  ;;  %v16114_v0 = vpop.f32.mrf.mxu0 }
 0x9a7   : > { %6178 = vmatmul.bf16.gmra.mxu3 %v18060_v2  ;;  %v6277_v23 = vmul.f32 %v6213_v12, %v18113_v24  ;;  %v5997_v36 = vadd.f32 %v5996_v4, %v5908_v40  ;;  %v16117_v33 = vpack.c.bf16 %v6368_v15, %v6366_v46  ;;  %v6050_v31 = vpop.f32.mrf.mxu2 }
 0x9a8   : > { %v6051_v52 = vadd.f32 %v6050_v31, %v15986_v55 }
 0x9a9   : > { %v6242_v49 = vmax.f32 %v5997_v36, 0.0  ;;  %6679 = vmatmul.bf16.gmra.mxu0 %v16117_v33  ;;  %v6341_v5 = vadd.f32 %v6277_v23, %v18114_v14  ;;  %v18118_v23 = vld [vmem:[#allocation218_spill] sm:$0xff]  ;;  %v10429_v14 = vld [vmem:[#allocation9 + $0xc0] sm:$0xf] }
 0x9aa   : > { %v6139_v37 = vpop.f32.mrf.mxu3 }
 0x9ab   : > { %v6306_v32 = vmul.f32 %v6242_v49, %v18115_v44  ;;  %v6140_v2 = vadd.f32 %v6139_v37, %v6051_v52  ;;  %v16123_v34 = vpack.c.bf16 %v6341_v5, %v6339_v29  ;;  %v10365_v52 = vld [vmem:[#allocation9 + $0x40] sm:$0xf]  ;;  %v11014_v5 = vld [vmem:[#allocation9 + $0xc4] sm:$0xf0]  ;;  %v18119_v44 = vld [vmem:[#allocation131_spill] sm:$0xff] }
 0x9ac   : > { %v10366_v37 = vor.u32 %v10998_v38, %v10365_v52 }
 0x9ad   : > { %v6370_v46 = vadd.f32 %v6306_v32, %v18116_v54  ;;  %v6215_v17 = vmax.f32 %v6140_v2, 0.0  ;;  %6733 = vmatmul.bf16.gmra.mxu1 %v16123_v34  ;;  %v10430_v54 = vor.u32 %v11014_v5, %v10429_v14  ;;  %v18123_v14 = vld [vmem:[#allocation133_spill] sm:$0xff] }
 0x9ae   : > { %v5998_v40 = vpop.f32.mrf.mxu1  ;;  %v16129_v12 = vpop.f32.mrf.mxu0  ;;  %7397 = vmatpush.bf16.msra.mxu0 %v10366_v37 }
 0x9af   : > { %v6279_v15 = vmul.f32 %v6215_v17, %v18117_v3  ;;  %v5999_v4 = vadd.f32 %v5998_v40, %v5910_v39  ;;  %v6052_v24 = vpop.f32.mrf.mxu2  ;;  %v5913_v39 = vadd.f32 %v15949_v7, %v15817_v11  ;;  %v18120_v40 = vld [vmem:[#allocation219_spill] sm:$0xff]  ;;  %7486 = vmatpush.bf16.msra.mxu1 %v10430_v54 }
 0x9b0   : > { %v6053_v29 = vadd.f32 %v6052_v24, %v15986_v55  ;;  %v18121_v24 = vld [vmem:[#allocation132_spill] sm:$0xff] }
 0x9b1   : > { %v6343_v36 = vadd.f32 %v6279_v15, %v18118_v23  ;;  %v6244_v31 = vmax.f32 %v5999_v4, 0.0 }
 0x9b2   : > { %v6141_v49 = vpop.f32.mrf.mxu3 }
 0x9b3   : > { %v6308_v32 = vmul.f32 %v6244_v31, %v18119_v44  ;;  %v6142_v2 = vadd.f32 %v6141_v49, %v6053_v29 }
 0x9b4   : > { %6094 = vmatmul.bf16.gmra.mxu2 %v18012_v27  ;;  %v18122_v27 = vld [vmem:[#allocation220_spill] sm:$0xff] }
 0x9b5   : > { %v6217_v17 = vmax.f32 %v6142_v2, 0.0  ;;  %v6372_v3 = vadd.f32 %v6308_v32, %v18120_v40  ;;  %v5915_v32 = vadd.f32 %v15962_v1, %v15817_v11  ;;  %v10391_v1 = vld [vmem:[#allocation9 + $0x78] sm:$0xf0] }
 0x9b6   : > { %v6001_v15 = vpop.f32.mrf.mxu1  ;;  %v16140_v4 = vpop.f32.mrf.mxu0 }
 0x9b7   : > { %6183 = vmatmul.bf16.gmra.mxu3 %v18067_v22  ;;  %v6281_v23 = vmul.f32 %v6217_v17, %v18121_v24  ;;  %v6002_v31 = vadd.f32 %v6001_v15, %v5913_v39  ;;  %v16143_v29 = vpack.c.bf16 %v6372_v3, %v6370_v46  ;;  %v6055_v49 = vpop.f32.mrf.mxu2  ;;  %v18124_v17 = vld [vmem:[#allocation134_spill] sm:$0xff] }
 0x9b8   : > { %v6056_v7 = vadd.f32 %v6055_v49, %v15986_v55  ;;  %v11003_v49 = vld [vmem:[#allocation9 + $0x74] sm:$0xf] }
 0x9b9   : > { %v6246_v52 = vmax.f32 %v6002_v31, 0.0  ;;  %6684 = vmatmul.bf16.gmra.mxu0 %v16143_v29  ;;  %v6345_v37 = vadd.f32 %v6281_v23, %v18122_v27 }
 0x9ba   : > { %v6144_v38 = vpop.f32.mrf.mxu3 }
 0x9bb   : > { %v6310_v5 = vmul.f32 %v6246_v52, %v18123_v14  ;;  %v6145_v22 = vadd.f32 %v6144_v38, %v6056_v7  ;;  %v16149_v44 = vpack.c.bf16 %v6345_v37, %v6343_v36  ;;  %v10394_v52 = vor.u32 %v11003_v49, %v10391_v1  ;;  %v10455_v7 = vld [vmem:[#allocation9 + $0xf8] sm:$0xf0]  ;;  %v18125_v38 = vld [vmem:[#allocation135_spill] sm:$0xff] }
 0x9bc   : > { %v10357_v1 = vld [vmem:[#allocation9 + $0x30] sm:$0xf] }
 0x9bd   : > { %v6374_v46 = vadd.f32 %v6310_v5, %v15395_v50  ;;  %v6219_v2 = vmax.f32 %v6145_v22, 0.0  ;;  %6738 = vmatmul.bf16.gmra.mxu1 %v16149_v44  ;;  %v11019_v50 = vld [vmem:[#allocation9 + $0xf4] sm:$0xf]  ;;  %7572 = vmatpush.bf16.msrb.mxu2 %v10394_v52  ;;  %v5918_v5 = vadd.f32 %v15976_v53, %v15817_v11  ;;  %v10996_v52 = vld [vmem:[#allocation9 + $0x34] sm:$0xf0] }
 0x9be   : > { %v6003_v54 = vpop.f32.mrf.mxu1  ;;  %v16155_v39 = vpop.f32.mrf.mxu0  ;;  %v10458_v14 = vor.u32 %v11019_v50, %v10455_v7  ;;  %v18128_v50 = vld [vmem:[#allocation17_spill] sm:$0xff] }
 0x9bf   : > { %v6283_v40 = vmul.f32 %v6219_v2, %v18124_v17  ;;  %v6004_v3 = vadd.f32 %v6003_v54, %v5915_v32  ;;  %v6057_v15 = vpop.f32.mrf.mxu2  ;;  %v18126_v54 = vld [vmem:[#allocation136_spill] sm:$0xff] }
 0x9c0   : > { %v6058_v36 = vadd.f32 %v6057_v15, %v15986_v55  ;;  %7661 = vmatpush.bf16.msrb.mxu3 %v10458_v14 }
 0x9c1   : > { %v6347_v24 = vadd.f32 %v6283_v40, %v15399_v41  ;;  %v6248_v23 = vmax.f32 %v6004_v3, 0.0 }
 0x9c2   : > { %v6146_v31 = vpop.f32.mrf.mxu3 }
 0x9c3   : > { %v6312_v27 = vmul.f32 %v6248_v23, %v18125_v38  ;;  %v6147_v37 = vadd.f32 %v6146_v31, %v6058_v36 }
 0x9c4   : > { %6099 = vmatmul.bf16.gmra.mxu2 %v18018_v42  ;;  %v18127_v42 = vld [vmem:[#allocation137_spill] sm:$0xff] }
 0x9c5   : > { %v6221_v22 = vmax.f32 %v6147_v37, 0.0  ;;  %v6376_v41 = vadd.f32 %v6312_v27, %v15405_v51  ;;  %v10358_v27 = vor.u32 %v10996_v52, %v10357_v1  ;;  %v10341_v1 = vld [vmem:[#allocation9 + $0x10] sm:$0xf]  ;;  %v10992_v52 = vld [vmem:[#allocation9 + $0x14] sm:$0xf0] }
 0x9c6   : > { %v6006_v32 = vpop.f32.mrf.mxu1  ;;  %v16166_v2 = vpop.f32.mrf.mxu0 }
 0x9c7   : > { %6188 = vmatmul.bf16.gmra.mxu3 %v18074_v56  ;;  %v6285_v17 = vmul.f32 %v6221_v22, %v18126_v54  ;;  %v6007_v40 = vadd.f32 %v6006_v32, %v5918_v5  ;;  %v16169_v3 = vpack.c.bf16 %v6376_v41, %v6374_v46  ;;  %v6060_v15 = vpop.f32.mrf.mxu2  ;;  %v5920_v46 = vadd.f32 %v15995_v20, %v15817_v11  ;;  %v10349_v41 = vld [vmem:[#allocation9 + $0x20] sm:$0xf]  ;;  %v10994_v32 = vld [vmem:[#allocation9 + $0x24] sm:$0xf0] }
 0x9c8   : > { %v6061_v53 = vadd.f32 %v6060_v15, %v15986_v55  ;;  %7398 = vmatpush.bf16.msra.mxu0 %v10358_v27  ;;  %v18130_v54 = vld [vmem:[#allocation221_spill] sm:$0xff] }
 0x9c9   : > { %v6250_v23 = vmax.f32 %v6007_v40, 0.0  ;;  %6689 = vmatmul.bf16.gmra.mxu0 %v16169_v3  ;;  %v6349_v51 = vadd.f32 %v6285_v17, %v15409_v61  ;;  %v18129_v61 = vld [vmem:[#allocation138_spill] sm:$0xff] }
 0x9ca   : > { %v6149_v36 = vpop.f32.mrf.mxu3 }
 0x9cb   : > { %v6314_v31 = vmul.f32 %v6250_v23, %v18127_v42  ;;  %v6150_v56 = vadd.f32 %v6149_v36, %v6061_v53  ;;  %v16175_v49 = vpack.c.bf16 %v6349_v51, %v6347_v24  ;;  %v10421_v23 = vld [vmem:[#allocation9 + $0xb0] sm:$0xf]  ;;  %v11012_v53 = vld [vmem:[#allocation9 + $0xb4] sm:$0xf0]  ;;  %v10350_v36 = vor.u32 %v10994_v32, %v10349_v41 }
 0x9cc   : > { %v10422_v51 = vor.u32 %v11012_v53, %v10421_v23  ;;  %v18131_v42 = vld [vmem:[#allocation139_spill] sm:$0xff] }
 0x9cd   : > { %v6378_v7 = vadd.f32 %v6314_v31, %v18128_v50  ;;  %v6223_v38 = vmax.f32 %v6150_v56, 0.0  ;;  %6743 = vmatmul.bf16.gmra.mxu1 %v16175_v49  ;;  %7399 = vmatpush.bf16.msra.mxu0 %v10350_v36  ;;  %v18134_v23 = vld [vmem:[#allocation223_spill] sm:$0xff]  ;;  %v18135_v36 = vld [vmem:[#allocation141_spill] sm:$0xff] }
 0x9ce   : > { %v6008_v37 = vpop.f32.mrf.mxu1  ;;  %v16181_v14 = vpop.f32.mrf.mxu0  ;;  %7487 = vmatpush.bf16.msra.mxu1 %v10422_v51 }
 0x9cf   : > { %v6287_v5 = vmul.f32 %v6223_v38, %v18129_v61  ;;  %v6009_v22 = vadd.f32 %v6008_v37, %v5920_v46  ;;  %v6062_v24 = vpop.f32.mrf.mxu2  ;;  %v5923_v46 = vadd.f32 %v16005_v26, %v15817_v11  ;;  %v18132_v38 = vld [vmem:[#allocation222_spill] sm:$0xff]  ;;  %v10342_v37 = vor.u32 %v10992_v52, %v10341_v1 }
 0x9d0   : > { %v6063_v20 = vadd.f32 %v6062_v24, %v15986_v55  ;;  %v10990_v26 = vld [vmem:[#allocation9 + $0x4] sm:$0xf0] }
 0x9d1   : > { %v6351_v17 = vadd.f32 %v6287_v5, %v18130_v54  ;;  %v6252_v40 = vmax.f32 %v6009_v22, 0.0  ;;  %v18133_v22 = vld [vmem:[#allocation140_spill] sm:$0xff]  ;;  %7400 = vmatpush.bf16.msra.mxu0 %v10342_v37 }
 0x9d2   : > { %v6151_v15 = vpop.f32.mrf.mxu3 }
 0x9d3   : > { %v6316_v31 = vmul.f32 %v6252_v40, %v18131_v42  ;;  %v6152_v56 = vadd.f32 %v6151_v15, %v6063_v20  ;;  %v10333_v40 = vld [vmem:[#allocation9] sm:$0xf] }
 0x9d4   : > { %6802 = vmatmul.bf16.vlgmr.msra.gmra.mxu2 %v15849_v10  ;;  %v10334_v53 = vor.u32 %v10990_v26, %v10333_v40  ;;  %v11017_v40 = vld [vmem:[#allocation9 + $0xe4] sm:$0xf]  ;;  %v10447_v26 = vld [vmem:[#allocation9 + $0xe8] sm:$0xf0] }
 0x9d5   : > { %v6225_v50 = vmax.f32 %v6152_v56, 0.0  ;;  %v6380_v27 = vadd.f32 %v6316_v31, %v18132_v38 }
 0x9d6   : > { %v6011_v61 = vpop.f32.mrf.mxu1  ;;  %v16192_v5 = vpop.f32.mrf.mxu0  ;;  %7401 = vmatpush.bf16.msra.mxu0 %v10334_v53 }
 0x9d7   : > { %6891 = vmatmul.bf16.vlgmr.msra.gmra.mxu3 %v16018_v47  ;;  %v6289_v24 = vmul.f32 %v6225_v50, %v18133_v22  ;;  %v6012_v41 = vadd.f32 %v6011_v61, %v5923_v46  ;;  %v16195_v32 = vpack.c.bf16 %v6380_v27, %v6378_v7  ;;  %v6065_v54 = vpop.f32.mrf.mxu2  ;;  %v5925_v7 = vadd.f32 %v16025_v9, %v15817_v11  ;;  %v18136_v50 = vld [vmem:[#allocation142_spill] sm:$0xff]  ;;  %v18137_v61 = vld [vmem:[#allocation224_spill] sm:$0xff] }
 0x9d8   : > { %v6066_v10 = vadd.f32 %v6065_v54, %v15986_v55  ;;  %v11001_v54 = vld [vmem:[#allocation9 + $0x64] sm:$0xf]  ;;  %v10383_v11 = vld [vmem:[#allocation9 + $0x68] sm:$0xf0] }
 0x9d9   : > { %v6254_v20 = vmax.f32 %v6012_v41, 0.0  ;;  %6694 = vmatmul.bf16.gmra.mxu0 %v16195_v32  ;;  %v6353_v47 = vadd.f32 %v6289_v24, %v18134_v23  ;;  %v10386_v9 = vor.u32 %v11001_v54, %v10383_v11  ;;  %v10450_v23 = vor.u32 %v11017_v40, %v10447_v26  ;;  %v18143_v26 = vld [vmem:[#allocation146_spill] sm:$0xff] }
 0x9da   : > { %v6154_v15 = vpop.f32.mrf.mxu3 }
 0x9db   : > { %v6318_v51 = vmul.f32 %v6254_v20, %v18135_v36  ;;  %v6155_v42 = vadd.f32 %v6154_v15, %v6066_v10  ;;  %v16201_v31 = vpack.c.bf16 %v6353_v47, %v6351_v17  ;;  %v18138_v20 = vld [vmem:[#allocation143_spill] sm:$0xff]  ;;  %7573 = vmatpush.bf16.msrb.mxu2 %v10386_v9  ;;  %7662 = vmatpush.bf16.msrb.mxu3 %v10450_v23 }
 0x9dc   : > { %v18139_v36 = vld [vmem:[#allocation67_spill] sm:$0xff] }
 0x9dd   : > { %v6382_v56 = vadd.f32 %v6318_v51, %v15439_v48  ;;  %v6227_v1 = vmax.f32 %v6155_v42, 0.0  ;;  %6748 = vmatmul.bf16.gmra.mxu1 %v16201_v31  ;;  %v16215_v48 = vld [vmem:[%s17334_s10] sm:$0x3] }
 0x9de   : > { %v6013_v52 = vpop.f32.mrf.mxu1  ;;  %v16207_v46 = vpop.f32.mrf.mxu0  ;;  %v16219_v47 = vperm.slane %v16215_v48, 0  ;;  %v18140_v51 = vld [vmem:[#allocation225_spill] sm:$0xff] }
 0x9df   : > { %v6291_v38 = vmul.f32 %v6227_v1, %v18136_v50  ;;  %v6014_v27 = vadd.f32 %v6013_v52, %v5925_v7  ;;  %v6067_v37 = vpop.f32.mrf.mxu2  ;;  %v18141_v1 = vld [vmem:[#allocation144_spill] sm:$0xff] }
 0x9e0   : > { %v6068_v24 = vadd.f32 %v6067_v37, %v15986_v55  ;;  %v6628_v23 = vadd.f32 %v16051_v35, %v16219_v47 }
 0x9e1   : > { %v6355_v22 = vadd.f32 %v6291_v38, %v18137_v61  ;;  %v6256_v17 = vmax.f32 %v6014_v27, 0.0  ;;  %v6626_v27 = vadd.f32 %v16036_v13, %v16219_v47 }
 0x9e2   : > { %v6156_v41 = vpop.f32.mrf.mxu3 }
 0x9e3   : > { %v6320_v10 = vmul.f32 %v6256_v17, %v18138_v20  ;;  %v6157_v15 = vadd.f32 %v6156_v41, %v6068_v24  ;;  %v18142_v17 = vld [vmem:[#allocation20_spill] sm:$0xff]  ;;  %v18144_v20 = vld [vmem:[#allocation145_spill] sm:$0xff] }
 0x9e4   : > { %6807 = vmatmul.bf16.gmra.mxu2 %v18139_v36 }
 0x9e5   : > { %v6229_v53 = vmax.f32 %v6157_v15, 0.0  ;;  %v6384_v42 = vadd.f32 %v6320_v10, %v18140_v51  ;;  %v18146_v51 = vld [vmem:[#allocation226_spill] sm:$0xff] }
 0x9e6   : > { %v16224_v7 = vpop.f32.mrf.mxu0 }
 0x9e7   : > { %6896 = vmatmul.bf16.gmra.mxu3 %v16045_v43  ;;  %v6293_v52 = vmul.f32 %v6229_v53, %v18141_v1  ;;  %v16227_v50 = vpack.c.bf16 %v6384_v42, %v6382_v56  ;;  %v6070_v38 = vpop.f32.mrf.mxu2  ;;  %v18145_v53 = vld [vmem:[#allocation227_spill] sm:$0xff] }
 0x9e8   : > { %v6071_v37 = vadd.f32 %v6070_v38, %v15986_v55  ;;  %v11010_v38 = vld [vmem:[#allocation9 + $0xa4] sm:$0xf0] }
 0x9e9   : > { %6699 = vmatmul.bf16.gmra.mxu0 %v16227_v50  ;;  %v6357_v24 = vadd.f32 %v6293_v52, %v18142_v17  ;;  %v10413_v52 = vld [vmem:[#allocation9 + $0xa0] sm:$0xf] }
 0x9ea   : > { %v6159_v61 = vpop.f32.mrf.mxu3  ;;  %v6714_v41 = vpop.f32.mrf.mxu1 }
 0x9eb   : > { %v6160_v54 = vadd.f32 %v6159_v61, %v6071_v37  ;;  %v6715_v43 = vadd.f32 %v6714_v41, %v6626_v27  ;;  %v16234_v11 = vpack.c.bf16 %v6357_v24, %v6355_v22  ;;  %v10414_v37 = vor.u32 %v11010_v38, %v10413_v52 }
 0x9ed   : > { %v6231_v9 = vmax.f32 %v6160_v54, 0.0  ;;  %v6972_v40 = vmax.f32 %v6715_v43, 0.0  ;;  %6753 = vmatmul.bf16.gmra.mxu1 %v16234_v11  ;;  %v18147_v54 = vld [vmem:[#allocation148_spill] sm:$0xff] }
 0x9ee   : > { %v16237_v56 = vpop.f32.mrf.mxu0  ;;  %7488 = vmatpush.bf16.msra.mxu1 %v10414_v37  ;;  %v18151_v37 = vld [vmem:[#allocation149_spill] sm:$0xff] }
 0x9ef   : > { %v6295_v13 = vmul.f32 %v6231_v9, %v18143_v26  ;;  %v7036_v10 = vmul.f32 %v6972_v40, %v18144_v20  ;;  %v6072_v15 = vpop.f32.mrf.mxu2  ;;  %v18148_v9 = vld [vmem:[#allocation147_spill] sm:$0xff]  ;;  %v18149_v20 = vld [vmem:[#allocation228_spill] sm:$0xff] }
 0x9f0   : > { %v6073_v22 = vadd.f32 %v6072_v15, %v15986_v55 }
 0x9f1   : > { %v6359_v36 = vadd.f32 %v6295_v13, %v18145_v53  ;;  %v7100_v42 = vadd.f32 %v7036_v10, %v18146_v51  ;;  %v6631_v13 = vadd.f32 %v16062_v28, %v16219_v47  ;;  %v18150_v53 = vld [vmem:[#allocation208_spill] sm:$0xff] }
 0x9f2   : > { %v6161_v1 = vpop.f32.mrf.mxu3  ;;  %v6716_v27 = vpop.f32.mrf.mxu1 }
 0x9f3   : > { %v6162_v61 = vadd.f32 %v6161_v1, %v6073_v22  ;;  %v6717_v17 = vadd.f32 %v6716_v27, %v6628_v23 }
 0x9f4   : > { %6812 = vmatmul.bf16.gmra.mxu2 %v15895_v63 }
 0x9f5   : > { %v6233_v24 = vmax.f32 %v6162_v61, 0.0  ;;  %v6974_v41 = vmax.f32 %v6717_v17, 0.0  ;;  %v18152_v17 = vld [vmem:[#allocation59_spill] sm:$0xff] }
 0x9f6   : > { %v16248_v35 = vpop.f32.mrf.mxu0 }
 0x9f7   : > { %6901 = vmatmul.bf16.gmra.mxu3 %v16071_v21  ;;  %v6297_v43 = vmul.f32 %v6233_v24, %v18147_v54  ;;  %v7038_v40 = vmul.f32 %v6974_v41, %v18148_v9  ;;  %v6075_v26 = vpop.f32.mrf.mxu2  ;;  %v18153_v54 = vld [vmem:[#allocation230_spill] sm:$0xff] }
 0x9f8   : > { %v6076_v15 = vadd.f32 %v6075_v26, %v15986_v55 }
 0x9f9   : > { %v7102_v10 = vadd.f32 %v7038_v40, %v18149_v20  ;;  %v6361_v51 = vadd.f32 %v6297_v43, %v18150_v53  ;;  %v10375_v20 = vld [vmem:[#allocation9 + $0x58] sm:$0xf0] }
 0x9fa   : > { %v6164_v23 = vpop.f32.mrf.mxu3  ;;  %v6719_v63 = vpop.f32.mrf.mxu1  ;;  %v10439_v53 = vld [vmem:[#allocation9 + $0xd8] sm:$0xf0] }
 0x9fb   : > { %v16257_v22 = vpack.c.bf16 %v7102_v10, %v7100_v42  ;;  %v6165_v21 = vadd.f32 %v6164_v23, %v6076_v15  ;;  %v6720_v1 = vadd.f32 %v6719_v63, %v6631_v13  ;;  %v16259_v52 = vpack.c.bf16 %v6361_v51, %v6359_v36  ;;  %v18154_v36 = vld [vmem:[#allocation229_spill] sm:$0xff]  ;;  %v10999_v13 = vld [vmem:[#allocation9 + $0x54] sm:$0xf] }
 0x9fc   : > { %v6633_v42 = vadd.f32 %v16077_v30, %v16219_v47  ;;  %v11015_v10 = vld [vmem:[#allocation9 + $0xd4] sm:$0xf]  ;;  %v10378_v23 = vor.u32 %v10999_v13, %v10375_v20 }
 0x9fd   : > { %v6235_v38 = vmax.f32 %v6165_v21, 0.0  ;;  %v6976_v27 = vmax.f32 %v6720_v1, 0.0  ;;  %6758 = vmatmul.bf16.gmra.mxu1 %v16259_v52  ;;  %7402 = vmatmul.bf16.vlgmr.msra.gmra.mxu0 %v16257_v22  ;;  %v10442_v21 = vor.u32 %v11015_v10, %v10439_v53 }
 0x9fe   : > { %v16263_v28 = vpop.f32.mrf.mxu0  ;;  %7574 = vmatpush.bf16.msrb.mxu2 %v10378_v23 }
 0x9ff   : > { %v6299_v61 = vmul.f32 %v6235_v38, %v18151_v37  ;;  %v7040_v24 = vmul.f32 %v6976_v27, %v18152_v17  ;;  %v6077_v41 = vpop.f32.mrf.mxu2  ;;  %7663 = vmatpush.bf16.msrb.mxu3 %v10442_v21  ;;  %v18155_v27 = vld [vmem:[#allocation151_spill] sm:$0xff]  ;;  %v18160_v21 = vld [vmem:[#allocation64_spill] sm:$0xff] }
 0xa00   : > { %v6078_v40 = vadd.f32 %v6077_v41, %v15986_v55  ;;  %v6636_v41 = vadd.f32 %v16088_v57, %v16219_v47 }
 0xa01   : > { %v6363_v43 = vadd.f32 %v6299_v61, %v18153_v54  ;;  %v7104_v9 = vadd.f32 %v7040_v24, %v18154_v36  ;;  %v18156_v61 = vld [vmem:[#allocation150_spill] sm:$0xff]  ;;  %v18157_v36 = vld [vmem:[#allocation209_spill] sm:$0xff] }
 0xa02   : > { %v6166_v26 = vpop.f32.mrf.mxu3  ;;  %v6721_v15 = vpop.f32.mrf.mxu1 }
 0xa03   : > { %v6167_v51 = vadd.f32 %v6166_v26, %v6078_v40  ;;  %v6722_v63 = vadd.f32 %v6721_v15, %v6633_v42  ;;  %v18158_v26 = vld [vmem:[#allocation231_spill] sm:$0xff] }
 0xa04   : > { %6817 = vmatmul.bf16.gmra.mxu2 %v15917_v58 }
 0xa05   : > { %v6237_v1 = vmax.f32 %v6167_v51, 0.0  ;;  %v6978_v38 = vmax.f32 %v6722_v63, 0.0  ;;  %v18159_v51 = vld [vmem:[#allocation152_spill] sm:$0xff] }
 0xa06   : > { %v16274_v30 = vpop.f32.mrf.mxu0 }
 0xa07   : > { %6906 = vmatmul.bf16.gmra.mxu3 %v16097_v60  ;;  %v6301_v37 = vmul.f32 %v6237_v1, %v18155_v27  ;;  %v7042_v17 = vmul.f32 %v6978_v38, %v18156_v61  ;;  %v6080_v24 = vpop.f32.mrf.mxu2  ;;  %v6638_v27 = vadd.f32 %v16103_v16, %v16219_v47 }
 0xa08   : > { %v6081_v42 = vadd.f32 %v6080_v24, %v15986_v55 }
 0xa09   : > { %v6365_v40 = vadd.f32 %v6301_v37, %v18157_v36  ;;  %v7106_v58 = vadd.f32 %v7042_v17, %v18158_v26 }
 0xa0a   : > { %v6169_v54 = vpop.f32.mrf.mxu3  ;;  %v6724_v13 = vpop.f32.mrf.mxu1 }
 0xa0b   : > { %v6170_v20 = vadd.f32 %v6169_v54, %v6081_v42  ;;  %v6725_v60 = vadd.f32 %v6724_v13, %v6636_v41  ;;  %v16283_v10 = vpack.c.bf16 %v6365_v40, %v6363_v43  ;;  %v16285_v15 = vpack.c.bf16 %v7106_v58, %v7104_v9  ;;  %v18161_v43 = vld [vmem:[#allocation233_spill] sm:$0xff]  ;;  %v18162_v9 = vld [vmem:[#allocation232_spill] sm:$0xff]  ;;  %v10405_v41 = vld [vmem:[#allocation9 + $0x90] sm:$0xf] }
 0xa0c   : > { %v11008_v42 = vld [vmem:[#allocation9 + $0x94] sm:$0xf0] }
 0xa0d   : > { %v6239_v23 = vmax.f32 %v6170_v20, 0.0  ;;  %v6980_v53 = vmax.f32 %v6725_v60, 0.0  ;;  %6763 = vmatmul.bf16.gmra.mxu1 %v16283_v10  ;;  %7407 = vmatmul.bf16.gmra.mxu0 %v16285_v15  ;;  %v10406_v36 = vor.u32 %v11008_v42, %v10405_v41  ;;  %v18163_v20 = vld [vmem:[#allocation154_spill] sm:$0xff] }
 0xa0e   : > { %v16289_v57 = vpop.f32.mrf.mxu0 }
 0xa0f   : > { %v6303_v63 = vmul.f32 %v6239_v23, %v18159_v51  ;;  %v7044_v1 = vmul.f32 %v6980_v53, %v18160_v21  ;;  %v6082_v38 = vpop.f32.mrf.mxu2  ;;  %7489 = vmatpush.bf16.msra.mxu1 %v10406_v36  ;;  %v18164_v23 = vld [vmem:[#allocation153_spill] sm:$0xff]  ;;  %v18167_v36 = vld [vmem:[#allocation156_spill] sm:$0xff] }
 0xa10   : > { %v6083_v17 = vadd.f32 %v6082_v38, %v15986_v55  ;;  %v18165_v38 = vld [vmem:[#allocation210_spill] sm:$0xff] }
 0xa11   : > { %v6367_v37 = vadd.f32 %v6303_v63, %v18161_v43  ;;  %v7108_v61 = vadd.f32 %v7044_v1, %v18162_v9  ;;  %v6641_v63 = vadd.f32 %v16114_v0, %v16219_v47  ;;  %v18166_v43 = vld [vmem:[#allocation234_spill] sm:$0xff] }
 0xa12   : > { %v6171_v24 = vpop.f32.mrf.mxu3  ;;  %v6726_v54 = vpop.f32.mrf.mxu1 }
 0xa13   : > { %v6172_v40 = vadd.f32 %v6171_v24, %v6083_v17  ;;  %v6727_v26 = vadd.f32 %v6726_v54, %v6638_v27 }
 0xa14   : > { %6822 = vmatmul.bf16.gmra.mxu2 %v15941_v6 }
 0xa15   : > { %v6241_v58 = vmax.f32 %v6172_v40, 0.0  ;;  %v6982_v13 = vmax.f32 %v6727_v26, 0.0  ;;  %v18168_v26 = vld [vmem:[#allocation155_spill] sm:$0xff] }
 0xa16   : > { %v16300_v16 = vpop.f32.mrf.mxu0 }
 0xa17   : > { %6911 = vmatmul.bf16.gmra.mxu3 %v16123_v34  ;;  %v6305_v60 = vmul.f32 %v6241_v58, %v18163_v20  ;;  %v7046_v53 = vmul.f32 %v6982_v13, %v18164_v23  ;;  %v6085_v51 = vpop.f32.mrf.mxu2  ;;  %v6643_v20 = vadd.f32 %v16129_v12, %v16219_v47 }
 0xa18   : > { %v6086_v21 = vadd.f32 %v6085_v51, %v15986_v55 }
 0xa19   : > { %v6369_v27 = vadd.f32 %v6305_v60, %v18165_v38  ;;  %v7110_v9 = vadd.f32 %v7046_v53, %v18166_v43  ;;  %v10431_v43 = vld [vmem:[#allocation9 + $0xc8] sm:$0xf0] }
 0xa1a   : > { %v6174_v1 = vpop.f32.mrf.mxu3  ;;  %v6729_v6 = vpop.f32.mrf.mxu1 }
 0xa1b   : > { %v6175_v17 = vadd.f32 %v6174_v1, %v6086_v21  ;;  %v6730_v34 = vadd.f32 %v6729_v6, %v6641_v63  ;;  %v16309_v24 = vpack.c.bf16 %v6369_v27, %v6367_v37  ;;  %v16311_v41 = vpack.c.bf16 %v7110_v9, %v7108_v61  ;;  %v18169_v37 = vld [vmem:[#allocation235_spill] sm:$0xff]  ;;  %v18170_v61 = vld [vmem:[#allocation69_spill] sm:$0xff]  ;;  %v10367_v21 = vld [vmem:[#allocation9 + $0x48] sm:$0xf0] }
 0xa1c   : > { %v10997_v63 = vld [vmem:[#allocation9 + $0x44] sm:$0xf] }
 0xa1d   : > { %v6243_v42 = vmax.f32 %v6175_v17, 0.0  ;;  %v6984_v54 = vmax.f32 %v6730_v34, 0.0  ;;  %6768 = vmatmul.bf16.gmra.mxu1 %v16309_v24  ;;  %7412 = vmatmul.bf16.gmra.mxu0 %v16311_v41  ;;  %v11013_v1 = vld [vmem:[#allocation9 + $0xc4] sm:$0xf]  ;;  %v10370_v27 = vor.u32 %v10997_v63, %v10367_v21 }
 0xa1e   : > { %v16315_v0 = vpop.f32.mrf.mxu0  ;;  %v10434_v17 = vor.u32 %v11013_v1, %v10431_v43 }
 0xa1f   : > { %v6307_v40 = vmul.f32 %v6243_v42, %v18167_v36  ;;  %v7048_v58 = vmul.f32 %v6984_v54, %v18168_v26  ;;  %v6087_v13 = vpop.f32.mrf.mxu2  ;;  %7575 = vmatpush.bf16.msrb.mxu2 %v10370_v27  ;;  %v18171_v54 = vld [vmem:[#allocation158_spill] sm:$0xff] }
 0xa20   : > { %v6088_v53 = vadd.f32 %v6087_v13, %v15986_v55  ;;  %7664 = vmatpush.bf16.msrb.mxu3 %v10434_v17  ;;  %v6646_v13 = vadd.f32 %v16140_v4, %v16219_v47  ;;  %v18176_v17 = vld [vmem:[#allocation159_spill] sm:$0xff] }
 0xa21   : > { %v6371_v60 = vadd.f32 %v6307_v40, %v18169_v37  ;;  %v7112_v23 = vadd.f32 %v7048_v58, %v18170_v61  ;;  %v18172_v40 = vld [vmem:[#allocation157_spill] sm:$0xff]  ;;  %v18173_v61 = vld [vmem:[#allocation211_spill] sm:$0xff] }
 0xa22   : > { %v6176_v51 = vpop.f32.mrf.mxu3  ;;  %v6731_v38 = vpop.f32.mrf.mxu1 }
 0xa23   : > { %v6177_v9 = vadd.f32 %v6176_v51, %v6088_v53  ;;  %v6732_v6 = vadd.f32 %v6731_v38, %v6643_v20  ;;  %v18174_v51 = vld [vmem:[#allocation236_spill] sm:$0xff] }
 0xa24   : > { %6827 = vmatmul.bf16.gmra.mxu2 %v15965_v18 }
 0xa25   : > { %v6245_v34 = vmax.f32 %v6177_v9, 0.0  ;;  %v6986_v42 = vmax.f32 %v6732_v6, 0.0  ;;  %v18175_v9 = vld [vmem:[#allocation160_spill] sm:$0xff] }
 0xa26   : > { %v16326_v12 = vpop.f32.mrf.mxu0 }
 0xa27   : > { %6916 = vmatmul.bf16.gmra.mxu3 %v16149_v44  ;;  %v6309_v36 = vmul.f32 %v6245_v34, %v18171_v54  ;;  %v7050_v26 = vmul.f32 %v6986_v42, %v18172_v40  ;;  %v6090_v58 = vpop.f32.mrf.mxu2  ;;  %v6648_v54 = vadd.f32 %v16155_v39, %v16219_v47 }
 0xa28   : > { %v6091_v20 = vadd.f32 %v6090_v58, %v15986_v55 }
 0xa29   : > { %v6373_v53 = vadd.f32 %v6309_v36, %v18173_v61  ;;  %v7114_v18 = vadd.f32 %v7050_v26, %v18174_v51 }
 0xa2a   : > { %v6179_v37 = vpop.f32.mrf.mxu3  ;;  %v6734_v63 = vpop.f32.mrf.mxu1 }
 0xa2b   : > { %v6180_v21 = vadd.f32 %v6179_v37, %v6091_v20  ;;  %v6735_v44 = vadd.f32 %v6734_v63, %v6646_v13  ;;  %v16335_v1 = vpack.c.bf16 %v6373_v53, %v6371_v60  ;;  %v16337_v38 = vpack.c.bf16 %v7114_v18, %v7112_v23  ;;  %v18177_v60 = vld [vmem:[#allocation237_spill] sm:$0xff]  ;;  %v18178_v23 = vld [vmem:[#allocation74_spill] sm:$0xff] }
 0xa2c   : > { %v10397_v13 = vld [vmem:[#allocation9 + $0x80] sm:$0xf]  ;;  %v11006_v20 = vld [vmem:[#allocation9 + $0x84] sm:$0xf0] }
 0xa2d   : > { %v6247_v27 = vmax.f32 %v6180_v21, 0.0  ;;  %v6988_v43 = vmax.f32 %v6735_v44, 0.0  ;;  %6773 = vmatmul.bf16.gmra.mxu1 %v16335_v1  ;;  %7417 = vmatmul.bf16.gmra.mxu0 %v16337_v38  ;;  %v10398_v61 = vor.u32 %v11006_v20, %v10397_v13  ;;  %v18179_v21 = vld [vmem:[#allocation162_spill] sm:$0xff] }
 0xa2e   : > { %v16341_v4 = vpop.f32.mrf.mxu0 }
 0xa2f   : > { %v6311_v6 = vmul.f32 %v6247_v27, %v18175_v9  ;;  %v7052_v34 = vmul.f32 %v6988_v43, %v18176_v17  ;;  %v6092_v42 = vpop.f32.mrf.mxu2  ;;  %7490 = vmatpush.bf16.msra.mxu1 %v10398_v61  ;;  %v18180_v27 = vld [vmem:[#allocation161_spill] sm:$0xff]  ;;  %v18183_v61 = vld [vmem:[#allocation164_spill] sm:$0xff] }
 0xa30   : > { %v6093_v26 = vadd.f32 %v6092_v42, %v15986_v55  ;;  %v18181_v42 = vld [vmem:[#allocation212_spill] sm:$0xff] }
 0xa31   : > { %v6375_v36 = vadd.f32 %v6311_v6, %v18177_v60  ;;  %v7116_v40 = vadd.f32 %v7052_v34, %v18178_v23  ;;  %v6651_v6 = vadd.f32 %v16166_v2, %v16219_v47  ;;  %v18182_v60 = vld [vmem:[#allocation238_spill] sm:$0xff] }
 0xa32   : > { %v6181_v58 = vpop.f32.mrf.mxu3  ;;  %v6736_v37 = vpop.f32.mrf.mxu1 }
 0xa33   : > { %v6182_v53 = vadd.f32 %v6181_v58, %v6093_v26  ;;  %v6737_v51 = vadd.f32 %v6736_v37, %v6648_v54 }
 0xa34   : > { %6832 = vmatmul.bf16.gmra.mxu2 %v15990_v62 }
 0xa35   : > { %v6249_v18 = vmax.f32 %v6182_v53, 0.0  ;;  %v6990_v63 = vmax.f32 %v6737_v51, 0.0  ;;  %v18184_v51 = vld [vmem:[#allocation163_spill] sm:$0xff] }
 0xa36   : > { %v16352_v39 = vpop.f32.mrf.mxu0 }
 0xa37   : > { %6921 = vmatmul.bf16.gmra.mxu3 %v16175_v49  ;;  %v6313_v44 = vmul.f32 %v6249_v18, %v18179_v21  ;;  %v7054_v43 = vmul.f32 %v6990_v63, %v18180_v27  ;;  %v6095_v9 = vpop.f32.mrf.mxu2  ;;  %v6653_v21 = vadd.f32 %v16181_v14, %v16219_v47 }
 0xa38   : > { %v6096_v17 = vadd.f32 %v6095_v9, %v15986_v55 }
 0xa39   : > { %v6377_v54 = vadd.f32 %v6313_v44, %v18181_v42  ;;  %v7118_v23 = vadd.f32 %v7054_v43, %v18182_v60  ;;  %v10423_v60 = vld [vmem:[#allocation9 + $0xb8] sm:$0xf0] }
 0xa3a   : > { %v6184_v34 = vpop.f32.mrf.mxu3  ;;  %v6739_v62 = vpop.f32.mrf.mxu1 }
 0xa3b   : > { %v6185_v26 = vadd.f32 %v6184_v34, %v6096_v17  ;;  %v6740_v49 = vadd.f32 %v6739_v62, %v6651_v6  ;;  %v16361_v58 = vpack.c.bf16 %v6377_v54, %v6375_v36  ;;  %v16363_v13 = vpack.c.bf16 %v7118_v23, %v7116_v40  ;;  %v18185_v36 = vld [vmem:[#allocation240_spill] sm:$0xff]  ;;  %v18186_v40 = vld [vmem:[#allocation239_spill] sm:$0xff] }
 0xa3c   : > { %v10995_v6 = vld [vmem:[#allocation9 + $0x34] sm:$0xf]  ;;  %v10359_v17 = vld [vmem:[#allocation9 + $0x38] sm:$0xf0] }
 0xa3d   : > { %v6251_v20 = vmax.f32 %v6185_v26, 0.0  ;;  %v6992_v37 = vmax.f32 %v6740_v49, 0.0  ;;  %6778 = vmatmul.bf16.gmra.mxu1 %v16361_v58  ;;  %7422 = vmatmul.bf16.gmra.mxu0 %v16363_v13  ;;  %v11011_v34 = vld [vmem:[#allocation9 + $0xb4] sm:$0xf]  ;;  %v10362_v54 = vor.u32 %v10995_v6, %v10359_v17 }
 0xa3e   : > { %v16367_v2 = vpop.f32.mrf.mxu0  ;;  %v10426_v26 = vor.u32 %v11011_v34, %v10423_v60 }
 0xa3f   : > { %v6315_v53 = vmul.f32 %v6251_v20, %v18183_v61  ;;  %v7056_v18 = vmul.f32 %v6992_v37, %v18184_v51  ;;  %v6097_v63 = vpop.f32.mrf.mxu2  ;;  %7576 = vmatpush.bf16.msrb.mxu2 %v10362_v54  ;;  %v18187_v37 = vld [vmem:[#allocation166_spill] sm:$0xff] }
 0xa40   : > { %v6098_v43 = vadd.f32 %v6097_v63, %v15986_v55  ;;  %7665 = vmatpush.bf16.msrb.mxu3 %v10426_v26  ;;  %v6656_v63 = vadd.f32 %v16192_v5, %v16219_v47  ;;  %v18192_v26 = vld [vmem:[#allocation167_spill] sm:$0xff] }
 0xa41   : > { %v6379_v44 = vadd.f32 %v6315_v53, %v18185_v36  ;;  %v7120_v27 = vadd.f32 %v7056_v18, %v18186_v40  ;;  %v18188_v53 = vld [vmem:[#allocation165_spill] sm:$0xff]  ;;  %v18189_v40 = vld [vmem:[#allocation44_spill] sm:$0xff] }
 0xa42   : > { %v6186_v9 = vpop.f32.mrf.mxu3  ;;  %v6741_v42 = vpop.f32.mrf.mxu1 }
 0xa43   : > { %v6187_v23 = vadd.f32 %v6186_v9, %v6098_v43  ;;  %v6742_v62 = vadd.f32 %v6741_v42, %v6653_v21  ;;  %v18190_v9 = vld [vmem:[#allocation241_spill] sm:$0xff] }
 0xa44   : > { %6837 = vmatmul.bf16.gmra.mxu2 %v16013_v59 }
 0xa45   : > { %v6253_v49 = vmax.f32 %v6187_v23, 0.0  ;;  %v6994_v20 = vmax.f32 %v6742_v62, 0.0  ;;  %v18191_v23 = vld [vmem:[#allocation168_spill] sm:$0xff] }
 0xa46   : > { %v16378_v14 = vpop.f32.mrf.mxu0 }
 0xa47   : > { %6926 = vmatmul.bf16.gmra.mxu3 %v16201_v31  ;;  %v6317_v61 = vmul.f32 %v6253_v49, %v18187_v37  ;;  %v7058_v51 = vmul.f32 %v6994_v20, %v18188_v53  ;;  %v6100_v18 = vpop.f32.mrf.mxu2  ;;  %v6658_v37 = vadd.f32 %v16207_v46, %v16219_v47  ;;  %v16404_v46 = vperm.slane %v16215_v48, 1  ;;  %v18198_v48 = vld [vmem:[#allocation244_spill] sm:$0xff] }
 0xa48   : > { %v6101_v21 = vadd.f32 %v6100_v18, %v15986_v55 }
 0xa49   : > { %v6381_v43 = vadd.f32 %v6317_v61, %v18189_v40  ;;  %v7122_v59 = vadd.f32 %v7058_v51, %v18190_v9  ;;  %v11052_v9 = vld [vmem:[#allocation10 + $0xf4] sm:$0xf0] }
 0xa4a   : > { %v6189_v36 = vpop.f32.mrf.mxu3  ;;  %v6744_v6 = vpop.f32.mrf.mxu1 }
 0xa4b   : > { %v6190_v17 = vadd.f32 %v6189_v36, %v6101_v21  ;;  %v6745_v31 = vadd.f32 %v6744_v6, %v6656_v63  ;;  %v16387_v34 = vpack.c.bf16 %v6381_v43, %v6379_v44  ;;  %v16389_v42 = vpack.c.bf16 %v7122_v59, %v7120_v27  ;;  %v18193_v44 = vld [vmem:[#allocation243_spill] sm:$0xff]  ;;  %v18194_v27 = vld [vmem:[#allocation242_spill] sm:$0xff]  ;;  %v11036_v21 = vld [vmem:[#allocation10 + $0x74] sm:$0xf0] }
 0xa4c   : > { %v10517_v63 = vld [vmem:[#allocation10 + $0x70] sm:$0xf] }
 0xa4d   : > { %v6255_v54 = vmax.f32 %v6190_v17, 0.0  ;;  %v6996_v60 = vmax.f32 %v6745_v31, 0.0  ;;  %6783 = vmatmul.bf16.gmra.mxu1 %v16387_v34  ;;  %7427 = vmatmul.bf16.gmra.mxu0 %v16389_v42  ;;  %v10581_v36 = vld [vmem:[#allocation10 + $0xf0] sm:$0xf]  ;;  %v10518_v43 = vor.u32 %v11036_v21, %v10517_v63 }
 0xa4e   : > { %v16393_v5 = vpop.f32.mrf.mxu0  ;;  %v10582_v17 = vor.u32 %v11052_v9, %v10581_v36  ;;  %v18199_v9 = vld [vmem:[#allocation172_spill] sm:$0xff] }
 0xa4f   : > { %v6319_v62 = vmul.f32 %v6255_v54, %v18191_v23  ;;  %v7060_v49 = vmul.f32 %v6996_v60, %v18192_v26  ;;  %v6102_v20 = vpop.f32.mrf.mxu2  ;;  %8044 = vmatpush.bf16.msrb.mxu0 %v10518_v43  ;;  %v18195_v60 = vld [vmem:[#allocation170_spill] sm:$0xff] }
 0xa50   : > { %v6103_v51 = vadd.f32 %v6102_v20, %v15986_v55  ;;  %8133 = vmatpush.bf16.msrb.mxu1 %v10582_v17  ;;  %v6661_v20 = vadd.f32 %v16224_v7, %v16219_v47 }
 0xa51   : > { %v6383_v61 = vadd.f32 %v6319_v62, %v18193_v44  ;;  %v7124_v53 = vadd.f32 %v7060_v49, %v18194_v27  ;;  %v18196_v62 = vld [vmem:[#allocation169_spill] sm:$0xff] }
 0xa52   : > { %v6191_v18 = vpop.f32.mrf.mxu3  ;;  %v6746_v40 = vpop.f32.mrf.mxu1 }
 0xa53   : > { %v6192_v59 = vadd.f32 %v6191_v18, %v6103_v51  ;;  %v6747_v6 = vadd.f32 %v6746_v40, %v6658_v37 }
 0xa54   : > { %6842 = vmatmul.bf16.gmra.mxu2 %v16039_v25  ;;  %v18197_v25 = vld [vmem:[#allocation46_spill] sm:$0xff] }
 0xa55   : > { %v6257_v31 = vmax.f32 %v6192_v59, 0.0  ;;  %v6998_v54 = vmax.f32 %v6747_v6, 0.0  ;;  %v18200_v6 = vld [vmem:[#allocation171_spill] sm:$0xff] }
 0xa56   : > { %v16407_v55 = vpop.f32.mrf.mxu0 }
 0xa57   : > { %6931 = vmatmul.bf16.gmra.mxu3 %v16234_v11  ;;  %v6321_v23 = vmul.f32 %v6257_v31, %v18195_v60  ;;  %v7062_v26 = vmul.f32 %v6998_v54, %v18196_v62  ;;  %v6803_v49 = vpop.f32.mrf.mxu2  ;;  %v6663_v54 = vadd.f32 %v16237_v56, %v16219_v47  ;;  %v18203_v56 = vld [vmem:[#allocation174_spill] sm:$0xff] }
 0xa58   : > { %v6804_v37 = vadd.f32 %v6803_v49, %v16404_v46  ;;  %v10993_v49 = vld [vmem:[#allocation9 + $0x24] sm:$0xf] }
 0xa59   : > { %v6385_v27 = vadd.f32 %v6321_v23, %v18197_v25  ;;  %v7126_v51 = vadd.f32 %v7062_v26, %v18198_v48 }
 0xa5a   : > { %v6892_v44 = vpop.f32.mrf.mxu3  ;;  %v6749_v18 = vpop.f32.mrf.mxu1 }
 0xa5b   : > { %v6893_v63 = vadd.f32 %v6892_v44, %v6804_v37  ;;  %v6750_v11 = vadd.f32 %v6749_v18, %v6661_v20  ;;  %v16416_v21 = vpack.c.bf16 %v6385_v27, %v6383_v61  ;;  %v16418_v36 = vpack.c.bf16 %v7126_v51, %v7124_v53  ;;  %v18201_v61 = vld [vmem:[#allocation246_spill] sm:$0xff]  ;;  %v18202_v53 = vld [vmem:[#allocation245_spill] sm:$0xff] }
 0xa5c   : > { %v10351_v20 = vld [vmem:[#allocation9 + $0x28] sm:$0xf0]  ;;  %v11009_v37 = vld [vmem:[#allocation9 + $0xa4] sm:$0xf] }
 0xa5d   : > { %v6973_v40 = vmax.f32 %v6893_v63, 0.0  ;;  %v7000_v43 = vmax.f32 %v6750_v11, 0.0  ;;  %6788 = vmatmul.bf16.gmra.mxu1 %v16416_v21  ;;  %7432 = vmatmul.bf16.gmra.mxu0 %v16418_v36  ;;  %v10354_v25 = vor.u32 %v10993_v49, %v10351_v20  ;;  %v10415_v27 = vld [vmem:[#allocation9 + $0xa8] sm:$0xf0] }
 0xa5e   : > { %v16422_v7 = vpop.f32.mrf.mxu0  ;;  %v10418_v18 = vor.u32 %v11009_v37, %v10415_v27 }
 0xa5f   : > { %v7037_v59 = vmul.f32 %v6973_v40, %v18199_v9  ;;  %v7064_v17 = vmul.f32 %v7000_v43, %v18200_v6  ;;  %v6805_v31 = vpop.f32.mrf.mxu2  ;;  %7577 = vmatpush.bf16.msrb.mxu2 %v10354_v25  ;;  %v18204_v43 = vld [vmem:[#allocation173_spill] sm:$0xff] }
 0xa60   : > { %v6806_v62 = vadd.f32 %v6805_v31, %v16404_v46  ;;  %7666 = vmatpush.bf16.msrb.mxu3 %v10418_v18  ;;  %v18205_v31 = vld [vmem:[#allocation48_spill] sm:$0xff] }
 0xa61   : > { %v7101_v60 = vadd.f32 %v7037_v59, %v18201_v61  ;;  %v7128_v23 = vadd.f32 %v7064_v17, %v18202_v53  ;;  %v6666_v17 = vadd.f32 %v16248_v35, %v16219_v47  ;;  %v18207_v35 = vld [vmem:[#allocation176_spill] sm:$0xff] }
 0xa62   : > { %v6894_v26 = vpop.f32.mrf.mxu3  ;;  %v6751_v44 = vpop.f32.mrf.mxu1 }
 0xa63   : > { %v6895_v48 = vadd.f32 %v6894_v26, %v6806_v62  ;;  %v6752_v51 = vadd.f32 %v6751_v44, %v6663_v54  ;;  %v18206_v62 = vld [vmem:[#allocation247_spill] sm:$0xff] }
 0xa64   : > { %6847 = vmatmul.bf16.gmra.mxu2 %v16065_v19 }
 0xa65   : > { %v6975_v63 = vmax.f32 %v6895_v48, 0.0  ;;  %v7002_v11 = vmax.f32 %v6752_v51, 0.0  ;;  %v18208_v48 = vld [vmem:[#allocation175_spill] sm:$0xff] }
 0xa66   : > { %v16435_v59 = vpop.f32.mrf.mxu0 }
 0xa67   : > { %6936 = vmatmul.bf16.gmra.mxu3 %v16259_v52  ;;  %v7039_v40 = vmul.f32 %v6975_v63, %v18203_v56  ;;  %v7066_v9 = vmul.f32 %v7002_v11, %v18204_v43  ;;  %v6808_v6 = vpop.f32.mrf.mxu2  ;;  %v6668_v63 = vadd.f32 %v16263_v28, %v16219_v47  ;;  %v18210_v56 = vld [vmem:[#allocation248_spill] sm:$0xff] }
 0xa68   : > { %v6809_v61 = vadd.f32 %v6808_v6, %v16404_v46  ;;  %v11034_v6 = vld [vmem:[#allocation10 + $0x64] sm:$0xf0] }
 0xa69   : > { %v7103_v54 = vadd.f32 %v7039_v40, %v18205_v31  ;;  %v7130_v19 = vadd.f32 %v7066_v9, %v18206_v62  ;;  %v10509_v9 = vld [vmem:[#allocation10 + $0x60] sm:$0xf] }
 0xa6a   : > { %v6897_v53 = vpop.f32.mrf.mxu3  ;;  %v6754_v26 = vpop.f32.mrf.mxu1 }
 0xa6b   : > { %v16442_v49 = vpack.c.bf16 %v7103_v54, %v7101_v60  ;;  %v6898_v52 = vadd.f32 %v6897_v53, %v6809_v61  ;;  %v6755_v20 = vadd.f32 %v6754_v26, %v6666_v17  ;;  %v16444_v37 = vpack.c.bf16 %v7130_v19, %v7128_v23  ;;  %v18209_v60 = vld [vmem:[#allocation19_spill] sm:$0xff]  ;;  %v10573_v17 = vld [vmem:[#allocation10 + $0xe0] sm:$0xf]  ;;  %v11050_v53 = vld [vmem:[#allocation10 + $0xe4] sm:$0xf0] }
 0xa6c   : > { %v10510_v61 = vor.u32 %v11034_v6, %v10509_v9  ;;  %v10574_v26 = vor.u32 %v11050_v53, %v10573_v17 }
 0xa6d   : > { %v6977_v44 = vmax.f32 %v6898_v52, 0.0  ;;  %v7004_v25 = vmax.f32 %v6755_v20, 0.0  ;;  %7437 = vmatmul.bf16.gmra.mxu0 %v16444_v37  ;;  %7491 = vmatmul.bf16.vlgmr.msra.gmra.mxu1 %v16442_v49  ;;  %v18211_v20 = vld [vmem:[#allocation178_spill] sm:$0xff] }
 0xa6e   : > { %v16455_v31 = vpop.f32.mrf.mxu0  ;;  %8045 = vmatpush.bf16.msrb.mxu0 %v10510_v61  ;;  %8134 = vmatpush.bf16.msrb.mxu1 %v10574_v26 }
 0xa6f   : > { %v7041_v27 = vmul.f32 %v6977_v44, %v18207_v35  ;;  %v7068_v51 = vmul.f32 %v7004_v25, %v18208_v48  ;;  %v6810_v18 = vpop.f32.mrf.mxu2  ;;  %v18212_v25 = vld [vmem:[#allocation177_spill] sm:$0xff]  ;;  %v6671_v48 = vadd.f32 %v16274_v30, %v16219_v47  ;;  %v18215_v30 = vld [vmem:[#allocation180_spill] sm:$0xff] }
 0xa70   : > { %v6811_v23 = vadd.f32 %v6810_v18, %v16404_v46 }
 0xa71   : > { %v7105_v11 = vadd.f32 %v7041_v27, %v18209_v60  ;;  %v7132_v40 = vadd.f32 %v7068_v51, %v18210_v56  ;;  %v18214_v56 = vld [vmem:[#allocation23_spill] sm:$0xff] }
 0xa72   : > { %v6899_v43 = vpop.f32.mrf.mxu3  ;;  %v6756_v54 = vpop.f32.mrf.mxu1 }
 0xa73   : > { %v6900_v62 = vadd.f32 %v6899_v43, %v6811_v23  ;;  %v6757_v19 = vadd.f32 %v6756_v54, %v6668_v63  ;;  %v18213_v63 = vld [vmem:[#allocation249_spill] sm:$0xff] }
 0xa74   : > { %6852 = vmatmul.bf16.gmra.mxu2 %v16091_v45 }
 0xa75   : > { %v6979_v28 = vmax.f32 %v6900_v62, 0.0  ;;  %v7006_v52 = vmax.f32 %v6757_v19, 0.0  ;;  %v18216_v62 = vld [vmem:[#allocation179_spill] sm:$0xff] }
 0xa77   : > { %6941 = vmatmul.bf16.gmra.mxu3 %v16283_v10  ;;  %v7043_v44 = vmul.f32 %v6979_v28, %v18211_v20  ;;  %v7070_v35 = vmul.f32 %v7006_v52, %v18212_v25  ;;  %v6813_v27 = vpop.f32.mrf.mxu2  ;;  %v6673_v28 = vadd.f32 %v16289_v57, %v16219_v47  ;;  %v18217_v52 = vld [vmem:[#allocation21_spill] sm:$0xff] }
 0xa78   : > { %v6814_v51 = vadd.f32 %v6813_v27, %v16404_v46  ;;  %v10343_v27 = vld [vmem:[#allocation9 + $0x18] sm:$0xf0] }
 0xa79   : > { %v7134_v60 = vadd.f32 %v7070_v35, %v18213_v63  ;;  %v7107_v23 = vadd.f32 %v7043_v44, %v18214_v56  ;;  %v10991_v35 = vld [vmem:[#allocation9 + $0x14] sm:$0xf] }
 0xa7a   : > { %v6902_v18 = vpop.f32.mrf.mxu3  ;;  %v6759_v43 = vpop.f32.mrf.mxu1  ;;  %v10346_v63 = vor.u32 %v10991_v35, %v10343_v27 }
 0xa7b   : > { %v16466_v45 = vpop.f32.mrf.mxu0  ;;  %v6903_v9 = vadd.f32 %v6902_v18, %v6814_v51  ;;  %v6760_v10 = vadd.f32 %v6759_v43, %v6671_v48  ;;  %v16468_v6 = vpack.c.bf16 %v7134_v60, %v7132_v40  ;;  %v16470_v17 = vpack.c.bf16 %v7107_v23, %v7105_v11  ;;  %v18218_v40 = vld [vmem:[#allocation250_spill] sm:$0xff]  ;;  %v11007_v48 = vld [vmem:[#allocation9 + $0x94] sm:$0xf]  ;;  %v10407_v60 = vld [vmem:[#allocation9 + $0x98] sm:$0xf0] }
 0xa7c   : > { %v10410_v43 = vor.u32 %v11007_v48, %v10407_v60  ;;  %7578 = vmatpush.bf16.msrb.mxu2 %v10346_v63 }
 0xa7d   : > { %v6981_v54 = vmax.f32 %v6903_v9, 0.0  ;;  %v7008_v61 = vmax.f32 %v6760_v10, 0.0  ;;  %7442 = vmatmul.bf16.gmra.mxu0 %v16468_v6  ;;  %7496 = vmatmul.bf16.gmra.mxu1 %v16470_v17  ;;  %v18219_v10 = vld [vmem:[#allocation182_spill] sm:$0xff] }
 0xa7e   : > { %7667 = vmatpush.bf16.msrb.mxu3 %v10410_v43 }
 0xa7f   : > { %v7045_v53 = vmul.f32 %v6981_v54, %v18215_v30  ;;  %v7072_v19 = vmul.f32 %v7008_v61, %v18216_v62  ;;  %v6815_v26 = vpop.f32.mrf.mxu2  ;;  %v18220_v61 = vld [vmem:[#allocation181_spill] sm:$0xff]  ;;  %v6676_v62 = vadd.f32 %v16300_v16, %v16219_v47  ;;  %v18223_v16 = vld [vmem:[#allocation184_spill] sm:$0xff] }
 0xa80   : > { %v6816_v11 = vadd.f32 %v6815_v26, %v16404_v46 }
 0xa81   : > { %v7109_v20 = vadd.f32 %v7045_v53, %v18217_v52  ;;  %v7136_v44 = vadd.f32 %v7072_v19, %v18218_v40  ;;  %v18222_v40 = vld [vmem:[#allocation25_spill] sm:$0xff] }
 0xa82   : > { %v6904_v25 = vpop.f32.mrf.mxu3  ;;  %v6761_v51 = vpop.f32.mrf.mxu1 }
 0xa83   : > { %v16481_v18 = vpop.f32.mrf.mxu0  ;;  %v6905_v56 = vadd.f32 %v6904_v25, %v6816_v11  ;;  %v6762_v23 = vadd.f32 %v6761_v51, %v6673_v28  ;;  %v18221_v28 = vld [vmem:[#allocation251_spill] sm:$0xff] }
 0xa84   : > { %6857 = vmatmul.bf16.gmra.mxu2 %v16117_v33 }
 0xa85   : > { %v6983_v57 = vmax.f32 %v6905_v56, 0.0  ;;  %v7010_v9 = vmax.f32 %v6762_v23, 0.0  ;;  %v18224_v56 = vld [vmem:[#allocation183_spill] sm:$0xff] }
 0xa87   : > { %6946 = vmatmul.bf16.gmra.mxu3 %v16309_v24  ;;  %v7047_v54 = vmul.f32 %v6983_v57, %v18219_v10  ;;  %v7074_v30 = vmul.f32 %v7010_v9, %v18220_v61  ;;  %v6818_v53 = vpop.f32.mrf.mxu2  ;;  %v6678_v57 = vadd.f32 %v16315_v0, %v16219_v47  ;;  %v18225_v9 = vld [vmem:[#allocation52_spill] sm:$0xff] }
 0xa88   : > { %v6819_v19 = vadd.f32 %v6818_v53, %v16404_v46  ;;  %v11032_v53 = vld [vmem:[#allocation10 + $0x54] sm:$0xf0] }
 0xa89   : > { %v7138_v52 = vadd.f32 %v7074_v30, %v18221_v28  ;;  %v7111_v11 = vadd.f32 %v7047_v54, %v18222_v40  ;;  %v10501_v30 = vld [vmem:[#allocation10 + $0x50] sm:$0xf] }
 0xa8a   : > { %v6907_v26 = vpop.f32.mrf.mxu3  ;;  %v6764_v25 = vpop.f32.mrf.mxu1  ;;  %v10502_v28 = vor.u32 %v11032_v53, %v10501_v30 }
 0xa8b   : > { %v16492_v33 = vpop.f32.mrf.mxu0  ;;  %v6908_v35 = vadd.f32 %v6907_v26, %v6819_v19  ;;  %v6765_v24 = vadd.f32 %v6764_v25, %v6676_v62  ;;  %v16494_v27 = vpack.c.bf16 %v7138_v52, %v7136_v44  ;;  %v16496_v48 = vpack.c.bf16 %v7111_v11, %v7109_v20  ;;  %v18226_v44 = vld [vmem:[#allocation88_spill] sm:$0xff]  ;;  %v10565_v62 = vld [vmem:[#allocation10 + $0xd0] sm:$0xf] }
 0xa8c   : > { %v11048_v52 = vld [vmem:[#allocation10 + $0xd4] sm:$0xf0]  ;;  %8046 = vmatpush.bf16.msrb.mxu0 %v10502_v28 }
 0xa8d   : > { %v6985_v51 = vmax.f32 %v6908_v35, 0.0  ;;  %v7012_v63 = vmax.f32 %v6765_v24, 0.0  ;;  %7447 = vmatmul.bf16.gmra.mxu0 %v16494_v27  ;;  %7501 = vmatmul.bf16.gmra.mxu1 %v16496_v48  ;;  %v10566_v25 = vor.u32 %v11048_v52, %v10565_v62  ;;  %v18227_v24 = vld [vmem:[#allocation186_spill] sm:$0xff] }
 0xa8f   : > { %v7049_v60 = vmul.f32 %v6985_v51, %v18223_v16  ;;  %v7076_v23 = vmul.f32 %v7012_v63, %v18224_v56  ;;  %v6820_v43 = vpop.f32.mrf.mxu2  ;;  %8135 = vmatpush.bf16.msrb.mxu1 %v10566_v25  ;;  %v18228_v63 = vld [vmem:[#allocation185_spill] sm:$0xff]  ;;  %v6681_v56 = vadd.f32 %v16326_v12, %v16219_v47  ;;  %v18231_v12 = vld [vmem:[#allocation188_spill] sm:$0xff] }
 0xa90   : > { %v6821_v20 = vadd.f32 %v6820_v43, %v16404_v46 }
 0xa91   : > { %v7113_v10 = vadd.f32 %v7049_v60, %v18225_v9  ;;  %v7140_v54 = vadd.f32 %v7076_v23, %v18226_v44  ;;  %v18230_v44 = vld [vmem:[#allocation27_spill] sm:$0xff] }
 0xa92   : > { %v6909_v61 = vpop.f32.mrf.mxu3  ;;  %v6766_v19 = vpop.f32.mrf.mxu1 }
 0xa93   : > { %v16507_v26 = vpop.f32.mrf.mxu0  ;;  %v6910_v40 = vadd.f32 %v6909_v61, %v6821_v20  ;;  %v6767_v11 = vadd.f32 %v6766_v19, %v6678_v57  ;;  %v18229_v57 = vld [vmem:[#allocation252_spill] sm:$0xff] }
 0xa94   : > { %6862 = vmatmul.bf16.gmra.mxu2 %v16143_v29 }
 0xa95   : > { %v6987_v0 = vmax.f32 %v6910_v40, 0.0  ;;  %v7014_v35 = vmax.f32 %v6767_v11, 0.0  ;;  %v18232_v40 = vld [vmem:[#allocation187_spill] sm:$0xff] }
 0xa97   : > { %6951 = vmatmul.bf16.gmra.mxu3 %v16335_v1  ;;  %v7051_v51 = vmul.f32 %v6987_v0, %v18227_v24  ;;  %v7078_v16 = vmul.f32 %v7014_v35, %v18228_v63  ;;  %v6823_v60 = vpop.f32.mrf.mxu2  ;;  %v6683_v0 = vadd.f32 %v16341_v4, %v16219_v47  ;;  %v18233_v35 = vld [vmem:[#allocation92_spill] sm:$0xff] }
 0xa98   : > { %v6824_v23 = vadd.f32 %v6823_v60, %v16404_v46  ;;  %v10335_v60 = vld [vmem:[#allocation9 + $0x8] sm:$0xf0] }
 0xa99   : > { %v7142_v9 = vadd.f32 %v7078_v16, %v18229_v57  ;;  %v7115_v20 = vadd.f32 %v7051_v51, %v18230_v44  ;;  %v10989_v16 = vld [vmem:[#allocation9 + $0x4] sm:$0xf] }
 0xa9a   : > { %v6912_v43 = vpop.f32.mrf.mxu3  ;;  %v6769_v61 = vpop.f32.mrf.mxu1  ;;  %v10338_v57 = vor.u32 %v10989_v16, %v10335_v60 }
 0xa9b   : > { %v16518_v29 = vpop.f32.mrf.mxu0  ;;  %v6913_v30 = vadd.f32 %v6912_v43, %v6824_v23  ;;  %v6770_v1 = vadd.f32 %v6769_v61, %v6681_v56  ;;  %v16520_v53 = vpack.c.bf16 %v7142_v9, %v7140_v54  ;;  %v16522_v62 = vpack.c.bf16 %v7115_v20, %v7113_v10  ;;  %v18234_v54 = vld [vmem:[#allocation89_spill] sm:$0xff]  ;;  %v10399_v9 = vld [vmem:[#allocation9 + $0x88] sm:$0xf0] }
 0xa9c   : > { %v11005_v56 = vld [vmem:[#allocation9 + $0x84] sm:$0xf]  ;;  %7579 = vmatpush.bf16.msrb.mxu2 %v10338_v57 }
 0xa9d   : > { %v6989_v19 = vmax.f32 %v6913_v30, 0.0  ;;  %v7016_v28 = vmax.f32 %v6770_v1, 0.0  ;;  %7452 = vmatmul.bf16.gmra.mxu0 %v16520_v53  ;;  %7506 = vmatmul.bf16.gmra.mxu1 %v16522_v62  ;;  %v10402_v61 = vor.u32 %v11005_v56, %v10399_v9  ;;  %v18235_v1 = vld [vmem:[#allocation190_spill] sm:$0xff] }
 0xa9f   : > { %v7053_v52 = vmul.f32 %v6989_v19, %v18231_v12  ;;  %v7080_v11 = vmul.f32 %v7016_v28, %v18232_v40  ;;  %v6825_v25 = vpop.f32.mrf.mxu2  ;;  %7668 = vmatpush.bf16.msrb.mxu3 %v10402_v61  ;;  %v18236_v28 = vld [vmem:[#allocation189_spill] sm:$0xff]  ;;  %v6686_v40 = vadd.f32 %v16352_v39, %v16219_v47  ;;  %v18239_v39 = vld [vmem:[#allocation192_spill] sm:$0xff] }
 0xaa0   : > { %v6826_v10 = vadd.f32 %v6825_v25, %v16404_v46 }
 0xaa1   : > { %v7117_v24 = vadd.f32 %v7053_v52, %v18233_v35  ;;  %v7144_v51 = vadd.f32 %v7080_v11, %v18234_v54  ;;  %v18238_v54 = vld [vmem:[#allocation29_spill] sm:$0xff] }
 0xaa2   : > { %v6914_v63 = vpop.f32.mrf.mxu3  ;;  %v6771_v23 = vpop.f32.mrf.mxu1 }
 0xaa3   : > { %v16533_v43 = vpop.f32.mrf.mxu0  ;;  %v6915_v44 = vadd.f32 %v6914_v63, %v6826_v10  ;;  %v6772_v20 = vadd.f32 %v6771_v23, %v6683_v0  ;;  %v18237_v0 = vld [vmem:[#allocation253_spill] sm:$0xff] }
 0xaa4   : > { %6867 = vmatmul.bf16.gmra.mxu2 %v16169_v3 }
 0xaa5   : > { %v6991_v4 = vmax.f32 %v6915_v44, 0.0  ;;  %v7018_v30 = vmax.f32 %v6772_v20, 0.0  ;;  %v18240_v44 = vld [vmem:[#allocation191_spill] sm:$0xff] }
 0xaa7   : > { %6956 = vmatmul.bf16.gmra.mxu3 %v16361_v58  ;;  %v7055_v19 = vmul.f32 %v6991_v4, %v18235_v1  ;;  %v7082_v12 = vmul.f32 %v7018_v30, %v18236_v28  ;;  %v6828_v52 = vpop.f32.mrf.mxu2  ;;  %v6688_v4 = vadd.f32 %v16367_v2, %v16219_v47  ;;  %v18241_v30 = vld [vmem:[#allocation56_spill] sm:$0xff] }
 0xaa8   : > { %v6829_v11 = vadd.f32 %v6828_v52, %v16404_v46  ;;  %v11030_v52 = vld [vmem:[#allocation10 + $0x44] sm:$0xf0] }
 0xaa9   : > { %v7146_v35 = vadd.f32 %v7082_v12, %v18237_v0  ;;  %v7119_v10 = vadd.f32 %v7055_v19, %v18238_v54  ;;  %v10493_v12 = vld [vmem:[#allocation10 + $0x40] sm:$0xf] }
 0xaaa   : > { %v6917_v25 = vpop.f32.mrf.mxu3  ;;  %v6774_v63 = vpop.f32.mrf.mxu1  ;;  %v10494_v0 = vor.u32 %v11030_v52, %v10493_v12 }
 0xaab   : > { %v16544_v3 = vpop.f32.mrf.mxu0  ;;  %v6918_v16 = vadd.f32 %v6917_v25, %v6829_v11  ;;  %v6775_v58 = vadd.f32 %v6774_v63, %v6686_v40  ;;  %v16546_v60 = vpack.c.bf16 %v7146_v35, %v7144_v51  ;;  %v16548_v56 = vpack.c.bf16 %v7119_v10, %v7117_v24  ;;  %v18242_v51 = vld [vmem:[#allocation90_spill] sm:$0xff]  ;;  %v10557_v40 = vld [vmem:[#allocation10 + $0xc0] sm:$0xf] }
 0xaac   : > { %v11046_v35 = vld [vmem:[#allocation10 + $0xc4] sm:$0xf0]  ;;  %8047 = vmatpush.bf16.msrb.mxu0 %v10494_v0 }
 0xaad   : > { %v6993_v23 = vmax.f32 %v6918_v16, 0.0  ;;  %v7020_v57 = vmax.f32 %v6775_v58, 0.0  ;;  %7457 = vmatmul.bf16.gmra.mxu0 %v16546_v60  ;;  %7511 = vmatmul.bf16.gmra.mxu1 %v16548_v56  ;;  %v10558_v63 = vor.u32 %v11046_v35, %v10557_v40  ;;  %v18243_v58 = vld [vmem:[#allocation194_spill] sm:$0xff] }
 0xaaf   : > { %v7057_v9 = vmul.f32 %v6993_v23, %v18239_v39  ;;  %v7084_v20 = vmul.f32 %v7020_v57, %v18240_v44  ;;  %v6830_v61 = vpop.f32.mrf.mxu2  ;;  %8136 = vmatpush.bf16.msrb.mxu1 %v10558_v63  ;;  %v18244_v57 = vld [vmem:[#allocation193_spill] sm:$0xff]  ;;  %v6691_v44 = vadd.f32 %v16378_v14, %v16219_v47  ;;  %v18247_v14 = vld [vmem:[#allocation196_spill] sm:$0xff] }
 0xab0   : > { %v6831_v24 = vadd.f32 %v6830_v61, %v16404_v46 }
 0xab1   : > { %v7121_v1 = vadd.f32 %v7057_v9, %v18241_v30  ;;  %v7148_v19 = vadd.f32 %v7084_v20, %v18242_v51  ;;  %v18246_v51 = vld [vmem:[#allocation31_spill] sm:$0xff] }
 0xab2   : > { %v6919_v28 = vpop.f32.mrf.mxu3  ;;  %v6776_v11 = vpop.f32.mrf.mxu1 }
 0xab3   : > { %v16559_v25 = vpop.f32.mrf.mxu0  ;;  %v6920_v54 = vadd.f32 %v6919_v28, %v6831_v24  ;;  %v6777_v10 = vadd.f32 %v6776_v11, %v6688_v4  ;;  %v18245_v4 = vld [vmem:[#allocation254_spill] sm:$0xff] }
 0xab4   : > { %6872 = vmatmul.bf16.gmra.mxu2 %v16195_v32 }
 0xab5   : > { %v6995_v2 = vmax.f32 %v6920_v54, 0.0  ;;  %v7022_v16 = vmax.f32 %v6777_v10, 0.0  ;;  %v18248_v54 = vld [vmem:[#allocation195_spill] sm:$0xff] }
 0xab7   : > { %6961 = vmatmul.bf16.gmra.mxu3 %v16387_v34  ;;  %v7059_v23 = vmul.f32 %v6995_v2, %v18243_v58  ;;  %v7086_v39 = vmul.f32 %v7022_v16, %v18244_v57  ;;  %v6833_v9 = vpop.f32.mrf.mxu2  ;;  %v6693_v2 = vadd.f32 %v16393_v5, %v16219_v47  ;;  %v18249_v16 = vld [vmem:[#allocation93_spill] sm:$0xff] }
 0xab8   : > { %v6834_v20 = vadd.f32 %v6833_v9, %v16404_v46  ;;  %v10519_v9 = vld [vmem:[#allocation10 + $0x78] sm:$0xf0] }
 0xab9   : > { %v7150_v30 = vadd.f32 %v7086_v39, %v18245_v4  ;;  %v7123_v24 = vadd.f32 %v7059_v23, %v18246_v51  ;;  %v11035_v39 = vld [vmem:[#allocation10 + $0x74] sm:$0xf] }
 0xaba   : > { %v6922_v61 = vpop.f32.mrf.mxu3  ;;  %v6779_v28 = vpop.f32.mrf.mxu1  ;;  %v10522_v4 = vor.u32 %v11035_v39, %v10519_v9 }
 0xabb   : > { %v16570_v32 = vpop.f32.mrf.mxu0  ;;  %v6923_v12 = vadd.f32 %v6922_v61, %v6834_v20  ;;  %v6780_v34 = vadd.f32 %v6779_v28, %v6691_v44  ;;  %v16572_v52 = vpack.c.bf16 %v7150_v30, %v7148_v19  ;;  %v16574_v40 = vpack.c.bf16 %v7123_v24, %v7121_v1  ;;  %v18250_v19 = vld [vmem:[#allocation255_spill] sm:$0xff]  ;;  %v10583_v30 = vld [vmem:[#allocation10 + $0xf8] sm:$0xf0] }
 0xabc   : > { %v11051_v44 = vld [vmem:[#allocation10 + $0xf4] sm:$0xf]  ;;  %8222 = vmatpush.bf16.msra.mxu2 %v10522_v4  ;;  %v11028_v4 = vld [vmem:[#allocation10 + $0x34] sm:$0xf0] }
 0xabd   : > { %v6997_v11 = vmax.f32 %v6923_v12, 0.0  ;;  %v7024_v0 = vmax.f32 %v6780_v34, 0.0  ;;  %7462 = vmatmul.bf16.gmra.mxu0 %v16572_v52  ;;  %7516 = vmatmul.bf16.gmra.mxu1 %v16574_v40  ;;  %v10586_v28 = vor.u32 %v11051_v44, %v10583_v30  ;;  %v18251_v34 = vld [vmem:[#allocation198_spill] sm:$0xff] }
 0xabf   : > { %v7061_v35 = vmul.f32 %v6997_v11, %v18247_v14  ;;  %v7088_v10 = vmul.f32 %v7024_v0, %v18248_v54  ;;  %v6835_v63 = vpop.f32.mrf.mxu2  ;;  %8311 = vmatpush.bf16.msra.mxu3 %v10586_v28  ;;  %v18252_v0 = vld [vmem:[#allocation197_spill] sm:$0xff]  ;;  %v6696_v54 = vadd.f32 %v16407_v55, %v16219_v47 }
 0xac0   : > { %v6836_v1 = vadd.f32 %v6835_v63, %v16404_v46 }
 0xac1   : > { %v7125_v58 = vadd.f32 %v7061_v35, %v18249_v16  ;;  %v7152_v23 = vadd.f32 %v7088_v10, %v18250_v19  ;;  %v18254_v19 = vld [vmem:[#allocation33_spill] sm:$0xff] }
 0xac2   : > { %v6924_v57 = vpop.f32.mrf.mxu3  ;;  %v6781_v20 = vpop.f32.mrf.mxu1 }
 0xac3   : > { %v16585_v61 = vpop.f32.mrf.mxu0  ;;  %v6925_v51 = vadd.f32 %v6924_v57, %v6836_v1  ;;  %v6782_v24 = vadd.f32 %v6781_v20, %v6693_v2  ;;  %v18253_v2 = vld [vmem:[#allocation256_spill] sm:$0xff]  ;;  %v10485_v20 = vld [vmem:[#allocation10 + $0x30] sm:$0xf] }
 0xac4   : > { %6877 = vmatmul.bf16.gmra.mxu2 %v16227_v50 }
 0xac5   : > { %v6999_v5 = vmax.f32 %v6925_v51, 0.0  ;;  %v7026_v12 = vmax.f32 %v6782_v24, 0.0  ;;  %v10486_v51 = vor.u32 %v11028_v4, %v10485_v20  ;;  %v18255_v24 = vld [vmem:[#allocation200_spill] sm:$0xff] }
 0xac6   : > { %v11024_v4 = vld [vmem:[#allocation10 + $0x14] sm:$0xf0] }
 0xac7   : > { %6966 = vmatmul.bf16.gmra.mxu3 %v16416_v21  ;;  %v7063_v11 = vmul.f32 %v6999_v5, %v18251_v34  ;;  %v7090_v14 = vmul.f32 %v7026_v12, %v18252_v0  ;;  %v6838_v35 = vpop.f32.mrf.mxu2  ;;  %v18256_v5 = vld [vmem:[#allocation199_spill] sm:$0xff]  ;;  %8048 = vmatpush.bf16.msrb.mxu0 %v10486_v51  ;;  %v18257_v0 = vld [vmem:[#allocation60_spill] sm:$0xff] }
 0xac8   : > { %v6839_v10 = vadd.f32 %v6838_v35, %v16404_v46  ;;  %v18258_v35 = vld [vmem:[#allocation257_spill] sm:$0xff] }
 0xac9   : > { %v7154_v16 = vadd.f32 %v7090_v14, %v18253_v2  ;;  %v7127_v1 = vadd.f32 %v7063_v11, %v18254_v19  ;;  %v11026_v11 = vld [vmem:[#allocation10 + $0x24] sm:$0xf0]  ;;  %v10549_v2 = vld [vmem:[#allocation10 + $0xb0] sm:$0xf] }
 0xaca   : > { %v6927_v63 = vpop.f32.mrf.mxu3  ;;  %v6784_v57 = vpop.f32.mrf.mxu1 }
 0xacb   : > { %v16596_v50 = vpop.f32.mrf.mxu0  ;;  %v6928_v39 = vadd.f32 %v6927_v63, %v6839_v10  ;;  %v6785_v21 = vadd.f32 %v6784_v57, %v6696_v54  ;;  %v16598_v9 = vpack.c.bf16 %v7154_v16, %v7152_v23  ;;  %v16600_v44 = vpack.c.bf16 %v7127_v1, %v7125_v58  ;;  %v10477_v58 = vld [vmem:[#allocation10 + $0x20] sm:$0xf]  ;;  %v11044_v16 = vld [vmem:[#allocation10 + $0xb4] sm:$0xf0] }
 0xacc   : > { %v6698_v23 = vadd.f32 %v16422_v7, %v16219_v47  ;;  %v10478_v19 = vor.u32 %v11026_v11, %v10477_v58  ;;  %v10469_v7 = vld [vmem:[#allocation10 + $0x10] sm:$0xf]  ;;  %v10461_v58 = vld [vmem:[#allocation10] sm:$0xf]  ;;  %v11022_v11 = vld [vmem:[#allocation10 + $0x4] sm:$0xf0] }
 0xacd   : > { %v7001_v30 = vmax.f32 %v6928_v39, 0.0  ;;  %v7028_v55 = vmax.f32 %v6785_v21, 0.0  ;;  %7467 = vmatmul.bf16.gmra.mxu0 %v16598_v9  ;;  %7521 = vmatmul.bf16.gmra.mxu1 %v16600_v44  ;;  %v10550_v39 = vor.u32 %v11044_v16, %v10549_v2  ;;  %v10470_v51 = vor.u32 %v11024_v4, %v10469_v7  ;;  %v18263_v4 = vld [vmem:[#allocation204_spill] sm:$0xff] }
 0xace   : > { %8049 = vmatpush.bf16.msrb.mxu0 %v10478_v19  ;;  %v10462_v16 = vor.u32 %v11022_v11, %v10461_v58  ;;  %v11033_v58 = vld [vmem:[#allocation10 + $0x64] sm:$0xf]  ;;  %v10511_v11 = vld [vmem:[#allocation10 + $0x68] sm:$0xf0] }
 0xacf   : > { %v7065_v28 = vmul.f32 %v7001_v30, %v18255_v24  ;;  %v7092_v12 = vmul.f32 %v7028_v55, %v18256_v5  ;;  %v6840_v34 = vpop.f32.mrf.mxu2  ;;  %8137 = vmatpush.bf16.msrb.mxu1 %v10550_v39  ;;  %v18259_v24 = vld [vmem:[#allocation202_spill] sm:$0xff]  ;;  %v18260_v5 = vld [vmem:[#allocation201_spill] sm:$0xff] }
 0xad0   : > { %v6841_v10 = vadd.f32 %v6840_v34, %v16404_v46  ;;  %v6701_v34 = vadd.f32 %v16435_v59, %v16219_v47 }
 0xad1   : > { %v7129_v14 = vadd.f32 %v7065_v28, %v18257_v0  ;;  %v7156_v54 = vadd.f32 %v7092_v12, %v18258_v35 }
 0xad2   : > { %v6929_v63 = vpop.f32.mrf.mxu3  ;;  %v6786_v1 = vpop.f32.mrf.mxu1  ;;  %8050 = vmatpush.bf16.msrb.mxu0 %v10470_v51 }
 0xad3   : > { %v16611_v57 = vpop.f32.mrf.mxu0  ;;  %v6930_v21 = vadd.f32 %v6929_v63, %v6841_v10  ;;  %v6787_v20 = vadd.f32 %v6786_v1, %v6698_v23  ;;  %v18261_v10 = vld [vmem:[#allocation258_spill] sm:$0xff] }
 0xad4   : > { %7580 = vmatmul.bf16.vlgmr.msrb.gmra.mxu2 %v16257_v22  ;;  %v18262_v22 = vld [vmem:[#allocation35_spill] sm:$0xff] }
 0xad5   : > { %v7003_v30 = vmax.f32 %v6930_v21, 0.0  ;;  %v7030_v55 = vmax.f32 %v6787_v20, 0.0 }
 0xad6   : > { %8051 = vmatpush.bf16.msrb.mxu0 %v10462_v16 }
 0xad7   : > { %7669 = vmatmul.bf16.vlgmr.msrb.gmra.mxu3 %v16442_v49  ;;  %v7067_v28 = vmul.f32 %v7003_v30, %v18259_v24  ;;  %v7094_v12 = vmul.f32 %v7030_v55, %v18260_v5  ;;  %v6843_v23 = vpop.f32.mrf.mxu2  ;;  %v18264_v55 = vld [vmem:[#allocation203_spill] sm:$0xff]  ;;  %v18265_v5 = vld [vmem:[#allocation62_spill] sm:$0xff] }
 0xad8   : > { %v6844_v0 = vadd.f32 %v6843_v23, %v16404_v46 }
 0xad9   : > { %v7158_v63 = vadd.f32 %v7094_v12, %v18261_v10  ;;  %v7131_v2 = vadd.f32 %v7067_v28, %v18262_v22  ;;  %v6703_v28 = vadd.f32 %v16455_v31, %v16219_v47  ;;  %v18266_v12 = vld [vmem:[#allocation259_spill] sm:$0xff]  ;;  %v10575_v22 = vld [vmem:[#allocation10 + $0xe8] sm:$0xf0] }
 0xada   : > { %v6932_v35 = vpop.f32.mrf.mxu3  ;;  %v6789_v49 = vpop.f32.mrf.mxu1 }
 0xadb   : > { %v16622_v19 = vpop.f32.mrf.mxu0  ;;  %v6933_v1 = vadd.f32 %v6932_v35, %v6844_v0  ;;  %v6790_v39 = vadd.f32 %v6789_v49, %v6701_v34  ;;  %v16624_v21 = vpack.c.bf16 %v7158_v63, %v7156_v54  ;;  %v16626_v59 = vpack.c.bf16 %v7131_v2, %v7129_v14  ;;  %v11049_v0 = vld [vmem:[#allocation10 + $0xe4] sm:$0xf] }
 0xadc   : > { %v10514_v63 = vor.u32 %v11033_v58, %v10511_v11  ;;  %v10578_v49 = vor.u32 %v11049_v0, %v10575_v22 }
 0xadd   : > { %v7005_v20 = vmax.f32 %v6933_v1, 0.0  ;;  %v7032_v7 = vmax.f32 %v6790_v39, 0.0  ;;  %7472 = vmatmul.bf16.gmra.mxu0 %v16624_v21  ;;  %7526 = vmatmul.bf16.gmra.mxu1 %v16626_v59  ;;  %v18267_v1 = vld [vmem:[#allocation206_spill] sm:$0xff] }
 0xade   : > { %8223 = vmatpush.bf16.msra.mxu2 %v10514_v63  ;;  %8312 = vmatpush.bf16.msra.mxu3 %v10578_v49 }
 0xadf   : > { %v7069_v30 = vmul.f32 %v7005_v20, %v18263_v4  ;;  %v7096_v51 = vmul.f32 %v7032_v7, %v18264_v55  ;;  %v6845_v24 = vpop.f32.mrf.mxu2  ;;  %v18268_v20 = vld [vmem:[#allocation205_spill] sm:$0xff] }
 0xae0   : > { %v6846_v14 = vadd.f32 %v6845_v24, %v16404_v46 }
 0xae1   : > { %v7133_v54 = vadd.f32 %v7069_v30, %v18265_v5  ;;  %v7160_v34 = vadd.f32 %v7096_v51, %v18266_v12  ;;  %v18269_v51 = vld [vmem:[#allocation260_spill] sm:$0xff] }
 0xae2   : > { %v6934_v23 = vpop.f32.mrf.mxu3  ;;  %v6791_v35 = vpop.f32.mrf.mxu1 }
 0xae3   : > { %v16637_v10 = vpop.f32.mrf.mxu0  ;;  %v6935_v2 = vadd.f32 %v6934_v23, %v6846_v14  ;;  %v6792_v16 = vadd.f32 %v6791_v35, %v6703_v28  ;;  %v18270_v28 = vld [vmem:[#allocation261_spill] sm:$0xff]  ;;  %v18271_v35 = vld [vmem:[#allocation18_spill] sm:$0xff] }
 0xae4   : > { %7585 = vmatmul.bf16.gmra.mxu2 %v16285_v15 }
 0xae5   : > { %v7007_v47 = vmax.f32 %v6935_v2, 0.0  ;;  %v7034_v31 = vmax.f32 %v6792_v16, 0.0  ;;  %v18272_v2 = vld [vmem:[#allocation37_spill] sm:$0xff] }
 0xae7   : > { %7674 = vmatmul.bf16.gmra.mxu3 %v16470_v17  ;;  %v7071_v39 = vmul.f32 %v7007_v47, %v18267_v1  ;;  %v7098_v7 = vmul.f32 %v7034_v31, %v18268_v20  ;;  %v6848_v4 = vpop.f32.mrf.mxu2  ;;  %v16653_v17 = vld [vmem:[%s17336_s12] sm:$0x3]  ;;  %v11042_v31 = vld [vmem:[#allocation10 + $0xa4] sm:$0xf0] }
 0xae8   : > { %v6849_v30 = vadd.f32 %v6848_v4, %v16404_v46  ;;  %v16660_v0 = vperm.slane %v16653_v17, 0  ;;  %v10541_v47 = vld [vmem:[#allocation10 + $0xa0] sm:$0xf] }
 0xae9   : > { %v7162_v24 = vadd.f32 %v7098_v7, %v18269_v51  ;;  %v7135_v5 = vadd.f32 %v7071_v39, %v18270_v28  ;;  %v10542_v20 = vor.u32 %v11042_v31, %v10541_v47  ;;  %v18276_v31 = vld [vmem:[#allocation65_spill] sm:$0xff] }
 0xaea   : > { %v6937_v55 = vpop.f32.mrf.mxu3  ;;  %v7492_v14 = vpop.f32.mrf.mxu1  ;;  %v7404_v7 = vadd.f32 %v16466_v45, %v16660_v0 }
 0xaeb   : > { %v16646_v12 = vpop.f32.mrf.mxu0  ;;  %v6938_v23 = vadd.f32 %v6937_v55, %v6849_v30  ;;  %v16648_v15 = vpack.c.bf16 %v7162_v24, %v7160_v34  ;;  %v16655_v58 = vpack.c.bf16 %v7135_v5, %v7133_v54  ;;  %v7406_v34 = vadd.f32 %v16481_v18, %v16660_v0  ;;  %8138 = vmatpush.bf16.msrb.mxu1 %v10542_v20  ;;  %v18273_v18 = vld [vmem:[#allocation207_spill] sm:$0xff] }
 0xaec   : > { %v7493_v55 = vadd.f32 %v7492_v14, %v7404_v7 }
 0xaed   : > { %v7009_v11 = vmax.f32 %v6938_v23, 0.0  ;;  %7477 = vmatmul.bf16.gmra.mxu0 %v16648_v15  ;;  %7531 = vmatmul.bf16.gmra.mxu1 %v16655_v58 }
 0xaee   : > { %v7750_v23 = vmax.f32 %v7493_v55, 0.0  ;;  %v11047_v55 = vld [vmem:[#allocation10 + $0xd4] sm:$0xf] }
 0xaef   : > { %v7073_v63 = vmul.f32 %v7009_v11, %v18271_v35  ;;  %v6850_v22 = vpop.f32.mrf.mxu2 }
 0xaf0   : > { %v6851_v49 = vadd.f32 %v6850_v22, %v16404_v46 }
 0xaf1   : > { %v7137_v16 = vadd.f32 %v7073_v63, %v18272_v2  ;;  %v18274_v63 = vld [vmem:[#allocation54_spill] sm:$0xff] }
 0xaf2   : > { %v6939_v54 = vpop.f32.mrf.mxu3  ;;  %v7494_v39 = vpop.f32.mrf.mxu1 }
 0xaf3   : > { %v16667_v1 = vpop.f32.mrf.mxu0  ;;  %v6940_v4 = vadd.f32 %v6939_v54, %v6851_v49  ;;  %v7495_v30 = vadd.f32 %v7494_v39, %v7406_v34 }
 0xaf4   : > { %7590 = vmatmul.bf16.gmra.mxu2 %v16311_v41 }
 0xaf5   : > { %v7011_v51 = vmax.f32 %v6940_v4, 0.0  ;;  %v7752_v28 = vmax.f32 %v7495_v30, 0.0  ;;  %v11031_v4 = vld [vmem:[#allocation10 + $0x54] sm:$0xf]  ;;  %v10503_v30 = vld [vmem:[#allocation10 + $0x58] sm:$0xf0] }
 0xaf7   : > { %7679 = vmatmul.bf16.gmra.mxu3 %v16496_v48  ;;  %v7075_v24 = vmul.f32 %v7011_v51, %v18273_v18  ;;  %v6853_v5 = vpop.f32.mrf.mxu2  ;;  %v16678_v34 = vpack.c.bf16 %v7752_v28, %v7750_v23  ;;  %v18275_v48 = vld [vmem:[#allocation22_spill] sm:$0xff]  ;;  %v10506_v18 = vor.u32 %v11031_v4, %v10503_v30  ;;  %v7409_v28 = vadd.f32 %v16492_v33, %v16660_v0 }
 0xaf8   : > { %v6854_v11 = vadd.f32 %v6853_v5, %v16404_v46 }
 0xaf9   : > { %v7139_v22 = vadd.f32 %v7075_v24, %v18274_v63  ;;  %v10567_v24 = vld [vmem:[#allocation10 + $0xd8] sm:$0xf0]  ;;  %8224 = vmatpush.bf16.msra.mxu2 %v10506_v18 }
 0xafa   : > { %v6942_v35 = vpop.f32.mrf.mxu3  ;;  %v7497_v2 = vpop.f32.mrf.mxu1 }
 0xafb   : > { %v16676_v45 = vpop.f32.mrf.mxu0  ;;  %v6943_v14 = vadd.f32 %v6942_v35, %v6854_v11  ;;  %v16680_v49 = vpack.c.bf16 %v7139_v22, %v7137_v16  ;;  %v7411_v16 = vadd.f32 %v16507_v26, %v16660_v0  ;;  %v10570_v11 = vor.u32 %v11047_v55, %v10567_v24  ;;  %v18277_v26 = vld [vmem:[#allocation24_spill] sm:$0xff] }
 0xafc   : > { %v7498_v63 = vadd.f32 %v7497_v2, %v7409_v28 }
 0xafd   : > { %v7013_v41 = vmax.f32 %v6943_v14, 0.0  ;;  %8052 = vmatmul.bf16.vlgmr.msrb.gmra.mxu0 %v16678_v34  ;;  %7536 = vmatmul.bf16.gmra.mxu1 %v16680_v49 }
 0xafe   : > { %8313 = vmatpush.bf16.msra.mxu3 %v10570_v11  ;;  %v11040_v11 = vld [vmem:[#allocation10 + $0x94] sm:$0xf0] }
 0xaff   : > { %v7077_v54 = vmul.f32 %v7013_v41, %v18275_v48  ;;  %v6855_v47 = vpop.f32.mrf.mxu2 }
 0xb00   : > { %v6856_v20 = vadd.f32 %v6855_v47, %v16404_v46 }
 0xb01   : > { %v7141_v39 = vadd.f32 %v7077_v54, %v18276_v31  ;;  %v7754_v54 = vmax.f32 %v7498_v63, 0.0  ;;  %v18278_v31 = vld [vmem:[#allocation57_spill] sm:$0xff] }
 0xb02   : > { %v6944_v7 = vpop.f32.mrf.mxu3  ;;  %v7499_v23 = vpop.f32.mrf.mxu1 }
 0xb03   : > { %v16689_v51 = vpop.f32.mrf.mxu0  ;;  %v6945_v5 = vadd.f32 %v6944_v7, %v6856_v20  ;;  %v7500_v35 = vadd.f32 %v7499_v23, %v7411_v16  ;;  %v10533_v23 = vld [vmem:[#allocation10 + $0x90] sm:$0xf] }
 0xb04   : > { %7595 = vmatmul.bf16.gmra.mxu2 %v16337_v38  ;;  %v10534_v63 = vor.u32 %v11040_v11, %v10533_v23  ;;  %v18283_v11 = vld [vmem:[#allocation58_spill] sm:$0xff] }
 0xb05   : > { %v7015_v22 = vmax.f32 %v6945_v5, 0.0  ;;  %v7756_v41 = vmax.f32 %v7500_v35, 0.0 }
 0xb06   : > { %8139 = vmatpush.bf16.msrb.mxu1 %v10534_v63 }
 0xb07   : > { %7684 = vmatmul.bf16.gmra.mxu3 %v16522_v62  ;;  %v7079_v14 = vmul.f32 %v7015_v22, %v18277_v26  ;;  %v6858_v48 = vpop.f32.mrf.mxu2  ;;  %v16702_v38 = vpack.c.bf16 %v7756_v41, %v7754_v54  ;;  %v18279_v62 = vld [vmem:[#allocation26_spill] sm:$0xff]  ;;  %v7414_v22 = vadd.f32 %v16518_v29, %v16660_v0  ;;  %v18280_v54 = vld [vmem:[#allocation28_spill] sm:$0xff] }
 0xb08   : > { %v6859_v47 = vadd.f32 %v6858_v48, %v16404_v46 }
 0xb09   : > { %v7143_v20 = vadd.f32 %v7079_v14, %v18278_v31 }
 0xb0a   : > { %v6947_v33 = vpop.f32.mrf.mxu3  ;;  %v7502_v2 = vpop.f32.mrf.mxu1 }
 0xb0b   : > { %v16698_v7 = vpop.f32.mrf.mxu0  ;;  %v6948_v4 = vadd.f32 %v6947_v33, %v6859_v47  ;;  %v16700_v30 = vpack.c.bf16 %v7143_v20, %v7141_v39  ;;  %v7416_v39 = vadd.f32 %v16533_v43, %v16660_v0  ;;  %v7503_v48 = vadd.f32 %v7502_v2, %v7414_v22 }
 0xb0d   : > { %v7017_v55 = vmax.f32 %v6948_v4, 0.0  ;;  %8057 = vmatmul.bf16.gmra.mxu0 %v16702_v38  ;;  %7541 = vmatmul.bf16.gmra.mxu1 %v16700_v30  ;;  %v7758_v31 = vmax.f32 %v7503_v48, 0.0 }
 0xb0f   : > { %v7081_v16 = vmul.f32 %v7017_v55, %v18279_v62  ;;  %v6860_v18 = vpop.f32.mrf.mxu2  ;;  %v18281_v55 = vld [vmem:[#allocation70_spill] sm:$0xff] }
 0xb10   : > { %v6861_v28 = vadd.f32 %v6860_v18, %v16404_v46 }
 0xb11   : > { %v7145_v24 = vadd.f32 %v7081_v16, %v15879_v8 }
 0xb12   : > { %v6949_v5 = vpop.f32.mrf.mxu3  ;;  %v7504_v14 = vpop.f32.mrf.mxu1 }
 0xb13   : > { %v16711_v35 = vpop.f32.mrf.mxu0  ;;  %v6950_v26 = vadd.f32 %v6949_v5, %v6861_v28  ;;  %v7505_v41 = vadd.f32 %v7504_v14, %v7416_v39  ;;  %v10495_v14 = vld [vmem:[#allocation10 + $0x48] sm:$0xf0] }
 0xb14   : > { %7600 = vmatmul.bf16.gmra.mxu2 %v16363_v13 }
 0xb15   : > { %v7019_v8 = vmax.f32 %v6950_v26, 0.0  ;;  %v7760_v33 = vmax.f32 %v7505_v41, 0.0  ;;  %v11029_v26 = vld [vmem:[#allocation10 + $0x44] sm:$0xf] }
 0xb16   : > { %v11045_v41 = vld [vmem:[#allocation10 + $0xc4] sm:$0xf] }
 0xb17   : > { %7689 = vmatmul.bf16.gmra.mxu3 %v16548_v56  ;;  %v7083_v47 = vmul.f32 %v7019_v8, %v18280_v54  ;;  %v6863_v43 = vpop.f32.mrf.mxu2  ;;  %v16724_v28 = vpack.c.bf16 %v7760_v33, %v7758_v31  ;;  %v18282_v56 = vld [vmem:[#allocation30_spill] sm:$0xff]  ;;  %v10498_v8 = vor.u32 %v11029_v26, %v10495_v14 }
 0xb18   : > { %v6864_v20 = vadd.f32 %v6863_v43, %v16404_v46  ;;  %v10559_v54 = vld [vmem:[#allocation10 + $0xc8] sm:$0xf0] }
 0xb19   : > { %v7147_v29 = vadd.f32 %v7083_v47, %v18281_v55  ;;  %v7419_v47 = vadd.f32 %v16544_v3, %v16660_v0  ;;  %v10562_v31 = vor.u32 %v11045_v41, %v10559_v54  ;;  %8225 = vmatpush.bf16.msra.mxu2 %v10498_v8  ;;  %v18287_v8 = vld [vmem:[#allocation61_spill] sm:$0xff] }
 0xb1a   : > { %v6952_v4 = vpop.f32.mrf.mxu3  ;;  %v7507_v18 = vpop.f32.mrf.mxu1 }
 0xb1b   : > { %v16720_v62 = vpop.f32.mrf.mxu0  ;;  %v6953_v16 = vadd.f32 %v6952_v4, %v6864_v20  ;;  %v16722_v2 = vpack.c.bf16 %v7147_v29, %v7145_v24  ;;  %v7421_v24 = vadd.f32 %v16559_v25, %v16660_v0  ;;  %v7508_v4 = vadd.f32 %v7507_v18, %v7419_v47  ;;  %8314 = vmatpush.bf16.msra.mxu3 %v10562_v31  ;;  %v18284_v25 = vld [vmem:[#allocation32_spill] sm:$0xff]  ;;  %v11038_v31 = vld [vmem:[#allocation10 + $0x84] sm:$0xf0] }
 0xb1d   : > { %v7021_v13 = vmax.f32 %v6953_v16, 0.0  ;;  %8062 = vmatmul.bf16.gmra.mxu0 %v16724_v28  ;;  %7546 = vmatmul.bf16.gmra.mxu1 %v16722_v2 }
 0xb1f   : > { %v7085_v5 = vmul.f32 %v7021_v13, %v18282_v56  ;;  %v6865_v23 = vpop.f32.mrf.mxu2  ;;  %v7762_v56 = vmax.f32 %v7508_v4, 0.0 }
 0xb20   : > { %v6866_v63 = vadd.f32 %v6865_v23, %v16404_v46  ;;  %v18285_v23 = vld [vmem:[#allocation39_spill] sm:$0xff] }
 0xb21   : > { %v7149_v39 = vadd.f32 %v7085_v5, %v18283_v11 }
 0xb22   : > { %v6954_v22 = vpop.f32.mrf.mxu3  ;;  %v7509_v43 = vpop.f32.mrf.mxu1 }
 0xb23   : > { %v16733_v48 = vpop.f32.mrf.mxu0  ;;  %v6955_v33 = vadd.f32 %v6954_v22, %v6866_v63  ;;  %v7510_v20 = vadd.f32 %v7509_v43, %v7421_v24  ;;  %v10525_v43 = vld [vmem:[#allocation10 + $0x80] sm:$0xf] }
 0xb24   : > { %7605 = vmatmul.bf16.gmra.mxu2 %v16389_v42  ;;  %v10526_v4 = vor.u32 %v11038_v31, %v10525_v43  ;;  %v11043_v31 = vld [vmem:[#allocation10 + $0xb4] sm:$0xf] }
 0xb25   : > { %v7023_v55 = vmax.f32 %v6955_v33, 0.0  ;;  %v7764_v16 = vmax.f32 %v7510_v20, 0.0 }
 0xb26   : > { %8140 = vmatpush.bf16.msrb.mxu1 %v10526_v4  ;;  %v18290_v4 = vld [vmem:[#allocation38_spill] sm:$0xff] }
 0xb27   : > { %7694 = vmatmul.bf16.gmra.mxu3 %v16574_v40  ;;  %v7087_v29 = vmul.f32 %v7023_v55, %v18284_v25  ;;  %v6868_v13 = vpop.f32.mrf.mxu2  ;;  %v16746_v42 = vpack.c.bf16 %v7764_v16, %v7762_v56  ;;  %v18286_v40 = vld [vmem:[#allocation34_spill] sm:$0xff]  ;;  %v7424_v55 = vadd.f32 %v16570_v32, %v16660_v0 }
 0xb28   : > { %v6869_v5 = vadd.f32 %v6868_v13, %v16404_v46 }
 0xb29   : > { %v7151_v11 = vadd.f32 %v7087_v29, %v18285_v23 }
 0xb2a   : > { %v6957_v3 = vpop.f32.mrf.mxu3  ;;  %v7512_v18 = vpop.f32.mrf.mxu1 }
 0xb2b   : > { %v16742_v63 = vpop.f32.mrf.mxu0  ;;  %v6958_v22 = vadd.f32 %v6957_v3, %v6869_v5  ;;  %v16744_v26 = vpack.c.bf16 %v7151_v11, %v7149_v39  ;;  %v7426_v39 = vadd.f32 %v16585_v61, %v16660_v0  ;;  %v7513_v13 = vadd.f32 %v7512_v18, %v7424_v55  ;;  %v18288_v5 = vld [vmem:[#allocation36_spill] sm:$0xff] }
 0xb2d   : > { %v7025_v14 = vmax.f32 %v6958_v22, 0.0  ;;  %8067 = vmatmul.bf16.gmra.mxu0 %v16746_v42  ;;  %7551 = vmatmul.bf16.gmra.mxu1 %v16744_v26  ;;  %v7766_v11 = vmax.f32 %v7513_v13, 0.0 }
 0xb2f   : > { %v7089_v41 = vmul.f32 %v7025_v14, %v18286_v40  ;;  %v6870_v24 = vpop.f32.mrf.mxu2  ;;  %v18289_v40 = vld [vmem:[#allocation41_spill] sm:$0xff] }
 0xb30   : > { %v6871_v47 = vadd.f32 %v6870_v24, %v16404_v46 }
 0xb31   : > { %v7153_v54 = vadd.f32 %v7089_v41, %v18287_v8 }
 0xb32   : > { %v6959_v33 = vpop.f32.mrf.mxu3  ;;  %v7514_v29 = vpop.f32.mrf.mxu1 }
 0xb33   : > { %v16755_v20 = vpop.f32.mrf.mxu0  ;;  %v6960_v25 = vadd.f32 %v6959_v33, %v6871_v47  ;;  %v7515_v16 = vadd.f32 %v7514_v29, %v7426_v39  ;;  %v10487_v33 = vld [vmem:[#allocation10 + $0x38] sm:$0xf0] }
 0xb34   : > { %7610 = vmatmul.bf16.gmra.mxu2 %v16418_v36  ;;  %v10551_v39 = vld [vmem:[#allocation10 + $0xb8] sm:$0xf0] }
 0xb35   : > { %v7027_v56 = vmax.f32 %v6960_v25, 0.0  ;;  %v7768_v23 = vmax.f32 %v7515_v16, 0.0  ;;  %v10554_v25 = vor.u32 %v11043_v31, %v10551_v39  ;;  %v18291_v16 = vld [vmem:[#allocation43_spill] sm:$0xff] }
 0xb36   : > { %v18293_v31 = vld [vmem:[#allocation63_spill] sm:$0xff] }
 0xb37   : > { %7699 = vmatmul.bf16.gmra.mxu3 %v16600_v44  ;;  %v7091_v3 = vmul.f32 %v7027_v56, %v18288_v5  ;;  %v6873_v61 = vpop.f32.mrf.mxu2  ;;  %v16768_v47 = vpack.c.bf16 %v7768_v23, %v7766_v11  ;;  %v11027_v44 = vld [vmem:[#allocation10 + $0x34] sm:$0xf]  ;;  %v7431_v5 = vadd.f32 %v16611_v57, %v16660_v0  ;;  %v7429_v23 = vadd.f32 %v16596_v50, %v16660_v0 }
 0xb38   : > { %v6874_v22 = vadd.f32 %v6873_v61, %v16404_v46  ;;  %v10490_v43 = vor.u32 %v11027_v44, %v10487_v33  ;;  %8315 = vmatpush.bf16.msra.mxu3 %v10554_v25 }
 0xb39   : > { %v7155_v32 = vadd.f32 %v7091_v3, %v18289_v40 }
 0xb3a   : > { %v6962_v14 = vpop.f32.mrf.mxu3  ;;  %v7517_v8 = vpop.f32.mrf.mxu1  ;;  %8226 = vmatpush.bf16.msra.mxu2 %v10490_v43 }
 0xb3b   : > { %v16764_v41 = vpop.f32.mrf.mxu0  ;;  %v6963_v24 = vadd.f32 %v6962_v14, %v6874_v22  ;;  %v16766_v18 = vpack.c.bf16 %v7155_v32, %v7153_v54  ;;  %v7518_v14 = vadd.f32 %v7517_v8, %v7429_v23  ;;  %v18292_v32 = vld [vmem:[#allocation40_spill] sm:$0xff] }
 0xb3d   : > { %v7029_v36 = vmax.f32 %v6963_v24, 0.0  ;;  %8072 = vmatmul.bf16.gmra.mxu0 %v16768_v47  ;;  %7556 = vmatmul.bf16.gmra.mxu1 %v16766_v18  ;;  %v7770_v33 = vmax.f32 %v7518_v14, 0.0  ;;  %v7434_v14 = vadd.f32 %v16622_v19, %v16660_v0 }
 0xb3f   : > { %v7093_v55 = vmul.f32 %v7029_v36, %v18290_v4  ;;  %v6875_v29 = vpop.f32.mrf.mxu2 }
 0xb40   : > { %v6876_v13 = vadd.f32 %v6875_v29, %v16404_v46  ;;  %v11068_v29 = vld [vmem:[#allocation12 + $0x78] sm:$0xff] }
 0xb41   : > { %v7157_v54 = vadd.f32 %v7093_v55, %v18291_v16  ;;  %v18294_v16 = vld [vmem:[#allocation84_spill] sm:$0xff]  ;;  %8717 = vmatpush.bf16.msra.mxu1 %v11068_v29 }
 0xb42   : > { %v6964_v56 = vpop.f32.mrf.mxu3  ;;  %v7519_v11 = vpop.f32.mrf.mxu1 }
 0xb43   : > { %v16777_v3 = vpop.f32.mrf.mxu0  ;;  %v6965_v61 = vadd.f32 %v6964_v56, %v6876_v13  ;;  %v7520_v22 = vadd.f32 %v7519_v11, %v7431_v5  ;;  %v18295_v5 = vld [vmem:[#allocation72_spill] sm:$0xff]  ;;  %v7436_v11 = vadd.f32 %v16637_v10, %v16660_v0 }
 0xb44   : > { %7615 = vmatmul.bf16.gmra.mxu2 %v16444_v37 }
 0xb45   : > { %v7031_v40 = vmax.f32 %v6965_v61, 0.0  ;;  %v7772_v36 = vmax.f32 %v7520_v22, 0.0 }
 0xb47   : > { %7704 = vmatmul.bf16.gmra.mxu3 %v16626_v59  ;;  %v7095_v24 = vmul.f32 %v7031_v40, %v18292_v32  ;;  %v6878_v44 = vpop.f32.mrf.mxu2  ;;  %v16790_v25 = vpack.c.bf16 %v7772_v36, %v7770_v33  ;;  %v11060_v59 = vld [vmem:[#allocation12 + $0x38] sm:$0xff]  ;;  %v18296_v33 = vld [vmem:[#allocation42_spill] sm:$0xff] }
 0xb48   : > { %v6879_v57 = vadd.f32 %v6878_v44, %v16404_v46  ;;  %8628 = vmatpush.bf16.msra.mxu0 %v11060_v59 }
 0xb49   : > { %v7159_v39 = vadd.f32 %v7095_v24, %v18293_v31 }
 0xb4a   : > { %v6967_v43 = vpop.f32.mrf.mxu3  ;;  %v7522_v55 = vpop.f32.mrf.mxu1 }
 0xb4b   : > { %v16786_v50 = vpop.f32.mrf.mxu0  ;;  %v6968_v4 = vadd.f32 %v6967_v43, %v6879_v57  ;;  %v16788_v8 = vpack.c.bf16 %v7159_v39, %v7157_v54  ;;  %v7523_v36 = vadd.f32 %v7522_v55, %v7434_v14  ;;  %v18297_v39 = vld [vmem:[#allocation66_spill] sm:$0xff] }
 0xb4c   : > { %v10479_v55 = vld [vmem:[#allocation10 + $0x28] sm:$0xf0] }
 0xb4d   : > { %v7033_v37 = vmax.f32 %v6968_v4, 0.0  ;;  %8077 = vmatmul.bf16.gmra.mxu0 %v16790_v25  ;;  %7561 = vmatmul.bf16.gmra.mxu1 %v16788_v8  ;;  %v7774_v31 = vmax.f32 %v7523_v36, 0.0 }
 0xb4f   : > { %v7097_v13 = vmul.f32 %v7033_v37, %v18294_v16  ;;  %v6880_v56 = vpop.f32.mrf.mxu2 }
 0xb50   : > { %v6881_v61 = vadd.f32 %v6880_v56, %v16404_v46  ;;  %v10543_v56 = vld [vmem:[#allocation10 + $0xa8] sm:$0xf0] }
 0xb51   : > { %v7161_v23 = vadd.f32 %v7097_v13, %v18295_v5  ;;  %v11041_v13 = vld [vmem:[#allocation10 + $0xa4] sm:$0xf] }
 0xb52   : > { %v6969_v54 = vpop.f32.mrf.mxu3  ;;  %v7524_v32 = vpop.f32.mrf.mxu1  ;;  %v10546_v5 = vor.u32 %v11041_v13, %v10543_v56  ;;  %v7446_v13 = vadd.f32 %v16689_v51, %v16660_v0 }
 0xb53   : > { %v16799_v22 = vpop.f32.mrf.mxu0  ;;  %v6970_v40 = vadd.f32 %v6969_v54, %v6881_v61  ;;  %v7525_v24 = vadd.f32 %v7524_v32, %v7436_v11  ;;  %v7441_v11 = vadd.f32 %v16667_v1, %v16660_v0 }
 0xb54   : > { %7620 = vmatmul.bf16.gmra.mxu2 %v16468_v6  ;;  %v11025_v6 = vld [vmem:[#allocation10 + $0x24] sm:$0xf]  ;;  %8316 = vmatpush.bf16.msra.mxu3 %v10546_v5 }
 0xb55   : > { %v7035_v44 = vmax.f32 %v6970_v40, 0.0  ;;  %v7776_v57 = vmax.f32 %v7525_v24, 0.0  ;;  %v10482_v16 = vor.u32 %v11025_v6, %v10479_v55 }
 0xb57   : > { %7709 = vmatmul.bf16.gmra.mxu3 %v16655_v58  ;;  %v7099_v46 = vmul.f32 %v7035_v44, %v18296_v33  ;;  %v7581_v43 = vpop.f32.mrf.mxu2  ;;  %v16811_v29 = vpack.c.bf16 %v7776_v57, %v7774_v31  ;;  %v16815_v58 = vperm.slane %v16653_v17, 1  ;;  %8227 = vmatpush.bf16.msra.mxu2 %v10482_v16  ;;  %v7439_v17 = vadd.f32 %v16646_v12, %v16660_v0 }
 0xb59   : > { %v7163_v4 = vadd.f32 %v7099_v46, %v18297_v39  ;;  %v7582_v14 = vadd.f32 %v7581_v43, %v16815_v58 }
 0xb5a   : > { %v7670_v10 = vpop.f32.mrf.mxu3  ;;  %v7527_v19 = vpop.f32.mrf.mxu1 }
 0xb5b   : > { %v16807_v37 = vpop.f32.mrf.mxu0  ;;  %v16809_v59 = vpack.c.bf16 %v7163_v4, %v7161_v23  ;;  %v7528_v44 = vadd.f32 %v7527_v19, %v7439_v17  ;;  %v7671_v33 = vadd.f32 %v7670_v10, %v7582_v14  ;;  %v11067_v10 = vld [vmem:[#allocation12 + $0x70] sm:$0xff] }
 0xb5c   : > { %8718 = vmatpush.bf16.msra.mxu1 %v11067_v10 }
 0xb5d   : > { %8082 = vmatmul.bf16.gmra.mxu0 %v16811_v29  ;;  %7566 = vmatmul.bf16.gmra.mxu1 %v16809_v59  ;;  %v7778_v1 = vmax.f32 %v7528_v44, 0.0  ;;  %v7751_v43 = vmax.f32 %v7671_v33, 0.0 }
 0xb5f   : > { %v7583_v61 = vpop.f32.mrf.mxu2 }
 0xb60   : > { %v7584_v23 = vadd.f32 %v7583_v61, %v16815_v58  ;;  %v7444_v61 = vadd.f32 %v16676_v45, %v16660_v0 }
 0xb62   : > { %v7672_v54 = vpop.f32.mrf.mxu3  ;;  %v7529_v32 = vpop.f32.mrf.mxu1 }
 0xb63   : > { %v16822_v40 = vpop.f32.mrf.mxu0  ;;  %v7673_v24 = vadd.f32 %v7672_v54, %v7584_v23  ;;  %v7530_v36 = vadd.f32 %v7529_v32, %v7441_v11 }
 0xb64   : > { %7625 = vmatmul.bf16.gmra.mxu2 %v16494_v27  ;;  %v11059_v27 = vld [vmem:[#allocation12 + $0x30] sm:$0xff] }
 0xb65   : > { %v7780_v46 = vmax.f32 %v7530_v36, 0.0  ;;  %v7753_v57 = vmax.f32 %v7673_v24, 0.0  ;;  %8629 = vmatpush.bf16.msra.mxu0 %v11059_v27 }
 0xb67   : > { %7714 = vmatmul.bf16.gmra.mxu3 %v16680_v49  ;;  %v7586_v31 = vpop.f32.mrf.mxu2  ;;  %v16830_v55 = vpack.c.bf16 %v7780_v46, %v7778_v1  ;;  %v16832_v12 = vpack.c.bf16 %v7753_v57, %v7751_v43  ;;  %v11023_v1 = vld [vmem:[#allocation10 + $0x14] sm:$0xf]  ;;  %v10535_v43 = vld [vmem:[#allocation10 + $0x98] sm:$0xf0] }
 0xb68   : > { %v7587_v56 = vadd.f32 %v7586_v31, %v16815_v58 }
 0xb6a   : > { %v7675_v39 = vpop.f32.mrf.mxu3  ;;  %v7532_v6 = vpop.f32.mrf.mxu1 }
 0xb6b   : > { %v16828_v4 = vpop.f32.mrf.mxu0  ;;  %v7533_v14 = vadd.f32 %v7532_v6, %v7444_v61  ;;  %v7676_v17 = vadd.f32 %v7675_v39, %v7587_v56  ;;  %v11039_v39 = vld [vmem:[#allocation10 + $0x94] sm:$0xf]  ;;  %v7449_v56 = vadd.f32 %v16698_v7, %v16660_v0 }
 0xb6c   : > { %v10538_v6 = vor.u32 %v11039_v39, %v10535_v43  ;;  %v7456_v39 = vadd.f32 %v16733_v48, %v16660_v0 }
 0xb6d   : > { %8087 = vmatmul.bf16.gmra.mxu0 %v16830_v55  ;;  %8141 = vmatmul.bf16.vlgmr.msrb.gmra.mxu1 %v16832_v12  ;;  %v7782_v51 = vmax.f32 %v7533_v14, 0.0  ;;  %v7755_v33 = vmax.f32 %v7676_v17, 0.0 }
 0xb6e   : > { %8317 = vmatpush.bf16.msra.mxu3 %v10538_v6 }
 0xb6f   : > { %v7588_v49 = vpop.f32.mrf.mxu2 }
 0xb70   : > { %v7589_v19 = vadd.f32 %v7588_v49, %v16815_v58 }
 0xb72   : > { %v7677_v16 = vpop.f32.mrf.mxu3  ;;  %v7534_v23 = vpop.f32.mrf.mxu1 }
 0xb73   : > { %v16840_v5 = vpop.f32.mrf.mxu0  ;;  %v7678_v54 = vadd.f32 %v7677_v16, %v7589_v19  ;;  %v7535_v11 = vadd.f32 %v7534_v23, %v7446_v13  ;;  %v7451_v19 = vadd.f32 %v16711_v35, %v16660_v0 }
 0xb74   : > { %7630 = vmatmul.bf16.gmra.mxu2 %v16520_v53  ;;  %v10471_v53 = vld [vmem:[#allocation10 + $0x18] sm:$0xf0] }
 0xb75   : > { %v7784_v32 = vmax.f32 %v7535_v11, 0.0  ;;  %v7757_v24 = vmax.f32 %v7678_v54, 0.0 }
 0xb77   : > { %7719 = vmatmul.bf16.gmra.mxu3 %v16700_v30  ;;  %v7591_v36 = vpop.f32.mrf.mxu2  ;;  %v16848_v31 = vpack.c.bf16 %v7784_v32, %v7782_v51  ;;  %v16850_v45 = vpack.c.bf16 %v7757_v24, %v7755_v33  ;;  %v10474_v30 = vor.u32 %v11023_v1, %v10471_v53 }
 0xb78   : > { %v7592_v16 = vadd.f32 %v7591_v36, %v16815_v58 }
 0xb79   : > { %8228 = vmatpush.bf16.msra.mxu2 %v10474_v30 }
 0xb7a   : > { %v7680_v44 = vpop.f32.mrf.mxu3  ;;  %v7537_v57 = vpop.f32.mrf.mxu1 }
 0xb7b   : > { %v16846_v46 = vpop.f32.mrf.mxu0  ;;  %v7538_v11 = vadd.f32 %v7537_v57, %v7449_v56  ;;  %v7681_v14 = vadd.f32 %v7680_v44, %v7592_v16  ;;  %v11066_v44 = vld [vmem:[#allocation12 + $0x68] sm:$0xff] }
 0xb7c   : > { %8719 = vmatpush.bf16.msra.mxu1 %v11066_v44 }
 0xb7d   : > { %8092 = vmatmul.bf16.gmra.mxu0 %v16848_v31  ;;  %8146 = vmatmul.bf16.gmra.mxu1 %v16850_v45  ;;  %v7786_v35 = vmax.f32 %v7538_v11, 0.0  ;;  %v7759_v36 = vmax.f32 %v7681_v14, 0.0 }
 0xb7f   : > { %v7593_v27 = vpop.f32.mrf.mxu2 }
 0xb80   : > { %v7594_v10 = vadd.f32 %v7593_v27, %v16815_v58  ;;  %v7454_v27 = vadd.f32 %v16720_v62, %v16660_v0 }
 0xb82   : > { %v7682_v49 = vpop.f32.mrf.mxu3  ;;  %v7539_v61 = vpop.f32.mrf.mxu1 }
 0xb83   : > { %v16858_v13 = vpop.f32.mrf.mxu0  ;;  %v7683_v23 = vadd.f32 %v7682_v49, %v7594_v10  ;;  %v7540_v54 = vadd.f32 %v7539_v61, %v7451_v19 }
 0xb84   : > { %7635 = vmatmul.bf16.gmra.mxu2 %v16546_v60  ;;  %v11058_v60 = vld [vmem:[#allocation12 + $0x28] sm:$0xff] }
 0xb85   : > { %v7788_v17 = vmax.f32 %v7540_v54, 0.0  ;;  %v7761_v32 = vmax.f32 %v7683_v23, 0.0  ;;  %8630 = vmatpush.bf16.msra.mxu0 %v11058_v60 }
 0xb87   : > { %7724 = vmatmul.bf16.gmra.mxu3 %v16722_v2  ;;  %v7596_v24 = vpop.f32.mrf.mxu2  ;;  %v16866_v53 = vpack.c.bf16 %v7788_v17, %v7786_v35  ;;  %v16868_v7 = vpack.c.bf16 %v7761_v32, %v7759_v36  ;;  %v11021_v35 = vld [vmem:[#allocation10 + $0x4] sm:$0xf]  ;;  %v10527_v36 = vld [vmem:[#allocation10 + $0x88] sm:$0xf0] }
 0xb88   : > { %v7597_v43 = vadd.f32 %v7596_v24, %v16815_v58 }
 0xb8a   : > { %v7685_v51 = vpop.f32.mrf.mxu3  ;;  %v7542_v1 = vpop.f32.mrf.mxu1 }
 0xb8b   : > { %v16864_v33 = vpop.f32.mrf.mxu0  ;;  %v7543_v16 = vadd.f32 %v7542_v1, %v7454_v27  ;;  %v7686_v56 = vadd.f32 %v7685_v51, %v7597_v43  ;;  %v11037_v51 = vld [vmem:[#allocation10 + $0x84] sm:$0xf]  ;;  %v7459_v43 = vadd.f32 %v16742_v63, %v16660_v0 }
 0xb8c   : > { %v10530_v1 = vor.u32 %v11037_v51, %v10527_v36  ;;  %v7466_v51 = vadd.f32 %v16777_v3, %v16660_v0 }
 0xb8d   : > { %8097 = vmatmul.bf16.gmra.mxu0 %v16866_v53  ;;  %8151 = vmatmul.bf16.gmra.mxu1 %v16868_v7  ;;  %v7790_v48 = vmax.f32 %v7543_v16, 0.0  ;;  %v7763_v14 = vmax.f32 %v7686_v56, 0.0 }
 0xb8e   : > { %8318 = vmatpush.bf16.msra.mxu3 %v10530_v1 }
 0xb8f   : > { %v7598_v2 = vpop.f32.mrf.mxu2 }
 0xb90   : > { %v7599_v57 = vadd.f32 %v7598_v2, %v16815_v58 }
 0xb92   : > { %v7687_v30 = vpop.f32.mrf.mxu3  ;;  %v7544_v10 = vpop.f32.mrf.mxu1 }
 0xb93   : > { %v16876_v6 = vpop.f32.mrf.mxu0  ;;  %v7688_v49 = vadd.f32 %v7687_v30, %v7599_v57  ;;  %v7545_v19 = vadd.f32 %v7544_v10, %v7456_v39  ;;  %v7461_v57 = vadd.f32 %v16755_v20, %v16660_v0 }
 0xb94   : > { %7640 = vmatmul.bf16.gmra.mxu2 %v16572_v52  ;;  %v10463_v52 = vld [vmem:[#allocation10 + $0x8] sm:$0xf0] }
 0xb95   : > { %v7792_v61 = vmax.f32 %v7545_v19, 0.0  ;;  %v7765_v23 = vmax.f32 %v7688_v49, 0.0 }
 0xb97   : > { %7729 = vmatmul.bf16.gmra.mxu3 %v16744_v26  ;;  %v7601_v54 = vpop.f32.mrf.mxu2  ;;  %v16884_v24 = vpack.c.bf16 %v7792_v61, %v7790_v48  ;;  %v16886_v62 = vpack.c.bf16 %v7765_v23, %v7763_v14  ;;  %v10466_v26 = vor.u32 %v11021_v35, %v10463_v52 }
 0xb98   : > { %v7602_v30 = vadd.f32 %v7601_v54, %v16815_v58 }
 0xb99   : > { %8229 = vmatpush.bf16.msra.mxu2 %v10466_v26 }
 0xb9a   : > { %v7690_v11 = vpop.f32.mrf.mxu3  ;;  %v7547_v32 = vpop.f32.mrf.mxu1 }
 0xb9b   : > { %v16882_v17 = vpop.f32.mrf.mxu0  ;;  %v7548_v19 = vadd.f32 %v7547_v32, %v7459_v43  ;;  %v7691_v16 = vadd.f32 %v7690_v11, %v7602_v30  ;;  %v11065_v11 = vld [vmem:[#allocation12 + $0x60] sm:$0xff] }
 0xb9c   : > { %8720 = vmatpush.bf16.msra.mxu1 %v11065_v11 }
 0xb9d   : > { %8102 = vmatmul.bf16.gmra.mxu0 %v16884_v24  ;;  %8156 = vmatmul.bf16.gmra.mxu1 %v16886_v62  ;;  %v7794_v20 = vmax.f32 %v7548_v19, 0.0  ;;  %v7767_v54 = vmax.f32 %v7691_v16, 0.0 }
 0xb9f   : > { %v7603_v60 = vpop.f32.mrf.mxu2 }
 0xba0   : > { %v7604_v44 = vadd.f32 %v7603_v60, %v16815_v58  ;;  %v7464_v60 = vadd.f32 %v16764_v41, %v16660_v0 }
 0xba2   : > { %v7692_v2 = vpop.f32.mrf.mxu3  ;;  %v7549_v27 = vpop.f32.mrf.mxu1 }
 0xba3   : > { %v16894_v39 = vpop.f32.mrf.mxu0  ;;  %v7693_v10 = vadd.f32 %v7692_v2, %v7604_v44  ;;  %v7550_v49 = vadd.f32 %v7549_v27, %v7461_v57 }
 0xba4   : > { %7645 = vmatmul.bf16.gmra.mxu2 %v16598_v9  ;;  %v11057_v9 = vld [vmem:[#allocation12 + $0x20] sm:$0xff] }
 0xba5   : > { %v7796_v56 = vmax.f32 %v7550_v49, 0.0  ;;  %v7769_v61 = vmax.f32 %v7693_v10, 0.0  ;;  %8631 = vmatpush.bf16.msra.mxu0 %v11057_v9  ;;  %v7469_v9 = vadd.f32 %v16786_v50, %v16660_v0 }
 0xba7   : > { %7734 = vmatmul.bf16.gmra.mxu3 %v16766_v18  ;;  %v7606_v23 = vpop.f32.mrf.mxu2  ;;  %v16902_v52 = vpack.c.bf16 %v7796_v56, %v7794_v20  ;;  %v16904_v63 = vpack.c.bf16 %v7769_v61, %v7767_v54 }
 0xba8   : > { %v7607_v36 = vadd.f32 %v7606_v23, %v16815_v58 }
 0xbaa   : > { %v7695_v48 = vpop.f32.mrf.mxu3  ;;  %v7552_v35 = vpop.f32.mrf.mxu1 }
 0xbab   : > { %v16900_v14 = vpop.f32.mrf.mxu0  ;;  %v7553_v30 = vadd.f32 %v7552_v35, %v7464_v60  ;;  %v7696_v43 = vadd.f32 %v7695_v48, %v7607_v36  ;;  %v7471_v48 = vadd.f32 %v16799_v22, %v16660_v0 }
 0xbad   : > { %8107 = vmatmul.bf16.gmra.mxu0 %v16902_v52  ;;  %8161 = vmatmul.bf16.gmra.mxu1 %v16904_v63  ;;  %v7798_v3 = vmax.f32 %v7553_v30, 0.0  ;;  %v7771_v16 = vmax.f32 %v7696_v43, 0.0 }
 0xbaf   : > { %v7608_v18 = vpop.f32.mrf.mxu2 }
 0xbb0   : > { %v7609_v32 = vadd.f32 %v7608_v18, %v16815_v58 }
 0xbb2   : > { %v7697_v26 = vpop.f32.mrf.mxu3  ;;  %v7554_v44 = vpop.f32.mrf.mxu1 }
 0xbb3   : > { %v16912_v1 = vpop.f32.mrf.mxu0  ;;  %v7698_v2 = vadd.f32 %v7697_v26, %v7609_v32  ;;  %v7555_v57 = vadd.f32 %v7554_v44, %v7466_v51 }
 0xbb4   : > { %7650 = vmatmul.bf16.gmra.mxu2 %v16624_v21 }
 0xbb5   : > { %v7800_v27 = vmax.f32 %v7555_v57, 0.0  ;;  %v7773_v10 = vmax.f32 %v7698_v2, 0.0 }
 0xbb7   : > { %7739 = vmatmul.bf16.gmra.mxu3 %v16788_v8  ;;  %v7611_v49 = vpop.f32.mrf.mxu2  ;;  %v16920_v23 = vpack.c.bf16 %v7800_v27, %v7798_v3  ;;  %v16922_v41 = vpack.c.bf16 %v7773_v10, %v7771_v16  ;;  %v11056_v10 = vld [vmem:[#allocation12 + $0x18] sm:$0xff]  ;;  %v7476_v16 = vadd.f32 %v16822_v40, %v16660_v0 }
 0xbb8   : > { %v7612_v54 = vadd.f32 %v7611_v49, %v16815_v58  ;;  %8632 = vmatpush.bf16.msra.mxu0 %v11056_v10  ;;  %v7481_v10 = vadd.f32 %v16840_v5, %v16660_v0 }
 0xbba   : > { %v7700_v19 = vpop.f32.mrf.mxu3  ;;  %v7557_v61 = vpop.f32.mrf.mxu1 }
 0xbbb   : > { %v16918_v56 = vpop.f32.mrf.mxu0  ;;  %v7558_v26 = vadd.f32 %v7557_v61, %v7469_v9  ;;  %v7701_v51 = vadd.f32 %v7700_v19, %v7612_v54  ;;  %v11055_v19 = vld [vmem:[#allocation12 + $0x10] sm:$0xff] }
 0xbbc   : > { %8633 = vmatpush.bf16.msra.mxu0 %v11055_v19 }
 0xbbd   : > { %8112 = vmatmul.bf16.gmra.mxu0 %v16920_v23  ;;  %8166 = vmatmul.bf16.gmra.mxu1 %v16922_v41  ;;  %v7802_v22 = vmax.f32 %v7558_v26, 0.0  ;;  %v7775_v57 = vmax.f32 %v7701_v51, 0.0 }
 0xbbf   : > { %v7613_v21 = vpop.f32.mrf.mxu2 }
 0xbc0   : > { %v7614_v8 = vadd.f32 %v7613_v21, %v16815_v58  ;;  %v7474_v21 = vadd.f32 %v16807_v37, %v16660_v0  ;;  %v11053_v37 = vld [vmem:[#allocation12] sm:$0xff] }
 0xbc2   : > { %v7702_v20 = vpop.f32.mrf.mxu3  ;;  %v7559_v11 = vpop.f32.mrf.mxu1 }
 0xbc3   : > { %v16930_v35 = vpop.f32.mrf.mxu0  ;;  %v7703_v18 = vadd.f32 %v7702_v20, %v7614_v8  ;;  %v7560_v32 = vadd.f32 %v7559_v11, %v7471_v48  ;;  %v11054_v11 = vld [vmem:[#allocation12 + $0x8] sm:$0xff] }
 0xbc4   : > { %7655 = vmatmul.bf16.gmra.mxu2 %v16648_v15  ;;  %v11064_v15 = vld [vmem:[#allocation12 + $0x58] sm:$0xff]  ;;  %8634 = vmatpush.bf16.msra.mxu0 %v11054_v11 }
 0xbc5   : > { %v7804_v36 = vmax.f32 %v7560_v32, 0.0  ;;  %v7777_v60 = vmax.f32 %v7703_v18, 0.0  ;;  %8721 = vmatpush.bf16.msra.mxu1 %v11064_v15 }
 0xbc7   : > { %7744 = vmatmul.bf16.gmra.mxu3 %v16809_v59  ;;  %v7616_v44 = vpop.f32.mrf.mxu2  ;;  %v16938_v27 = vpack.c.bf16 %v7804_v36, %v7802_v22  ;;  %v16940_v50 = vpack.c.bf16 %v7777_v60, %v7775_v57 }
 0xbc8   : > { %v7617_v61 = vadd.f32 %v7616_v44, %v16815_v58  ;;  %8635 = vmatpush.bf16.msra.mxu0 %v11053_v37 }
 0xbca   : > { %v7705_v2 = vpop.f32.mrf.mxu3  ;;  %v7562_v30 = vpop.f32.mrf.mxu1 }
 0xbcb   : > { %v16936_v43 = vpop.f32.mrf.mxu0  ;;  %v7563_v54 = vadd.f32 %v7562_v30, %v7474_v21  ;;  %v7706_v18 = vadd.f32 %v7705_v2, %v7617_v61 }
 0xbcd   : > { %8117 = vmatmul.bf16.gmra.mxu0 %v16938_v27  ;;  %8171 = vmatmul.bf16.gmra.mxu1 %v16940_v50  ;;  %v7806_v51 = vmax.f32 %v7563_v54, 0.0  ;;  %v7779_v60 = vmax.f32 %v7706_v18, 0.0 }
 0xbcf   : > { %v7618_v59 = vpop.f32.mrf.mxu2 }
 0xbd0   : > { %v7619_v49 = vadd.f32 %v7618_v59, %v16815_v58  ;;  %v7479_v59 = vadd.f32 %v16828_v4, %v16660_v0  ;;  %v16977_v0 = vld [vmem:[%s17338_s14] sm:$0x3]  ;;  %v11063_v4 = vld [vmem:[#allocation12 + $0x50] sm:$0xff] }
 0xbd1   : > { %8722 = vmatpush.bf16.msra.mxu1 %v11063_v4 }
 0xbd2   : > { %v7707_v3 = vpop.f32.mrf.mxu3  ;;  %v7564_v8 = vpop.f32.mrf.mxu1 }
 0xbd3   : > { %v7708_v20 = vadd.f32 %v7707_v3, %v7619_v49  ;;  %v7565_v48 = vadd.f32 %v7564_v8, %v7476_v16  ;;  %v16950_v9 = vpop.f32.mrf.mxu0 }
 0xbd4   : > { %8230 = vmatmul.bf16.vlgmr.msra.gmra.mxu2 %v16678_v34 }
 0xbd5   : > { %v7808_v32 = vmax.f32 %v7565_v48, 0.0  ;;  %v7781_v40 = vmax.f32 %v7708_v20, 0.0 }
 0xbd7   : > { %8319 = vmatmul.bf16.vlgmr.msra.gmra.mxu3 %v16832_v12  ;;  %v7621_v26 = vpop.f32.mrf.mxu2  ;;  %v16954_v22 = vpack.c.bf16 %v7808_v32, %v7806_v51  ;;  %v16956_v57 = vpack.c.bf16 %v7781_v40, %v7779_v60 }
 0xbd8   : > { %v7622_v15 = vadd.f32 %v7621_v26, %v16815_v58 }
 0xbda   : > { %v7710_v36 = vpop.f32.mrf.mxu3  ;;  %v7567_v44 = vpop.f32.mrf.mxu1 }
 0xbdb   : > { %v16960_v34 = vpop.f32.mrf.mxu0  ;;  %v7568_v16 = vadd.f32 %v7567_v44, %v7479_v59  ;;  %v7711_v61 = vadd.f32 %v7710_v36, %v7622_v15 }
 0xbdd   : > { %8122 = vmatmul.bf16.gmra.mxu0 %v16954_v22  ;;  %8176 = vmatmul.bf16.gmra.mxu1 %v16956_v57  ;;  %v7810_v48 = vmax.f32 %v7568_v16, 0.0  ;;  %v7783_v11 = vmax.f32 %v7711_v61, 0.0 }
 0xbdf   : > { %v7623_v12 = vpop.f32.mrf.mxu2 }
 0xbe0   : > { %v7624_v2 = vadd.f32 %v7623_v12, %v16815_v58 }
 0xbe2   : > { %v7712_v30 = vpop.f32.mrf.mxu3  ;;  %v7569_v49 = vpop.f32.mrf.mxu1 }
 0xbe3   : > { %v7713_v3 = vadd.f32 %v7712_v30, %v7624_v2  ;;  %v7570_v19 = vadd.f32 %v7569_v49, %v7481_v10  ;;  %v16970_v54 = vpop.f32.mrf.mxu0 }
 0xbe4   : > { %8235 = vmatmul.bf16.gmra.mxu2 %v16702_v38 }
 0xbe5   : > { %v7812_v21 = vmax.f32 %v7570_v19, 0.0  ;;  %v7785_v8 = vmax.f32 %v7713_v3, 0.0 }
 0xbe7   : > { %8324 = vmatmul.bf16.gmra.mxu3 %v16850_v45  ;;  %v7626_v20 = vpop.f32.mrf.mxu2  ;;  %v16972_v32 = vpack.c.bf16 %v7812_v21, %v7810_v48  ;;  %v16979_v38 = vpack.c.bf16 %v7785_v8, %v7783_v11  ;;  %v16984_v45 = vperm.slane %v16977_v0, 0 }
 0xbe8   : > { %v7627_v37 = vadd.f32 %v7626_v20, %v16815_v58 }
 0xbe9   : > { %v8056_v36 = vadd.f32 %v16858_v13, %v16984_v45  ;;  %v8054_v60 = vadd.f32 %v16846_v46, %v16984_v45  ;;  %v8059_v11 = vadd.f32 %v16864_v33, %v16984_v45 }
 0xbea   : > { %v7715_v5 = vpop.f32.mrf.mxu3  ;;  %v8142_v18 = vpop.f32.mrf.mxu1 }
 0xbeb   : > { %v16992_v44 = vpop.f32.mrf.mxu0  ;;  %v8143_v10 = vadd.f32 %v8142_v18, %v8054_v60  ;;  %v7716_v15 = vadd.f32 %v7715_v5, %v7627_v37 }
 0xbed   : > { %8127 = vmatmul.bf16.gmra.mxu0 %v16972_v32  ;;  %8181 = vmatmul.bf16.gmra.mxu1 %v16979_v38  ;;  %v8400_v13 = vmax.f32 %v8143_v10, 0.0  ;;  %v7787_v16 = vmax.f32 %v7716_v15, 0.0 }
 0xbef   : > { %v7628_v40 = vpop.f32.mrf.mxu2 }
 0xbf0   : > { %v7629_v26 = vadd.f32 %v7628_v40, %v16815_v58 }
 0xbf2   : > { %v7717_v51 = vpop.f32.mrf.mxu3  ;;  %v8144_v12 = vpop.f32.mrf.mxu1 }
 0xbf3   : > { %v7718_v2 = vadd.f32 %v7717_v51, %v7629_v26  ;;  %v8145_v30 = vadd.f32 %v8144_v12, %v8056_v36  ;;  %v16998_v8 = vpop.f32.mrf.mxu0 }
 0xbf4   : > { %8240 = vmatmul.bf16.gmra.mxu2 %v16724_v28 }
 0xbf5   : > { %v8402_v59 = vmax.f32 %v8145_v30, 0.0  ;;  %v7789_v49 = vmax.f32 %v7718_v2, 0.0 }
 0xbf7   : > { %8329 = vmatmul.bf16.gmra.mxu3 %v16868_v7  ;;  %v7631_v3 = vpop.f32.mrf.mxu2  ;;  %v8464_v61 = vpack.c.bf16 %v8402_v59, %v8400_v13  ;;  %v16996_v46 = vpack.c.bf16 %v7789_v49, %v7787_v16  ;;  %v8061_v7 = vadd.f32 %v16876_v6, %v16984_v45  ;;  %v11062_v59 = vld [vmem:[#allocation12 + $0x48] sm:$0xff]  ;;  %v8066_v13 = vadd.f32 %v16894_v39, %v16984_v45 }
 0xbf8   : > { %v7632_v5 = vadd.f32 %v7631_v3, %v16815_v58  ;;  %8723 = vmatpush.bf16.msra.mxu1 %v11062_v59  ;;  %v8064_v16 = vadd.f32 %v16882_v17, %v16984_v45 }
 0xbfa   : > { %v7720_v19 = vpop.f32.mrf.mxu3  ;;  %v8147_v21 = vpop.f32.mrf.mxu1 }
 0xbfb   : > { %v8148_v26 = vadd.f32 %v8147_v21, %v8059_v11  ;;  %v7721_v51 = vadd.f32 %v7720_v19, %v7632_v5  ;;  %v17009_v36 = vpop.f32.mrf.mxu0 }
 0xbfd   : > { %8636 = vmatmul.bf16.vlgmr.msra.gmra.mxu0 %v8464_v61  ;;  %8186 = vmatmul.bf16.gmra.mxu1 %v16996_v46  ;;  %v8404_v6 = vmax.f32 %v8148_v26, 0.0  ;;  %v7791_v30 = vmax.f32 %v7721_v51, 0.0 }
 0xbff   : > { %v7633_v20 = vpop.f32.mrf.mxu2 }
 0xc00   : > { %v7634_v28 = vadd.f32 %v7633_v20, %v16815_v58 }
 0xc02   : > { %v7722_v48 = vpop.f32.mrf.mxu3  ;;  %v8149_v18 = vpop.f32.mrf.mxu1 }
 0xc03   : > { %v7723_v4 = vadd.f32 %v7722_v48, %v7634_v28  ;;  %v8150_v40 = vadd.f32 %v8149_v18, %v8061_v7  ;;  %v17014_v49 = vpop.f32.mrf.mxu0 }
 0xc04   : > { %8245 = vmatmul.bf16.gmra.mxu2 %v16746_v42 }
 0xc05   : > { %v8406_v37 = vmax.f32 %v8150_v40, 0.0  ;;  %v7793_v60 = vmax.f32 %v7723_v4, 0.0 }
 0xc07   : > { %8334 = vmatmul.bf16.gmra.mxu3 %v16886_v62  ;;  %v7636_v12 = vpop.f32.mrf.mxu2  ;;  %v8466_v15 = vpack.c.bf16 %v8406_v37, %v8404_v6  ;;  %v17011_v33 = vpack.c.bf16 %v7793_v60, %v7791_v30  ;;  %v8069_v6 = vadd.f32 %v16900_v14, %v16984_v45 }
 0xc08   : > { %v7637_v19 = vadd.f32 %v7636_v12, %v16815_v58 }
 0xc0a   : > { %v7725_v2 = vpop.f32.mrf.mxu3  ;;  %v8152_v10 = vpop.f32.mrf.mxu1 }
 0xc0b   : > { %v8153_v28 = vadd.f32 %v8152_v10, %v8064_v16  ;;  %v7726_v48 = vadd.f32 %v7725_v2, %v7637_v19  ;;  %v17024_v40 = vpop.f32.mrf.mxu0 }
 0xc0d   : > { %8641 = vmatmul.bf16.gmra.mxu0 %v8466_v15  ;;  %8191 = vmatmul.bf16.gmra.mxu1 %v17011_v33  ;;  %v8408_v18 = vmax.f32 %v8153_v28, 0.0  ;;  %v7795_v39 = vmax.f32 %v7726_v48, 0.0 }
 0xc0f   : > { %v7638_v42 = vpop.f32.mrf.mxu2 }
 0xc10   : > { %v7639_v62 = vadd.f32 %v7638_v42, %v16815_v58 }
 0xc12   : > { %v7727_v3 = vpop.f32.mrf.mxu3  ;;  %v8154_v61 = vpop.f32.mrf.mxu1 }
 0xc13   : > { %v7728_v21 = vadd.f32 %v7727_v3, %v7639_v62  ;;  %v8155_v20 = vadd.f32 %v8154_v61, %v8066_v13  ;;  %v17035_v15 = vpop.f32.mrf.mxu0 }
 0xc14   : > { %8250 = vmatmul.bf16.gmra.mxu2 %v16768_v47 }
 0xc15   : > { %v8410_v7 = vmax.f32 %v8155_v20, 0.0  ;;  %v7797_v5 = vmax.f32 %v7728_v21, 0.0  ;;  %v11061_v20 = vld [vmem:[#allocation12 + $0x40] sm:$0xff] }
 0xc16   : > { %8724 = vmatpush.bf16.msra.mxu1 %v11061_v20 }
 0xc17   : > { %8339 = vmatmul.bf16.gmra.mxu3 %v16904_v63  ;;  %v7641_v11 = vpop.f32.mrf.mxu2  ;;  %v8468_v51 = vpack.c.bf16 %v8410_v7, %v8408_v18  ;;  %v17026_v17 = vpack.c.bf16 %v7797_v5, %v7795_v39  ;;  %v8071_v63 = vadd.f32 %v16912_v1, %v16984_v45  ;;  %v8076_v7 = vadd.f32 %v16930_v35, %v16984_v45 }
 0xc18   : > { %v7642_v12 = vadd.f32 %v7641_v11, %v16815_v58  ;;  %v8074_v11 = vadd.f32 %v16918_v56, %v16984_v45 }
 0xc1a   : > { %v7730_v4 = vpop.f32.mrf.mxu3  ;;  %v8157_v26 = vpop.f32.mrf.mxu1 }
 0xc1b   : > { %v8158_v59 = vadd.f32 %v8157_v26, %v8069_v6  ;;  %v7731_v42 = vadd.f32 %v7730_v4, %v7642_v12  ;;  %v17042_v28 = vpop.f32.mrf.mxu0 }
 0xc1d   : > { %8646 = vmatmul.bf16.gmra.mxu0 %v8468_v51  ;;  %8196 = vmatmul.bf16.gmra.mxu1 %v17026_v17  ;;  %v8412_v1 = vmax.f32 %v8158_v59, 0.0  ;;  %v7799_v16 = vmax.f32 %v7731_v42, 0.0 }
 0xc1f   : > { %v7643_v37 = vpop.f32.mrf.mxu2 }
 0xc20   : > { %v7644_v47 = vadd.f32 %v7643_v37, %v16815_v58 }
 0xc22   : > { %v7732_v60 = vpop.f32.mrf.mxu3  ;;  %v8159_v2 = vpop.f32.mrf.mxu1 }
 0xc23   : > { %v7733_v30 = vadd.f32 %v7732_v60, %v7644_v47  ;;  %v8160_v10 = vadd.f32 %v8159_v2, %v8071_v63  ;;  %v17052_v63 = vpop.f32.mrf.mxu0 }
 0xc24   : > { %8255 = vmatmul.bf16.gmra.mxu2 %v16790_v25 }
 0xc25   : > { %v8414_v62 = vmax.f32 %v8160_v10, 0.0  ;;  %v7801_v3 = vmax.f32 %v7733_v30, 0.0 }
 0xc27   : > { %8344 = vmatmul.bf16.gmra.mxu3 %v16922_v41  ;;  %v7646_v13 = vpop.f32.mrf.mxu2  ;;  %v8470_v21 = vpack.c.bf16 %v8414_v62, %v8412_v1  ;;  %v17039_v14 = vpack.c.bf16 %v7801_v3, %v7799_v16  ;;  %v8079_v62 = vadd.f32 %v16936_v43, %v16984_v45 }
 0xc28   : > { %v7647_v5 = vadd.f32 %v7646_v13, %v16815_v58 }
 0xc2a   : > { %v7735_v19 = vpop.f32.mrf.mxu3  ;;  %v8162_v61 = vpop.f32.mrf.mxu1 }
 0xc2b   : > { %v8163_v26 = vadd.f32 %v8162_v61, %v8074_v11  ;;  %v7736_v51 = vadd.f32 %v7735_v19, %v7647_v5  ;;  %v17063_v3 = vpop.f32.mrf.mxu0 }
 0xc2d   : > { %8651 = vmatmul.bf16.gmra.mxu0 %v8470_v21  ;;  %8201 = vmatmul.bf16.gmra.mxu1 %v17039_v14  ;;  %v8416_v35 = vmax.f32 %v8163_v26, 0.0  ;;  %v7803_v6 = vmax.f32 %v7736_v51, 0.0  ;;  %v8084_v26 = vadd.f32 %v16960_v34, %v16984_v45 }
 0xc2f   : > { %v7648_v25 = vpop.f32.mrf.mxu2 }
 0xc30   : > { %v7649_v41 = vadd.f32 %v7648_v25, %v16815_v58 }
 0xc32   : > { %v7737_v48 = vpop.f32.mrf.mxu3  ;;  %v8164_v18 = vpop.f32.mrf.mxu1 }
 0xc33   : > { %v7738_v4 = vadd.f32 %v7737_v48, %v7649_v41  ;;  %v8165_v39 = vadd.f32 %v8164_v18, %v8076_v7  ;;  %v17069_v11 = vpop.f32.mrf.mxu0 }
 0xc34   : > { %8260 = vmatmul.bf16.gmra.mxu2 %v16811_v29 }
 0xc35   : > { %v8418_v37 = vmax.f32 %v8165_v39, 0.0  ;;  %v7805_v47 = vmax.f32 %v7738_v4, 0.0 }
 0xc37   : > { %8349 = vmatmul.bf16.gmra.mxu3 %v16940_v50  ;;  %v7651_v60 = vpop.f32.mrf.mxu2  ;;  %v8472_v30 = vpack.c.bf16 %v8418_v37, %v8416_v35  ;;  %v17054_v56 = vpack.c.bf16 %v7805_v47, %v7803_v6  ;;  %v8081_v50 = vadd.f32 %v16950_v9, %v16984_v45 }
 0xc38   : > { %v7652_v42 = vadd.f32 %v7651_v60, %v16815_v58 }
 0xc3a   : > { %v7740_v12 = vpop.f32.mrf.mxu3  ;;  %v8167_v2 = vpop.f32.mrf.mxu1 }
 0xc3b   : > { %v8168_v16 = vadd.f32 %v8167_v2, %v8079_v62  ;;  %v7741_v61 = vadd.f32 %v7740_v12, %v7652_v42  ;;  %v17080_v12 = vpop.f32.mrf.mxu0 }
 0xc3d   : > { %8656 = vmatmul.bf16.gmra.mxu0 %v8472_v30  ;;  %8206 = vmatmul.bf16.gmra.mxu1 %v17054_v56  ;;  %v8420_v9 = vmax.f32 %v8168_v16, 0.0  ;;  %v7807_v48 = vmax.f32 %v7741_v61, 0.0 }
 0xc3f   : > { %v7653_v10 = vpop.f32.mrf.mxu2 }
 0xc40   : > { %v7654_v29 = vadd.f32 %v7653_v10, %v16815_v58 }
 0xc42   : > { %v7742_v59 = vpop.f32.mrf.mxu3  ;;  %v8169_v13 = vpop.f32.mrf.mxu1 }
 0xc43   : > { %v7743_v1 = vadd.f32 %v7742_v59, %v7654_v29  ;;  %v8170_v19 = vadd.f32 %v8169_v13, %v8081_v50  ;;  %v17085_v50 = vperm.slane %v16977_v0, 1  ;;  %v8091_v13 = vadd.f32 %v16998_v8, %v16984_v45 }
 0xc44   : > { %8265 = vmatmul.bf16.gmra.mxu2 %v16830_v55 }
 0xc45   : > { %v8422_v21 = vmax.f32 %v8170_v19, 0.0  ;;  %v7809_v20 = vmax.f32 %v7743_v1, 0.0  ;;  %v8089_v19 = vadd.f32 %v16992_v44, %v16984_v45 }
 0xc47   : > { %8354 = vmatmul.bf16.gmra.mxu3 %v16956_v57  ;;  %v7656_v25 = vpop.f32.mrf.mxu2  ;;  %v8474_v5 = vpack.c.bf16 %v8422_v21, %v8420_v9  ;;  %v17067_v43 = vpack.c.bf16 %v7809_v20, %v7807_v48  ;;  %v8086_v57 = vadd.f32 %v16970_v54, %v16984_v45 }
 0xc48   : > { %v7657_v39 = vadd.f32 %v7656_v25, %v16815_v58 }
 0xc4a   : > { %v7745_v41 = vpop.f32.mrf.mxu3  ;;  %v8172_v7 = vpop.f32.mrf.mxu1 }
 0xc4b   : > { %v8173_v60 = vadd.f32 %v8172_v7, %v8084_v26  ;;  %v7746_v35 = vadd.f32 %v7745_v41, %v7657_v39  ;;  %v8094_v26 = vadd.f32 %v17009_v36, %v16984_v45 }
 0xc4d   : > { %8661 = vmatmul.bf16.gmra.mxu0 %v8474_v5  ;;  %8211 = vmatmul.bf16.gmra.mxu1 %v17067_v43  ;;  %v8424_v54 = vmax.f32 %v8173_v60, 0.0 }
 0xc4f   : > { %v7658_v18 = vpop.f32.mrf.mxu2 }
 0xc50   : > { %v7659_v55 = vadd.f32 %v7658_v18, %v16815_v58  ;;  %v7811_v58 = vmax.f32 %v7746_v35, 0.0 }
 0xc52   : > { %v7747_v4 = vpop.f32.mrf.mxu3  ;;  %v8174_v51 = vpop.f32.mrf.mxu1 }
 0xc53   : > { %v7748_v37 = vadd.f32 %v7747_v4, %v7659_v55  ;;  %v8175_v47 = vadd.f32 %v8174_v51, %v8086_v57 }
 0xc54   : > { %8270 = vmatmul.bf16.gmra.mxu2 %v16848_v31 }
 0xc55   : > { %v8426_v6 = vmax.f32 %v8175_v47, 0.0  ;;  %v7813_v2 = vmax.f32 %v7748_v37, 0.0 }
 0xc57   : > { %8359 = vmatmul.bf16.gmra.mxu3 %v16979_v38  ;;  %v8231_v30 = vpop.f32.mrf.mxu2  ;;  %v8476_v59 = vpack.c.bf16 %v8426_v6, %v8424_v54  ;;  %v17082_v34 = vpack.c.bf16 %v7813_v2, %v7811_v58  ;;  %v17088_v38 = vpop.f32.mrf.mxu0 }
 0xc58   : > { %v8232_v1 = vadd.f32 %v8231_v30, %v17085_v50 }
 0xc5a   : > { %v8320_v10 = vpop.f32.mrf.mxu3  ;;  %v8177_v29 = vpop.f32.mrf.mxu1 }
 0xc5b   : > { %v8178_v21 = vadd.f32 %v8177_v29, %v8089_v19  ;;  %v8321_v20 = vadd.f32 %v8320_v10, %v8232_v1  ;;  %v8099_v1 = vadd.f32 %v17024_v40, %v16984_v45 }
 0xc5d   : > { %8666 = vmatmul.bf16.gmra.mxu0 %v8476_v59  ;;  %8216 = vmatmul.bf16.gmra.mxu1 %v17082_v34  ;;  %v8428_v48 = vmax.f32 %v8178_v21, 0.0  ;;  %v8401_v8 = vmax.f32 %v8321_v20, 0.0 }
 0xc5f   : > { %v8233_v31 = vpop.f32.mrf.mxu2  ;;  %v17098_v5 = vpop.f32.mrf.mxu0 }
 0xc60   : > { %v8234_v42 = vadd.f32 %v8233_v31, %v17085_v50 }
 0xc62   : > { %v8322_v62 = vpop.f32.mrf.mxu3  ;;  %v8179_v16 = vpop.f32.mrf.mxu1 }
 0xc63   : > { %v8323_v61 = vadd.f32 %v8322_v62, %v8234_v42  ;;  %v8180_v0 = vadd.f32 %v8179_v16, %v8091_v13 }
 0xc64   : > { %8275 = vmatmul.bf16.gmra.mxu2 %v16866_v53 }
 0xc65   : > { %v8430_v25 = vmax.f32 %v8180_v0, 0.0  ;;  %v8403_v9 = vmax.f32 %v8323_v61, 0.0 }
 0xc67   : > { %8364 = vmatmul.bf16.gmra.mxu3 %v16996_v46  ;;  %v8236_v41 = vpop.f32.mrf.mxu2  ;;  %v8478_v55 = vpack.c.bf16 %v8430_v25, %v8428_v48  ;;  %v8465_v44 = vpack.c.bf16 %v8403_v9, %v8401_v8  ;;  %v8096_v46 = vadd.f32 %v17014_v49, %v16984_v45  ;;  %v17106_v60 = vpop.f32.mrf.mxu0 }
 0xc68   : > { %v8237_v39 = vadd.f32 %v8236_v41, %v17085_v50 }
 0xc6a   : > { %v8325_v7 = vpop.f32.mrf.mxu3  ;;  %v8182_v18 = vpop.f32.mrf.mxu1 }
 0xc6b   : > { %v8183_v35 = vadd.f32 %v8182_v18, %v8094_v26  ;;  %v8326_v6 = vadd.f32 %v8325_v7, %v8237_v39 }
 0xc6d   : > { %8671 = vmatmul.bf16.gmra.mxu0 %v8478_v55  ;;  %8725 = vmatmul.bf16.vlgmr.msra.gmra.mxu1 %v8465_v44  ;;  %v8432_v49 = vmax.f32 %v8183_v35, 0.0  ;;  %v8405_v58 = vmax.f32 %v8326_v6, 0.0 }
 0xc6f   : > { %v8238_v4 = vpop.f32.mrf.mxu2  ;;  %v17110_v31 = vpop.f32.mrf.mxu0 }
 0xc70   : > { %v8239_v57 = vadd.f32 %v8238_v4, %v17085_v50 }
 0xc72   : > { %v8327_v53 = vpop.f32.mrf.mxu3  ;;  %v8184_v51 = vpop.f32.mrf.mxu1 }
 0xc73   : > { %v8328_v37 = vadd.f32 %v8327_v53, %v8239_v57  ;;  %v8185_v47 = vadd.f32 %v8184_v51, %v8096_v46  ;;  %v8104_v57 = vadd.f32 %v17042_v28, %v16984_v45 }
 0xc74   : > { %8280 = vmatmul.bf16.gmra.mxu2 %v16884_v24 }
 0xc75   : > { %v8434_v2 = vmax.f32 %v8185_v47, 0.0  ;;  %v8407_v30 = vmax.f32 %v8328_v37, 0.0 }
 0xc77   : > { %8369 = vmatmul.bf16.gmra.mxu3 %v17011_v33  ;;  %v8241_v54 = vpop.f32.mrf.mxu2  ;;  %v8480_v59 = vpack.c.bf16 %v8434_v2, %v8432_v49  ;;  %v8467_v36 = vpack.c.bf16 %v8407_v30, %v8405_v58  ;;  %v8101_v33 = vadd.f32 %v17035_v15, %v16984_v45  ;;  %v17120_v41 = vpop.f32.mrf.mxu0 }
 0xc78   : > { %v8242_v13 = vadd.f32 %v8241_v54, %v17085_v50 }
 0xc7a   : > { %v8330_v10 = vpop.f32.mrf.mxu3  ;;  %v8187_v29 = vpop.f32.mrf.mxu1 }
 0xc7b   : > { %v8188_v0 = vadd.f32 %v8187_v29, %v8099_v1  ;;  %v8331_v21 = vadd.f32 %v8330_v10, %v8242_v13 }
 0xc7d   : > { %8676 = vmatmul.bf16.gmra.mxu0 %v8480_v59  ;;  %8730 = vmatmul.bf16.gmra.mxu1 %v8467_v36  ;;  %v8436_v15 = vmax.f32 %v8188_v0, 0.0  ;;  %v8409_v7 = vmax.f32 %v8331_v21, 0.0  ;;  %v8109_v36 = vadd.f32 %v17063_v3, %v16984_v45 }
 0xc7f   : > { %v8243_v42 = vpop.f32.mrf.mxu2  ;;  %v17128_v53 = vpop.f32.mrf.mxu0 }
 0xc80   : > { %v8244_v62 = vadd.f32 %v8243_v42, %v17085_v50 }
 0xc82   : > { %v8332_v24 = vpop.f32.mrf.mxu3  ;;  %v8189_v19 = vpop.f32.mrf.mxu1 }
 0xc83   : > { %v8333_v16 = vadd.f32 %v8332_v24, %v8244_v62  ;;  %v8190_v61 = vadd.f32 %v8189_v19, %v8101_v33 }
 0xc84   : > { %8285 = vmatmul.bf16.gmra.mxu2 %v16902_v52 }
 0xc85   : > { %v8438_v20 = vmax.f32 %v8190_v61, 0.0  ;;  %v8411_v25 = vmax.f32 %v8333_v16, 0.0 }
 0xc87   : > { %8374 = vmatmul.bf16.gmra.mxu3 %v17026_v17  ;;  %v8246_v9 = vpop.f32.mrf.mxu2  ;;  %v8482_v18 = vpack.c.bf16 %v8438_v20, %v8436_v15  ;;  %v8469_v40 = vpack.c.bf16 %v8411_v25, %v8409_v7  ;;  %v8106_v17 = vadd.f32 %v17052_v63, %v16984_v45  ;;  %v17132_v10 = vpop.f32.mrf.mxu0 }
 0xc88   : > { %v8247_v4 = vadd.f32 %v8246_v9, %v17085_v50 }
 0xc8a   : > { %v8335_v48 = vpop.f32.mrf.mxu3  ;;  %v8192_v8 = vpop.f32.mrf.mxu1 }
 0xc8b   : > { %v8193_v51 = vadd.f32 %v8192_v8, %v8104_v57  ;;  %v8336_v37 = vadd.f32 %v8335_v48, %v8247_v4  ;;  %v8114_v8 = vadd.f32 %v17080_v12, %v16984_v45 }
 0xc8d   : > { %8681 = vmatmul.bf16.gmra.mxu0 %v8482_v18  ;;  %8735 = vmatmul.bf16.gmra.mxu1 %v8469_v40  ;;  %v8440_v63 = vmax.f32 %v8193_v51, 0.0  ;;  %v8413_v30 = vmax.f32 %v8336_v37, 0.0 }
 0xc8f   : > { %v8248_v55 = vpop.f32.mrf.mxu2  ;;  %v17142_v1 = vpop.f32.mrf.mxu0 }
 0xc90   : > { %v8249_v44 = vadd.f32 %v8248_v55, %v17085_v50 }
 0xc92   : > { %v8337_v52 = vpop.f32.mrf.mxu3  ;;  %v8194_v46 = vpop.f32.mrf.mxu1 }
 0xc93   : > { %v8338_v39 = vadd.f32 %v8337_v52, %v8249_v44  ;;  %v8195_v26 = vadd.f32 %v8194_v46, %v8106_v17 }
 0xc94   : > { %8290 = vmatmul.bf16.gmra.mxu2 %v16920_v23 }
 0xc95   : > { %v8442_v47 = vmax.f32 %v8195_v26, 0.0  ;;  %v8415_v35 = vmax.f32 %v8338_v39, 0.0 }
 0xc97   : > { %8379 = vmatmul.bf16.gmra.mxu3 %v17039_v14  ;;  %v8251_v6 = vpop.f32.mrf.mxu2  ;;  %v8484_v49 = vpack.c.bf16 %v8442_v47, %v8440_v63  ;;  %v8471_v28 = vpack.c.bf16 %v8415_v35, %v8413_v30  ;;  %v8111_v14 = vadd.f32 %v17069_v11, %v16984_v45  ;;  %v17144_v15 = vpop.f32.mrf.mxu0  ;;  %v8119_v63 = vadd.f32 %v17098_v5, %v16984_v45 }
 0xc98   : > { %v8252_v59 = vadd.f32 %v8251_v6, %v17085_v50 }
 0xc9a   : > { %v8340_v2 = vpop.f32.mrf.mxu3  ;;  %v8197_v54 = vpop.f32.mrf.mxu1 }
 0xc9b   : > { %v8198_v33 = vadd.f32 %v8197_v54, %v8109_v36  ;;  %v8341_v13 = vadd.f32 %v8340_v2, %v8252_v59 }
 0xc9d   : > { %8686 = vmatmul.bf16.gmra.mxu0 %v8484_v49  ;;  %8740 = vmatmul.bf16.gmra.mxu1 %v8471_v28  ;;  %v8444_v11 = vmax.f32 %v8198_v33, 0.0  ;;  %v8417_v21 = vmax.f32 %v8341_v13, 0.0 }
 0xc9f   : > { %v8253_v58 = vpop.f32.mrf.mxu2  ;;  %v17154_v26 = vpop.f32.mrf.mxu0 }
 0xca0   : > { %v8254_v29 = vadd.f32 %v8253_v58, %v17085_v50 }
 0xca2   : > { %v8342_v23 = vpop.f32.mrf.mxu3  ;;  %v8199_v42 = vpop.f32.mrf.mxu1 }
 0xca3   : > { %v8343_v62 = vadd.f32 %v8342_v23, %v8254_v29  ;;  %v8200_v24 = vadd.f32 %v8199_v42, %v8111_v14 }
 0xca4   : > { %8295 = vmatmul.bf16.gmra.mxu2 %v16938_v27 }
 0xca5   : > { %v8446_v19 = vmax.f32 %v8200_v24, 0.0  ;;  %v8419_v16 = vmax.f32 %v8343_v62, 0.0 }
 0xca7   : > { %8384 = vmatmul.bf16.gmra.mxu3 %v17054_v56  ;;  %v8256_v61 = vpop.f32.mrf.mxu2  ;;  %v8486_v25 = vpack.c.bf16 %v8446_v19, %v8444_v11  ;;  %v8473_v3 = vpack.c.bf16 %v8419_v16, %v8417_v21  ;;  %v8116_v56 = vadd.f32 %v17088_v38, %v16984_v45  ;;  %v17162_v49 = vpop.f32.mrf.mxu0  ;;  %v8124_v16 = vadd.f32 %v17110_v31, %v16984_v45 }
 0xca8   : > { %v8257_v7 = vadd.f32 %v8256_v61, %v17085_v50 }
 0xcaa   : > { %v8345_v0 = vpop.f32.mrf.mxu3  ;;  %v8202_v20 = vpop.f32.mrf.mxu1 }
 0xcab   : > { %v8203_v44 = vadd.f32 %v8202_v20, %v8114_v8  ;;  %v8346_v52 = vadd.f32 %v8345_v0, %v8257_v7 }
 0xcad   : > { %8691 = vmatmul.bf16.gmra.mxu0 %v8486_v25  ;;  %8745 = vmatmul.bf16.gmra.mxu1 %v8473_v3  ;;  %v8448_v46 = vmax.f32 %v8203_v44, 0.0  ;;  %v8421_v38 = vmax.f32 %v8346_v52, 0.0  ;;  %v8131_v44 = vadd.f32 %v17132_v10, %v16984_v45 }
 0xcaf   : > { %v8258_v9 = vpop.f32.mrf.mxu2  ;;  %v17166_v24 = vpop.f32.mrf.mxu0 }
 0xcb0   : > { %v8259_v27 = vadd.f32 %v8258_v9, %v17085_v50 }
 0xcb2   : > { %v8347_v48 = vpop.f32.mrf.mxu3  ;;  %v8204_v18 = vpop.f32.mrf.mxu1 }
 0xcb3   : > { %v8348_v40 = vadd.f32 %v8347_v48, %v8259_v27  ;;  %v8205_v55 = vadd.f32 %v8204_v18, %v8116_v56 }
 0xcb4   : > { %8300 = vmatmul.bf16.gmra.mxu2 %v16954_v22 }
 0xcb5   : > { %v8450_v17 = vmax.f32 %v8205_v55, 0.0  ;;  %v8423_v4 = vmax.f32 %v8348_v40, 0.0 }
 0xcb7   : > { %8389 = vmatmul.bf16.gmra.mxu3 %v17067_v43  ;;  %v8261_v57 = vpop.f32.mrf.mxu2  ;;  %v8488_v37 = vpack.c.bf16 %v8450_v17, %v8448_v46  ;;  %v8475_v12 = vpack.c.bf16 %v8423_v4, %v8421_v38  ;;  %v8121_v43 = vadd.f32 %v17106_v60, %v16984_v45  ;;  %v17174_v27 = vpop.f32.mrf.mxu0  ;;  %v8129_v17 = vadd.f32 %v17128_v53, %v16984_v45 }
 0xcb8   : > { %v8262_v6 = vadd.f32 %v8261_v57, %v17085_v50 }
 0xcba   : > { %v8350_v39 = vpop.f32.mrf.mxu3  ;;  %v8207_v51 = vpop.f32.mrf.mxu1 }
 0xcbb   : > { %v8208_v28 = vadd.f32 %v8207_v51, %v8119_v63  ;;  %v8351_v58 = vadd.f32 %v8350_v39, %v8262_v6  ;;  %v17187_v51 = vld [vmem:[%s18298_s30] ss:$0 sm:$0xff] }
 0xcbd   : > { %8696 = vmatmul.bf16.gmra.mxu0 %v8488_v37  ;;  %8750 = vmatmul.bf16.gmra.mxu1 %v8475_v12  ;;  %v8452_v60 = vmax.f32 %v8208_v28, 0.0  ;;  %v8425_v36 = vmax.f32 %v8351_v58, 0.0  ;;  %v8640_v58 = vadd.f32 %v17187_v51, %v17144_v15 }
 0xcbf   : > { %v8263_v47 = vpop.f32.mrf.mxu2  ;;  %v17182_v4 = vpop.f32.mrf.mxu0 }
 0xcc0   : > { %v8264_v35 = vadd.f32 %v8263_v47, %v17085_v50 }
 0xcc2   : > { %v8352_v22 = vpop.f32.mrf.mxu3  ;;  %v8209_v2 = vpop.f32.mrf.mxu1 }
 0xcc3   : > { %v8353_v30 = vadd.f32 %v8352_v22, %v8264_v35  ;;  %v8210_v54 = vadd.f32 %v8209_v2, %v8121_v43 }
 0xcc4   : > { %8305 = vmatmul.bf16.gmra.mxu2 %v16972_v32 }
 0xcc5   : > { %v8454_v29 = vmax.f32 %v8210_v54, 0.0  ;;  %v8427_v23 = vmax.f32 %v8353_v30, 0.0 }
 0xcc7   : > { %8394 = vmatmul.bf16.gmra.mxu3 %v17082_v34  ;;  %v8266_v14 = vpop.f32.mrf.mxu2  ;;  %v8490_v62 = vpack.c.bf16 %v8454_v29, %v8452_v60  ;;  %v8477_v5 = vpack.c.bf16 %v8427_v23, %v8425_v36  ;;  %v8126_v34 = vadd.f32 %v17120_v41, %v16984_v45  ;;  %v8638_v45 = vadd.f32 %v17187_v51, %v17142_v1  ;;  %v17197_v30 = vpop.f32.mrf.mxu0 }
 0xcc8   : > { %v8267_v19 = vadd.f32 %v8266_v14, %v17085_v50 }
 0xcca   : > { %v8355_v59 = vpop.f32.mrf.mxu3  ;;  %v8212_v42 = vpop.f32.mrf.mxu1 }
 0xccb   : > { %v8213_v21 = vadd.f32 %v8212_v42, %v8124_v16  ;;  %v8356_v20 = vadd.f32 %v8355_v59, %v8267_v19 }
 0xccd   : > { %8701 = vmatmul.bf16.gmra.mxu0 %v8490_v62  ;;  %8755 = vmatmul.bf16.gmra.mxu1 %v8477_v5  ;;  %v8456_v48 = vmax.f32 %v8213_v21, 0.0  ;;  %v8429_v7 = vmax.f32 %v8356_v20, 0.0 }
 0xccf   : > { %v8268_v33 = vpop.f32.mrf.mxu2  ;;  %v17207_v36 = vpop.f32.mrf.mxu0 }
 0xcd0   : > { %v8269_v13 = vadd.f32 %v8268_v33, %v17085_v50  ;;  %v8643_v33 = vadd.f32 %v17187_v51, %v17154_v26 }
 0xcd2   : > { %v8357_v32 = vpop.f32.mrf.mxu3  ;;  %v8214_v61 = vpop.f32.mrf.mxu1 }
 0xcd3   : > { %v8358_v11 = vadd.f32 %v8357_v32, %v8269_v13  ;;  %v8215_v0 = vadd.f32 %v8214_v61, %v8126_v34 }
 0xcd5   : > { %v8458_v25 = vmax.f32 %v8215_v0, 0.0  ;;  %v8431_v3 = vmax.f32 %v8358_v11, 0.0  ;;  %v8645_v11 = vadd.f32 %v17187_v51, %v17162_v49 }
 0xcd7   : > { %v8271_v9 = vpop.f32.mrf.mxu2  ;;  %v8492_v41 = vpack.c.bf16 %v8458_v25, %v8456_v48  ;;  %v8479_v18 = vpack.c.bf16 %v8431_v3, %v8429_v7  ;;  %v17216_v0 = vpop.f32.mrf.mxu0  ;;  %v8648_v7 = vadd.f32 %v17187_v51, %v17166_v24 }
 0xcd8   : > { %v8272_v52 = vadd.f32 %v8271_v9, %v17085_v50 }
 0xcda   : > { %v8360_v56 = vpop.f32.mrf.mxu3  ;;  %v8217_v8 = vpop.f32.mrf.mxu1 }
 0xcdb   : > { %v8218_v38 = vadd.f32 %v8217_v8, %v8129_v17  ;;  %v8361_v37 = vadd.f32 %v8360_v56, %v8272_v52  ;;  %v8650_v52 = vadd.f32 %v17187_v51, %v17174_v27 }
 0xcdd   : > { %8706 = vmatmul.bf16.gmra.mxu0 %v8492_v41  ;;  %8760 = vmatmul.bf16.gmra.mxu1 %v8479_v18  ;;  %v8460_v35 = vmax.f32 %v8218_v38, 0.0  ;;  %v8433_v53 = vmax.f32 %v8361_v37, 0.0 }
 0xcdf   : > { %v8273_v40 = vpop.f32.mrf.mxu2  ;;  %v8662_v49 = vpop.f32.mrf.mxu0 }
 0xce0   : > { %v8274_v31 = vadd.f32 %v8273_v40, %v17085_v50 }
 0xce2   : > { %v8362_v55 = vpop.f32.mrf.mxu3  ;;  %v8219_v57 = vpop.f32.mrf.mxu1 }
 0xce3   : > { %v8363_v46 = vadd.f32 %v8362_v55, %v8274_v31  ;;  %v8220_v39 = vadd.f32 %v8219_v57, %v8131_v44 }
 0xce5   : > { %v8462_v12 = vmax.f32 %v8220_v39, 0.0  ;;  %v8435_v47 = vmax.f32 %v8363_v46, 0.0 }
 0xce7   : > { %v8276_v10 = vpop.f32.mrf.mxu2  ;;  %v8494_v6 = vpack.c.bf16 %v8462_v12, %v8460_v35  ;;  %v8481_v63 = vpack.c.bf16 %v8435_v47, %v8433_v53  ;;  %v8664_v39 = vpop.f32.mrf.mxu0 }
 0xce8   : > { %v8277_v29 = vadd.f32 %v8276_v10, %v17085_v50  ;;  %v8653_v10 = vadd.f32 %v17187_v51, %v17182_v4 }
 0xcea   : > { %v8365_v22 = vpop.f32.mrf.mxu3  ;;  %v8726_v43 = vpop.f32.mrf.mxu1 }
 0xceb   : > { %v8727_v2 = vadd.f32 %v8726_v43, %v8638_v45  ;;  %v8366_v59 = vadd.f32 %v8365_v22, %v8277_v29 }
 0xced   : > { %8711 = vmatmul.bf16.gmra.mxu0 %v8494_v6  ;;  %8807 = vst.msk [vmem:[%s17195_s17] sm:$0xff] %vm8806_vm0, %v8727_v2  ;;  %8765 = vmatmul.bf16.gmra.mxu1 %v8481_v63  ;;  %v8437_v13 = vmax.f32 %v8366_v59, 0.0  ;;  %v8655_v2 = vadd.f32 %v17187_v51, %v17197_v30 }
 0xcef   : > { %v8278_v1 = vpop.f32.mrf.mxu2  ;;  %v8667_v53 = vpop.f32.mrf.mxu0 }
 0xcf0   : > { %v8279_v54 = vadd.f32 %v8278_v1, %v17085_v50 }
 0xcf2   : > { %v8367_v28 = vpop.f32.mrf.mxu3  ;;  %v8728_v23 = vpop.f32.mrf.mxu1 }
 0xcf3   : > { %v8368_v14 = vadd.f32 %v8367_v28, %v8279_v54  ;;  %v8729_v60 = vadd.f32 %v8728_v23, %v8640_v58 }
 0xcf5   : > { %8808 = vst.msk [vmem:[%s17195_s17 + $0x8] sm:$0xff] %vm8806_vm0, %v8729_v60  ;;  %v8439_v42 = vmax.f32 %v8368_v14, 0.0  ;;  %v8658_v60 = vadd.f32 %v17187_v51, %v17207_v36 }
 0xcf7   : > { %v8281_v62 = vpop.f32.mrf.mxu2  ;;  %v8483_v32 = vpack.c.bf16 %v8439_v42, %v8437_v13  ;;  %v8669_v59 = vpop.f32.mrf.mxu0 }
 0xcf8   : > { %v8282_v26 = vadd.f32 %v8281_v62, %v17085_v50 }
 0xcfa   : > { %v8370_v5 = vpop.f32.mrf.mxu3  ;;  %v8731_v15 = vpop.f32.mrf.mxu1 }
 0xcfb   : > { %v8732_v34 = vadd.f32 %v8731_v15, %v8643_v33  ;;  %v8371_v3 = vadd.f32 %v8370_v5, %v8282_v26 }
 0xcfd   : > { %8809 = vst.msk [vmem:[%s17195_s17 + $0x10] sm:$0xff] %vm8806_vm0, %v8732_v34  ;;  %8770 = vmatmul.bf16.gmra.mxu1 %v8483_v32  ;;  %v8441_v8 = vmax.f32 %v8371_v3, 0.0  ;;  %v8660_v32 = vadd.f32 %v17187_v51, %v17216_v0 }
 0xcff   : > { %v8283_v19 = vpop.f32.mrf.mxu2 }
 0xd00   : > { %v8284_v16 = vadd.f32 %v8283_v19, %v17085_v50  ;;  %v8672_v19 = vpop.f32.mrf.mxu0 }
 0xd02   : > { %v8372_v61 = vpop.f32.mrf.mxu3  ;;  %v8733_v21 = vpop.f32.mrf.mxu1 }
 0xd03   : > { %v8373_v20 = vadd.f32 %v8372_v61, %v8284_v16  ;;  %v8734_v25 = vadd.f32 %v8733_v21, %v8645_v11 }
 0xd05   : > { %8810 = vst.msk [vmem:[%s17195_s17 + $0x18] sm:$0xff] %vm8806_vm0, %v8734_v25  ;;  %v8443_v9 = vmax.f32 %v8373_v20, 0.0  ;;  %v8663_v25 = vadd.f32 %v17187_v51, %v8662_v49 }
 0xd07   : > { %v8286_v48 = vpop.f32.mrf.mxu2  ;;  %v8485_v18 = vpack.c.bf16 %v8443_v9, %v8441_v8 }
 0xd08   : > { %v8287_v17 = vadd.f32 %v8286_v48, %v17085_v50 }
 0xd0a   : > { %v8375_v56 = vpop.f32.mrf.mxu3  ;;  %v8736_v41 = vpop.f32.mrf.mxu1 }
 0xd0b   : > { %v8737_v40 = vadd.f32 %v8736_v41, %v8648_v7  ;;  %v8376_v38 = vadd.f32 %v8375_v56, %v8287_v17  ;;  %v8674_v56 = vpop.f32.mrf.mxu0 }
 0xd0d   : > { %8811 = vst.msk [vmem:[%s17195_s17 + $0x20] sm:$0xff] %vm8806_vm0, %v8737_v40  ;;  %8775 = vmatmul.bf16.gmra.mxu1 %v8485_v18  ;;  %v8445_v35 = vmax.f32 %v8376_v38, 0.0  ;;  %v8665_v18 = vadd.f32 %v17187_v51, %v8664_v39 }
 0xd0f   : > { %v8288_v31 = vpop.f32.mrf.mxu2 }
 0xd10   : > { %v8289_v55 = vadd.f32 %v8288_v31, %v17085_v50 }
 0xd12   : > { %v8377_v44 = vpop.f32.mrf.mxu3  ;;  %v8738_v24 = vpop.f32.mrf.mxu1 }
 0xd13   : > { %v8378_v57 = vadd.f32 %v8377_v44, %v8289_v55  ;;  %v8739_v46 = vadd.f32 %v8738_v24, %v8650_v52  ;;  %v8677_v52 = vpop.f32.mrf.mxu0 }
 0xd15   : > { %8812 = vst.msk [vmem:[%s17195_s17 + $0x28] sm:$0xff] %vm8806_vm0, %v8739_v46  ;;  %v8447_v37 = vmax.f32 %v8378_v57, 0.0  ;;  %v8668_v46 = vadd.f32 %v17187_v51, %v8667_v53 }
 0xd17   : > { %v8291_v12 = vpop.f32.mrf.mxu2  ;;  %v8487_v27 = vpack.c.bf16 %v8447_v37, %v8445_v35  ;;  %v8670_v35 = vadd.f32 %v17187_v51, %v8669_v59  ;;  %v8678_v59 = vadd.f32 %v17187_v51, %v8677_v52 }
 0xd18   : > { %v8292_v1 = vadd.f32 %v8291_v12, %v17085_v50 }
 0xd1a   : > { %v8380_v47 = vpop.f32.mrf.mxu3  ;;  %v8741_v22 = vpop.f32.mrf.mxu1 }
 0xd1b   : > { %v8742_v45 = vadd.f32 %v8741_v22, %v8653_v10  ;;  %v8381_v58 = vadd.f32 %v8380_v47, %v8292_v1  ;;  %v8679_v22 = vpop.f32.mrf.mxu0  ;;  %v8673_v1 = vadd.f32 %v17187_v51, %v8672_v19 }
 0xd1d   : > { %8813 = vst.msk [vmem:[%s17195_s17 + $0x30] sm:$0xff] %vm8806_vm0, %v8742_v45  ;;  %8780 = vmatmul.bf16.gmra.mxu1 %v8487_v27  ;;  %v8449_v42 = vmax.f32 %v8381_v58, 0.0 }
 0xd1f   : > { %v8293_v43 = vpop.f32.mrf.mxu2 }
 0xd20   : > { %v8294_v6 = vadd.f32 %v8293_v43, %v17085_v50 }
 0xd22   : > { %v8382_v63 = vpop.f32.mrf.mxu3  ;;  %v8743_v4 = vpop.f32.mrf.mxu1 }
 0xd23   : > { %v8383_v54 = vadd.f32 %v8382_v63, %v8294_v6  ;;  %v8744_v28 = vadd.f32 %v8743_v4, %v8655_v2 }
 0xd25   : > { %8814 = vst.msk [vmem:[%s17195_s17 + $0x38] sm:$0xff] %vm8806_vm0, %v8744_v28  ;;  %v8451_v29 = vmax.f32 %v8383_v54, 0.0 }
 0xd27   : > { %v8296_v23 = vpop.f32.mrf.mxu2  ;;  %v8489_v30 = vpack.c.bf16 %v8451_v29, %v8449_v42  ;;  %v8682_v29 = vpop.f32.mrf.mxu0 }
 0xd28   : > { %v8297_v34 = vadd.f32 %v8296_v23, %v17085_v50 }
 0xd2a   : > { %v8385_v14 = vpop.f32.mrf.mxu3  ;;  %v8746_v62 = vpop.f32.mrf.mxu1 }
 0xd2b   : > { %v8747_v5 = vadd.f32 %v8746_v62, %v8658_v60  ;;  %v8386_v11 = vadd.f32 %v8385_v14, %v8297_v34 }
 0xd2d   : > { %8815 = vst.msk [vmem:[%s17195_s17 + $0x40] sm:$0xff] %vm8806_vm0, %v8747_v5  ;;  %8785 = vmatmul.bf16.gmra.mxu1 %v8489_v30  ;;  %v8453_v3 = vmax.f32 %v8386_v11, 0.0  ;;  %v8680_v5 = vadd.f32 %v17187_v51, %v8679_v22 }
 0xd2f   : > { %v8298_v33 = vpop.f32.mrf.mxu2  ;;  %v8684_v60 = vpop.f32.mrf.mxu0 }
 0xd30   : > { %v8299_v13 = vadd.f32 %v8298_v33, %v17085_v50  ;;  %v8685_v19 = vadd.f32 %v17187_v51, %v8684_v60 }
 0xd32   : > { %v8387_v15 = vpop.f32.mrf.mxu3  ;;  %v8748_v36 = vpop.f32.mrf.mxu1 }
 0xd33   : > { %v8388_v16 = vadd.f32 %v8387_v15, %v8299_v13  ;;  %v8749_v61 = vadd.f32 %v8748_v36, %v8660_v32  ;;  %v8683_v15 = vadd.f32 %v17187_v51, %v8682_v29 }
 0xd35   : > { %8816 = vst.msk [vmem:[%s17195_s17 + $0x48] sm:$0xff] %vm8806_vm0, %v8749_v61  ;;  %v8455_v26 = vmax.f32 %v8388_v16, 0.0 }
 0xd37   : > { %v8301_v21 = vpop.f32.mrf.mxu2  ;;  %v8491_v48 = vpack.c.bf16 %v8455_v26, %v8453_v3  ;;  %v8687_v30 = vpop.f32.mrf.mxu0 }
 0xd38   : > { %v8302_v40 = vadd.f32 %v8301_v21, %v17085_v50  ;;  %v8688_v26 = vadd.f32 %v17187_v51, %v8687_v30 }
 0xd3a   : > { %v8390_v20 = vpop.f32.mrf.mxu3  ;;  %v8751_v9 = vpop.f32.mrf.mxu1 }
 0xd3b   : > { %v8752_v0 = vadd.f32 %v8751_v9, %v8663_v25  ;;  %v8391_v44 = vadd.f32 %v8390_v20, %v8302_v40 }
 0xd3d   : > { %8817 = vst.msk [vmem:[%s17195_s17 + $0x50] sm:$0xff] %vm8806_vm0, %v8752_v0  ;;  %8790 = vmatmul.bf16.gmra.mxu1 %v8491_v48  ;;  %v8457_v38 = vmax.f32 %v8391_v44, 0.0 }
 0xd3f   : > { %v8303_v7 = vpop.f32.mrf.mxu2  ;;  %v8689_v32 = vpop.f32.mrf.mxu0 }
 0xd40   : > { %v8304_v8 = vadd.f32 %v8303_v7, %v17085_v50  ;;  %v8690_v3 = vadd.f32 %v17187_v51, %v8689_v32 }
 0xd42   : > { %v8392_v41 = vpop.f32.mrf.mxu3  ;;  %v8753_v31 = vpop.f32.mrf.mxu1 }
 0xd43   : > { %v8393_v49 = vadd.f32 %v8392_v41, %v8304_v8  ;;  %v8754_v55 = vadd.f32 %v8753_v31, %v8665_v18 }
 0xd45   : > { %8818 = vst.msk [vmem:[%s17195_s17 + $0x58] sm:$0xff] %vm8806_vm0, %v8754_v55  ;;  %v8459_v17 = vmax.f32 %v8393_v49, 0.0 }
 0xd47   : > { %v8306_v24 = vpop.f32.mrf.mxu2  ;;  %v8493_v12 = vpack.c.bf16 %v8459_v17, %v8457_v38  ;;  %v8692_v11 = vpop.f32.mrf.mxu0 }
 0xd48   : > { %v8307_v27 = vadd.f32 %v8306_v24, %v17085_v50 }
 0xd4a   : > { %v8395_v57 = vpop.f32.mrf.mxu3  ;;  %v8756_v37 = vpop.f32.mrf.mxu1 }
 0xd4b   : > { %v8757_v39 = vadd.f32 %v8756_v37, %v8668_v46  ;;  %v8396_v63 = vadd.f32 %v8395_v57, %v8307_v27 }
 0xd4d   : > { %8819 = vst.msk [vmem:[%s17195_s17 + $0x60] sm:$0xff] %vm8806_vm0, %v8757_v39  ;;  %8795 = vmatmul.bf16.gmra.mxu1 %v8493_v12  ;;  %v8461_v4 = vmax.f32 %v8396_v63, 0.0 }
 0xd4f   : > { %v8308_v47 = vpop.f32.mrf.mxu2  ;;  %v8694_v25 = vpop.f32.mrf.mxu0 }
 0xd50   : > { %v8309_v10 = vadd.f32 %v8308_v47, %v17085_v50  ;;  %v8675_v50 = vadd.f32 %v17187_v51, %v8674_v56  ;;  %v8693_v56 = vadd.f32 %v17187_v51, %v8692_v11  ;;  %v8695_v41 = vadd.f32 %v17187_v51, %v8694_v25 }
 0xd52   : > { %v8397_v45 = vpop.f32.mrf.mxu3  ;;  %v8758_v43 = vpop.f32.mrf.mxu1 }
 0xd53   : > { %v8398_v53 = vadd.f32 %v8397_v45, %v8309_v10  ;;  %v8759_v6 = vadd.f32 %v8758_v43, %v8670_v35 }
 0xd55   : > { %8820 = vst.msk [vmem:[%s17195_s17 + $0x68] sm:$0xff] %vm8806_vm0, %v8759_v6  ;;  %v8463_v2 = vmax.f32 %v8398_v53, 0.0 }
 0xd57   : > { %v8495_v28 = vpack.c.bf16 %v8463_v2, %v8461_v4  ;;  %v8697_v0 = vpop.f32.mrf.mxu0 }
 0xd58   : > { %v8698_v49 = vadd.f32 %v17187_v51, %v8697_v0 }
 0xd5a   : > { %v8761_v54 = vpop.f32.mrf.mxu1 }
 0xd5b   : > { %v8762_v58 = vadd.f32 %v8761_v54, %v8673_v1 }
 0xd5d   : > { %8821 = vst.msk [vmem:[%s17195_s17 + $0x70] sm:$0xff] %vm8806_vm0, %v8762_v58  ;;  %8800 = vmatmul.bf16.gmra.mxu1 %v8495_v28 }
 0xd5f   : > { %v8699_v18 = vpop.f32.mrf.mxu0 }
 0xd60   : > { %v8700_v17 = vadd.f32 %v17187_v51, %v8699_v18 }
 0xd62   : > { %v8763_v23 = vpop.f32.mrf.mxu1 }
 0xd63   : > { %v8764_v14 = vadd.f32 %v8763_v23, %v8675_v50 }
 0xd65   : > { %8822 = vst.msk [vmem:[%s17195_s17 + $0x78] sm:$0xff] %vm8806_vm0, %v8764_v14 }
 0xd67   : > { %v8702_v52 = vpop.f32.mrf.mxu0 }
 0xd68   : > { %v8703_v38 = vadd.f32 %v17187_v51, %v8702_v52 }
 0xd6a   : > { %v8766_v42 = vpop.f32.mrf.mxu1 }
 0xd6b   : > { %v8767_v62 = vadd.f32 %v8766_v42, %v8678_v59 }
 0xd6d   : > { %8823 = vst.msk [vmem:[%s17195_s17 + $0x80] sm:$0xff] %vm8806_vm0, %v8767_v62 }
 0xd6f   : > { %v8704_v46 = vpop.f32.mrf.mxu0 }
 0xd70   : > { %v8705_v47 = vadd.f32 %v17187_v51, %v8704_v46 }
 0xd72   : > { %v8768_v33 = vpop.f32.mrf.mxu1 }
 0xd73   : > { %v8769_v13 = vadd.f32 %v8768_v33, %v8680_v5 }
 0xd75   : > { %8824 = vst.msk [vmem:[%s17195_s17 + $0x88] sm:$0xff] %vm8806_vm0, %v8769_v13 }
 0xd77   : > { %v8707_v39 = vpop.f32.mrf.mxu0 }
 0xd78   : > { %v8708_v22 = vadd.f32 %v17187_v51, %v8707_v39 }
 0xd7a   : > { %v8771_v34 = vpop.f32.mrf.mxu1 }
 0xd7b   : > { %v8772_v36 = vadd.f32 %v8771_v34, %v8683_v15 }
 0xd7d   : > { %8825 = vst.msk [vmem:[%s17195_s17 + $0x90] sm:$0xff] %vm8806_vm0, %v8772_v36 }
 0xd7f   : > { %v8709_v27 = vpop.f32.mrf.mxu0 }
 0xd80   : > { %v8710_v53 = vadd.f32 %v17187_v51, %v8709_v27 }
 0xd82   : > { %v8773_v16 = vpop.f32.mrf.mxu1 }
 0xd83   : > { %v8774_v61 = vadd.f32 %v8773_v16, %v8685_v19 }
 0xd85   : > { %8826 = vst.msk [vmem:[%s17195_s17 + $0x98] sm:$0xff] %vm8806_vm0, %v8774_v61 }
 0xd87   : > { %v8712_v2 = vpop.f32.mrf.mxu0 }
 0xd88   : > { %v8713_v1 = vadd.f32 %v17187_v51, %v8712_v2 }
 0xd8a   : > { %v8776_v21 = vpop.f32.mrf.mxu1 }
 0xd8b   : > { %v8777_v20 = vadd.f32 %v8776_v21, %v8688_v26 }
 0xd8d   : > { %8827 = vst.msk [vmem:[%s17195_s17 + $0xa0] sm:$0xff] %vm8806_vm0, %v8777_v20 }
 0xd8f   : > { %v8714_v28 = vpop.f32.mrf.mxu0 }
 0xd90   : > { %v8715_v58 = vadd.f32 %v17187_v51, %v8714_v28 }
 0xd92   : > { %v8778_v9 = vpop.f32.mrf.mxu1 }
 0xd93   : > { %v8779_v48 = vadd.f32 %v8778_v9, %v8690_v3 }
 0xd95   : > { %8828 = vst.msk [vmem:[%s17195_s17 + $0xa8] sm:$0xff] %vm8806_vm0, %v8779_v48 }
 0xd9a   : > { %v8781_v7 = vpop.f32.mrf.mxu1 }
 0xd9b   : > { %v8782_v8 = vadd.f32 %v8781_v7, %v8693_v56 }
 0xd9d   : > { %8829 = vst.msk [vmem:[%s17195_s17 + $0xb0] sm:$0xff] %vm8806_vm0, %v8782_v8 }
 0xda2   : > { %v8783_v40 = vpop.f32.mrf.mxu1 }
 0xda3   : > { %v8784_v31 = vadd.f32 %v8783_v40, %v8695_v41 }
 0xda5   : > { %8830 = vst.msk [vmem:[%s17195_s17 + $0xb8] sm:$0xff] %vm8806_vm0, %v8784_v31 }
 0xdaa   : > { %v8786_v55 = vpop.f32.mrf.mxu1 }
 0xdab   : > { %v8787_v44 = vadd.f32 %v8786_v55, %v8698_v49 }
 0xdad   : > { %8831 = vst.msk [vmem:[%s17195_s17 + $0xc0] sm:$0xff] %vm8806_vm0, %v8787_v44 }
 0xdb2   : > { %v8788_v24 = vpop.f32.mrf.mxu1 }
 0xdb3   : > { %v8789_v57 = vadd.f32 %v8788_v24, %v8700_v17 }
 0xdb5   : > { %8832 = vst.msk [vmem:[%s17195_s17 + $0xc8] sm:$0xff] %vm8806_vm0, %v8789_v57 }
 0xdba   : > { %v8791_v37 = vpop.f32.mrf.mxu1 }
 0xdbb   : > { %v8792_v12 = vadd.f32 %v8791_v37, %v8703_v38 }
 0xdbd   : > { %8833 = vst.msk [vmem:[%s17195_s17 + $0xd0] sm:$0xff] %vm8806_vm0, %v8792_v12 }
 0xdc2   : > { %v8793_v10 = vpop.f32.mrf.mxu1 }
 0xdc3   : > { %v8794_v35 = vadd.f32 %v8793_v10, %v8705_v47 }
 0xdc5   : > { %8834 = vst.msk [vmem:[%s17195_s17 + $0xd8] sm:$0xff] %vm8806_vm0, %v8794_v35 }
 0xdca   : > { %v8796_v45 = vpop.f32.mrf.mxu1 }
 0xdcb   : > { %v8797_v43 = vadd.f32 %v8796_v45, %v8708_v22 }
 0xdcd   : > { %8835 = vst.msk [vmem:[%s17195_s17 + $0xe0] sm:$0xff] %vm8806_vm0, %v8797_v43 }
 0xdd2   : > { %v8798_v6 = vpop.f32.mrf.mxu1 }
 0xdd3   : > { %v8799_v63 = vadd.f32 %v8798_v6, %v8710_v53 }
 0xdd5   : > { %8836 = vst.msk [vmem:[%s17195_s17 + $0xe8] sm:$0xff] %vm8806_vm0, %v8799_v63 }
 0xdda   : > { %v8801_v4 = vpop.f32.mrf.mxu1 }
 0xddb   : > { %v8802_v54 = vadd.f32 %v8801_v4, %v8713_v1 }
 0xddd   : > { %8837 = vst.msk [vmem:[%s17195_s17 + $0xf0] sm:$0xff] %vm8806_vm0, %v8802_v54 }
 0xde2   : > { %v8803_v29 = vpop.f32.mrf.mxu1 }
 0xde3   : > { %v8804_v50 = vadd.f32 %v8803_v29, %v8715_v58 }
 0xde5   : > { %8838 = vst.msk [vmem:[%s17195_s17 + $0xf8] sm:$0xff] %vm8806_vm0, %v8804_v50 }
 0xde6 PF: > { %s31_s24 = sadd.s32 1, %s11407_s24  }
 0xde7   : > { %p28_p7 = scmp.ge.s32.totalorder %s31_s24, 4  }
 0xde9   :  { %30 = sbr.rel (!%p28_p7) target bundleno = 12 (0xc), region = 147 }
 0xdee   :  { %8861 = vsyncpa [#allocation3], 1 }
 0xdef   :  { %8863 = vsyncpa [#allocation3 + $0x1], 1 }
 0xdf0   :  { %8864 = vsyncpa [#allocation5], 1 }
 0xdf1   :  { %8865 = vsyncpa [#allocation8], 1 }
 0xdf2   :  { %8866 = vsyncpa [#allocation11], 1 }

</bundles_post_ra>
